<compile_context>
chip_gen: v7x
topology: tpu7x:2x2x1
jax: 0.10.0
libtpu: 0.0.40
codegen_flags: <defaults>
</compile_context>

<pallas_src>
import jax
import jax.numpy as jnp
from jax.experimental import pallas as pl
from jax.experimental.pallas import tpu as pltpu

# ---- small, module-consistent hyperparameters ----
I = 2                    # number of instruments (global `I` in coconet.py)
P = 16                   # pitch dim / LSTM hidden size (global `P`)
T = 8                    # time steps
N = 2                    # batch
HIDDEN = 32              # hidden_size
N_LAYERS = 2             # -> n_layers // 2 == 1 residual Unit
N_UNITS = N_LAYERS // 2
CHORD_NUM = 12
CHORD_DIM = 4
CHORD_NUM_PERTRACK = 3

NPARTS = 2 * I + 1       # 5 stacked "parts" all fed through lstm[0]
NB = N * NPARTS          # LSTM batch (batch-major, part-minor) -> lanes
M = T * P                # spatial pixels per batch element -> 128
PAD_TOP = 24             # sublane zero-padding above/below conv scratch (>= P+1)
APAD_ROWS = M + 2 * PAD_TOP


# ============================== fused Pallas kernel ==============================

def rnnnet_fused_kernel(
    lstm_base_ref,                     # [T, P, NB]  parts stack, chord cols = 0
    embT_ref,                          # [12, N]     flattened chord embedding, transposed
    sel_ref,                           # [N, NB]     scatters chord_vec into part column 4
    chord_w_ref, chord_b_ref,          # [P, 12], [P, 1]
    w_l0_ref, b_l0_ref,                # [4P, 2P], [4P, 1]   (gates reordered i,f,o,g)
    w_l1_ref, b_l1_ref,
    w_init_ref, b_init_ref,            # [5, H], [1, H]      (BN folded)
    wu1_ref, bu1_ref, wu2_ref, bu2_ref,  # [U,9,H,H], [U,1,H] (BN folded)
    w_pitch_ref, b_pitch_ref,          # [P, P], [P, 1]
    w_down_ref, b_down_ref,            # [H, I], [1, I]
    mask_l_ref, mask_r_ref,            # [M, 1] pitch-boundary masks for the 3x3 conv
    out_ref,                           # [N*I, T*P]  lane-dense output
    apad_ref):                         # VMEM scratch [APAD_ROWS, H]
  f32 = jnp.float32

  # ---------- chord linear, computed directly in transposed [P, N] form ----------
  chord_vec_t = (jnp.dot(chord_w_ref[...], embT_ref[...],
                         preferred_element_type=f32) + chord_b_ref[...])      # [P, N]
  # place chord_vec into lane column n*NPARTS + 4 of the LSTM batch
  chord_pad = jnp.dot(chord_vec_t, sel_ref[...],
                      preferred_element_type=f32)                             # [P, NB]

  # ---------- 2-layer LSTM: layout [P, NB], fully unrolled, register state ----------
  w0 = w_l0_ref[...]; b0 = b_l0_ref[...]
  w1 = w_l1_ref[...]; b1 = b_l1_ref[...]

  def cell(xt, h, c, w, b):
    xh = jnp.concatenate([xt, h], axis=0)                         # [2P, NB]
    g = jnp.dot(w, xh, preferred_element_type=f32) + b            # [4P, NB]
    sig = jax.nn.sigmoid(g[0:3 * P, :])                           # gates (i, f, o)
    i_g = sig[0:P, :]
    f_g = sig[P:2 * P, :]
    o_g = sig[2 * P:3 * P, :]
    g_g = jnp.tanh(g[3 * P:4 * P, :])
    c_new = f_g * c + i_g * g_g
    h_new = o_g * jnp.tanh(c_new)
    return h_new, c_new

  h0 = c0 = h1 = c1 = jnp.zeros((P, NB), f32)
  hs = []
  for t in range(T):                      # static unroll over time
    xt = lstm_base_ref[t] + chord_pad
    h0, c0 = cell(xt, h0, c0, w0, b0)
    h1, c1 = cell(h0, h1, c1, w1, b1)
    hs.append(h1)                         # [P, NB] top-layer output per step

  # ---------- conv stack ----------
  apad_ref[...] = jnp.zeros_like(apad_ref)   # zero the pads once; borders never rewritten
  mask_l = mask_l_ref[...]
  mask_r = mask_r_ref[...]
  w_init = w_init_ref[...]; b_init = b_init_ref[...]
  w_pitch = w_pitch_ref[...]; b_pitch = b_pitch_ref[...]
  w_down = w_down_ref[...]; b_down = b_down_ref[...]

  def conv3x3(w_ref, u):
    """SAME 3x3 conv on the [M, H] tile living in apad_ref (9 shifted MXU taps)."""
    acc = jnp.zeros((M, HIDDEN), f32)
    for k in range(9):
      kh, kw = divmod(k, 3)
      s = PAD_TOP - P - 1 + kh * P + kw          # row shift for tap (kh, kw)
      patch = apad_ref[s:s + M, :]
      if kw == 0:
        patch = patch * mask_l                   # left neighbour invalid at p == 0
      elif kw == 2:
        patch = patch * mask_r                   # right neighbour invalid at p == P-1
      acc = acc + jnp.dot(patch, w_ref[u, k], preferred_element_type=f32)
    return acc

  for n in range(N):
    # initial 1x1 conv (parts -> HIDDEN) + folded BN + ReLU.
    # Part channels are a contiguous lane slice of the [P, NB] LSTM outputs.
    y5 = jnp.concatenate(
        [hs[t][:, n * NPARTS:(n + 1) * NPARTS] for t in range(T)], axis=0)    # [M, 5]
    cur = jnp.maximum(
        jnp.dot(y5, w_init, preferred_element_type=f32) + b_init, 0.0)        # [M, H]

    # residual Units: conv3x3 -> ReLU -> conv3x3 -> +residual -> ReLU
    for u in range(N_UNITS):
      apad_ref[PAD_TOP:PAD_TOP + M, :] = cur
      y1 = jnp.maximum(conv3x3(wu1_ref, u) + bu1_ref[u], 0.0)
      apad_ref[PAD_TOP:PAD_TOP + M, :] = y1
      y2 = conv3x3(wu2_ref, u) + bu2_ref[u]
      cur = jnp.maximum(y2 + cur, 0.0)

    # pitch 1x1 conv: mixes the pitch (sublane) axis within each time step
    pb = jnp.concatenate(
        [jnp.dot(w_pitch, cur[t * P:(t + 1) * P, :],
                 preferred_element_type=f32) + b_pitch
         for t in range(T)], axis=0)                                          # [M, H]

    # instrument down-projection, stored lane-dense ([I rows, 128 lanes])
    dn = jnp.dot(pb, w_down, preferred_element_type=f32) + b_down             # [M, I]
    out_ref[n * I:(n + 1) * I, :] = dn.T                                      # [I, M]


# ============================== wrapper ==============================

def _vmem():
  return pl.BlockSpec(memory_space=pltpu.MemorySpace.VMEM)


def rnnnet_forward(prep, x, C, chord):
  """x: [N, I, T, P] f32, C: [N, I, T] f32, chord: [N, chord_num_pertrack] i32.

  Returns [N, I, T, P] (same axis convention as the torch module).
  """
  # chord embedding gather (data-dependent gather stays in XLA glue)
  embT = prep['chord_emb'][chord].reshape(N, CHORD_DIM * CHORD_NUM_PERTRACK).T

  # LSTM input stack in the kernel's [T, P, (batch, part)] layout; chord cols = 0.
  xT = jnp.transpose(x, (2, 3, 0, 1)).astype(jnp.float32)                # [T, P, N, I]
  Ct = jnp.transpose(C, (2, 0, 1))[:, None, :, :].astype(jnp.float32)    # [T, 1, N, I]
  cx = Ct * xT                                                           # C * x parts
  cb = jnp.broadcast_to(Ct, (T, P, N, I))                                # C parts
  zc = jnp.zeros((T, P, N, 1), jnp.float32)                              # chord slot
  lstm_base = jnp.concatenate([cx, cb, zc], axis=3).reshape(T, P, NB)

  args = (lstm_base, embT.astype(jnp.float32), prep['sel'],
          prep['chord_w'], prep['chord_b'],
          prep['w_l0'], prep['b_l0'], prep['w_l1'], prep['b_l1'],
          prep['w_init'], prep['b_init'],
          prep['wu1'], prep['bu1'], prep['wu2'], prep['bu2'],
          prep['w_pitch'], prep['b_pitch'], prep['w_down'], prep['b_down'],
          prep['mask_l'], prep['mask_r'])

  out = pl.pallas_call(
      rnnnet_fused_kernel,
      out_shape=jax.ShapeDtypeStruct((N * I, T * P), jnp.float32),
      in_specs=[_vmem() for _ in args],
      out_specs=_vmem(),
      scratch_shapes=[pltpu.VMEM((APAD_ROWS, HIDDEN), jnp.float32)],
  )(*args)

  # [N*I, T*P] -> [N, I, T, P] is a pure metadata reshape (no HBM transpose).
  return out.reshape(N, I, T, P)


# ============================== parameters ==============================

def init_params(key):
  """Synthetic parameters in (roughly) native PyTorch layouts."""
  keys = jax.random.split(key, 64)
  it = iter(keys)

  def rnd(shape, scale=0.1):
    return (scale * jax.random.normal(next(it), shape)).astype(jnp.float32)

  def bn(c):  # eval-mode BN -> per-channel (scale, bias)
    gamma = 1.0 + rnd((c,))
    beta = rnd((c,))
    mean = rnd((c,))
    var = 1.0 + jnp.abs(rnd((c,)))
    scale = (gamma / jnp.sqrt(var + 1e-5)).astype(jnp.float32)
    bias = (beta - mean * scale).astype(jnp.float32)
    return scale, bias

  p = {}
  p['chord_emb'] = rnd((CHORD_NUM, CHORD_DIM), 0.5)
  p['chord_w'] = rnd((P, CHORD_DIM * CHORD_NUM_PERTRACK))     # Linear [out, in]
  p['chord_b'] = rnd((P,))
  # lstm[0] only (the reference forward never uses the others): 2 layers,
  # torch layout [4P, P] with gate rows (i, f, g, o).
  p['wih0'] = rnd((4 * P, P)); p['whh0'] = rnd((4 * P, P))
  p['bih0'] = rnd((4 * P,));   p['bhh0'] = rnd((4 * P,))
  p['wih1'] = rnd((4 * P, P)); p['whh1'] = rnd((4 * P, P))
  p['bih1'] = rnd((4 * P,));   p['bhh1'] = rnd((4 * P,))
  # initial 1x1 conv (2I+1 -> HIDDEN) + BN
  p['w_init'] = rnd((HIDDEN, NPARTS)); p['b_init'] = rnd((HIDDEN,))
  p['bn_init'] = bn(HIDDEN)
  # residual Units (torch conv weight layout [Cout, Cin, 3, 3])
  units = []
  for _ in range(N_UNITS):
    units.append({
        'w1': rnd((HIDDEN, HIDDEN, 3, 3)), 'b1': rnd((HIDDEN,)), 'bn1': bn(HIDDEN),
        'w2': rnd((HIDDEN, HIDDEN, 3, 3)), 'b2': rnd((HIDDEN,)), 'bn2': bn(HIDDEN),
    })
  p['units'] = units
  p['w_pitch'] = rnd((P, P)); p['b_pitch'] = rnd((P,))        # Conv2d(P,P,1) [out,in]
  p['w_down'] = rnd((I, HIDDEN)); p['b_down'] = rnd((I,))     # Conv2d(H,I,1) [out,in]
  return p


def prepare_params(p):
  """Pack/fold params into the fused-kernel layout (all done once, on the host).

  - LSTM: stack [W_ih | W_hh] -> [4P, 2P], sum the two biases, and reorder the
    gate rows to (i, f, o, g) so one sigmoid covers a contiguous 3P block.
  - Conv+BN pairs: fold eval-mode BN scale/bias into the conv weights/bias.
  - Transpose weights so every contraction axis sits where the kernel needs it.
  """
  perm = jnp.concatenate([jnp.arange(0, P), jnp.arange(P, 2 * P),
                          jnp.arange(3 * P, 4 * P), jnp.arange(2 * P, 3 * P)])

  def pack_lstm(wih, whh, bih, bhh):
    w = jnp.concatenate([wih, whh], axis=1)[perm]               # [4P, 2P]
    b = (bih + bhh)[perm].reshape(4 * P, 1)
    return w.astype(jnp.float32), b.astype(jnp.float32)

  def fold_conv1x1(w_oi, b, bn):                                # w_oi: [Cout, Cin]
    scale, bias = bn
    w = (w_oi * scale[:, None]).T                               # -> [Cin, Cout]
    bb = (b * scale + bias).reshape(1, -1)
    return w.astype(jnp.float32), bb.astype(jnp.float32)

  def fold_conv3x3(w_t, b, bn):                                 # w_t: [Cout, Cin, 3, 3]
    scale, bias = bn
    w = w_t * scale[:, None, None, None]
    w = jnp.transpose(w, (2, 3, 1, 0)).reshape(9, HIDDEN, HIDDEN)   # [k, Cin, Cout]
    bb = (b * scale + bias).reshape(1, HIDDEN)
    return w.astype(jnp.float32), bb.astype(jnp.float32)

  out = {}
  out['chord_emb'] = p['chord_emb']
  out['chord_w'] = p['chord_w'].astype(jnp.float32)
  out['chord_b'] = p['chord_b'].reshape(P, 1).astype(jnp.float32)
  out['w_l0'], out['b_l0'] = pack_lstm(p['wih0'], p['whh0'], p['bih0'], p['bhh0'])
  out['w_l1'], out['b_l1'] = pack_lstm(p['wih1'], p['whh1'], p['bih1'], p['bhh1'])
  out['w_init'], out['b_init'] = fold_conv1x1(p['w_init'], p['b_init'], p['bn_init'])
  wu1, bu1, wu2, bu2 = [], [], [], []
  for u in p['units']:
    a, b_ = fold_conv3x3(u['w1'], u['b1'], u['bn1']); wu1.append(a); bu1.append(b_)
    a, b_ = fold_conv3x3(u['w2'], u['b2'], u['bn2']); wu2.append(a); bu2.append(b_)
  out['wu1'] = jnp.stack(wu1); out['bu1'] = jnp.stack(bu1)
  out['wu2'] = jnp.stack(wu2); out['bu2'] = jnp.stack(bu2)
  out['w_pitch'] = p['w_pitch'].astype(jnp.float32)             # [P, P] (out, in)
  out['b_pitch'] = p['b_pitch'].reshape(P, 1).astype(jnp.float32)
  out['w_down'] = p['w_down'].T.astype(jnp.float32)             # [H, I]
  out['b_down'] = p['b_down'].reshape(1, I).astype(jnp.float32)

  # constants used by the kernel
  sel = jnp.zeros((N, NB), jnp.float32)
  for nn in range(N):
    sel = sel.at[nn, nn * NPARTS + 2 * I].set(1.0)              # chord part column
  out['sel'] = sel
  r = jnp.arange(M) % P
  out['mask_l'] = (r != 0).astype(jnp.float32).reshape(M, 1)
  out['mask_r'] = (r != P - 1).astype(jnp.float32).reshape(M, 1)
  return out


# ============================== main ==============================

if __name__ == "__main__":
  key = jax.random.PRNGKey(0)
  kp, kx, kc, kch = jax.random.split(key, 4)
  params = prepare_params(init_params(kp))

  x = jax.random.normal(kx, (N, I, T, P), jnp.float32)          # pitch rolls
  C = (jax.random.uniform(kc, (N, I, T)) > 0.5).astype(jnp.float32)
  chord = jax.random.randint(kch, (N, CHORD_NUM_PERTRACK), 0, CHORD_NUM, jnp.int32)

  out = jax.jit(rnnnet_forward)(params, x, C, chord)
  out = jax.block_until_ready(out)
  assert out.shape == (N, I, T, P) and out.dtype == jnp.float32
  assert bool(jnp.all(jnp.isfinite(out)))
  print("KERNEL_OK")
</pallas_src>

<mosaic_0001>
module attributes {stable_mosaic.version = 11 : i64} {
  func.func @rnnnet_fused_kernel(%arg0: memref<8x16x10xf32, #tpu.memory_space<vmem>>, %arg1: memref<12x2xf32, #tpu.memory_space<vmem>>, %arg2: memref<2x10xf32, #tpu.memory_space<vmem>>, %arg3: memref<16x12xf32, #tpu.memory_space<vmem>>, %arg4: memref<16x1xf32, #tpu.memory_space<vmem>>, %arg5: memref<64x32xf32, #tpu.memory_space<vmem>>, %arg6: memref<64x1xf32, #tpu.memory_space<vmem>>, %arg7: memref<64x32xf32, #tpu.memory_space<vmem>>, %arg8: memref<64x1xf32, #tpu.memory_space<vmem>>, %arg9: memref<5x32xf32, #tpu.memory_space<vmem>>, %arg10: memref<1x32xf32, #tpu.memory_space<vmem>>, %arg11: memref<1x9x32x32xf32, #tpu.memory_space<vmem>>, %arg12: memref<1x1x32xf32, #tpu.memory_space<vmem>>, %arg13: memref<1x9x32x32xf32, #tpu.memory_space<vmem>>, %arg14: memref<1x1x32xf32, #tpu.memory_space<vmem>>, %arg15: memref<16x16xf32, #tpu.memory_space<vmem>>, %arg16: memref<16x1xf32, #tpu.memory_space<vmem>>, %arg17: memref<32x2xf32, #tpu.memory_space<vmem>>, %arg18: memref<1x2xf32, #tpu.memory_space<vmem>>, %arg19: memref<128x1xf32, #tpu.memory_space<vmem>>, %arg20: memref<128x1xf32, #tpu.memory_space<vmem>>, %arg21: memref<4x128xf32, #tpu.memory_space<vmem>>, %arg22: memref<176x32xf32, #tpu.memory_space<vmem>>) attributes {dimension_semantics = [], scalar_prefetch = 0 : i64, scratch_operands = 1 : i64, tpu.core_type = #tpu.core_type<tc>} {
    %c0 = arith.constant 0 : index
    %c0_0 = arith.constant 0 : index
    %0 = vector.load %arg3[%c0, %c0_0] : memref<16x12xf32, #tpu.memory_space<vmem>>, vector<16x12xf32>
    %c0_1 = arith.constant 0 : index
    %c0_2 = arith.constant 0 : index
    %1 = vector.load %arg1[%c0_1, %c0_2] : memref<12x2xf32, #tpu.memory_space<vmem>>, vector<12x2xf32>
    %cst = arith.constant dense<0.000000e+00> : vector<16x2xf32>
    %2 = tpu.matmul %0, %1, %cst {dimension_numbers = #tpu.dot_dimension_numbers<[1], [0], [0], [1], [0, 0, 1, 1], [], []>} : vector<16x12xf32>, vector<12x2xf32>, vector<16x2xf32> -> vector<16x2xf32>
    %c0_3 = arith.constant 0 : index
    %c0_4 = arith.constant 0 : index
    %3 = vector.load %arg4[%c0_3, %c0_4] : memref<16x1xf32, #tpu.memory_space<vmem>>, vector<16x1xf32>
    %4 = vector.broadcast %3 : vector<16x1xf32> to vector<16x2xf32>
    %5 = arith.addf %2, %4 : vector<16x2xf32>
    %c0_5 = arith.constant 0 : index
    %c0_6 = arith.constant 0 : index
    %6 = vector.load %arg2[%c0_5, %c0_6] : memref<2x10xf32, #tpu.memory_space<vmem>>, vector<2x10xf32>
    %cst_7 = arith.constant dense<0.000000e+00> : vector<16x10xf32>
    %7 = tpu.matmul %5, %6, %cst_7 {dimension_numbers = #tpu.dot_dimension_numbers<[1], [0], [0], [1], [0, 0, 1, 1], [], []>} : vector<16x2xf32>, vector<2x10xf32>, vector<16x10xf32> -> vector<16x10xf32>
    %c0_8 = arith.constant 0 : index
    %c0_9 = arith.constant 0 : index
    %8 = vector.load %arg5[%c0_8, %c0_9] : memref<64x32xf32, #tpu.memory_space<vmem>>, vector<64x32xf32>
    %c0_10 = arith.constant 0 : index
    %c0_11 = arith.constant 0 : index
    %9 = vector.load %arg6[%c0_10, %c0_11] : memref<64x1xf32, #tpu.memory_space<vmem>>, vector<64x1xf32>
    %c0_12 = arith.constant 0 : index
    %c0_13 = arith.constant 0 : index
    %10 = vector.load %arg7[%c0_12, %c0_13] : memref<64x32xf32, #tpu.memory_space<vmem>>, vector<64x32xf32>
    %c0_14 = arith.constant 0 : index
    %c0_15 = arith.constant 0 : index
    %11 = vector.load %arg8[%c0_14, %c0_15] : memref<64x1xf32, #tpu.memory_space<vmem>>, vector<64x1xf32>
    %cst_16 = arith.constant 0.000000e+00 : f32
    %12 = vector.broadcast %cst_16 : f32 to vector<16x10xf32>
    %c0_17 = arith.constant 0 : index
    %c0_18 = arith.constant 0 : index
    %c0_19 = arith.constant 0 : index
    %13 = vector.load %arg0[%c0_17, %c0_18, %c0_19] : memref<8x16x10xf32, #tpu.memory_space<vmem>>, vector<1x16x10xf32>
    %14 = vector.shape_cast %13 : vector<1x16x10xf32> to vector<16x10xf32>
    %15 = arith.addf %14, %7 : vector<16x10xf32>
    %16 = tpu.concatenate %15, %12 in 0 : vector<16x10xf32>, vector<16x10xf32> -> vector<32x10xf32>
    %cst_20 = arith.constant dense<0.000000e+00> : vector<64x10xf32>
    %17 = tpu.matmul %8, %16, %cst_20 {dimension_numbers = #tpu.dot_dimension_numbers<[1], [0], [0], [1], [0, 0, 1, 1], [], []>} : vector<64x32xf32>, vector<32x10xf32>, vector<64x10xf32> -> vector<64x10xf32>
    %18 = vector.broadcast %9 : vector<64x1xf32> to vector<64x10xf32>
    %19 = arith.addf %17, %18 : vector<64x10xf32>
    %20 = vector.extract_strided_slice %19 {offsets = [0, 0], sizes = [48, 10], strides = [1, 1]} : vector<64x10xf32> to vector<48x10xf32>
    %21 = arith.negf %20 : vector<48x10xf32>
    %22 = math.exp %21 : vector<48x10xf32>
    %cst_21 = arith.constant 1.000000e+00 : f32
    %23 = vector.broadcast %cst_21 : f32 to vector<48x10xf32>
    %24 = arith.addf %23, %22 : vector<48x10xf32>
    %25 = arith.divf %23, %24 : vector<48x10xf32>
    %26 = vector.extract_strided_slice %25 {offsets = [0, 0], sizes = [16, 10], strides = [1, 1]} : vector<48x10xf32> to vector<16x10xf32>
    %27 = vector.extract_strided_slice %25 {offsets = [16, 0], sizes = [16, 10], strides = [1, 1]} : vector<48x10xf32> to vector<16x10xf32>
    %28 = vector.extract_strided_slice %25 {offsets = [32, 0], sizes = [16, 10], strides = [1, 1]} : vector<48x10xf32> to vector<16x10xf32>
    %29 = vector.extract_strided_slice %19 {offsets = [48, 0], sizes = [16, 10], strides = [1, 1]} : vector<64x10xf32> to vector<16x10xf32>
    %30 = math.tanh %29 : vector<16x10xf32>
    %31 = arith.mulf %27, %12 : vector<16x10xf32>
    %32 = arith.mulf %26, %30 : vector<16x10xf32>
    %33 = arith.addf %31, %32 : vector<16x10xf32>
    %34 = math.tanh %33 : vector<16x10xf32>
    %35 = arith.mulf %28, %34 : vector<16x10xf32>
    %36 = tpu.concatenate %35, %12 in 0 : vector<16x10xf32>, vector<16x10xf32> -> vector<32x10xf32>
    %cst_22 = arith.constant dense<0.000000e+00> : vector<64x10xf32>
    %37 = tpu.matmul %10, %36, %cst_22 {dimension_numbers = #tpu.dot_dimension_numbers<[1], [0], [0], [1], [0, 0, 1, 1], [], []>} : vector<64x32xf32>, vector<32x10xf32>, vector<64x10xf32> -> vector<64x10xf32>
    %38 = vector.broadcast %11 : vector<64x1xf32> to vector<64x10xf32>
    %39 = arith.addf %37, %38 : vector<64x10xf32>
    %40 = vector.extract_strided_slice %39 {offsets = [0, 0], sizes = [48, 10], strides = [1, 1]} : vector<64x10xf32> to vector<48x10xf32>
    %41 = arith.negf %40 : vector<48x10xf32>
    %42 = math.exp %41 : vector<48x10xf32>
    %cst_23 = arith.constant 1.000000e+00 : f32
    %43 = vector.broadcast %cst_23 : f32 to vector<48x10xf32>
    %44 = arith.addf %43, %42 : vector<48x10xf32>
    %45 = arith.divf %43, %44 : vector<48x10xf32>
    %46 = vector.extract_strided_slice %45 {offsets = [0, 0], sizes = [16, 10], strides = [1, 1]} : vector<48x10xf32> to vector<16x10xf32>
    %47 = vector.extract_strided_slice %45 {offsets = [16, 0], sizes = [16, 10], strides = [1, 1]} : vector<48x10xf32> to vector<16x10xf32>
    %48 = vector.extract_strided_slice %45 {offsets = [32, 0], sizes = [16, 10], strides = [1, 1]} : vector<48x10xf32> to vector<16x10xf32>
    %49 = vector.extract_strided_slice %39 {offsets = [48, 0], sizes = [16, 10], strides = [1, 1]} : vector<64x10xf32> to vector<16x10xf32>
    %50 = math.tanh %49 : vector<16x10xf32>
    %51 = arith.mulf %47, %12 : vector<16x10xf32>
    %52 = arith.mulf %46, %50 : vector<16x10xf32>
    %53 = arith.addf %51, %52 : vector<16x10xf32>
    %54 = math.tanh %53 : vector<16x10xf32>
    %55 = arith.mulf %48, %54 : vector<16x10xf32>
    %c1 = arith.constant 1 : index
    %c0_24 = arith.constant 0 : index
    %c0_25 = arith.constant 0 : index
    %56 = vector.load %arg0[%c1, %c0_24, %c0_25] : memref<8x16x10xf32, #tpu.memory_space<vmem>>, vector<1x16x10xf32>
    %57 = vector.shape_cast %56 : vector<1x16x10xf32> to vector<16x10xf32>
    %58 = arith.addf %57, %7 : vector<16x10xf32>
    %59 = tpu.concatenate %58, %35 in 0 : vector<16x10xf32>, vector<16x10xf32> -> vector<32x10xf32>
    %cst_26 = arith.constant dense<0.000000e+00> : vector<64x10xf32>
    %60 = tpu.matmul %8, %59, %cst_26 {dimension_numbers = #tpu.dot_dimension_numbers<[1], [0], [0], [1], [0, 0, 1, 1], [], []>} : vector<64x32xf32>, vector<32x10xf32>, vector<64x10xf32> -> vector<64x10xf32>
    %61 = vector.broadcast %9 : vector<64x1xf32> to vector<64x10xf32>
    %62 = arith.addf %60, %61 : vector<64x10xf32>
    %63 = vector.extract_strided_slice %62 {offsets = [0, 0], sizes = [48, 10], strides = [1, 1]} : vector<64x10xf32> to vector<48x10xf32>
    %64 = arith.negf %63 : vector<48x10xf32>
    %65 = math.exp %64 : vector<48x10xf32>
    %cst_27 = arith.constant 1.000000e+00 : f32
    %66 = vector.broadcast %cst_27 : f32 to vector<48x10xf32>
    %67 = arith.addf %66, %65 : vector<48x10xf32>
    %68 = arith.divf %66, %67 : vector<48x10xf32>
    %69 = vector.extract_strided_slice %68 {offsets = [0, 0], sizes = [16, 10], strides = [1, 1]} : vector<48x10xf32> to vector<16x10xf32>
    %70 = vector.extract_strided_slice %68 {offsets = [16, 0], sizes = [16, 10], strides = [1, 1]} : vector<48x10xf32> to vector<16x10xf32>
    %71 = vector.extract_strided_slice %68 {offsets = [32, 0], sizes = [16, 10], strides = [1, 1]} : vector<48x10xf32> to vector<16x10xf32>
    %72 = vector.extract_strided_slice %62 {offsets = [48, 0], sizes = [16, 10], strides = [1, 1]} : vector<64x10xf32> to vector<16x10xf32>
    %73 = math.tanh %72 : vector<16x10xf32>
    %74 = arith.mulf %70, %33 : vector<16x10xf32>
    %75 = arith.mulf %69, %73 : vector<16x10xf32>
    %76 = arith.addf %74, %75 : vector<16x10xf32>
    %77 = math.tanh %76 : vector<16x10xf32>
    %78 = arith.mulf %71, %77 : vector<16x10xf32>
    %79 = tpu.concatenate %78, %55 in 0 : vector<16x10xf32>, vector<16x10xf32> -> vector<32x10xf32>
    %cst_28 = arith.constant dense<0.000000e+00> : vector<64x10xf32>
    %80 = tpu.matmul %10, %79, %cst_28 {dimension_numbers = #tpu.dot_dimension_numbers<[1], [0], [0], [1], [0, 0, 1, 1], [], []>} : vector<64x32xf32>, vector<32x10xf32>, vector<64x10xf32> -> vector<64x10xf32>
    %81 = vector.broadcast %11 : vector<64x1xf32> to vector<64x10xf32>
    %82 = arith.addf %80, %81 : vector<64x10xf32>
    %83 = vector.extract_strided_slice %82 {offsets = [0, 0], sizes = [48, 10], strides = [1, 1]} : vector<64x10xf32> to vector<48x10xf32>
    %84 = arith.negf %83 : vector<48x10xf32>
    %85 = math.exp %84 : vector<48x10xf32>
    %cst_29 = arith.constant 1.000000e+00 : f32
    %86 = vector.broadcast %cst_29 : f32 to vector<48x10xf32>
    %87 = arith.addf %86, %85 : vector<48x10xf32>
    %88 = arith.divf %86, %87 : vector<48x10xf32>
    %89 = vector.extract_strided_slice %88 {offsets = [0, 0], sizes = [16, 10], strides = [1, 1]} : vector<48x10xf32> to vector<16x10xf32>
    %90 = vector.extract_strided_slice %88 {offsets = [16, 0], sizes = [16, 10], strides = [1, 1]} : vector<48x10xf32> to vector<16x10xf32>
    %91 = vector.extract_strided_slice %88 {offsets = [32, 0], sizes = [16, 10], strides = [1, 1]} : vector<48x10xf32> to vector<16x10xf32>
    %92 = vector.extract_strided_slice %82 {offsets = [48, 0], sizes = [16, 10], strides = [1, 1]} : vector<64x10xf32> to vector<16x10xf32>
    %93 = math.tanh %92 : vector<16x10xf32>
    %94 = arith.mulf %90, %53 : vector<16x10xf32>
    %95 = arith.mulf %89, %93 : vector<16x10xf32>
    %96 = arith.addf %94, %95 : vector<16x10xf32>
    %97 = math.tanh %96 : vector<16x10xf32>
    %98 = arith.mulf %91, %97 : vector<16x10xf32>
    %c2 = arith.constant 2 : index
    %c0_30 = arith.constant 0 : index
    %c0_31 = arith.constant 0 : index
    %99 = vector.load %arg0[%c2, %c0_30, %c0_31] : memref<8x16x10xf32, #tpu.memory_space<vmem>>, vector<1x16x10xf32>
    %100 = vector.shape_cast %99 : vector<1x16x10xf32> to vector<16x10xf32>
    %101 = arith.addf %100, %7 : vector<16x10xf32>
    %102 = tpu.concatenate %101, %78 in 0 : vector<16x10xf32>, vector<16x10xf32> -> vector<32x10xf32>
    %cst_32 = arith.constant dense<0.000000e+00> : vector<64x10xf32>
    %103 = tpu.matmul %8, %102, %cst_32 {dimension_numbers = #tpu.dot_dimension_numbers<[1], [0], [0], [1], [0, 0, 1, 1], [], []>} : vector<64x32xf32>, vector<32x10xf32>, vector<64x10xf32> -> vector<64x10xf32>
    %104 = vector.broadcast %9 : vector<64x1xf32> to vector<64x10xf32>
    %105 = arith.addf %103, %104 : vector<64x10xf32>
    %106 = vector.extract_strided_slice %105 {offsets = [0, 0], sizes = [48, 10], strides = [1, 1]} : vector<64x10xf32> to vector<48x10xf32>
    %107 = arith.negf %106 : vector<48x10xf32>
    %108 = math.exp %107 : vector<48x10xf32>
    %cst_33 = arith.constant 1.000000e+00 : f32
    %109 = vector.broadcast %cst_33 : f32 to vector<48x10xf32>
    %110 = arith.addf %109, %108 : vector<48x10xf32>
    %111 = arith.divf %109, %110 : vector<48x10xf32>
    %112 = vector.extract_strided_slice %111 {offsets = [0, 0], sizes = [16, 10], strides = [1, 1]} : vector<48x10xf32> to vector<16x10xf32>
    %113 = vector.extract_strided_slice %111 {offsets = [16, 0], sizes = [16, 10], strides = [1, 1]} : vector<48x10xf32> to vector<16x10xf32>
    %114 = vector.extract_strided_slice %111 {offsets = [32, 0], sizes = [16, 10], strides = [1, 1]} : vector<48x10xf32> to vector<16x10xf32>
    %115 = vector.extract_strided_slice %105 {offsets = [48, 0], sizes = [16, 10], strides = [1, 1]} : vector<64x10xf32> to vector<16x10xf32>
    %116 = math.tanh %115 : vector<16x10xf32>
    %117 = arith.mulf %113, %76 : vector<16x10xf32>
    %118 = arith.mulf %112, %116 : vector<16x10xf32>
    %119 = arith.addf %117, %118 : vector<16x10xf32>
    %120 = math.tanh %119 : vector<16x10xf32>
    %121 = arith.mulf %114, %120 : vector<16x10xf32>
    %122 = tpu.concatenate %121, %98 in 0 : vector<16x10xf32>, vector<16x10xf32> -> vector<32x10xf32>
    %cst_34 = arith.constant dense<0.000000e+00> : vector<64x10xf32>
    %123 = tpu.matmul %10, %122, %cst_34 {dimension_numbers = #tpu.dot_dimension_numbers<[1], [0], [0], [1], [0, 0, 1, 1], [], []>} : vector<64x32xf32>, vector<32x10xf32>, vector<64x10xf32> -> vector<64x10xf32>
    %124 = vector.broadcast %11 : vector<64x1xf32> to vector<64x10xf32>
    %125 = arith.addf %123, %124 : vector<64x10xf32>
    %126 = vector.extract_strided_slice %125 {offsets = [0, 0], sizes = [48, 10], strides = [1, 1]} : vector<64x10xf32> to vector<48x10xf32>
    %127 = arith.negf %126 : vector<48x10xf32>
    %128 = math.exp %127 : vector<48x10xf32>
    %cst_35 = arith.constant 1.000000e+00 : f32
    %129 = vector.broadcast %cst_35 : f32 to vector<48x10xf32>
    %130 = arith.addf %129, %128 : vector<48x10xf32>
    %131 = arith.divf %129, %130 : vector<48x10xf32>
    %132 = vector.extract_strided_slice %131 {offsets = [0, 0], sizes = [16, 10], strides = [1, 1]} : vector<48x10xf32> to vector<16x10xf32>
    %133 = vector.extract_strided_slice %131 {offsets = [16, 0], sizes = [16, 10], strides = [1, 1]} : vector<48x10xf32> to vector<16x10xf32>
    %134 = vector.extract_strided_slice %131 {offsets = [32, 0], sizes = [16, 10], strides = [1, 1]} : vector<48x10xf32> to vector<16x10xf32>
    %135 = vector.extract_strided_slice %125 {offsets = [48, 0], sizes = [16, 10], strides = [1, 1]} : vector<64x10xf32> to vector<16x10xf32>
    %136 = math.tanh %135 : vector<16x10xf32>
    %137 = arith.mulf %133, %96 : vector<16x10xf32>
    %138 = arith.mulf %132, %136 : vector<16x10xf32>
    %139 = arith.addf %137, %138 : vector<16x10xf32>
    %140 = math.tanh %139 : vector<16x10xf32>
    %141 = arith.mulf %134, %140 : vector<16x10xf32>
    %c3 = arith.constant 3 : index
    %c0_36 = arith.constant 0 : index
    %c0_37 = arith.constant 0 : index
    %142 = vector.load %arg0[%c3, %c0_36, %c0_37] : memref<8x16x10xf32, #tpu.memory_space<vmem>>, vector<1x16x10xf32>
    %143 = vector.shape_cast %142 : vector<1x16x10xf32> to vector<16x10xf32>
    %144 = arith.addf %143, %7 : vector<16x10xf32>
    %145 = tpu.concatenate %144, %121 in 0 : vector<16x10xf32>, vector<16x10xf32> -> vector<32x10xf32>
    %cst_38 = arith.constant dense<0.000000e+00> : vector<64x10xf32>
    %146 = tpu.matmul %8, %145, %cst_38 {dimension_numbers = #tpu.dot_dimension_numbers<[1], [0], [0], [1], [0, 0, 1, 1], [], []>} : vector<64x32xf32>, vector<32x10xf32>, vector<64x10xf32> -> vector<64x10xf32>
    %147 = vector.broadcast %9 : vector<64x1xf32> to vector<64x10xf32>
    %148 = arith.addf %146, %147 : vector<64x10xf32>
    %149 = vector.extract_strided_slice %148 {offsets = [0, 0], sizes = [48, 10], strides = [1, 1]} : vector<64x10xf32> to vector<48x10xf32>
    %150 = arith.negf %149 : vector<48x10xf32>
    %151 = math.exp %150 : vector<48x10xf32>
    %cst_39 = arith.constant 1.000000e+00 : f32
    %152 = vector.broadcast %cst_39 : f32 to vector<48x10xf32>
    %153 = arith.addf %152, %151 : vector<48x10xf32>
    %154 = arith.divf %152, %153 : vector<48x10xf32>
    %155 = vector.extract_strided_slice %154 {offsets = [0, 0], sizes = [16, 10], strides = [1, 1]} : vector<48x10xf32> to vector<16x10xf32>
    %156 = vector.extract_strided_slice %154 {offsets = [16, 0], sizes = [16, 10], strides = [1, 1]} : vector<48x10xf32> to vector<16x10xf32>
    %157 = vector.extract_strided_slice %154 {offsets = [32, 0], sizes = [16, 10], strides = [1, 1]} : vector<48x10xf32> to vector<16x10xf32>
    %158 = vector.extract_strided_slice %148 {offsets = [48, 0], sizes = [16, 10], strides = [1, 1]} : vector<64x10xf32> to vector<16x10xf32>
    %159 = math.tanh %158 : vector<16x10xf32>
    %160 = arith.mulf %156, %119 : vector<16x10xf32>
    %161 = arith.mulf %155, %159 : vector<16x10xf32>
    %162 = arith.addf %160, %161 : vector<16x10xf32>
    %163 = math.tanh %162 : vector<16x10xf32>
    %164 = arith.mulf %157, %163 : vector<16x10xf32>
    %165 = tpu.concatenate %164, %141 in 0 : vector<16x10xf32>, vector<16x10xf32> -> vector<32x10xf32>
    %cst_40 = arith.constant dense<0.000000e+00> : vector<64x10xf32>
    %166 = tpu.matmul %10, %165, %cst_40 {dimension_numbers = #tpu.dot_dimension_numbers<[1], [0], [0], [1], [0, 0, 1, 1], [], []>} : vector<64x32xf32>, vector<32x10xf32>, vector<64x10xf32> -> vector<64x10xf32>
    %167 = vector.broadcast %11 : vector<64x1xf32> to vector<64x10xf32>
    %168 = arith.addf %166, %167 : vector<64x10xf32>
    %169 = vector.extract_strided_slice %168 {offsets = [0, 0], sizes = [48, 10], strides = [1, 1]} : vector<64x10xf32> to vector<48x10xf32>
    %170 = arith.negf %169 : vector<48x10xf32>
    %171 = math.exp %170 : vector<48x10xf32>
    %cst_41 = arith.constant 1.000000e+00 : f32
    %172 = vector.broadcast %cst_41 : f32 to vector<48x10xf32>
    %173 = arith.addf %172, %171 : vector<48x10xf32>
    %174 = arith.divf %172, %173 : vector<48x10xf32>
    %175 = vector.extract_strided_slice %174 {offsets = [0, 0], sizes = [16, 10], strides = [1, 1]} : vector<48x10xf32> to vector<16x10xf32>
    %176 = vector.extract_strided_slice %174 {offsets = [16, 0], sizes = [16, 10], strides = [1, 1]} : vector<48x10xf32> to vector<16x10xf32>
    %177 = vector.extract_strided_slice %174 {offsets = [32, 0], sizes = [16, 10], strides = [1, 1]} : vector<48x10xf32> to vector<16x10xf32>
    %178 = vector.extract_strided_slice %168 {offsets = [48, 0], sizes = [16, 10], strides = [1, 1]} : vector<64x10xf32> to vector<16x10xf32>
    %179 = math.tanh %178 : vector<16x10xf32>
    %180 = arith.mulf %176, %139 : vector<16x10xf32>
    %181 = arith.mulf %175, %179 : vector<16x10xf32>
    %182 = arith.addf %180, %181 : vector<16x10xf32>
    %183 = math.tanh %182 : vector<16x10xf32>
    %184 = arith.mulf %177, %183 : vector<16x10xf32>
    %c4 = arith.constant 4 : index
    %c0_42 = arith.constant 0 : index
    %c0_43 = arith.constant 0 : index
    %185 = vector.load %arg0[%c4, %c0_42, %c0_43] : memref<8x16x10xf32, #tpu.memory_space<vmem>>, vector<1x16x10xf32>
    %186 = vector.shape_cast %185 : vector<1x16x10xf32> to vector<16x10xf32>
    %187 = arith.addf %186, %7 : vector<16x10xf32>
    %188 = tpu.concatenate %187, %164 in 0 : vector<16x10xf32>, vector<16x10xf32> -> vector<32x10xf32>
    %cst_44 = arith.constant dense<0.000000e+00> : vector<64x10xf32>
    %189 = tpu.matmul %8, %188, %cst_44 {dimension_numbers = #tpu.dot_dimension_numbers<[1], [0], [0], [1], [0, 0, 1, 1], [], []>} : vector<64x32xf32>, vector<32x10xf32>, vector<64x10xf32> -> vector<64x10xf32>
    %190 = vector.broadcast %9 : vector<64x1xf32> to vector<64x10xf32>
    %191 = arith.addf %189, %190 : vector<64x10xf32>
    %192 = vector.extract_strided_slice %191 {offsets = [0, 0], sizes = [48, 10], strides = [1, 1]} : vector<64x10xf32> to vector<48x10xf32>
    %193 = arith.negf %192 : vector<48x10xf32>
    %194 = math.exp %193 : vector<48x10xf32>
    %cst_45 = arith.constant 1.000000e+00 : f32
    %195 = vector.broadcast %cst_45 : f32 to vector<48x10xf32>
    %196 = arith.addf %195, %194 : vector<48x10xf32>
    %197 = arith.divf %195, %196 : vector<48x10xf32>
    %198 = vector.extract_strided_slice %197 {offsets = [0, 0], sizes = [16, 10], strides = [1, 1]} : vector<48x10xf32> to vector<16x10xf32>
    %199 = vector.extract_strided_slice %197 {offsets = [16, 0], sizes = [16, 10], strides = [1, 1]} : vector<48x10xf32> to vector<16x10xf32>
    %200 = vector.extract_strided_slice %197 {offsets = [32, 0], sizes = [16, 10], strides = [1, 1]} : vector<48x10xf32> to vector<16x10xf32>
    %201 = vector.extract_strided_slice %191 {offsets = [48, 0], sizes = [16, 10], strides = [1, 1]} : vector<64x10xf32> to vector<16x10xf32>
    %202 = math.tanh %201 : vector<16x10xf32>
    %203 = arith.mulf %199, %162 : vector<16x10xf32>
    %204 = arith.mulf %198, %202 : vector<16x10xf32>
    %205 = arith.addf %203, %204 : vector<16x10xf32>
    %206 = math.tanh %205 : vector<16x10xf32>
    %207 = arith.mulf %200, %206 : vector<16x10xf32>
    %208 = tpu.concatenate %207, %184 in 0 : vector<16x10xf32>, vector<16x10xf32> -> vector<32x10xf32>
    %cst_46 = arith.constant dense<0.000000e+00> : vector<64x10xf32>
    %209 = tpu.matmul %10, %208, %cst_46 {dimension_numbers = #tpu.dot_dimension_numbers<[1], [0], [0], [1], [0, 0, 1, 1], [], []>} : vector<64x32xf32>, vector<32x10xf32>, vector<64x10xf32> -> vector<64x10xf32>
    %210 = vector.broadcast %11 : vector<64x1xf32> to vector<64x10xf32>
    %211 = arith.addf %209, %210 : vector<64x10xf32>
    %212 = vector.extract_strided_slice %211 {offsets = [0, 0], sizes = [48, 10], strides = [1, 1]} : vector<64x10xf32> to vector<48x10xf32>
    %213 = arith.negf %212 : vector<48x10xf32>
    %214 = math.exp %213 : vector<48x10xf32>
    %cst_47 = arith.constant 1.000000e+00 : f32
    %215 = vector.broadcast %cst_47 : f32 to vector<48x10xf32>
    %216 = arith.addf %215, %214 : vector<48x10xf32>
    %217 = arith.divf %215, %216 : vector<48x10xf32>
    %218 = vector.extract_strided_slice %217 {offsets = [0, 0], sizes = [16, 10], strides = [1, 1]} : vector<48x10xf32> to vector<16x10xf32>
    %219 = vector.extract_strided_slice %217 {offsets = [16, 0], sizes = [16, 10], strides = [1, 1]} : vector<48x10xf32> to vector<16x10xf32>
    %220 = vector.extract_strided_slice %217 {offsets = [32, 0], sizes = [16, 10], strides = [1, 1]} : vector<48x10xf32> to vector<16x10xf32>
    %221 = vector.extract_strided_slice %211 {offsets = [48, 0], sizes = [16, 10], strides = [1, 1]} : vector<64x10xf32> to vector<16x10xf32>
    %222 = math.tanh %221 : vector<16x10xf32>
    %223 = arith.mulf %219, %182 : vector<16x10xf32>
    %224 = arith.mulf %218, %222 : vector<16x10xf32>
    %225 = arith.addf %223, %224 : vector<16x10xf32>
    %226 = math.tanh %225 : vector<16x10xf32>
    %227 = arith.mulf %220, %226 : vector<16x10xf32>
    %c5 = arith.constant 5 : index
    %c0_48 = arith.constant 0 : index
    %c0_49 = arith.constant 0 : index
    %228 = vector.load %arg0[%c5, %c0_48, %c0_49] : memref<8x16x10xf32, #tpu.memory_space<vmem>>, vector<1x16x10xf32>
    %229 = vector.shape_cast %228 : vector<1x16x10xf32> to vector<16x10xf32>
    %230 = arith.addf %229, %7 : vector<16x10xf32>
    %231 = tpu.concatenate %230, %207 in 0 : vector<16x10xf32>, vector<16x10xf32> -> vector<32x10xf32>
    %cst_50 = arith.constant dense<0.000000e+00> : vector<64x10xf32>
    %232 = tpu.matmul %8, %231, %cst_50 {dimension_numbers = #tpu.dot_dimension_numbers<[1], [0], [0], [1], [0, 0, 1, 1], [], []>} : vector<64x32xf32>, vector<32x10xf32>, vector<64x10xf32> -> vector<64x10xf32>
    %233 = vector.broadcast %9 : vector<64x1xf32> to vector<64x10xf32>
    %234 = arith.addf %232, %233 : vector<64x10xf32>
    %235 = vector.extract_strided_slice %234 {offsets = [0, 0], sizes = [48, 10], strides = [1, 1]} : vector<64x10xf32> to vector<48x10xf32>
    %236 = arith.negf %235 : vector<48x10xf32>
    %237 = math.exp %236 : vector<48x10xf32>
    %cst_51 = arith.constant 1.000000e+00 : f32
    %238 = vector.broadcast %cst_51 : f32 to vector<48x10xf32>
    %239 = arith.addf %238, %237 : vector<48x10xf32>
    %240 = arith.divf %238, %239 : vector<48x10xf32>
    %241 = vector.extract_strided_slice %240 {offsets = [0, 0], sizes = [16, 10], strides = [1, 1]} : vector<48x10xf32> to vector<16x10xf32>
    %242 = vector.extract_strided_slice %240 {offsets = [16, 0], sizes = [16, 10], strides = [1, 1]} : vector<48x10xf32> to vector<16x10xf32>
    %243 = vector.extract_strided_slice %240 {offsets = [32, 0], sizes = [16, 10], strides = [1, 1]} : vector<48x10xf32> to vector<16x10xf32>
    %244 = vector.extract_strided_slice %234 {offsets = [48, 0], sizes = [16, 10], strides = [1, 1]} : vector<64x10xf32> to vector<16x10xf32>
    %245 = math.tanh %244 : vector<16x10xf32>
    %246 = arith.mulf %242, %205 : vector<16x10xf32>
    %247 = arith.mulf %241, %245 : vector<16x10xf32>
    %248 = arith.addf %246, %247 : vector<16x10xf32>
    %249 = math.tanh %248 : vector<16x10xf32>
    %250 = arith.mulf %243, %249 : vector<16x10xf32>
    %251 = tpu.concatenate %250, %227 in 0 : vector<16x10xf32>, vector<16x10xf32> -> vector<32x10xf32>
    %cst_52 = arith.constant dense<0.000000e+00> : vector<64x10xf32>
    %252 = tpu.matmul %10, %251, %cst_52 {dimension_numbers = #tpu.dot_dimension_numbers<[1], [0], [0], [1], [0, 0, 1, 1], [], []>} : vector<64x32xf32>, vector<32x10xf32>, vector<64x10xf32> -> vector<64x10xf32>
    %253 = vector.broadcast %11 : vector<64x1xf32> to vector<64x10xf32>
    %254 = arith.addf %252, %253 : vector<64x10xf32>
    %255 = vector.extract_strided_slice %254 {offsets = [0, 0], sizes = [48, 10], strides = [1, 1]} : vector<64x10xf32> to vector<48x10xf32>
    %256 = arith.negf %255 : vector<48x10xf32>
    %257 = math.exp %256 : vector<48x10xf32>
    %cst_53 = arith.constant 1.000000e+00 : f32
    %258 = vector.broadcast %cst_53 : f32 to vector<48x10xf32>
    %259 = arith.addf %258, %257 : vector<48x10xf32>
    %260 = arith.divf %258, %259 : vector<48x10xf32>
    %261 = vector.extract_strided_slice %260 {offsets = [0, 0], sizes = [16, 10], strides = [1, 1]} : vector<48x10xf32> to vector<16x10xf32>
    %262 = vector.extract_strided_slice %260 {offsets = [16, 0], sizes = [16, 10], strides = [1, 1]} : vector<48x10xf32> to vector<16x10xf32>
    %263 = vector.extract_strided_slice %260 {offsets = [32, 0], sizes = [16, 10], strides = [1, 1]} : vector<48x10xf32> to vector<16x10xf32>
    %264 = vector.extract_strided_slice %254 {offsets = [48, 0], sizes = [16, 10], strides = [1, 1]} : vector<64x10xf32> to vector<16x10xf32>
    %265 = math.tanh %264 : vector<16x10xf32>
    %266 = arith.mulf %262, %225 : vector<16x10xf32>
    %267 = arith.mulf %261, %265 : vector<16x10xf32>
    %268 = arith.addf %266, %267 : vector<16x10xf32>
    %269 = math.tanh %268 : vector<16x10xf32>
    %270 = arith.mulf %263, %269 : vector<16x10xf32>
    %c6 = arith.constant 6 : index
    %c0_54 = arith.constant 0 : index
    %c0_55 = arith.constant 0 : index
    %271 = vector.load %arg0[%c6, %c0_54, %c0_55] : memref<8x16x10xf32, #tpu.memory_space<vmem>>, vector<1x16x10xf32>
    %272 = vector.shape_cast %271 : vector<1x16x10xf32> to vector<16x10xf32>
    %273 = arith.addf %272, %7 : vector<16x10xf32>
    %274 = tpu.concatenate %273, %250 in 0 : vector<16x10xf32>, vector<16x10xf32> -> vector<32x10xf32>
    %cst_56 = arith.constant dense<0.000000e+00> : vector<64x10xf32>
    %275 = tpu.matmul %8, %274, %cst_56 {dimension_numbers = #tpu.dot_dimension_numbers<[1], [0], [0], [1], [0, 0, 1, 1], [], []>} : vector<64x32xf32>, vector<32x10xf32>, vector<64x10xf32> -> vector<64x10xf32>
    %276 = vector.broadcast %9 : vector<64x1xf32> to vector<64x10xf32>
    %277 = arith.addf %275, %276 : vector<64x10xf32>
    %278 = vector.extract_strided_slice %277 {offsets = [0, 0], sizes = [48, 10], strides = [1, 1]} : vector<64x10xf32> to vector<48x10xf32>
    %279 = arith.negf %278 : vector<48x10xf32>
    %280 = math.exp %279 : vector<48x10xf32>
    %cst_57 = arith.constant 1.000000e+00 : f32
    %281 = vector.broadcast %cst_57 : f32 to vector<48x10xf32>
    %282 = arith.addf %281, %280 : vector<48x10xf32>
    %283 = arith.divf %281, %282 : vector<48x10xf32>
    %284 = vector.extract_strided_slice %283 {offsets = [0, 0], sizes = [16, 10], strides = [1, 1]} : vector<48x10xf32> to vector<16x10xf32>
    %285 = vector.extract_strided_slice %283 {offsets = [16, 0], sizes = [16, 10], strides = [1, 1]} : vector<48x10xf32> to vector<16x10xf32>
    %286 = vector.extract_strided_slice %283 {offsets = [32, 0], sizes = [16, 10], strides = [1, 1]} : vector<48x10xf32> to vector<16x10xf32>
    %287 = vector.extract_strided_slice %277 {offsets = [48, 0], sizes = [16, 10], strides = [1, 1]} : vector<64x10xf32> to vector<16x10xf32>
    %288 = math.tanh %287 : vector<16x10xf32>
    %289 = arith.mulf %285, %248 : vector<16x10xf32>
    %290 = arith.mulf %284, %288 : vector<16x10xf32>
    %291 = arith.addf %289, %290 : vector<16x10xf32>
    %292 = math.tanh %291 : vector<16x10xf32>
    %293 = arith.mulf %286, %292 : vector<16x10xf32>
    %294 = tpu.concatenate %293, %270 in 0 : vector<16x10xf32>, vector<16x10xf32> -> vector<32x10xf32>
    %cst_58 = arith.constant dense<0.000000e+00> : vector<64x10xf32>
    %295 = tpu.matmul %10, %294, %cst_58 {dimension_numbers = #tpu.dot_dimension_numbers<[1], [0], [0], [1], [0, 0, 1, 1], [], []>} : vector<64x32xf32>, vector<32x10xf32>, vector<64x10xf32> -> vector<64x10xf32>
    %296 = vector.broadcast %11 : vector<64x1xf32> to vector<64x10xf32>
    %297 = arith.addf %295, %296 : vector<64x10xf32>
    %298 = vector.extract_strided_slice %297 {offsets = [0, 0], sizes = [48, 10], strides = [1, 1]} : vector<64x10xf32> to vector<48x10xf32>
    %299 = arith.negf %298 : vector<48x10xf32>
    %300 = math.exp %299 : vector<48x10xf32>
    %cst_59 = arith.constant 1.000000e+00 : f32
    %301 = vector.broadcast %cst_59 : f32 to vector<48x10xf32>
    %302 = arith.addf %301, %300 : vector<48x10xf32>
    %303 = arith.divf %301, %302 : vector<48x10xf32>
    %304 = vector.extract_strided_slice %303 {offsets = [0, 0], sizes = [16, 10], strides = [1, 1]} : vector<48x10xf32> to vector<16x10xf32>
    %305 = vector.extract_strided_slice %303 {offsets = [16, 0], sizes = [16, 10], strides = [1, 1]} : vector<48x10xf32> to vector<16x10xf32>
    %306 = vector.extract_strided_slice %303 {offsets = [32, 0], sizes = [16, 10], strides = [1, 1]} : vector<48x10xf32> to vector<16x10xf32>
    %307 = vector.extract_strided_slice %297 {offsets = [48, 0], sizes = [16, 10], strides = [1, 1]} : vector<64x10xf32> to vector<16x10xf32>
    %308 = math.tanh %307 : vector<16x10xf32>
    %309 = arith.mulf %305, %268 : vector<16x10xf32>
    %310 = arith.mulf %304, %308 : vector<16x10xf32>
    %311 = arith.addf %309, %310 : vector<16x10xf32>
    %312 = math.tanh %311 : vector<16x10xf32>
    %313 = arith.mulf %306, %312 : vector<16x10xf32>
    %c7 = arith.constant 7 : index
    %c0_60 = arith.constant 0 : index
    %c0_61 = arith.constant 0 : index
    %314 = vector.load %arg0[%c7, %c0_60, %c0_61] : memref<8x16x10xf32, #tpu.memory_space<vmem>>, vector<1x16x10xf32>
    %315 = vector.shape_cast %314 : vector<1x16x10xf32> to vector<16x10xf32>
    %316 = arith.addf %315, %7 : vector<16x10xf32>
    %317 = tpu.concatenate %316, %293 in 0 : vector<16x10xf32>, vector<16x10xf32> -> vector<32x10xf32>
    %cst_62 = arith.constant dense<0.000000e+00> : vector<64x10xf32>
    %318 = tpu.matmul %8, %317, %cst_62 {dimension_numbers = #tpu.dot_dimension_numbers<[1], [0], [0], [1], [0, 0, 1, 1], [], []>} : vector<64x32xf32>, vector<32x10xf32>, vector<64x10xf32> -> vector<64x10xf32>
    %319 = vector.broadcast %9 : vector<64x1xf32> to vector<64x10xf32>
    %320 = arith.addf %318, %319 : vector<64x10xf32>
    %321 = vector.extract_strided_slice %320 {offsets = [0, 0], sizes = [48, 10], strides = [1, 1]} : vector<64x10xf32> to vector<48x10xf32>
    %322 = arith.negf %321 : vector<48x10xf32>
    %323 = math.exp %322 : vector<48x10xf32>
    %cst_63 = arith.constant 1.000000e+00 : f32
    %324 = vector.broadcast %cst_63 : f32 to vector<48x10xf32>
    %325 = arith.addf %324, %323 : vector<48x10xf32>
    %326 = arith.divf %324, %325 : vector<48x10xf32>
    %327 = vector.extract_strided_slice %326 {offsets = [0, 0], sizes = [16, 10], strides = [1, 1]} : vector<48x10xf32> to vector<16x10xf32>
    %328 = vector.extract_strided_slice %326 {offsets = [16, 0], sizes = [16, 10], strides = [1, 1]} : vector<48x10xf32> to vector<16x10xf32>
    %329 = vector.extract_strided_slice %326 {offsets = [32, 0], sizes = [16, 10], strides = [1, 1]} : vector<48x10xf32> to vector<16x10xf32>
    %330 = vector.extract_strided_slice %320 {offsets = [48, 0], sizes = [16, 10], strides = [1, 1]} : vector<64x10xf32> to vector<16x10xf32>
    %331 = math.tanh %330 : vector<16x10xf32>
    %332 = arith.mulf %328, %291 : vector<16x10xf32>
    %333 = arith.mulf %327, %331 : vector<16x10xf32>
    %334 = arith.addf %332, %333 : vector<16x10xf32>
    %335 = math.tanh %334 : vector<16x10xf32>
    %336 = arith.mulf %329, %335 : vector<16x10xf32>
    %337 = tpu.concatenate %336, %313 in 0 : vector<16x10xf32>, vector<16x10xf32> -> vector<32x10xf32>
    %cst_64 = arith.constant dense<0.000000e+00> : vector<64x10xf32>
    %338 = tpu.matmul %10, %337, %cst_64 {dimension_numbers = #tpu.dot_dimension_numbers<[1], [0], [0], [1], [0, 0, 1, 1], [], []>} : vector<64x32xf32>, vector<32x10xf32>, vector<64x10xf32> -> vector<64x10xf32>
    %339 = vector.broadcast %11 : vector<64x1xf32> to vector<64x10xf32>
    %340 = arith.addf %338, %339 : vector<64x10xf32>
    %341 = vector.extract_strided_slice %340 {offsets = [0, 0], sizes = [48, 10], strides = [1, 1]} : vector<64x10xf32> to vector<48x10xf32>
    %342 = arith.negf %341 : vector<48x10xf32>
    %343 = math.exp %342 : vector<48x10xf32>
    %cst_65 = arith.constant 1.000000e+00 : f32
    %344 = vector.broadcast %cst_65 : f32 to vector<48x10xf32>
    %345 = arith.addf %344, %343 : vector<48x10xf32>
    %346 = arith.divf %344, %345 : vector<48x10xf32>
    %347 = vector.extract_strided_slice %346 {offsets = [0, 0], sizes = [16, 10], strides = [1, 1]} : vector<48x10xf32> to vector<16x10xf32>
    %348 = vector.extract_strided_slice %346 {offsets = [16, 0], sizes = [16, 10], strides = [1, 1]} : vector<48x10xf32> to vector<16x10xf32>
    %349 = vector.extract_strided_slice %346 {offsets = [32, 0], sizes = [16, 10], strides = [1, 1]} : vector<48x10xf32> to vector<16x10xf32>
    %350 = vector.extract_strided_slice %340 {offsets = [48, 0], sizes = [16, 10], strides = [1, 1]} : vector<64x10xf32> to vector<16x10xf32>
    %351 = math.tanh %350 : vector<16x10xf32>
    %352 = arith.mulf %348, %311 : vector<16x10xf32>
    %353 = arith.mulf %347, %351 : vector<16x10xf32>
    %354 = arith.addf %352, %353 : vector<16x10xf32>
    %355 = math.tanh %354 : vector<16x10xf32>
    %356 = arith.mulf %349, %355 : vector<16x10xf32>
    %cst_66 = arith.constant 0.000000e+00 : f32
    %357 = vector.broadcast %cst_66 : f32 to vector<176x32xf32>
    %c0_67 = arith.constant 0 : index
    %c0_68 = arith.constant 0 : index
    %358 = vector.load %arg22[%c0_67, %c0_68] : memref<176x32xf32, #tpu.memory_space<vmem>>, vector<176x32xf32>
    tpu.vector_store %arg22[%c0_67, %c0_68], %357 {strides = array<i32>} : memref<176x32xf32, #tpu.memory_space<vmem>>, vector<176x32xf32>,
    %c0_69 = arith.constant 0 : index
    %c0_70 = arith.constant 0 : index
    %359 = vector.load %arg19[%c0_69, %c0_70] : memref<128x1xf32, #tpu.memory_space<vmem>>, vector<128x1xf32>
    %c0_71 = arith.constant 0 : index
    %c0_72 = arith.constant 0 : index
    %360 = vector.load %arg20[%c0_71, %c0_72] : memref<128x1xf32, #tpu.memory_space<vmem>>, vector<128x1xf32>
    %c0_73 = arith.constant 0 : index
    %c0_74 = arith.constant 0 : index
    %361 = vector.load %arg9[%c0_73, %c0_74] : memref<5x32xf32, #tpu.memory_space<vmem>>, vector<5x32xf32>
    %c0_75 = arith.constant 0 : index
    %c0_76 = arith.constant 0 : index
    %362 = vector.load %arg10[%c0_75, %c0_76] : memref<1x32xf32, #tpu.memory_space<vmem>>, vector<1x32xf32>
    %c0_77 = arith.constant 0 : index
    %c0_78 = arith.constant 0 : index
    %363 = vector.load %arg15[%c0_77, %c0_78] : memref<16x16xf32, #tpu.memory_space<vmem>>, vector<16x16xf32>
    %c0_79 = arith.constant 0 : index
    %c0_80 = arith.constant 0 : index
    %364 = vector.load %arg16[%c0_79, %c0_80] : memref<16x1xf32, #tpu.memory_space<vmem>>, vector<16x1xf32>
    %c0_81 = arith.constant 0 : index
    %c0_82 = arith.constant 0 : index
    %365 = vector.load %arg17[%c0_81, %c0_82] : memref<32x2xf32, #tpu.memory_space<vmem>>, vector<32x2xf32>
    %c0_83 = arith.constant 0 : index
    %c0_84 = arith.constant 0 : index
    %366 = vector.load %arg18[%c0_83, %c0_84] : memref<1x2xf32, #tpu.memory_space<vmem>>, vector<1x2xf32>
    %367 = vector.extract_strided_slice %55 {offsets = [0, 0], sizes = [16, 5], strides = [1, 1]} : vector<16x10xf32> to vector<16x5xf32>
    %368 = vector.extract_strided_slice %98 {offsets = [0, 0], sizes = [16, 5], strides = [1, 1]} : vector<16x10xf32> to vector<16x5xf32>
    %369 = vector.extract_strided_slice %141 {offsets = [0, 0], sizes = [16, 5], strides = [1, 1]} : vector<16x10xf32> to vector<16x5xf32>
    %370 = vector.extract_strided_slice %184 {offsets = [0, 0], sizes = [16, 5], strides = [1, 1]} : vector<16x10xf32> to vector<16x5xf32>
    %371 = vector.extract_strided_slice %227 {offsets = [0, 0], sizes = [16, 5], strides = [1, 1]} : vector<16x10xf32> to vector<16x5xf32>
    %372 = vector.extract_strided_slice %270 {offsets = [0, 0], sizes = [16, 5], strides = [1, 1]} : vector<16x10xf32> to vector<16x5xf32>
    %373 = vector.extract_strided_slice %313 {offsets = [0, 0], sizes = [16, 5], strides = [1, 1]} : vector<16x10xf32> to vector<16x5xf32>
    %374 = vector.extract_strided_slice %356 {offsets = [0, 0], sizes = [16, 5], strides = [1, 1]} : vector<16x10xf32> to vector<16x5xf32>
    %375 = tpu.concatenate %367, %368, %369, %370, %371, %372, %373, %374 in 0 : vector<16x5xf32>, vector<16x5xf32>, vector<16x5xf32>, vector<16x5xf32>, vector<16x5xf32>, vector<16x5xf32>, vector<16x5xf32>, vector<16x5xf32> -> vector<128x5xf32>
    %cst_85 = arith.constant dense<0.000000e+00> : vector<128x32xf32>
    %376 = tpu.matmul %375, %361, %cst_85 {dimension_numbers = #tpu.dot_dimension_numbers<[1], [0], [0], [1], [0, 0, 1, 1], [], []>} : vector<128x5xf32>, vector<5x32xf32>, vector<128x32xf32> -> vector<128x32xf32>
    %377 = vector.broadcast %362 : vector<1x32xf32> to vector<128x32xf32>
    %378 = arith.addf %376, %377 : vector<128x32xf32>
    %cst_86 = arith.constant 0.000000e+00 : f32
    %379 = vector.broadcast %cst_86 : f32 to vector<128x32xf32>
    %380 = arith.maximumf %378, %379 : vector<128x32xf32>
    %c24 = arith.constant 24 : index
    %c0_87 = arith.constant 0 : index
    %381 = vector.load %arg22[%c24, %c0_87] : memref<176x32xf32, #tpu.memory_space<vmem>>, vector<128x32xf32>
    tpu.vector_store %arg22[%c24, %c0_87], %380 {strides = array<i32>} : memref<176x32xf32, #tpu.memory_space<vmem>>, vector<128x32xf32>,
    %cst_88 = arith.constant 0.000000e+00 : f32
    %382 = vector.broadcast %cst_88 : f32 to vector<128x32xf32>
    %c7_89 = arith.constant 7 : index
    %c0_90 = arith.constant 0 : index
    %383 = vector.load %arg22[%c7_89, %c0_90] : memref<176x32xf32, #tpu.memory_space<vmem>>, vector<128x32xf32>
    %384 = vector.broadcast %359 : vector<128x1xf32> to vector<128x32xf32>
    %385 = arith.mulf %383, %384 : vector<128x32xf32>
    %c0_91 = arith.constant 0 : index
    %c0_92 = arith.constant 0 : index
    %c0_93 = arith.constant 0 : index
    %c0_94 = arith.constant 0 : index
    %386 = vector.load %arg11[%c0_91, %c0_92, %c0_93, %c0_94] : memref<1x9x32x32xf32, #tpu.memory_space<vmem>>, vector<1x1x32x32xf32>
    %387 = vector.shape_cast %386 : vector<1x1x32x32xf32> to vector<32x32xf32>
    %cst_95 = arith.constant dense<0.000000e+00> : vector<128x32xf32>
    %388 = tpu.matmul %385, %387, %cst_95 {dimension_numbers = #tpu.dot_dimension_numbers<[1], [0], [0], [1], [0, 0, 1, 1], [], []>} : vector<128x32xf32>, vector<32x32xf32>, vector<128x32xf32> -> vector<128x32xf32>
    %389 = arith.addf %382, %388 : vector<128x32xf32>
    %c8 = arith.constant 8 : index
    %c0_96 = arith.constant 0 : index
    %390 = vector.load %arg22[%c8, %c0_96] : memref<176x32xf32, #tpu.memory_space<vmem>>, vector<128x32xf32>
    %c0_97 = arith.constant 0 : index
    %c1_98 = arith.constant 1 : index
    %c0_99 = arith.constant 0 : index
    %c0_100 = arith.constant 0 : index
    %391 = vector.load %arg11[%c0_97, %c1_98, %c0_99, %c0_100] : memref<1x9x32x32xf32, #tpu.memory_space<vmem>>, vector<1x1x32x32xf32>
    %392 = vector.shape_cast %391 : vector<1x1x32x32xf32> to vector<32x32xf32>
    %cst_101 = arith.constant dense<0.000000e+00> : vector<128x32xf32>
    %393 = tpu.matmul %390, %392, %cst_101 {dimension_numbers = #tpu.dot_dimension_numbers<[1], [0], [0], [1], [0, 0, 1, 1], [], []>} : vector<128x32xf32>, vector<32x32xf32>, vector<128x32xf32> -> vector<128x32xf32>
    %394 = arith.addf %389, %393 : vector<128x32xf32>
    %c9 = arith.constant 9 : index
    %c0_102 = arith.constant 0 : index
    %395 = vector.load %arg22[%c9, %c0_102] : memref<176x32xf32, #tpu.memory_space<vmem>>, vector<128x32xf32>
    %396 = vector.broadcast %360 : vector<128x1xf32> to vector<128x32xf32>
    %397 = arith.mulf %395, %396 : vector<128x32xf32>
    %c0_103 = arith.constant 0 : index
    %c2_104 = arith.constant 2 : index
    %c0_105 = arith.constant 0 : index
    %c0_106 = arith.constant 0 : index
    %398 = vector.load %arg11[%c0_103, %c2_104, %c0_105, %c0_106] : memref<1x9x32x32xf32, #tpu.memory_space<vmem>>, vector<1x1x32x32xf32>
    %399 = vector.shape_cast %398 : vector<1x1x32x32xf32> to vector<32x32xf32>
    %cst_107 = arith.constant dense<0.000000e+00> : vector<128x32xf32>
    %400 = tpu.matmul %397, %399, %cst_107 {dimension_numbers = #tpu.dot_dimension_numbers<[1], [0], [0], [1], [0, 0, 1, 1], [], []>} : vector<128x32xf32>, vector<32x32xf32>, vector<128x32xf32> -> vector<128x32xf32>
    %401 = arith.addf %394, %400 : vector<128x32xf32>
    %c23 = arith.constant 23 : index
    %c0_108 = arith.constant 0 : index
    %402 = vector.load %arg22[%c23, %c0_108] : memref<176x32xf32, #tpu.memory_space<vmem>>, vector<128x32xf32>
    %403 = vector.broadcast %359 : vector<128x1xf32> to vector<128x32xf32>
    %404 = arith.mulf %402, %403 : vector<128x32xf32>
    %c0_109 = arith.constant 0 : index
    %c3_110 = arith.constant 3 : index
    %c0_111 = arith.constant 0 : index
    %c0_112 = arith.constant 0 : index
    %405 = vector.load %arg11[%c0_109, %c3_110, %c0_111, %c0_112] : memref<1x9x32x32xf32, #tpu.memory_space<vmem>>, vector<1x1x32x32xf32>
    %406 = vector.shape_cast %405 : vector<1x1x32x32xf32> to vector<32x32xf32>
    %cst_113 = arith.constant dense<0.000000e+00> : vector<128x32xf32>
    %407 = tpu.matmul %404, %406, %cst_113 {dimension_numbers = #tpu.dot_dimension_numbers<[1], [0], [0], [1], [0, 0, 1, 1], [], []>} : vector<128x32xf32>, vector<32x32xf32>, vector<128x32xf32> -> vector<128x32xf32>
    %408 = arith.addf %401, %407 : vector<128x32xf32>
    %c24_114 = arith.constant 24 : index
    %c0_115 = arith.constant 0 : index
    %409 = vector.load %arg22[%c24_114, %c0_115] : memref<176x32xf32, #tpu.memory_space<vmem>>, vector<128x32xf32>
    %c0_116 = arith.constant 0 : index
    %c4_117 = arith.constant 4 : index
    %c0_118 = arith.constant 0 : index
    %c0_119 = arith.constant 0 : index
    %410 = vector.load %arg11[%c0_116, %c4_117, %c0_118, %c0_119] : memref<1x9x32x32xf32, #tpu.memory_space<vmem>>, vector<1x1x32x32xf32>
    %411 = vector.shape_cast %410 : vector<1x1x32x32xf32> to vector<32x32xf32>
    %cst_120 = arith.constant dense<0.000000e+00> : vector<128x32xf32>
    %412 = tpu.matmul %409, %411, %cst_120 {dimension_numbers = #tpu.dot_dimension_numbers<[1], [0], [0], [1], [0, 0, 1, 1], [], []>} : vector<128x32xf32>, vector<32x32xf32>, vector<128x32xf32> -> vector<128x32xf32>
    %413 = arith.addf %408, %412 : vector<128x32xf32>
    %c25 = arith.constant 25 : index
    %c0_121 = arith.constant 0 : index
    %414 = vector.load %arg22[%c25, %c0_121] : memref<176x32xf32, #tpu.memory_space<vmem>>, vector<128x32xf32>
    %415 = vector.broadcast %360 : vector<128x1xf32> to vector<128x32xf32>
    %416 = arith.mulf %414, %415 : vector<128x32xf32>
    %c0_122 = arith.constant 0 : index
    %c5_123 = arith.constant 5 : index
    %c0_124 = arith.constant 0 : index
    %c0_125 = arith.constant 0 : index
    %417 = vector.load %arg11[%c0_122, %c5_123, %c0_124, %c0_125] : memref<1x9x32x32xf32, #tpu.memory_space<vmem>>, vector<1x1x32x32xf32>
    %418 = vector.shape_cast %417 : vector<1x1x32x32xf32> to vector<32x32xf32>
    %cst_126 = arith.constant dense<0.000000e+00> : vector<128x32xf32>
    %419 = tpu.matmul %416, %418, %cst_126 {dimension_numbers = #tpu.dot_dimension_numbers<[1], [0], [0], [1], [0, 0, 1, 1], [], []>} : vector<128x32xf32>, vector<32x32xf32>, vector<128x32xf32> -> vector<128x32xf32>
    %420 = arith.addf %413, %419 : vector<128x32xf32>
    %c39 = arith.constant 39 : index
    %c0_127 = arith.constant 0 : index
    %421 = vector.load %arg22[%c39, %c0_127] : memref<176x32xf32, #tpu.memory_space<vmem>>, vector<128x32xf32>
    %422 = vector.broadcast %359 : vector<128x1xf32> to vector<128x32xf32>
    %423 = arith.mulf %421, %422 : vector<128x32xf32>
    %c0_128 = arith.constant 0 : index
    %c6_129 = arith.constant 6 : index
    %c0_130 = arith.constant 0 : index
    %c0_131 = arith.constant 0 : index
    %424 = vector.load %arg11[%c0_128, %c6_129, %c0_130, %c0_131] : memref<1x9x32x32xf32, #tpu.memory_space<vmem>>, vector<1x1x32x32xf32>
    %425 = vector.shape_cast %424 : vector<1x1x32x32xf32> to vector<32x32xf32>
    %cst_132 = arith.constant dense<0.000000e+00> : vector<128x32xf32>
    %426 = tpu.matmul %423, %425, %cst_132 {dimension_numbers = #tpu.dot_dimension_numbers<[1], [0], [0], [1], [0, 0, 1, 1], [], []>} : vector<128x32xf32>, vector<32x32xf32>, vector<128x32xf32> -> vector<128x32xf32>
    %427 = arith.addf %420, %426 : vector<128x32xf32>
    %c40 = arith.constant 40 : index
    %c0_133 = arith.constant 0 : index
    %428 = vector.load %arg22[%c40, %c0_133] : memref<176x32xf32, #tpu.memory_space<vmem>>, vector<128x32xf32>
    %c0_134 = arith.constant 0 : index
    %c7_135 = arith.constant 7 : index
    %c0_136 = arith.constant 0 : index
    %c0_137 = arith.constant 0 : index
    %429 = vector.load %arg11[%c0_134, %c7_135, %c0_136, %c0_137] : memref<1x9x32x32xf32, #tpu.memory_space<vmem>>, vector<1x1x32x32xf32>
    %430 = vector.shape_cast %429 : vector<1x1x32x32xf32> to vector<32x32xf32>
    %cst_138 = arith.constant dense<0.000000e+00> : vector<128x32xf32>
    %431 = tpu.matmul %428, %430, %cst_138 {dimension_numbers = #tpu.dot_dimension_numbers<[1], [0], [0], [1], [0, 0, 1, 1], [], []>} : vector<128x32xf32>, vector<32x32xf32>, vector<128x32xf32> -> vector<128x32xf32>
    %432 = arith.addf %427, %431 : vector<128x32xf32>
    %c41 = arith.constant 41 : index
    %c0_139 = arith.constant 0 : index
    %433 = vector.load %arg22[%c41, %c0_139] : memref<176x32xf32, #tpu.memory_space<vmem>>, vector<128x32xf32>
    %434 = vector.broadcast %360 : vector<128x1xf32> to vector<128x32xf32>
    %435 = arith.mulf %433, %434 : vector<128x32xf32>
    %c0_140 = arith.constant 0 : index
    %c8_141 = arith.constant 8 : index
    %c0_142 = arith.constant 0 : index
    %c0_143 = arith.constant 0 : index
    %436 = vector.load %arg11[%c0_140, %c8_141, %c0_142, %c0_143] : memref<1x9x32x32xf32, #tpu.memory_space<vmem>>, vector<1x1x32x32xf32>
    %437 = vector.shape_cast %436 : vector<1x1x32x32xf32> to vector<32x32xf32>
    %cst_144 = arith.constant dense<0.000000e+00> : vector<128x32xf32>
    %438 = tpu.matmul %435, %437, %cst_144 {dimension_numbers = #tpu.dot_dimension_numbers<[1], [0], [0], [1], [0, 0, 1, 1], [], []>} : vector<128x32xf32>, vector<32x32xf32>, vector<128x32xf32> -> vector<128x32xf32>
    %439 = arith.addf %432, %438 : vector<128x32xf32>
    %c0_145 = arith.constant 0 : index
    %c0_146 = arith.constant 0 : index
    %c0_147 = arith.constant 0 : index
    %440 = vector.load %arg12[%c0_145, %c0_146, %c0_147] : memref<1x1x32xf32, #tpu.memory_space<vmem>>, vector<1x1x32xf32>
    %441 = vector.shape_cast %440 : vector<1x1x32xf32> to vector<1x32xf32>
    %442 = vector.broadcast %441 : vector<1x32xf32> to vector<128x32xf32>
    %443 = arith.addf %439, %442 : vector<128x32xf32>
    %cst_148 = arith.constant 0.000000e+00 : f32
    %444 = vector.broadcast %cst_148 : f32 to vector<128x32xf32>
    %445 = arith.maximumf %443, %444 : vector<128x32xf32>
    %c24_149 = arith.constant 24 : index
    %c0_150 = arith.constant 0 : index
    %446 = vector.load %arg22[%c24_149, %c0_150] : memref<176x32xf32, #tpu.memory_space<vmem>>, vector<128x32xf32>
    tpu.vector_store %arg22[%c24_149, %c0_150], %445 {strides = array<i32>} : memref<176x32xf32, #tpu.memory_space<vmem>>, vector<128x32xf32>,
    %cst_151 = arith.constant 0.000000e+00 : f32
    %447 = vector.broadcast %cst_151 : f32 to vector<128x32xf32>
    %c7_152 = arith.constant 7 : index
    %c0_153 = arith.constant 0 : index
    %448 = vector.load %arg22[%c7_152, %c0_153] : memref<176x32xf32, #tpu.memory_space<vmem>>, vector<128x32xf32>
    %449 = vector.broadcast %359 : vector<128x1xf32> to vector<128x32xf32>
    %450 = arith.mulf %448, %449 : vector<128x32xf32>
    %c0_154 = arith.constant 0 : index
    %c0_155 = arith.constant 0 : index
    %c0_156 = arith.constant 0 : index
    %c0_157 = arith.constant 0 : index
    %451 = vector.load %arg13[%c0_154, %c0_155, %c0_156, %c0_157] : memref<1x9x32x32xf32, #tpu.memory_space<vmem>>, vector<1x1x32x32xf32>
    %452 = vector.shape_cast %451 : vector<1x1x32x32xf32> to vector<32x32xf32>
    %cst_158 = arith.constant dense<0.000000e+00> : vector<128x32xf32>
    %453 = tpu.matmul %450, %452, %cst_158 {dimension_numbers = #tpu.dot_dimension_numbers<[1], [0], [0], [1], [0, 0, 1, 1], [], []>} : vector<128x32xf32>, vector<32x32xf32>, vector<128x32xf32> -> vector<128x32xf32>
    %454 = arith.addf %447, %453 : vector<128x32xf32>
    %c8_159 = arith.constant 8 : index
    %c0_160 = arith.constant 0 : index
    %455 = vector.load %arg22[%c8_159, %c0_160] : memref<176x32xf32, #tpu.memory_space<vmem>>, vector<128x32xf32>
    %c0_161 = arith.constant 0 : index
    %c1_162 = arith.constant 1 : index
    %c0_163 = arith.constant 0 : index
    %c0_164 = arith.constant 0 : index
    %456 = vector.load %arg13[%c0_161, %c1_162, %c0_163, %c0_164] : memref<1x9x32x32xf32, #tpu.memory_space<vmem>>, vector<1x1x32x32xf32>
    %457 = vector.shape_cast %456 : vector<1x1x32x32xf32> to vector<32x32xf32>
    %cst_165 = arith.constant dense<0.000000e+00> : vector<128x32xf32>
    %458 = tpu.matmul %455, %457, %cst_165 {dimension_numbers = #tpu.dot_dimension_numbers<[1], [0], [0], [1], [0, 0, 1, 1], [], []>} : vector<128x32xf32>, vector<32x32xf32>, vector<128x32xf32> -> vector<128x32xf32>
    %459 = arith.addf %454, %458 : vector<128x32xf32>
    %c9_166 = arith.constant 9 : index
    %c0_167 = arith.constant 0 : index
    %460 = vector.load %arg22[%c9_166, %c0_167] : memref<176x32xf32, #tpu.memory_space<vmem>>, vector<128x32xf32>
    %461 = vector.broadcast %360 : vector<128x1xf32> to vector<128x32xf32>
    %462 = arith.mulf %460, %461 : vector<128x32xf32>
    %c0_168 = arith.constant 0 : index
    %c2_169 = arith.constant 2 : index
    %c0_170 = arith.constant 0 : index
    %c0_171 = arith.constant 0 : index
    %463 = vector.load %arg13[%c0_168, %c2_169, %c0_170, %c0_171] : memref<1x9x32x32xf32, #tpu.memory_space<vmem>>, vector<1x1x32x32xf32>
    %464 = vector.shape_cast %463 : vector<1x1x32x32xf32> to vector<32x32xf32>
    %cst_172 = arith.constant dense<0.000000e+00> : vector<128x32xf32>
    %465 = tpu.matmul %462, %464, %cst_172 {dimension_numbers = #tpu.dot_dimension_numbers<[1], [0], [0], [1], [0, 0, 1, 1], [], []>} : vector<128x32xf32>, vector<32x32xf32>, vector<128x32xf32> -> vector<128x32xf32>
    %466 = arith.addf %459, %465 : vector<128x32xf32>
    %c23_173 = arith.constant 23 : index
    %c0_174 = arith.constant 0 : index
    %467 = vector.load %arg22[%c23_173, %c0_174] : memref<176x32xf32, #tpu.memory_space<vmem>>, vector<128x32xf32>
    %468 = vector.broadcast %359 : vector<128x1xf32> to vector<128x32xf32>
    %469 = arith.mulf %467, %468 : vector<128x32xf32>
    %c0_175 = arith.constant 0 : index
    %c3_176 = arith.constant 3 : index
    %c0_177 = arith.constant 0 : index
    %c0_178 = arith.constant 0 : index
    %470 = vector.load %arg13[%c0_175, %c3_176, %c0_177, %c0_178] : memref<1x9x32x32xf32, #tpu.memory_space<vmem>>, vector<1x1x32x32xf32>
    %471 = vector.shape_cast %470 : vector<1x1x32x32xf32> to vector<32x32xf32>
    %cst_179 = arith.constant dense<0.000000e+00> : vector<128x32xf32>
    %472 = tpu.matmul %469, %471, %cst_179 {dimension_numbers = #tpu.dot_dimension_numbers<[1], [0], [0], [1], [0, 0, 1, 1], [], []>} : vector<128x32xf32>, vector<32x32xf32>, vector<128x32xf32> -> vector<128x32xf32>
    %473 = arith.addf %466, %472 : vector<128x32xf32>
    %c24_180 = arith.constant 24 : index
    %c0_181 = arith.constant 0 : index
    %474 = vector.load %arg22[%c24_180, %c0_181] : memref<176x32xf32, #tpu.memory_space<vmem>>, vector<128x32xf32>
    %c0_182 = arith.constant 0 : index
    %c4_183 = arith.constant 4 : index
    %c0_184 = arith.constant 0 : index
    %c0_185 = arith.constant 0 : index
    %475 = vector.load %arg13[%c0_182, %c4_183, %c0_184, %c0_185] : memref<1x9x32x32xf32, #tpu.memory_space<vmem>>, vector<1x1x32x32xf32>
    %476 = vector.shape_cast %475 : vector<1x1x32x32xf32> to vector<32x32xf32>
    %cst_186 = arith.constant dense<0.000000e+00> : vector<128x32xf32>
    %477 = tpu.matmul %474, %476, %cst_186 {dimension_numbers = #tpu.dot_dimension_numbers<[1], [0], [0], [1], [0, 0, 1, 1], [], []>} : vector<128x32xf32>, vector<32x32xf32>, vector<128x32xf32> -> vector<128x32xf32>
    %478 = arith.addf %473, %477 : vector<128x32xf32>
    %c25_187 = arith.constant 25 : index
    %c0_188 = arith.constant 0 : index
    %479 = vector.load %arg22[%c25_187, %c0_188] : memref<176x32xf32, #tpu.memory_space<vmem>>, vector<128x32xf32>
    %480 = vector.broadcast %360 : vector<128x1xf32> to vector<128x32xf32>
    %481 = arith.mulf %479, %480 : vector<128x32xf32>
    %c0_189 = arith.constant 0 : index
    %c5_190 = arith.constant 5 : index
    %c0_191 = arith.constant 0 : index
    %c0_192 = arith.constant 0 : index
    %482 = vector.load %arg13[%c0_189, %c5_190, %c0_191, %c0_192] : memref<1x9x32x32xf32, #tpu.memory_space<vmem>>, vector<1x1x32x32xf32>
    %483 = vector.shape_cast %482 : vector<1x1x32x32xf32> to vector<32x32xf32>
    %cst_193 = arith.constant dense<0.000000e+00> : vector<128x32xf32>
    %484 = tpu.matmul %481, %483, %cst_193 {dimension_numbers = #tpu.dot_dimension_numbers<[1], [0], [0], [1], [0, 0, 1, 1], [], []>} : vector<128x32xf32>, vector<32x32xf32>, vector<128x32xf32> -> vector<128x32xf32>
    %485 = arith.addf %478, %484 : vector<128x32xf32>
    %c39_194 = arith.constant 39 : index
    %c0_195 = arith.constant 0 : index
    %486 = vector.load %arg22[%c39_194, %c0_195] : memref<176x32xf32, #tpu.memory_space<vmem>>, vector<128x32xf32>
    %487 = vector.broadcast %359 : vector<128x1xf32> to vector<128x32xf32>
    %488 = arith.mulf %486, %487 : vector<128x32xf32>
    %c0_196 = arith.constant 0 : index
    %c6_197 = arith.constant 6 : index
    %c0_198 = arith.constant 0 : index
    %c0_199 = arith.constant 0 : index
    %489 = vector.load %arg13[%c0_196, %c6_197, %c0_198, %c0_199] : memref<1x9x32x32xf32, #tpu.memory_space<vmem>>, vector<1x1x32x32xf32>
    %490 = vector.shape_cast %489 : vector<1x1x32x32xf32> to vector<32x32xf32>
    %cst_200 = arith.constant dense<0.000000e+00> : vector<128x32xf32>
    %491 = tpu.matmul %488, %490, %cst_200 {dimension_numbers = #tpu.dot_dimension_numbers<[1], [0], [0], [1], [0, 0, 1, 1], [], []>} : vector<128x32xf32>, vector<32x32xf32>, vector<128x32xf32> -> vector<128x32xf32>
    %492 = arith.addf %485, %491 : vector<128x32xf32>
    %c40_201 = arith.constant 40 : index
    %c0_202 = arith.constant 0 : index
    %493 = vector.load %arg22[%c40_201, %c0_202] : memref<176x32xf32, #tpu.memory_space<vmem>>, vector<128x32xf32>
    %c0_203 = arith.constant 0 : index
    %c7_204 = arith.constant 7 : index
    %c0_205 = arith.constant 0 : index
    %c0_206 = arith.constant 0 : index
    %494 = vector.load %arg13[%c0_203, %c7_204, %c0_205, %c0_206] : memref<1x9x32x32xf32, #tpu.memory_space<vmem>>, vector<1x1x32x32xf32>
    %495 = vector.shape_cast %494 : vector<1x1x32x32xf32> to vector<32x32xf32>
    %cst_207 = arith.constant dense<0.000000e+00> : vector<128x32xf32>
    %496 = tpu.matmul %493, %495, %cst_207 {dimension_numbers = #tpu.dot_dimension_numbers<[1], [0], [0], [1], [0, 0, 1, 1], [], []>} : vector<128x32xf32>, vector<32x32xf32>, vector<128x32xf32> -> vector<128x32xf32>
    %497 = arith.addf %492, %496 : vector<128x32xf32>
    %c41_208 = arith.constant 41 : index
    %c0_209 = arith.constant 0 : index
    %498 = vector.load %arg22[%c41_208, %c0_209] : memref<176x32xf32, #tpu.memory_space<vmem>>, vector<128x32xf32>
    %499 = vector.broadcast %360 : vector<128x1xf32> to vector<128x32xf32>
    %500 = arith.mulf %498, %499 : vector<128x32xf32>
    %c0_210 = arith.constant 0 : index
    %c8_211 = arith.constant 8 : index
    %c0_212 = arith.constant 0 : index
    %c0_213 = arith.constant 0 : index
    %501 = vector.load %arg13[%c0_210, %c8_211, %c0_212, %c0_213] : memref<1x9x32x32xf32, #tpu.memory_space<vmem>>, vector<1x1x32x32xf32>
    %502 = vector.shape_cast %501 : vector<1x1x32x32xf32> to vector<32x32xf32>
    %cst_214 = arith.constant dense<0.000000e+00> : vector<128x32xf32>
    %503 = tpu.matmul %500, %502, %cst_214 {dimension_numbers = #tpu.dot_dimension_numbers<[1], [0], [0], [1], [0, 0, 1, 1], [], []>} : vector<128x32xf32>, vector<32x32xf32>, vector<128x32xf32> -> vector<128x32xf32>
    %504 = arith.addf %497, %503 : vector<128x32xf32>
    %c0_215 = arith.constant 0 : index
    %c0_216 = arith.constant 0 : index
    %c0_217 = arith.constant 0 : index
    %505 = vector.load %arg14[%c0_215, %c0_216, %c0_217] : memref<1x1x32xf32, #tpu.memory_space<vmem>>, vector<1x1x32xf32>
    %506 = vector.shape_cast %505 : vector<1x1x32xf32> to vector<1x32xf32>
    %507 = vector.broadcast %506 : vector<1x32xf32> to vector<128x32xf32>
    %508 = arith.addf %504, %507 : vector<128x32xf32>
    %509 = arith.addf %508, %380 : vector<128x32xf32>
    %cst_218 = arith.constant 0.000000e+00 : f32
    %510 = vector.broadcast %cst_218 : f32 to vector<128x32xf32>
    %511 = arith.maximumf %509, %510 : vector<128x32xf32>
    %512 = vector.extract_strided_slice %511 {offsets = [0, 0], sizes = [16, 32], strides = [1, 1]} : vector<128x32xf32> to vector<16x32xf32>
    %cst_219 = arith.constant dense<0.000000e+00> : vector<16x32xf32>
    %513 = tpu.matmul %363, %512, %cst_219 {dimension_numbers = #tpu.dot_dimension_numbers<[1], [0], [0], [1], [0, 0, 1, 1], [], []>} : vector<16x16xf32>, vector<16x32xf32>, vector<16x32xf32> -> vector<16x32xf32>
    %514 = vector.broadcast %364 : vector<16x1xf32> to vector<16x32xf32>
    %515 = arith.addf %513, %514 : vector<16x32xf32>
    %516 = vector.extract_strided_slice %511 {offsets = [16, 0], sizes = [16, 32], strides = [1, 1]} : vector<128x32xf32> to vector<16x32xf32>
    %cst_220 = arith.constant dense<0.000000e+00> : vector<16x32xf32>
    %517 = tpu.matmul %363, %516, %cst_220 {dimension_numbers = #tpu.dot_dimension_numbers<[1], [0], [0], [1], [0, 0, 1, 1], [], []>} : vector<16x16xf32>, vector<16x32xf32>, vector<16x32xf32> -> vector<16x32xf32>
    %518 = vector.broadcast %364 : vector<16x1xf32> to vector<16x32xf32>
    %519 = arith.addf %517, %518 : vector<16x32xf32>
    %520 = vector.extract_strided_slice %511 {offsets = [32, 0], sizes = [16, 32], strides = [1, 1]} : vector<128x32xf32> to vector<16x32xf32>
    %cst_221 = arith.constant dense<0.000000e+00> : vector<16x32xf32>
    %521 = tpu.matmul %363, %520, %cst_221 {dimension_numbers = #tpu.dot_dimension_numbers<[1], [0], [0], [1], [0, 0, 1, 1], [], []>} : vector<16x16xf32>, vector<16x32xf32>, vector<16x32xf32> -> vector<16x32xf32>
    %522 = vector.broadcast %364 : vector<16x1xf32> to vector<16x32xf32>
    %523 = arith.addf %521, %522 : vector<16x32xf32>
    %524 = vector.extract_strided_slice %511 {offsets = [48, 0], sizes = [16, 32], strides = [1, 1]} : vector<128x32xf32> to vector<16x32xf32>
    %cst_222 = arith.constant dense<0.000000e+00> : vector<16x32xf32>
    %525 = tpu.matmul %363, %524, %cst_222 {dimension_numbers = #tpu.dot_dimension_numbers<[1], [0], [0], [1], [0, 0, 1, 1], [], []>} : vector<16x16xf32>, vector<16x32xf32>, vector<16x32xf32> -> vector<16x32xf32>
    %526 = vector.broadcast %364 : vector<16x1xf32> to vector<16x32xf32>
    %527 = arith.addf %525, %526 : vector<16x32xf32>
    %528 = vector.extract_strided_slice %511 {offsets = [64, 0], sizes = [16, 32], strides = [1, 1]} : vector<128x32xf32> to vector<16x32xf32>
    %cst_223 = arith.constant dense<0.000000e+00> : vector<16x32xf32>
    %529 = tpu.matmul %363, %528, %cst_223 {dimension_numbers = #tpu.dot_dimension_numbers<[1], [0], [0], [1], [0, 0, 1, 1], [], []>} : vector<16x16xf32>, vector<16x32xf32>, vector<16x32xf32> -> vector<16x32xf32>
    %530 = vector.broadcast %364 : vector<16x1xf32> to vector<16x32xf32>
    %531 = arith.addf %529, %530 : vector<16x32xf32>
    %532 = vector.extract_strided_slice %511 {offsets = [80, 0], sizes = [16, 32], strides = [1, 1]} : vector<128x32xf32> to vector<16x32xf32>
    %cst_224 = arith.constant dense<0.000000e+00> : vector<16x32xf32>
    %533 = tpu.matmul %363, %532, %cst_224 {dimension_numbers = #tpu.dot_dimension_numbers<[1], [0], [0], [1], [0, 0, 1, 1], [], []>} : vector<16x16xf32>, vector<16x32xf32>, vector<16x32xf32> -> vector<16x32xf32>
    %534 = vector.broadcast %364 : vector<16x1xf32> to vector<16x32xf32>
    %535 = arith.addf %533, %534 : vector<16x32xf32>
    %536 = vector.extract_strided_slice %511 {offsets = [96, 0], sizes = [16, 32], strides = [1, 1]} : vector<128x32xf32> to vector<16x32xf32>
    %cst_225 = arith.constant dense<0.000000e+00> : vector<16x32xf32>
    %537 = tpu.matmul %363, %536, %cst_225 {dimension_numbers = #tpu.dot_dimension_numbers<[1], [0], [0], [1], [0, 0, 1, 1], [], []>} : vector<16x16xf32>, vector<16x32xf32>, vector<16x32xf32> -> vector<16x32xf32>
    %538 = vector.broadcast %364 : vector<16x1xf32> to vector<16x32xf32>
    %539 = arith.addf %537, %538 : vector<16x32xf32>
    %540 = vector.extract_strided_slice %511 {offsets = [112, 0], sizes = [16, 32], strides = [1, 1]} : vector<128x32xf32> to vector<16x32xf32>
    %cst_226 = arith.constant dense<0.000000e+00> : vector<16x32xf32>
    %541 = tpu.matmul %363, %540, %cst_226 {dimension_numbers = #tpu.dot_dimension_numbers<[1], [0], [0], [1], [0, 0, 1, 1], [], []>} : vector<16x16xf32>, vector<16x32xf32>, vector<16x32xf32> -> vector<16x32xf32>
    %542 = vector.broadcast %364 : vector<16x1xf32> to vector<16x32xf32>
    %543 = arith.addf %541, %542 : vector<16x32xf32>
    %544 = tpu.concatenate %515, %519, %523, %527, %531, %535, %539, %543 in 0 : vector<16x32xf32>, vector<16x32xf32>, vector<16x32xf32>, vector<16x32xf32>, vector<16x32xf32>, vector<16x32xf32>, vector<16x32xf32>, vector<16x32xf32> -> vector<128x32xf32>
    %cst_227 = arith.constant dense<0.000000e+00> : vector<128x2xf32>
    %545 = tpu.matmul %544, %365, %cst_227 {dimension_numbers = #tpu.dot_dimension_numbers<[1], [0], [0], [1], [0, 0, 1, 1], [], []>} : vector<128x32xf32>, vector<32x2xf32>, vector<128x2xf32> -> vector<128x2xf32>
    %546 = vector.broadcast %366 : vector<1x2xf32> to vector<128x2xf32>
    %547 = arith.addf %545, %546 : vector<128x2xf32>
    %548 = tpu.transpose %547, [1, 0] : vector<128x2xf32> -> vector<2x128xf32>
    %c0_228 = arith.constant 0 : index
    %c0_229 = arith.constant 0 : index
    %549 = vector.load %arg21[%c0_228, %c0_229] : memref<4x128xf32, #tpu.memory_space<vmem>>, vector<2x128xf32>
    tpu.vector_store %arg21[%c0_228, %c0_229], %548 {strides = array<i32>} : memref<4x128xf32, #tpu.memory_space<vmem>>, vector<2x128xf32>,
    %550 = vector.extract_strided_slice %55 {offsets = [0, 5], sizes = [16, 5], strides = [1, 1]} : vector<16x10xf32> to vector<16x5xf32>
    %551 = vector.extract_strided_slice %98 {offsets = [0, 5], sizes = [16, 5], strides = [1, 1]} : vector<16x10xf32> to vector<16x5xf32>
    %552 = vector.extract_strided_slice %141 {offsets = [0, 5], sizes = [16, 5], strides = [1, 1]} : vector<16x10xf32> to vector<16x5xf32>
    %553 = vector.extract_strided_slice %184 {offsets = [0, 5], sizes = [16, 5], strides = [1, 1]} : vector<16x10xf32> to vector<16x5xf32>
    %554 = vector.extract_strided_slice %227 {offsets = [0, 5], sizes = [16, 5], strides = [1, 1]} : vector<16x10xf32> to vector<16x5xf32>
    %555 = vector.extract_strided_slice %270 {offsets = [0, 5], sizes = [16, 5], strides = [1, 1]} : vector<16x10xf32> to vector<16x5xf32>
    %556 = vector.extract_strided_slice %313 {offsets = [0, 5], sizes = [16, 5], strides = [1, 1]} : vector<16x10xf32> to vector<16x5xf32>
    %557 = vector.extract_strided_slice %356 {offsets = [0, 5], sizes = [16, 5], strides = [1, 1]} : vector<16x10xf32> to vector<16x5xf32>
    %558 = tpu.concatenate %550, %551, %552, %553, %554, %555, %556, %557 in 0 : vector<16x5xf32>, vector<16x5xf32>, vector<16x5xf32>, vector<16x5xf32>, vector<16x5xf32>, vector<16x5xf32>, vector<16x5xf32>, vector<16x5xf32> -> vector<128x5xf32>
    %cst_230 = arith.constant dense<0.000000e+00> : vector<128x32xf32>
    %559 = tpu.matmul %558, %361, %cst_230 {dimension_numbers = #tpu.dot_dimension_numbers<[1], [0], [0], [1], [0, 0, 1, 1], [], []>} : vector<128x5xf32>, vector<5x32xf32>, vector<128x32xf32> -> vector<128x32xf32>
    %560 = vector.broadcast %362 : vector<1x32xf32> to vector<128x32xf32>
    %561 = arith.addf %559, %560 : vector<128x32xf32>
    %cst_231 = arith.constant 0.000000e+00 : f32
    %562 = vector.broadcast %cst_231 : f32 to vector<128x32xf32>
    %563 = arith.maximumf %561, %562 : vector<128x32xf32>
    %c24_232 = arith.constant 24 : index
    %c0_233 = arith.constant 0 : index
    %564 = vector.load %arg22[%c24_232, %c0_233] : memref<176x32xf32, #tpu.memory_space<vmem>>, vector<128x32xf32>
    tpu.vector_store %arg22[%c24_232, %c0_233], %563 {strides = array<i32>} : memref<176x32xf32, #tpu.memory_space<vmem>>, vector<128x32xf32>,
    %cst_234 = arith.constant 0.000000e+00 : f32
    %565 = vector.broadcast %cst_234 : f32 to vector<128x32xf32>
    %c7_235 = arith.constant 7 : index
    %c0_236 = arith.constant 0 : index
    %566 = vector.load %arg22[%c7_235, %c0_236] : memref<176x32xf32, #tpu.memory_space<vmem>>, vector<128x32xf32>
    %567 = vector.broadcast %359 : vector<128x1xf32> to vector<128x32xf32>
    %568 = arith.mulf %566, %567 : vector<128x32xf32>
    %c0_237 = arith.constant 0 : index
    %c0_238 = arith.constant 0 : index
    %c0_239 = arith.constant 0 : index
    %c0_240 = arith.constant 0 : index
    %569 = vector.load %arg11[%c0_237, %c0_238, %c0_239, %c0_240] : memref<1x9x32x32xf32, #tpu.memory_space<vmem>>, vector<1x1x32x32xf32>
    %570 = vector.shape_cast %569 : vector<1x1x32x32xf32> to vector<32x32xf32>
    %cst_241 = arith.constant dense<0.000000e+00> : vector<128x32xf32>
    %571 = tpu.matmul %568, %570, %cst_241 {dimension_numbers = #tpu.dot_dimension_numbers<[1], [0], [0], [1], [0, 0, 1, 1], [], []>} : vector<128x32xf32>, vector<32x32xf32>, vector<128x32xf32> -> vector<128x32xf32>
    %572 = arith.addf %565, %571 : vector<128x32xf32>
    %c8_242 = arith.constant 8 : index
    %c0_243 = arith.constant 0 : index
    %573 = vector.load %arg22[%c8_242, %c0_243] : memref<176x32xf32, #tpu.memory_space<vmem>>, vector<128x32xf32>
    %c0_244 = arith.constant 0 : index
    %c1_245 = arith.constant 1 : index
    %c0_246 = arith.constant 0 : index
    %c0_247 = arith.constant 0 : index
    %574 = vector.load %arg11[%c0_244, %c1_245, %c0_246, %c0_247] : memref<1x9x32x32xf32, #tpu.memory_space<vmem>>, vector<1x1x32x32xf32>
    %575 = vector.shape_cast %574 : vector<1x1x32x32xf32> to vector<32x32xf32>
    %cst_248 = arith.constant dense<0.000000e+00> : vector<128x32xf32>
    %576 = tpu.matmul %573, %575, %cst_248 {dimension_numbers = #tpu.dot_dimension_numbers<[1], [0], [0], [1], [0, 0, 1, 1], [], []>} : vector<128x32xf32>, vector<32x32xf32>, vector<128x32xf32> -> vector<128x32xf32>
    %577 = arith.addf %572, %576 : vector<128x32xf32>
    %c9_249 = arith.constant 9 : index
    %c0_250 = arith.constant 0 : index
    %578 = vector.load %arg22[%c9_249, %c0_250] : memref<176x32xf32, #tpu.memory_space<vmem>>, vector<128x32xf32>
    %579 = vector.broadcast %360 : vector<128x1xf32> to vector<128x32xf32>
    %580 = arith.mulf %578, %579 : vector<128x32xf32>
    %c0_251 = arith.constant 0 : index
    %c2_252 = arith.constant 2 : index
    %c0_253 = arith.constant 0 : index
    %c0_254 = arith.constant 0 : index
    %581 = vector.load %arg11[%c0_251, %c2_252, %c0_253, %c0_254] : memref<1x9x32x32xf32, #tpu.memory_space<vmem>>, vector<1x1x32x32xf32>
    %582 = vector.shape_cast %581 : vector<1x1x32x32xf32> to vector<32x32xf32>
    %cst_255 = arith.constant dense<0.000000e+00> : vector<128x32xf32>
    %583 = tpu.matmul %580, %582, %cst_255 {dimension_numbers = #tpu.dot_dimension_numbers<[1], [0], [0], [1], [0, 0, 1, 1], [], []>} : vector<128x32xf32>, vector<32x32xf32>, vector<128x32xf32> -> vector<128x32xf32>
    %584 = arith.addf %577, %583 : vector<128x32xf32>
    %c23_256 = arith.constant 23 : index
    %c0_257 = arith.constant 0 : index
    %585 = vector.load %arg22[%c23_256, %c0_257] : memref<176x32xf32, #tpu.memory_space<vmem>>, vector<128x32xf32>
    %586 = vector.broadcast %359 : vector<128x1xf32> to vector<128x32xf32>
    %587 = arith.mulf %585, %586 : vector<128x32xf32>
    %c0_258 = arith.constant 0 : index
    %c3_259 = arith.constant 3 : index
    %c0_260 = arith.constant 0 : index
    %c0_261 = arith.constant 0 : index
    %588 = vector.load %arg11[%c0_258, %c3_259, %c0_260, %c0_261] : memref<1x9x32x32xf32, #tpu.memory_space<vmem>>, vector<1x1x32x32xf32>
    %589 = vector.shape_cast %588 : vector<1x1x32x32xf32> to vector<32x32xf32>
    %cst_262 = arith.constant dense<0.000000e+00> : vector<128x32xf32>
    %590 = tpu.matmul %587, %589, %cst_262 {dimension_numbers = #tpu.dot_dimension_numbers<[1], [0], [0], [1], [0, 0, 1, 1], [], []>} : vector<128x32xf32>, vector<32x32xf32>, vector<128x32xf32> -> vector<128x32xf32>
    %591 = arith.addf %584, %590 : vector<128x32xf32>
    %c24_263 = arith.constant 24 : index
    %c0_264 = arith.constant 0 : index
    %592 = vector.load %arg22[%c24_263, %c0_264] : memref<176x32xf32, #tpu.memory_space<vmem>>, vector<128x32xf32>
    %c0_265 = arith.constant 0 : index
    %c4_266 = arith.constant 4 : index
    %c0_267 = arith.constant 0 : index
    %c0_268 = arith.constant 0 : index
    %593 = vector.load %arg11[%c0_265, %c4_266, %c0_267, %c0_268] : memref<1x9x32x32xf32, #tpu.memory_space<vmem>>, vector<1x1x32x32xf32>
    %594 = vector.shape_cast %593 : vector<1x1x32x32xf32> to vector<32x32xf32>
    %cst_269 = arith.constant dense<0.000000e+00> : vector<128x32xf32>
    %595 = tpu.matmul %592, %594, %cst_269 {dimension_numbers = #tpu.dot_dimension_numbers<[1], [0], [0], [1], [0, 0, 1, 1], [], []>} : vector<128x32xf32>, vector<32x32xf32>, vector<128x32xf32> -> vector<128x32xf32>
    %596 = arith.addf %591, %595 : vector<128x32xf32>
    %c25_270 = arith.constant 25 : index
    %c0_271 = arith.constant 0 : index
    %597 = vector.load %arg22[%c25_270, %c0_271] : memref<176x32xf32, #tpu.memory_space<vmem>>, vector<128x32xf32>
    %598 = vector.broadcast %360 : vector<128x1xf32> to vector<128x32xf32>
    %599 = arith.mulf %597, %598 : vector<128x32xf32>
    %c0_272 = arith.constant 0 : index
    %c5_273 = arith.constant 5 : index
    %c0_274 = arith.constant 0 : index
    %c0_275 = arith.constant 0 : index
    %600 = vector.load %arg11[%c0_272, %c5_273, %c0_274, %c0_275] : memref<1x9x32x32xf32, #tpu.memory_space<vmem>>, vector<1x1x32x32xf32>
    %601 = vector.shape_cast %600 : vector<1x1x32x32xf32> to vector<32x32xf32>
    %cst_276 = arith.constant dense<0.000000e+00> : vector<128x32xf32>
    %602 = tpu.matmul %599, %601, %cst_276 {dimension_numbers = #tpu.dot_dimension_numbers<[1], [0], [0], [1], [0, 0, 1, 1], [], []>} : vector<128x32xf32>, vector<32x32xf32>, vector<128x32xf32> -> vector<128x32xf32>
    %603 = arith.addf %596, %602 : vector<128x32xf32>
    %c39_277 = arith.constant 39 : index
    %c0_278 = arith.constant 0 : index
    %604 = vector.load %arg22[%c39_277, %c0_278] : memref<176x32xf32, #tpu.memory_space<vmem>>, vector<128x32xf32>
    %605 = vector.broadcast %359 : vector<128x1xf32> to vector<128x32xf32>
    %606 = arith.mulf %604, %605 : vector<128x32xf32>
    %c0_279 = arith.constant 0 : index
    %c6_280 = arith.constant 6 : index
    %c0_281 = arith.constant 0 : index
    %c0_282 = arith.constant 0 : index
    %607 = vector.load %arg11[%c0_279, %c6_280, %c0_281, %c0_282] : memref<1x9x32x32xf32, #tpu.memory_space<vmem>>, vector<1x1x32x32xf32>
    %608 = vector.shape_cast %607 : vector<1x1x32x32xf32> to vector<32x32xf32>
    %cst_283 = arith.constant dense<0.000000e+00> : vector<128x32xf32>
    %609 = tpu.matmul %606, %608, %cst_283 {dimension_numbers = #tpu.dot_dimension_numbers<[1], [0], [0], [1], [0, 0, 1, 1], [], []>} : vector<128x32xf32>, vector<32x32xf32>, vector<128x32xf32> -> vector<128x32xf32>
    %610 = arith.addf %603, %609 : vector<128x32xf32>
    %c40_284 = arith.constant 40 : index
    %c0_285 = arith.constant 0 : index
    %611 = vector.load %arg22[%c40_284, %c0_285] : memref<176x32xf32, #tpu.memory_space<vmem>>, vector<128x32xf32>
    %c0_286 = arith.constant 0 : index
    %c7_287 = arith.constant 7 : index
    %c0_288 = arith.constant 0 : index
    %c0_289 = arith.constant 0 : index
    %612 = vector.load %arg11[%c0_286, %c7_287, %c0_288, %c0_289] : memref<1x9x32x32xf32, #tpu.memory_space<vmem>>, vector<1x1x32x32xf32>
    %613 = vector.shape_cast %612 : vector<1x1x32x32xf32> to vector<32x32xf32>
    %cst_290 = arith.constant dense<0.000000e+00> : vector<128x32xf32>
    %614 = tpu.matmul %611, %613, %cst_290 {dimension_numbers = #tpu.dot_dimension_numbers<[1], [0], [0], [1], [0, 0, 1, 1], [], []>} : vector<128x32xf32>, vector<32x32xf32>, vector<128x32xf32> -> vector<128x32xf32>
    %615 = arith.addf %610, %614 : vector<128x32xf32>
    %c41_291 = arith.constant 41 : index
    %c0_292 = arith.constant 0 : index
    %616 = vector.load %arg22[%c41_291, %c0_292] : memref<176x32xf32, #tpu.memory_space<vmem>>, vector<128x32xf32>
    %617 = vector.broadcast %360 : vector<128x1xf32> to vector<128x32xf32>
    %618 = arith.mulf %616, %617 : vector<128x32xf32>
    %c0_293 = arith.constant 0 : index
    %c8_294 = arith.constant 8 : index
    %c0_295 = arith.constant 0 : index
    %c0_296 = arith.constant 0 : index
    %619 = vector.load %arg11[%c0_293, %c8_294, %c0_295, %c0_296] : memref<1x9x32x32xf32, #tpu.memory_space<vmem>>, vector<1x1x32x32xf32>
    %620 = vector.shape_cast %619 : vector<1x1x32x32xf32> to vector<32x32xf32>
    %cst_297 = arith.constant dense<0.000000e+00> : vector<128x32xf32>
    %621 = tpu.matmul %618, %620, %cst_297 {dimension_numbers = #tpu.dot_dimension_numbers<[1], [0], [0], [1], [0, 0, 1, 1], [], []>} : vector<128x32xf32>, vector<32x32xf32>, vector<128x32xf32> -> vector<128x32xf32>
    %622 = arith.addf %615, %621 : vector<128x32xf32>
    %c0_298 = arith.constant 0 : index
    %c0_299 = arith.constant 0 : index
    %c0_300 = arith.constant 0 : index
    %623 = vector.load %arg12[%c0_298, %c0_299, %c0_300] : memref<1x1x32xf32, #tpu.memory_space<vmem>>, vector<1x1x32xf32>
    %624 = vector.shape_cast %623 : vector<1x1x32xf32> to vector<1x32xf32>
    %625 = vector.broadcast %624 : vector<1x32xf32> to vector<128x32xf32>
    %626 = arith.addf %622, %625 : vector<128x32xf32>
    %cst_301 = arith.constant 0.000000e+00 : f32
    %627 = vector.broadcast %cst_301 : f32 to vector<128x32xf32>
    %628 = arith.maximumf %626, %627 : vector<128x32xf32>
    %c24_302 = arith.constant 24 : index
    %c0_303 = arith.constant 0 : index
    %629 = vector.load %arg22[%c24_302, %c0_303] : memref<176x32xf32, #tpu.memory_space<vmem>>, vector<128x32xf32>
    tpu.vector_store %arg22[%c24_302, %c0_303], %628 {strides = array<i32>} : memref<176x32xf32, #tpu.memory_space<vmem>>, vector<128x32xf32>,
    %cst_304 = arith.constant 0.000000e+00 : f32
    %630 = vector.broadcast %cst_304 : f32 to vector<128x32xf32>
    %c7_305 = arith.constant 7 : index
    %c0_306 = arith.constant 0 : index
    %631 = vector.load %arg22[%c7_305, %c0_306] : memref<176x32xf32, #tpu.memory_space<vmem>>, vector<128x32xf32>
    %632 = vector.broadcast %359 : vector<128x1xf32> to vector<128x32xf32>
    %633 = arith.mulf %631, %632 : vector<128x32xf32>
    %c0_307 = arith.constant 0 : index
    %c0_308 = arith.constant 0 : index
    %c0_309 = arith.constant 0 : index
    %c0_310 = arith.constant 0 : index
    %634 = vector.load %arg13[%c0_307, %c0_308, %c0_309, %c0_310] : memref<1x9x32x32xf32, #tpu.memory_space<vmem>>, vector<1x1x32x32xf32>
    %635 = vector.shape_cast %634 : vector<1x1x32x32xf32> to vector<32x32xf32>
    %cst_311 = arith.constant dense<0.000000e+00> : vector<128x32xf32>
    %636 = tpu.matmul %633, %635, %cst_311 {dimension_numbers = #tpu.dot_dimension_numbers<[1], [0], [0], [1], [0, 0, 1, 1], [], []>} : vector<128x32xf32>, vector<32x32xf32>, vector<128x32xf32> -> vector<128x32xf32>
    %637 = arith.addf %630, %636 : vector<128x32xf32>
    %c8_312 = arith.constant 8 : index
    %c0_313 = arith.constant 0 : index
    %638 = vector.load %arg22[%c8_312, %c0_313] : memref<176x32xf32, #tpu.memory_space<vmem>>, vector<128x32xf32>
    %c0_314 = arith.constant 0 : index
    %c1_315 = arith.constant 1 : index
    %c0_316 = arith.constant 0 : index
    %c0_317 = arith.constant 0 : index
    %639 = vector.load %arg13[%c0_314, %c1_315, %c0_316, %c0_317] : memref<1x9x32x32xf32, #tpu.memory_space<vmem>>, vector<1x1x32x32xf32>
    %640 = vector.shape_cast %639 : vector<1x1x32x32xf32> to vector<32x32xf32>
    %cst_318 = arith.constant dense<0.000000e+00> : vector<128x32xf32>
    %641 = tpu.matmul %638, %640, %cst_318 {dimension_numbers = #tpu.dot_dimension_numbers<[1], [0], [0], [1], [0, 0, 1, 1], [], []>} : vector<128x32xf32>, vector<32x32xf32>, vector<128x32xf32> -> vector<128x32xf32>
    %642 = arith.addf %637, %641 : vector<128x32xf32>
    %c9_319 = arith.constant 9 : index
    %c0_320 = arith.constant 0 : index
    %643 = vector.load %arg22[%c9_319, %c0_320] : memref<176x32xf32, #tpu.memory_space<vmem>>, vector<128x32xf32>
    %644 = vector.broadcast %360 : vector<128x1xf32> to vector<128x32xf32>
    %645 = arith.mulf %643, %644 : vector<128x32xf32>
    %c0_321 = arith.constant 0 : index
    %c2_322 = arith.constant 2 : index
    %c0_323 = arith.constant 0 : index
    %c0_324 = arith.constant 0 : index
    %646 = vector.load %arg13[%c0_321, %c2_322, %c0_323, %c0_324] : memref<1x9x32x32xf32, #tpu.memory_space<vmem>>, vector<1x1x32x32xf32>
    %647 = vector.shape_cast %646 : vector<1x1x32x32xf32> to vector<32x32xf32>
    %cst_325 = arith.constant dense<0.000000e+00> : vector<128x32xf32>
    %648 = tpu.matmul %645, %647, %cst_325 {dimension_numbers = #tpu.dot_dimension_numbers<[1], [0], [0], [1], [0, 0, 1, 1], [], []>} : vector<128x32xf32>, vector<32x32xf32>, vector<128x32xf32> -> vector<128x32xf32>
    %649 = arith.addf %642, %648 : vector<128x32xf32>
    %c23_326 = arith.constant 23 : index
    %c0_327 = arith.constant 0 : index
    %650 = vector.load %arg22[%c23_326, %c0_327] : memref<176x32xf32, #tpu.memory_space<vmem>>, vector<128x32xf32>
    %651 = vector.broadcast %359 : vector<128x1xf32> to vector<128x32xf32>
    %652 = arith.mulf %650, %651 : vector<128x32xf32>
    %c0_328 = arith.constant 0 : index
    %c3_329 = arith.constant 3 : index
    %c0_330 = arith.constant 0 : index
    %c0_331 = arith.constant 0 : index
    %653 = vector.load %arg13[%c0_328, %c3_329, %c0_330, %c0_331] : memref<1x9x32x32xf32, #tpu.memory_space<vmem>>, vector<1x1x32x32xf32>
    %654 = vector.shape_cast %653 : vector<1x1x32x32xf32> to vector<32x32xf32>
    %cst_332 = arith.constant dense<0.000000e+00> : vector<128x32xf32>
    %655 = tpu.matmul %652, %654, %cst_332 {dimension_numbers = #tpu.dot_dimension_numbers<[1], [0], [0], [1], [0, 0, 1, 1], [], []>} : vector<128x32xf32>, vector<32x32xf32>, vector<128x32xf32> -> vector<128x32xf32>
    %656 = arith.addf %649, %655 : vector<128x32xf32>
    %c24_333 = arith.constant 24 : index
    %c0_334 = arith.constant 0 : index
    %657 = vector.load %arg22[%c24_333, %c0_334] : memref<176x32xf32, #tpu.memory_space<vmem>>, vector<128x32xf32>
    %c0_335 = arith.constant 0 : index
    %c4_336 = arith.constant 4 : index
    %c0_337 = arith.constant 0 : index
    %c0_338 = arith.constant 0 : index
    %658 = vector.load %arg13[%c0_335, %c4_336, %c0_337, %c0_338] : memref<1x9x32x32xf32, #tpu.memory_space<vmem>>, vector<1x1x32x32xf32>
    %659 = vector.shape_cast %658 : vector<1x1x32x32xf32> to vector<32x32xf32>
    %cst_339 = arith.constant dense<0.000000e+00> : vector<128x32xf32>
    %660 = tpu.matmul %657, %659, %cst_339 {dimension_numbers = #tpu.dot_dimension_numbers<[1], [0], [0], [1], [0, 0, 1, 1], [], []>} : vector<128x32xf32>, vector<32x32xf32>, vector<128x32xf32> -> vector<128x32xf32>
    %661 = arith.addf %656, %660 : vector<128x32xf32>
    %c25_340 = arith.constant 25 : index
    %c0_341 = arith.constant 0 : index
    %662 = vector.load %arg22[%c25_340, %c0_341] : memref<176x32xf32, #tpu.memory_space<vmem>>, vector<128x32xf32>
    %663 = vector.broadcast %360 : vector<128x1xf32> to vector<128x32xf32>
    %664 = arith.mulf %662, %663 : vector<128x32xf32>
    %c0_342 = arith.constant 0 : index
    %c5_343 = arith.constant 5 : index
    %c0_344 = arith.constant 0 : index
    %c0_345 = arith.constant 0 : index
    %665 = vector.load %arg13[%c0_342, %c5_343, %c0_344, %c0_345] : memref<1x9x32x32xf32, #tpu.memory_space<vmem>>, vector<1x1x32x32xf32>
    %666 = vector.shape_cast %665 : vector<1x1x32x32xf32> to vector<32x32xf32>
    %cst_346 = arith.constant dense<0.000000e+00> : vector<128x32xf32>
    %667 = tpu.matmul %664, %666, %cst_346 {dimension_numbers = #tpu.dot_dimension_numbers<[1], [0], [0], [1], [0, 0, 1, 1], [], []>} : vector<128x32xf32>, vector<32x32xf32>, vector<128x32xf32> -> vector<128x32xf32>
    %668 = arith.addf %661, %667 : vector<128x32xf32>
    %c39_347 = arith.constant 39 : index
    %c0_348 = arith.constant 0 : index
    %669 = vector.load %arg22[%c39_347, %c0_348] : memref<176x32xf32, #tpu.memory_space<vmem>>, vector<128x32xf32>
    %670 = vector.broadcast %359 : vector<128x1xf32> to vector<128x32xf32>
    %671 = arith.mulf %669, %670 : vector<128x32xf32>
    %c0_349 = arith.constant 0 : index
    %c6_350 = arith.constant 6 : index
    %c0_351 = arith.constant 0 : index
    %c0_352 = arith.constant 0 : index
    %672 = vector.load %arg13[%c0_349, %c6_350, %c0_351, %c0_352] : memref<1x9x32x32xf32, #tpu.memory_space<vmem>>, vector<1x1x32x32xf32>
    %673 = vector.shape_cast %672 : vector<1x1x32x32xf32> to vector<32x32xf32>
    %cst_353 = arith.constant dense<0.000000e+00> : vector<128x32xf32>
    %674 = tpu.matmul %671, %673, %cst_353 {dimension_numbers = #tpu.dot_dimension_numbers<[1], [0], [0], [1], [0, 0, 1, 1], [], []>} : vector<128x32xf32>, vector<32x32xf32>, vector<128x32xf32> -> vector<128x32xf32>
    %675 = arith.addf %668, %674 : vector<128x32xf32>
    %c40_354 = arith.constant 40 : index
    %c0_355 = arith.constant 0 : index
    %676 = vector.load %arg22[%c40_354, %c0_355] : memref<176x32xf32, #tpu.memory_space<vmem>>, vector<128x32xf32>
    %c0_356 = arith.constant 0 : index
    %c7_357 = arith.constant 7 : index
    %c0_358 = arith.constant 0 : index
    %c0_359 = arith.constant 0 : index
    %677 = vector.load %arg13[%c0_356, %c7_357, %c0_358, %c0_359] : memref<1x9x32x32xf32, #tpu.memory_space<vmem>>, vector<1x1x32x32xf32>
    %678 = vector.shape_cast %677 : vector<1x1x32x32xf32> to vector<32x32xf32>
    %cst_360 = arith.constant dense<0.000000e+00> : vector<128x32xf32>
    %679 = tpu.matmul %676, %678, %cst_360 {dimension_numbers = #tpu.dot_dimension_numbers<[1], [0], [0], [1], [0, 0, 1, 1], [], []>} : vector<128x32xf32>, vector<32x32xf32>, vector<128x32xf32> -> vector<128x32xf32>
    %680 = arith.addf %675, %679 : vector<128x32xf32>
    %c41_361 = arith.constant 41 : index
    %c0_362 = arith.constant 0 : index
    %681 = vector.load %arg22[%c41_361, %c0_362] : memref<176x32xf32, #tpu.memory_space<vmem>>, vector<128x32xf32>
    %682 = vector.broadcast %360 : vector<128x1xf32> to vector<128x32xf32>
    %683 = arith.mulf %681, %682 : vector<128x32xf32>
    %c0_363 = arith.constant 0 : index
    %c8_364 = arith.constant 8 : index
    %c0_365 = arith.constant 0 : index
    %c0_366 = arith.constant 0 : index
    %684 = vector.load %arg13[%c0_363, %c8_364, %c0_365, %c0_366] : memref<1x9x32x32xf32, #tpu.memory_space<vmem>>, vector<1x1x32x32xf32>
    %685 = vector.shape_cast %684 : vector<1x1x32x32xf32> to vector<32x32xf32>
    %cst_367 = arith.constant dense<0.000000e+00> : vector<128x32xf32>
    %686 = tpu.matmul %683, %685, %cst_367 {dimension_numbers = #tpu.dot_dimension_numbers<[1], [0], [0], [1], [0, 0, 1, 1], [], []>} : vector<128x32xf32>, vector<32x32xf32>, vector<128x32xf32> -> vector<128x32xf32>
    %687 = arith.addf %680, %686 : vector<128x32xf32>
    %c0_368 = arith.constant 0 : index
    %c0_369 = arith.constant 0 : index
    %c0_370 = arith.constant 0 : index
    %688 = vector.load %arg14[%c0_368, %c0_369, %c0_370] : memref<1x1x32xf32, #tpu.memory_space<vmem>>, vector<1x1x32xf32>
    %689 = vector.shape_cast %688 : vector<1x1x32xf32> to vector<1x32xf32>
    %690 = vector.broadcast %689 : vector<1x32xf32> to vector<128x32xf32>
    %691 = arith.addf %687, %690 : vector<128x32xf32>
    %692 = arith.addf %691, %563 : vector<128x32xf32>
    %cst_371 = arith.constant 0.000000e+00 : f32
    %693 = vector.broadcast %cst_371 : f32 to vector<128x32xf32>
    %694 = arith.maximumf %692, %693 : vector<128x32xf32>
    %695 = vector.extract_strided_slice %694 {offsets = [0, 0], sizes = [16, 32], strides = [1, 1]} : vector<128x32xf32> to vector<16x32xf32>
    %cst_372 = arith.constant dense<0.000000e+00> : vector<16x32xf32>
    %696 = tpu.matmul %363, %695, %cst_372 {dimension_numbers = #tpu.dot_dimension_numbers<[1], [0], [0], [1], [0, 0, 1, 1], [], []>} : vector<16x16xf32>, vector<16x32xf32>, vector<16x32xf32> -> vector<16x32xf32>
    %697 = vector.broadcast %364 : vector<16x1xf32> to vector<16x32xf32>
    %698 = arith.addf %696, %697 : vector<16x32xf32>
    %699 = vector.extract_strided_slice %694 {offsets = [16, 0], sizes = [16, 32], strides = [1, 1]} : vector<128x32xf32> to vector<16x32xf32>
    %cst_373 = arith.constant dense<0.000000e+00> : vector<16x32xf32>
    %700 = tpu.matmul %363, %699, %cst_373 {dimension_numbers = #tpu.dot_dimension_numbers<[1], [0], [0], [1], [0, 0, 1, 1], [], []>} : vector<16x16xf32>, vector<16x32xf32>, vector<16x32xf32> -> vector<16x32xf32>
    %701 = vector.broadcast %364 : vector<16x1xf32> to vector<16x32xf32>
    %702 = arith.addf %700, %701 : vector<16x32xf32>
    %703 = vector.extract_strided_slice %694 {offsets = [32, 0], sizes = [16, 32], strides = [1, 1]} : vector<128x32xf32> to vector<16x32xf32>
    %cst_374 = arith.constant dense<0.000000e+00> : vector<16x32xf32>
    %704 = tpu.matmul %363, %703, %cst_374 {dimension_numbers = #tpu.dot_dimension_numbers<[1], [0], [0], [1], [0, 0, 1, 1], [], []>} : vector<16x16xf32>, vector<16x32xf32>, vector<16x32xf32> -> vector<16x32xf32>
    %705 = vector.broadcast %364 : vector<16x1xf32> to vector<16x32xf32>
    %706 = arith.addf %704, %705 : vector<16x32xf32>
    %707 = vector.extract_strided_slice %694 {offsets = [48, 0], sizes = [16, 32], strides = [1, 1]} : vector<128x32xf32> to vector<16x32xf32>
    %cst_375 = arith.constant dense<0.000000e+00> : vector<16x32xf32>
    %708 = tpu.matmul %363, %707, %cst_375 {dimension_numbers = #tpu.dot_dimension_numbers<[1], [0], [0], [1], [0, 0, 1, 1], [], []>} : vector<16x16xf32>, vector<16x32xf32>, vector<16x32xf32> -> vector<16x32xf32>
    %709 = vector.broadcast %364 : vector<16x1xf32> to vector<16x32xf32>
    %710 = arith.addf %708, %709 : vector<16x32xf32>
    %711 = vector.extract_strided_slice %694 {offsets = [64, 0], sizes = [16, 32], strides = [1, 1]} : vector<128x32xf32> to vector<16x32xf32>
    %cst_376 = arith.constant dense<0.000000e+00> : vector<16x32xf32>
    %712 = tpu.matmul %363, %711, %cst_376 {dimension_numbers = #tpu.dot_dimension_numbers<[1], [0], [0], [1], [0, 0, 1, 1], [], []>} : vector<16x16xf32>, vector<16x32xf32>, vector<16x32xf32> -> vector<16x32xf32>
    %713 = vector.broadcast %364 : vector<16x1xf32> to vector<16x32xf32>
    %714 = arith.addf %712, %713 : vector<16x32xf32>
    %715 = vector.extract_strided_slice %694 {offsets = [80, 0], sizes = [16, 32], strides = [1, 1]} : vector<128x32xf32> to vector<16x32xf32>
    %cst_377 = arith.constant dense<0.000000e+00> : vector<16x32xf32>
    %716 = tpu.matmul %363, %715, %cst_377 {dimension_numbers = #tpu.dot_dimension_numbers<[1], [0], [0], [1], [0, 0, 1, 1], [], []>} : vector<16x16xf32>, vector<16x32xf32>, vector<16x32xf32> -> vector<16x32xf32>
    %717 = vector.broadcast %364 : vector<16x1xf32> to vector<16x32xf32>
    %718 = arith.addf %716, %717 : vector<16x32xf32>
    %719 = vector.extract_strided_slice %694 {offsets = [96, 0], sizes = [16, 32], strides = [1, 1]} : vector<128x32xf32> to vector<16x32xf32>
    %cst_378 = arith.constant dense<0.000000e+00> : vector<16x32xf32>
    %720 = tpu.matmul %363, %719, %cst_378 {dimension_numbers = #tpu.dot_dimension_numbers<[1], [0], [0], [1], [0, 0, 1, 1], [], []>} : vector<16x16xf32>, vector<16x32xf32>, vector<16x32xf32> -> vector<16x32xf32>
    %721 = vector.broadcast %364 : vector<16x1xf32> to vector<16x32xf32>
    %722 = arith.addf %720, %721 : vector<16x32xf32>
    %723 = vector.extract_strided_slice %694 {offsets = [112, 0], sizes = [16, 32], strides = [1, 1]} : vector<128x32xf32> to vector<16x32xf32>
    %cst_379 = arith.constant dense<0.000000e+00> : vector<16x32xf32>
    %724 = tpu.matmul %363, %723, %cst_379 {dimension_numbers = #tpu.dot_dimension_numbers<[1], [0], [0], [1], [0, 0, 1, 1], [], []>} : vector<16x16xf32>, vector<16x32xf32>, vector<16x32xf32> -> vector<16x32xf32>
    %725 = vector.broadcast %364 : vector<16x1xf32> to vector<16x32xf32>
    %726 = arith.addf %724, %725 : vector<16x32xf32>
    %727 = tpu.concatenate %698, %702, %706, %710, %714, %718, %722, %726 in 0 : vector<16x32xf32>, vector<16x32xf32>, vector<16x32xf32>, vector<16x32xf32>, vector<16x32xf32>, vector<16x32xf32>, vector<16x32xf32>, vector<16x32xf32> -> vector<128x32xf32>
    %cst_380 = arith.constant dense<0.000000e+00> : vector<128x2xf32>
    %728 = tpu.matmul %727, %365, %cst_380 {dimension_numbers = #tpu.dot_dimension_numbers<[1], [0], [0], [1], [0, 0, 1, 1], [], []>} : vector<128x32xf32>, vector<32x2xf32>, vector<128x2xf32> -> vector<128x2xf32>
    %729 = vector.broadcast %366 : vector<1x2xf32> to vector<128x2xf32>
    %730 = arith.addf %728, %729 : vector<128x2xf32>
    %731 = tpu.transpose %730, [1, 0] : vector<128x2xf32> -> vector<2x128xf32>
    %c2_381 = arith.constant 2 : index
    %c0_382 = arith.constant 0 : index
    %732 = vector.load %arg21[%c2_381, %c0_382] : memref<4x128xf32, #tpu.memory_space<vmem>>, vector<2x128xf32>
    tpu.vector_store %arg21[%c2_381, %c0_382], %731 {strides = array<i32>} : memref<4x128xf32, #tpu.memory_space<vmem>>, vector<2x128xf32>,
    return
  }
}

</mosaic_0001>

<bundles_post_ra>
// kernel: mul.6
= control target key start
LH: loop header
LB: loop body
LE: loop exit
PB: predicated region body
PF: predicated region fallthrough
CT: control target
= control target key end

     0   :  { %s72_s0 = inlined_call_operand.vmem [shape: f32[8,2,2], index: 0, kind: input, shape index: {}]   ;;  %s73_s1 = inlined_call_operand.vmem [shape: f32[8,16,2,2], index: 1, kind: output, shape index: {}]  }
   0x1   :  { %v34_v0 = vld [vmem:[%s72_s0 + $0x1] ss:$0 sm:$0xff]  ;;  %v4_v1 = vld [vmem:[%s72_s0] ss:$0 sm:$0xff]  ;;  %v36_v2 = vld [vmem:[%s72_s0 + $0x3] ss:$0 sm:$0xff] }
   0x2   :  { %19 = vbcast.lane.b32.xlu1 %v34_v0, 256  ;;  %6 = vbcast.lane.b32.xlu0 %v4_v1, 256  ;;  %v32_v3 = vld [vmem:[%s72_s0 + $0x2] ss:$0 sm:$0xff] }
   0x6   :  { %27 = vbcast.lane.b32.xlu1 %v36_v2, 256  ;;  %12 = vbcast.lane.b32.xlu0 %v32_v3, 256 }
  0x74   :  { %v20_v4 = vpop.permute.xlu1 %19  ;;  %v7_v5 = vpop.permute.xlu0 %6 }
  0x75   :  { %35 = vst [vmem:[%s73_s1 + $0x8] sm:$0xff] %v20_v4  ;;  %8 = vst [vmem:[%s73_s1] sm:$0xff] %v7_v5 }
  0x78   :  { %v28_v6 = vpop.permute.xlu1 %27  ;;  %v13_v7 = vpop.permute.xlu0 %12 }
  0x79   :  { %37 = vst [vmem:[%s73_s1 + $0x18] sm:$0xff] %v28_v6  ;;  %33 = vst [vmem:[%s73_s1 + $0x10] sm:$0xff] %v13_v7 }

// kernel: rnnnet_forward.1
= control target key start
LH: loop header
LB: loop body
LE: loop exit
PB: predicated region body
PF: predicated region fallthrough
CT: control target
= control target key end

     0   :  { %vm91_vm0 = vcmask 1043456   ;;  %vm84_vm1 = vcmask 97280   ;;  %v19384_v0 = vmov 0   ;;  %vm19385_vm2 = vmmov 1   ;;  %s23586_s4 = inlined_call_operand.vmem [shape: f32[16,1], index: 4, kind: input, shape index: {}]   ;;  %s23587_s1 = inlined_call_operand.vmem [shape: f32[12,2], index: 1, kind: input, shape index: {}]   ;;  %s23588_s3 = inlined_call_operand.vmem [shape: f32[16,12], index: 3, kind: input, shape index: {}]   ;;  %s23589_s6 = inlined_call_operand.vmem [shape: f32[64,1], index: 6, kind: input, shape index: {}]   ;;  %s23590_s8 = inlined_call_operand.vmem [shape: f32[64,1], index: 8, kind: input, shape index: {}]   ;;  %s23591_s19 = inlined_call_operand.vmem [shape: f32[128,1], index: 19, kind: input, shape index: {}]   ;;  %s23592_s20 = inlined_call_operand.vmem [shape: f32[128,1], index: 20, kind: input, shape index: {}]   ;;  %s23593_s2 = inlined_call_operand.vmem [shape: f32[2,10], index: 2, kind: input, shape index: {}]   ;;  %s23594_s5 = inlined_call_operand.vmem [shape: f32[64,32], index: 5, kind: input, shape index: {}]   ;;  %s23595_s0 = inlined_call_operand.vmem [shape: f32[8,16,10], index: 0, kind: input, shape index: {}]   ;;  %s23596_s7 = inlined_call_operand.vmem [shape: f32[64,32], index: 7, kind: input, shape index: {}]   ;;  %s23597_s9 = inlined_call_operand.vmem [shape: f32[5,32], index: 9, kind: input, shape index: {}]   ;;  %s23598_s10 = inlined_call_operand.vmem [shape: f32[1,32], index: 10, kind: input, shape index: {}]   ;;  %s23599_s11 = inlined_call_operand.vmem [shape: f32[1,9,32,32], index: 11, kind: input, shape index: {}]   ;;  %s23600_s16 = inlined_call_operand.vmem [shape: f32[16,1], index: 16, kind: input, shape index: {}]   ;;  %s23601_s13 = inlined_call_operand.vmem [shape: f32[1,9,32,32], index: 13, kind: input, shape index: {}]   ;;  %s23602_s12 = inlined_call_operand.vmem [shape: f32[1,1,32], index: 12, kind: input, shape index: {}]   ;;  %s23603_s15 = inlined_call_operand.vmem [shape: f32[16,16], index: 15, kind: input, shape index: {}]   ;;  %s23604_s17 = inlined_call_operand.vmem [shape: f32[32,2], index: 17, kind: input, shape index: {}]   ;;  %s23605_s14 = inlined_call_operand.vmem [shape: f32[1,1,32], index: 14, kind: input, shape index: {}]   ;;  %s23606_s18 = inlined_call_operand.vmem [shape: f32[1,2], index: 18, kind: input, shape index: {}]   ;;  %s23607_s21 = inlined_call_operand.vmem [shape: f32[4,128], index: 21, kind: output, shape index: {}]  }
   0x1   :  { %23837 = sst [smem:[#allocation50_spill]] %s23586_s4  ;;  %18841 = vset.pattern.permute.xlu0 %v19384_v0  ;;  %18842 = vset.pattern.permute.xlu1 %v19384_v0  ;;  %vm17832_vm3 = vmpackc.low %vm91_vm0, %vm19385_vm2  ;;  %v2943_v23 = vld [vmem:[%s23592_s20] sm:$0xff]  ;;  %v2945_v24 = vld [vmem:[%s23592_s20 + $0x10] sm:$0xff]  ;;  %vm178_vm4 = vcmask 1041408   ;;  %vm333_vm5 = vcmask 261120   ;;  %v19386_v34 = vmov 0.0  }
   0x2   :  { %23838 = sst [smem:[#allocation51_spill]] %s23587_s1  ;;  %s23843_s26 = sld [smem:[#allocation50_spill]]  ;;  %v2947_v25 = vld [vmem:[%s23592_s20 + $0x20] sm:$0xff]  ;;  %v2949_v26 = vld [vmem:[%s23592_s20 + $0x30] sm:$0xff]  ;;  %2909 = vst.msk [vmem:[#allocation2 + $0x20] sm:$0xff] %vm333_vm5, %v19386_v34  ;;  %2905 = vst.msk [vmem:[#allocation2] sm:$0xff] %vm333_vm5, %v19386_v34 }
   0x3   :  { %23839 = sst [smem:[#allocation52_spill]] %s23588_s3  ;;  %s23844_s28 = sld [smem:[#allocation51_spill]]  ;;  %v2951_v27 = vld [vmem:[%s23592_s20 + $0x40] sm:$0xff]  ;;  %v2953_v28 = vld [vmem:[%s23592_s20 + $0x50] sm:$0xff]  ;;  %2906 = vst.msk [vmem:[#allocation2 + $0x8] sm:$0xff] %vm333_vm5, %v19386_v34  ;;  %2907 = vst.msk [vmem:[#allocation2 + $0x10] sm:$0xff] %vm333_vm5, %v19386_v34 }
   0x4   :  { %23840 = sst [smem:[#allocation53_spill]] %s23589_s6  ;;  %v2955_v29 = vld [vmem:[%s23592_s20 + $0x60] sm:$0xff]  ;;  %v2957_v31 = vld [vmem:[%s23592_s20 + $0x70] sm:$0xff]  ;;  %2908 = vst.msk [vmem:[#allocation2 + $0x18] sm:$0xff] %vm333_vm5, %v19386_v34  ;;  %2910 = vst.msk [vmem:[#allocation2 + $0x28] sm:$0xff] %vm333_vm5, %v19386_v34  ;;  %vm171_vm6 = vcmask 15360  }
   0x5   :  { %23841 = sst [smem:[#allocation54_spill]] %s23590_s8  ;;  %s23846_s27 = sld [smem:[#allocation53_spill]]  ;;  %v170_v30 = vld [vmem:[%s23593_s2] sm:$0x3]  ;;  %2911 = vst.msk [vmem:[#allocation2 + $0x30] sm:$0xff] %vm333_vm5, %v19386_v34  ;;  %2912 = vst.msk [vmem:[#allocation2 + $0x38] sm:$0xff] %vm333_vm5, %v19386_v34 }
   0x6   :  { %23842 = sst [smem:[#allocation55_spill]] %s23591_s19  ;;  %s23845_s19 = sld [smem:[#allocation52_spill]]  ;;  %16134 = vmatprep.subr.msk.mxu1 %vm178_vm4, %v170_v30  ;;  %2913 = vst.msk [vmem:[#allocation2 + $0x40] sm:$0xff] %vm333_vm5, %v19386_v34  ;;  %2914 = vst.msk [vmem:[#allocation2 + $0x48] sm:$0xff] %vm333_vm5, %v19386_v34  ;;  %v19627_v43 = vld [vmem:[%s23594_s5] sm:$0xff]  ;;  %v2944_v57 = vld [vmem:[%s23592_s20 + $0x8] sm:$0xff] }
   0x7   :  { %s23847_s30 = sld [smem:[#allocation54_spill]]  ;;  %16135 = vmatpush3.msk.msra.mxu1 %vm178_vm4, %v170_v30  ;;  %2915 = vst.msk [vmem:[#allocation2 + $0x50] sm:$0xff] %vm333_vm5, %v19386_v34  ;;  %2916 = vst.msk [vmem:[#allocation2 + $0x58] sm:$0xff] %vm333_vm5, %v19386_v34  ;;  %v2946_v58 = vld [vmem:[%s23592_s20 + $0x18] sm:$0xff]  ;;  %v2948_v59 = vld [vmem:[%s23592_s20 + $0x28] sm:$0xff]  ;;  %s19387_s3 = smov 123  }
   0x8   :  { %v72_v1 = vld [vmem:[%s23843_s26] sm:$0xff]  ;;  %v73_v6 = vld [vmem:[%s23843_s26 + $0x8] sm:$0xff]  ;;  %2917 = vst.msk [vmem:[#allocation2 + $0x60] sm:$0xff] %vm333_vm5, %v19386_v34  ;;  %2918 = vst.msk [vmem:[#allocation2 + $0x68] sm:$0xff] %vm333_vm5, %v19386_v34  ;;  %vm3025_vm7 = vcmask 1044480   ;;  %vm2976_vm8 = vcmask 39936  }
   0x9   :  { %v70_v2 = vld [vmem:[%s23844_s28] sm:$0xff]  ;;  %v71_v3 = vld [vmem:[%s23844_s28 + $0x8] sm:$0xf]  ;;  %76 = vperm.xlu0 %18841, %v72_v1   ;;  %s23848_s28 = sld [smem:[#allocation55_spill]]  ;;  %2919 = vst.msk [vmem:[#allocation2 + $0x70] sm:$0xff] %vm333_vm5, %v19386_v34  ;;  %2920 = vst.msk [vmem:[#allocation2 + $0x78] sm:$0xff] %vm333_vm5, %v19386_v34 }
   0xa   :  { %v17831_v4 = vpack.c.bf16 %v71_v3, %v70_v2  ;;  %2921 = vst.msk [vmem:[#allocation2 + $0x80] sm:$0xff] %vm333_vm5, %v19386_v34  ;;  %2922 = vst.msk [vmem:[#allocation2 + $0x88] sm:$0xff] %vm333_vm5, %v19386_v34  ;;  %v2950_v60 = vld [vmem:[%s23592_s20 + $0x38] sm:$0xff]  ;;  %v2952_v61 = vld [vmem:[%s23592_s20 + $0x48] sm:$0xff]  ;;  %vm7752_vm9 = vcmask 130048  }
   0xb   :  { %v267_v8 = vld [vmem:[%s23846_s27 + $0x10] sm:$0xff]  ;;  %v269_v9 = vld [vmem:[%s23846_s27 + $0x20] sm:$0xff]  ;;  %v266_v33 = vld [vmem:[%s23846_s27 + $0x8] sm:$0xff]  ;;  %2923 = vst.msk [vmem:[#allocation2 + $0x90] sm:$0xff] %vm333_vm5, %v19386_v34 }
   0xc   :  { %v68_v5 = vld [vmem:[%s23845_s19] sm:$0xff]  ;;  %17833 = vmatprep.subr.msk.bf16.mxu0 %vm17832_vm3, %v17831_v4  ;;  %v69_v7 = vld [vmem:[%s23845_s19 + $0x8] sm:$0xff]  ;;  %v271_v10 = vld [vmem:[%s23846_s27 + $0x30] sm:$0xff]  ;;  %2924 = vst.msk [vmem:[#allocation2 + $0x98] sm:$0xff] %vm333_vm5, %v19386_v34 }
   0xd   :  { %16131 = vmatprep.mubr.msk.f32.mxu0 %vm84_vm1, %v68_v5  ;;  %17836 = vmatpush3.bf16.msk.msra.mxu0 %vm17832_vm3, %v17831_v4  ;;  %v281_v11 = vld [vmem:[%s23847_s30] sm:$0xff]  ;;  %v283_v12 = vld [vmem:[%s23847_s30 + $0x10] sm:$0xff]  ;;  %2925 = vst.msk [vmem:[#allocation2 + $0xa0] sm:$0xff] %vm333_vm5, %v19386_v34  ;;  %2926 = vst.msk [vmem:[#allocation2 + $0xa8] sm:$0xff] %vm333_vm5, %v19386_v34 }
   0xe   :  { %81 = vperm.xlu0 %18841, %v73_v6   ;;  %v285_v13 = vld [vmem:[%s23847_s30 + $0x20] sm:$0xff]  ;;  %v287_v14 = vld [vmem:[%s23847_s30 + $0x30] sm:$0xff]  ;;  %v268_v41 = vld [vmem:[%s23846_s27 + $0x18] sm:$0xff] }
   0xf   :  { %v2927_v15 = vld [vmem:[%s23848_s28] sm:$0xff]  ;;  %v2929_v16 = vld [vmem:[%s23848_s28 + $0x10] sm:$0xff]  ;;  %v270_v42 = vld [vmem:[%s23846_s27 + $0x28] sm:$0xff] }
  0x10   :  { %16132 = vmatmul.mubr.msk.f32.vlgmr.msra.gmra.mrb[0].mxu0 %vm84_vm1, %v69_v7  ;;  %v2931_v17 = vld [vmem:[%s23848_s28 + $0x20] sm:$0xff]  ;;  %v2933_v18 = vld [vmem:[%s23848_s28 + $0x30] sm:$0xff]  ;;  %v272_v44 = vld [vmem:[%s23846_s27 + $0x38] sm:$0xff] }
  0x11   :  { %v2935_v19 = vld [vmem:[%s23848_s28 + $0x40] sm:$0xff]  ;;  %v2937_v20 = vld [vmem:[%s23848_s28 + $0x50] sm:$0xff]  ;;  %v282_v45 = vld [vmem:[%s23847_s30 + $0x8] sm:$0xff] }
  0x12   :  { %305 = vperm.xlu0 %18841, %v267_v8   ;;  %v2939_v21 = vld [vmem:[%s23848_s28 + $0x60] sm:$0xff]  ;;  %v2941_v22 = vld [vmem:[%s23848_s28 + $0x70] sm:$0xff]  ;;  %v284_v46 = vld [vmem:[%s23847_s30 + $0x18] sm:$0xff] }
  0x13   :  { %v265_v32 = vld [vmem:[%s23846_s27] sm:$0xff]  ;;  %v286_v47 = vld [vmem:[%s23847_s30 + $0x28] sm:$0xff]  ;;  %v288_v48 = vld [vmem:[%s23847_s30 + $0x38] sm:$0xff] }
  0x14   :  { %295 = vperm.xlu1 %18842, %v265_v32   ;;  %v2928_v49 = vld [vmem:[%s23848_s28 + $0x8] sm:$0xff]  ;;  %v2930_v50 = vld [vmem:[%s23848_s28 + $0x18] sm:$0xff]  ;;  %v289_v4 = vld [vmem:[%s23595_s0] sm:$0xff] }
  0x15   :  { %v2932_v51 = vld [vmem:[%s23848_s28 + $0x28] sm:$0xff]  ;;  %v2934_v52 = vld [vmem:[%s23848_s28 + $0x38] sm:$0xff]  ;;  %v14086_v5 = vld [vmem:[%s23595_s0 + $0x20] sm:$0xff] }
  0x16   :  { %315 = vperm.xlu0 %18841, %v269_v9   ;;  %v2936_v53 = vld [vmem:[%s23848_s28 + $0x48] sm:$0xff]  ;;  %v2938_v54 = vld [vmem:[%s23848_s28 + $0x58] sm:$0xff]  ;;  %v14056_v7 = vld [vmem:[%s23595_s0 + $0x10] sm:$0xff] }
  0x17   :  { %v2940_v55 = vld [vmem:[%s23848_s28 + $0x68] sm:$0xff]  ;;  %v2942_v56 = vld [vmem:[%s23848_s28 + $0x78] sm:$0xff]  ;;  %v14116_v8 = vld [vmem:[%s23595_s0 + $0x30] sm:$0xff] }
  0x18   :  { %300 = vperm.xlu1 %18842, %v266_v33   ;;  %v2954_v62 = vld [vmem:[%s23592_s20 + $0x58] sm:$0xff]  ;;  %v2956_v63 = vld [vmem:[%s23592_s20 + $0x68] sm:$0xff] }
  0x19   :  { %v2958_v0 = vld [vmem:[%s23592_s20 + $0x78] sm:$0xff]  ;;  %v290_v1 = vld [vmem:[%s23595_s0 + $0x8] sm:$0xff] }
  0x1a   :  { %325 = vperm.xlu0 %18841, %v271_v10   ;;  %v14087_v2 = vld [vmem:[%s23595_s0 + $0x28] sm:$0xff]  ;;  %v14057_v3 = vld [vmem:[%s23595_s0 + $0x18] sm:$0xff] }
  0x1b   :  { %v14117_v6 = vld [vmem:[%s23595_s0 + $0x38] sm:$0xff]  ;;  %v14147_v9 = vld [vmem:[%s23595_s0 + $0x48] sm:$0xff] }
  0x1c   :  { %310 = vperm.xlu1 %18842, %v268_v41   ;;  %v14237_v30 = vld [vmem:[%s23595_s0 + $0x78] sm:$0xff]  ;;  %v19753_v41 = vld [vmem:[%s23594_s5 + $0x8] sm:$0xff] }
  0x1e   :  { %513 = vperm.xlu0 %18841, %v281_v11   ;;  %v14146_v11 = vld [vmem:[%s23595_s0 + $0x40] sm:$0xff] }
  0x20   :  { %320 = vperm.xlu1 %18842, %v270_v42  }
  0x22   :  { %523 = vperm.xlu0 %18841, %v283_v12   ;;  %v14176_v12 = vld [vmem:[%s23595_s0 + $0x50] sm:$0xff] }
  0x24   :  { %330 = vperm.xlu1 %18842, %v272_v44   ;;  %v19760_v44 = vld [vmem:[%s23594_s5 + $0x10] sm:$0xff] }
  0x26   :  { %533 = vperm.xlu0 %18841, %v285_v13   ;;  %v14177_v13 = vld [vmem:[%s23595_s0 + $0x58] sm:$0xff] }
  0x28   :  { %518 = vperm.xlu1 %18842, %v282_v45  }
  0x2a   :  { %543 = vperm.xlu0 %18841, %v287_v14  }
  0x2c   :  { %528 = vperm.xlu1 %18842, %v284_v46   ;;  %v19771_v46 = vld [vmem:[%s23594_s5 + $0x18] sm:$0xff] }
  0x2e   :  { %3224 = vperm.xlu0 %18841, %v2927_v15  }
  0x30   :  { %538 = vperm.xlu1 %18842, %v286_v47   ;;  %v19776_v47 = vld [vmem:[%s23594_s5 + $0x20] sm:$0xff] }
  0x32   :  { %3234 = vperm.xlu0 %18841, %v2929_v16  }
  0x34   :  { %548 = vperm.xlu1 %18842, %v288_v48   ;;  %v19785_v48 = vld [vmem:[%s23594_s5 + $0x28] sm:$0xff] }
  0x36   :  { %3244 = vperm.xlu0 %18841, %v2931_v17  }
  0x38   :  { %3229 = vperm.xlu1 %18842, %v2928_v49   ;;  %v19790_v49 = vld [vmem:[%s23594_s5 + $0x30] sm:$0xff] }
  0x3a   :  { %3254 = vperm.xlu0 %18841, %v2933_v18  }
  0x3c   :  { %3239 = vperm.xlu1 %18842, %v2930_v50   ;;  %v19799_v50 = vld [vmem:[%s23594_s5 + $0x38] sm:$0xff] }
  0x3e   :  { %3264 = vperm.xlu0 %18841, %v2935_v19  }
  0x40   :  { %3249 = vperm.xlu1 %18842, %v2932_v51   ;;  %v19808_v51 = vld [vmem:[%s23596_s7] sm:$0xff] }
  0x41   :  { %16159 = vmatprep.mubr.msk.f32.mxu0 %vm333_vm5, %v19808_v51 }
  0x42   :  { %3274 = vperm.xlu0 %18841, %v2937_v20  }
  0x44   :  { %3259 = vperm.xlu1 %18842, %v2934_v52  }
  0x46   :  { %3284 = vperm.xlu0 %18841, %v2939_v21  }
  0x48   :  { %3269 = vperm.xlu1 %18842, %v2936_v53  }
  0x4a   :  { %3294 = vperm.xlu0 %18841, %v2941_v22  }
  0x4c   :  { %3279 = vperm.xlu1 %18842, %v2938_v54  }
  0x4e   :  { %3747 = vperm.xlu0 %18841, %v2943_v23   ;;  %v14206_v23 = vld [vmem:[%s23595_s0 + $0x60] sm:$0xff] }
  0x50   :  { %3289 = vperm.xlu1 %18842, %v2940_v55  }
  0x52   :  { %3757 = vperm.xlu0 %18841, %v2945_v24   ;;  %v14207_v24 = vld [vmem:[%s23595_s0 + $0x68] sm:$0xff] }
  0x54   :  { %3299 = vperm.xlu1 %18842, %v2942_v56  }
  0x56   :  { %3767 = vperm.xlu0 %18841, %v2947_v25  }
  0x58   :  { %3752 = vperm.xlu1 %18842, %v2944_v57  }
  0x5a   :  { %3777 = vperm.xlu0 %18841, %v2949_v26  }
  0x5c   :  { %3762 = vperm.xlu1 %18842, %v2946_v58  }
  0x5e   :  { %3787 = vperm.xlu0 %18841, %v2951_v27  }
  0x60   :  { %3772 = vperm.xlu1 %18842, %v2948_v59  }
  0x62   :  { %3797 = vperm.xlu0 %18841, %v2953_v28  }
  0x64   :  { %3782 = vperm.xlu1 %18842, %v2950_v60  }
  0x66   :  { %3807 = vperm.xlu0 %18841, %v2955_v29   ;;  %v14236_v29 = vld [vmem:[%s23595_s0 + $0x70] sm:$0xff] }
  0x68   :  { %3792 = vperm.xlu1 %18842, %v2952_v61  }
  0x6a   :  { %3817 = vperm.xlu0 %18841, %v2957_v31  }
  0x6c   :  { %3802 = vperm.xlu1 %18842, %v2954_v62  }
  0x70   :  { %3812 = vperm.xlu1 %18842, %v2956_v63  }
  0x74   :  { %3822 = vperm.xlu1 %18842, %v2958_v0  }
  0x88   :  { %v77_v35 = vpop.permute.xlu0 %76 }
  0x8d   :  { %v82_v38 = vpop.permute.xlu0 %81 }
  0x91   :  { %v19818_v56 = vpop.permute.xlu0 %305 }
  0x93   :  { %v19812_v52 = vpop.permute.xlu1 %295 }
  0x97   :  { %v19814_v53 = vpop.permute.xlu1 %300 }
  0x9b   :  { %v19816_v54 = vpop.permute.xlu1 %310 }
  0xe3   :  { %v16133_v36 = vpop.f32.mrb[0].mxu0 }
  0xe4   :  { %v161_v37 = vpop.f32.mrb[1].mxu0  ;;  %v167_v40 = vadd.f32 %v16133_v36, %v82_v38 }
  0xe5   :  { %v162_v39 = vadd.f32 %v161_v37, %v77_v35 }
  0xe7   :  { %16136 = vmatprep.mubr.msk.f32.mxu1 %vm171_vm6, %v162_v39 }
  0xe8   :  { %16137 = vmatmul.mubr.msk.f32.vlgmr.msra.gmra.mrb[0].mxu1 %vm171_vm6, %v167_v40 }
  0xe9   :  { %16143 = vmatprep.mubr.msk.f32.mxu1 %vm333_vm5, %v19627_v43 }
 0x1bb   :  { %v16138_v10 = vpop.f32.mrb[0].mxu1 }
 0x1bc   :  { %v248_v14 = vpop.f32.mrb[1].mxu1  ;;  %v292_v15 = vadd.f32 %v16138_v10, %v290_v1  ;;  %v1043_v16 = vadd.f32 %v16138_v10, %v14087_v2  ;;  %v732_v17 = vadd.f32 %v16138_v10, %v14057_v3  ;;  %v1354_v18 = vadd.f32 %v16138_v10, %v14117_v6  ;;  %v19823_v1 = vpop.permute.xlu1 %320 }
 0x1bd   :  { %v291_v19 = vadd.f32 %v289_v4, %v248_v14  ;;  %v1042_v20 = vadd.f32 %v14086_v5, %v248_v14  ;;  %v731_v21 = vadd.f32 %v14056_v7, %v248_v14  ;;  %v1353_v22 = vadd.f32 %v14116_v8, %v248_v14  ;;  %v19826_v3 = vpop.permute.xlu0 %315 }
 0x1be   :  { %v1664_v25 = vadd.f32 %v14146_v11, %v248_v14  ;;  %v1665_v26 = vadd.f32 %v16138_v10, %v14147_v9  ;;  %v1975_v27 = vadd.f32 %v14176_v12, %v248_v14  ;;  %v1976_v28 = vadd.f32 %v16138_v10, %v14177_v13 }
 0x1bf   :  { %v17837_v31 = vpack.c.bf16 %v292_v15, %v291_v19  ;;  %v17861_v32 = vpack.c.bf16 %v1043_v16, %v1042_v20  ;;  %v19742_v33 = vpack.c.bf16 %v732_v17, %v731_v21  ;;  %v19744_v34 = vpack.c.bf16 %v1354_v18, %v1353_v22 }
 0x1c0   :  { %v19746_v35 = vpack.c.bf16 %v1665_v26, %v1664_v25  ;;  %v19748_v36 = vpack.c.bf16 %v1976_v28, %v1975_v27  ;;  %v2286_v37 = vadd.f32 %v14206_v23, %v248_v14  ;;  %v2287_v38 = vadd.f32 %v16138_v10, %v14207_v24  ;;  %v19830_v11 = vpop.permute.xlu1 %330 }
 0x1c1   :  { %17838 = vmatprep.subr.bf16.mxu1 %v17837_v31  ;;  %v2597_v39 = vadd.f32 %v14236_v29, %v248_v14  ;;  %v2598_v40 = vadd.f32 %v16138_v10, %v14237_v30  ;;  %v19832_v14 = vpop.permute.xlu0 %325 }
 0x1c2   :  { %17840 = vmatpush3.bf16.msra.mxu1 %v17837_v31  ;;  %v19755_v42 = vpack.c.bf16 %v2287_v38, %v2286_v37 }
 0x1c3   :  { %17862 = vmatprep.subr.bf16.mxu1 %v17861_v32  ;;  %v19762_v45 = vpack.c.bf16 %v2598_v40, %v2597_v39 }
 0x1c5   :  { %16144 = vmatmul.mubr.msk.f32.vlgmr.msra.gmra.mrb[2].mxu1 %vm333_vm5, %v19753_v41 }
 0x1c6   :  { %17864 = vmatpush3.bf16.msra.mxu1 %v17861_v32  ;;  %16146 = vmatprep.mubr.msk.f32.mxu1 %vm333_vm5, %v19760_v44 }
 0x1c9   :  { %16147 = vmatmul.mubr.msk.f32.gmra.mrb[4].mxu1 %vm333_vm5, %v19771_v46 }
 0x1ca   :  { %16149 = vmatprep.mubr.msk.f32.mxu1 %vm333_vm5, %v19776_v47 }
 0x1cd   :  { %16150 = vmatmul.mubr.msk.f32.gmra.mrb[6].mxu1 %vm333_vm5, %v19785_v48 }
 0x1ce   :  { %16152 = vmatprep.mubr.msk.f32.mxu1 %vm333_vm5, %v19790_v49 }
 0x1d1   :  { %16153 = vmatmul.mubr.msk.f32.gmra.mrb[8].mxu1 %vm333_vm5, %v19799_v50 }
 0x1d2   :  { %16219 = vmatprep.mubr.msk.f32.mxu1 %vm333_vm5, %v19627_v43 }
 0x298   :  { %v16145_v55 = vpop.f32.mrb[2].mxu1 }
 0x299   :  { %v430_v57 = vadd.f32 %v16145_v55, %v19814_v53  ;;  %v424_v58 = vpop.f32.mrb[3].mxu1 }
 0x29a   :  { %v425_v59 = vadd.f32 %v424_v58, %v19812_v52 }
 0x29b   :  { %v14037_v60 = vmul.f32 -1.442695, %v430_v57 }
 0x29c   :  { %v14036_v61 = vmul.f32 -1.442695, %v425_v59  ;;  %v16148_v62 = vpop.f32.mrb[4].mxu1 }
 0x29d   :  { %18843 = vpow2.f32 %v14037_v60  ;;  %v440_v63 = vadd.f32 %v16148_v62, %v19816_v54  ;;  %v434_v0 = vpop.f32.mrb[5].mxu1 }
 0x29e   :  { %18845 = vpow2.f32 %v14036_v61  ;;  %v435_v2 = vadd.f32 %v434_v0, %v19818_v56 }
 0x29f   :  { %v14039_v4 = vmul.f32 -1.442695, %v440_v63 }
 0x2a0   :  { %v14038_v5 = vmul.f32 -1.442695, %v435_v2  ;;  %v16151_v6 = vpop.f32.mrb[6].mxu1 }
 0x2a1   :  { %18847 = vpow2.f32 %v14039_v4  ;;  %v450_v7 = vadd.f32 %v16151_v6, %v19823_v1  ;;  %v444_v8 = vpop.f32.mrb[7].mxu1  ;;  %v19845_v6 = vld [vmem:[%s23596_s7 + $0x8] sm:$0xff] }
 0x2a2   :  { %18849 = vpow2.f32 %v14038_v5  ;;  %v445_v9 = vadd.f32 %v444_v8, %v19826_v3  ;;  %v19861_v8 = vld [vmem:[%s23596_s7 + $0x18] sm:$0xff] }
 0x2a3   :  { %v14041_v10 = vmul.f32 -1.442695, %v450_v7  ;;  %v19851_v7 = vld [vmem:[%s23596_s7 + $0x10] sm:$0xff] }
 0x2a4   :  { %v14040_v12 = vmul.f32 -1.442695, %v445_v9  ;;  %v16154_v13 = vpop.f32.mrb[8].mxu1  ;;  %v19866_v9 = vld [vmem:[%s23596_s7 + $0x20] sm:$0xff] }
 0x2a5   :  { %v460_v15 = vadd.f32 %v16154_v13, %v19830_v11  ;;  %v454_v16 = vpop.f32.mrb[9].mxu1  ;;  %18851 = vpow2.f32 %v14041_v10  ;;  %v19880_v10 = vld [vmem:[%s23596_s7 + $0x30] sm:$0xff]  ;;  %v19911_v13 = vpop.permute.xlu1 %518 }
 0x2a6   :  { %v455_v17 = vadd.f32 %v454_v16, %v19832_v14  ;;  %18853 = vpow2.f32 %v14040_v12  ;;  %v19889_v12 = vld [vmem:[%s23596_s7 + $0x38] sm:$0xff] }
 0x2a7   :  { %v18844_v18 = vpop.eup %18843  ;;  %18855 = vtanh.f32 %v460_v15  ;;  %v19913_v15 = vpop.permute.xlu0 %513 }
 0x2a8   :  { %v18846_v19 = vpop.eup %18845  ;;  %v482_v20 = vadd.f32 1.0, %v18844_v18  ;;  %18857 = vtanh.f32 %v455_v17 }
 0x2a9   :  { %v481_v21 = vadd.f32 1.0, %v18846_v19  ;;  %v19915_v16 = vpop.permute.xlu1 %528 }
 0x2aa   :  { %18859 = vrcp.f32 %v482_v20 }
 0x2ab   :  { %v18848_v22 = vpop.eup %18847  ;;  %18861 = vrcp.f32 %v481_v21  ;;  %v19917_v18 = vpop.permute.xlu0 %523 }
 0x2ac   :  { %v18850_v23 = vpop.eup %18849  ;;  %v484_v24 = vadd.f32 1.0, %v18848_v22 }
 0x2ad   :  { %v483_v25 = vadd.f32 1.0, %v18850_v23 }
 0x2ae   :  { %18863 = vrcp.f32 %v484_v24 }
 0x2af   :  { %18865 = vrcp.f32 %v483_v25  ;;  %v18852_v26 = vpop.eup %18851 }
 0x2b0   :  { %v18854_v27 = vpop.eup %18853  ;;  %v486_v38 = vadd.f32 1.0, %v18852_v26 }
 0x2b1   :  { %v18856_v28 = vpop.eup %18855  ;;  %v485_v40 = vadd.f32 1.0, %v18854_v27  ;;  %v19922_v27 = vpop.permute.xlu1 %538 }
 0x2b2   :  { %v18858_v29 = vpop.eup %18857  ;;  %18867 = vrcp.f32 %v486_v38 }
 0x2b3   :  { %18869 = vrcp.f32 %v485_v40 }
 0x2b4   :  { %v18860_v30 = vpop.eup %18859 }
 0x2b5   :  { %v18862_v31 = vpop.eup %18861  ;;  %v504_v32 = vmul.f32 %v18860_v30, %v18856_v28 }
 0x2b6   :  { %v503_v37 = vmul.f32 %v18862_v31, %v18858_v29  ;;  %v19925_v29 = vpop.permute.xlu0 %533 }
 0x2b8   :  { %v18864_v39 = vpop.eup %18863 }
 0x2b9   :  { %v18866_v55 = vpop.eup %18865  ;;  %v502_v57 = vmul.f32 0.0, %v18864_v39 }
 0x2ba   :  { %v501_v58 = vmul.f32 0.0, %v18866_v55  ;;  %v19929_v55 = vpop.permute.xlu1 %548 }
 0x2bb   :  { %v19836_v59 = vadd.f32 %v504_v32, %v502_v57 }
 0x2bc   :  { %v19838_v60 = vadd.f32 %v503_v37, %v501_v58  ;;  %v18868_v61 = vpop.eup %18867 }
 0x2bd   :  { %18871 = vtanh.f32 %v19836_v59  ;;  %v18870_v62 = vpop.eup %18869 }
 0x2be   :  { %18873 = vtanh.f32 %v19838_v60 }
 0x2c7   :  { %v18872_v63 = vpop.eup %18871 }
 0x2c8   :  { %v18874_v0 = vpop.eup %18873  ;;  %v510_v2 = vmul.f32 %v18872_v63, %v18868_v61  ;;  %v19931_v61 = vpop.permute.xlu0 %543 }
 0x2c9   :  { %v509_v4 = vmul.f32 %v18874_v0, %v18870_v62 }
 0x2cb   :  { %v17841_v5 = vpack.c.bf16 %v510_v2, %v509_v4 }
 0x2cd   :  { %17842 = vmatprep.subr.bf16.mxu0 %v17841_v5 }
 0x2ce   :  { %17844 = vmatpush3.bf16.msra.mxu0 %v17841_v5 }
 0x2cf   :  { %17846 = vmatprep.subr.bf16.mxu0 %v19742_v33 }
 0x2d1   :  { %16160 = vmatmul.mubr.msk.f32.vlgmr.msra.gmra.mrb[2].mxu0 %vm333_vm5, %v19845_v6 }
 0x2d2   :  { %17848 = vmatpush3.bf16.msra.mxu0 %v19742_v33  ;;  %16162 = vmatprep.mubr.msk.f32.mxu0 %vm333_vm5, %v19851_v7  ;;  %v19875_v33 = vld [vmem:[%s23596_s7 + $0x28] sm:$0xff] }
 0x2d3   :  { %17850 = vmatprep.subr.bf16.mxu0 %v17841_v5 }
 0x2d5   :  { %16163 = vmatmul.mubr.msk.f32.gmra.mrb[4].mxu0 %vm333_vm5, %v19861_v8 }
 0x2d6   :  { %17852 = vmatpush3.bf16.msra.mxu0 %v17841_v5  ;;  %16165 = vmatprep.mubr.msk.f32.mxu0 %vm333_vm5, %v19866_v9 }
 0x2d9   :  { %16166 = vmatmul.mubr.msk.f32.gmra.mrb[6].mxu0 %vm333_vm5, %v19875_v33 }
 0x2da   :  { %16168 = vmatprep.mubr.msk.f32.mxu0 %vm333_vm5, %v19880_v10 }
 0x2dd   :  { %16169 = vmatmul.mubr.msk.f32.gmra.mrb[8].mxu0 %vm333_vm5, %v19889_v12 }
 0x2de   :  { %16179 = vmatprep.mubr.msk.f32.mxu0 %vm333_vm5, %v19627_v43 }
 0x2e1   :  { %16180 = vmatmul.mubr.msk.f32.vlgmr.msra.gmra.mrb[10].mxu0 %vm333_vm5, %v19753_v41 }
 0x2e2   :  { %16182 = vmatprep.mubr.msk.f32.mxu0 %vm333_vm5, %v19760_v44 }
 0x2e5   :  { %16183 = vmatmul.mubr.msk.f32.gmra.mrb[12].mxu0 %vm333_vm5, %v19771_v46 }
 0x2e6   :  { %16185 = vmatprep.mubr.msk.f32.mxu0 %vm333_vm5, %v19776_v47 }
 0x2e9   :  { %16186 = vmatmul.mubr.msk.f32.gmra.mrb[14].mxu0 %vm333_vm5, %v19785_v48 }
 0x2ea   :  { %16188 = vmatprep.mubr.msk.f32.mxu0 %vm333_vm5, %v19790_v49 }
 0x2ed   :  { %16189 = vmatmul.mubr.msk.f32.gmra.mrb[16].mxu0 %vm333_vm5, %v19799_v50 }
 0x2ee   :  { %16199 = vmatprep.mubr.msk.f32.mxu0 %vm333_vm5, %v19808_v51 }
 0x3a4   :  { %v16161_v17 = vpop.f32.mrb[2].mxu0 }
 0x3a5   :  { %v647_v19 = vadd.f32 %v16161_v17, %v19911_v13  ;;  %v641_v20 = vpop.f32.mrb[3].mxu0 }
 0x3a6   :  { %v642_v21 = vadd.f32 %v641_v20, %v19913_v15 }
 0x3a7   :  { %v14051_v22 = vmul.f32 -1.442695, %v647_v19 }
 0x3a8   :  { %v14050_v23 = vmul.f32 -1.442695, %v642_v21  ;;  %v16164_v24 = vpop.f32.mrb[4].mxu0 }
 0x3a9   :  { %18875 = vpow2.f32 %v14051_v22  ;;  %v657_v25 = vadd.f32 %v16164_v24, %v19915_v16  ;;  %v651_v26 = vpop.f32.mrb[5].mxu0 }
 0x3aa   :  { %18877 = vpow2.f32 %v14050_v23  ;;  %v652_v28 = vadd.f32 %v651_v26, %v19917_v18 }
 0x3ab   :  { %v14053_v30 = vmul.f32 -1.442695, %v657_v25 }
 0x3ac   :  { %v14052_v31 = vmul.f32 -1.442695, %v652_v28  ;;  %v16167_v32 = vpop.f32.mrb[6].mxu0 }
 0x3ad   :  { %18879 = vpow2.f32 %v14053_v30  ;;  %v667_v37 = vadd.f32 %v16167_v32, %v19922_v27  ;;  %v661_v38 = vpop.f32.mrb[7].mxu0 }
 0x3ae   :  { %18881 = vpow2.f32 %v14052_v31  ;;  %v662_v39 = vadd.f32 %v661_v38, %v19925_v29 }
 0x3af   :  { %v14055_v40 = vmul.f32 -1.442695, %v667_v37 }
 0x3b0   :  { %v14054_v57 = vmul.f32 -1.442695, %v662_v39  ;;  %v16170_v58 = vpop.f32.mrb[8].mxu0 }
 0x3b1   :  { %18883 = vpow2.f32 %v14055_v40  ;;  %v677_v62 = vadd.f32 %v16170_v58, %v19929_v55  ;;  %v671_v63 = vpop.f32.mrb[9].mxu0 }
 0x3b2   :  { %18885 = vpow2.f32 %v14054_v57  ;;  %v672_v0 = vadd.f32 %v671_v63, %v19931_v61 }
 0x3b3   :  { %v18876_v2 = vpop.eup %18875  ;;  %18887 = vtanh.f32 %v677_v62 }
 0x3b4   :  { %v18878_v4 = vpop.eup %18877  ;;  %v699_v5 = vadd.f32 1.0, %v18876_v2  ;;  %v16181_v17 = vpop.f32.mrb[10].mxu0  ;;  %18889 = vtanh.f32 %v672_v0 }
 0x3b5   :  { %v698_v19 = vadd.f32 1.0, %v18878_v4  ;;  %v805_v20 = vadd.f32 %v16181_v17, %v19814_v53  ;;  %v799_v21 = vpop.f32.mrb[11].mxu0 }
 0x3b6   :  { %18891 = vrcp.f32 %v699_v5  ;;  %v800_v22 = vadd.f32 %v799_v21, %v19812_v52 }
 0x3b7   :  { %v18880_v23 = vpop.eup %18879  ;;  %18893 = vrcp.f32 %v698_v19  ;;  %v14067_v24 = vmul.f32 -1.442695, %v805_v20 }
 0x3b8   :  { %v18882_v25 = vpop.eup %18881  ;;  %v701_v26 = vadd.f32 1.0, %v18880_v23  ;;  %v14066_v28 = vmul.f32 -1.442695, %v800_v22  ;;  %v16184_v30 = vpop.f32.mrb[12].mxu0 }
 0x3b9   :  { %v700_v31 = vadd.f32 1.0, %v18882_v25  ;;  %18895 = vpow2.f32 %v14067_v24  ;;  %v815_v32 = vadd.f32 %v16184_v30, %v19816_v54  ;;  %v809_v37 = vpop.f32.mrb[13].mxu0 }
 0x3ba   :  { %18897 = vrcp.f32 %v701_v26  ;;  %v810_v38 = vadd.f32 %v809_v37, %v19818_v56 }
 0x3bb   :  { %v18884_v39 = vpop.eup %18883  ;;  %18899 = vrcp.f32 %v700_v31  ;;  %v14069_v40 = vmul.f32 -1.442695, %v815_v32 }
 0x3bc   :  { %v18886_v57 = vpop.eup %18885  ;;  %18901 = vpow2.f32 %v14066_v28  ;;  %v14068_v58 = vmul.f32 -1.442695, %v810_v38  ;;  %v16187_v62 = vpop.f32.mrb[14].mxu0  ;;  %v703_v4 = vadd.f32 1.0, %v18884_v39 }
 0x3bd   :  { %18903 = vpow2.f32 %v14069_v40  ;;  %v825_v63 = vadd.f32 %v16187_v62, %v19823_v1  ;;  %v819_v0 = vpop.f32.mrb[15].mxu0  ;;  %v18888_v2 = vpop.eup %18887  ;;  %v702_v17 = vadd.f32 1.0, %v18886_v57 }
 0x3be   :  { %v18890_v5 = vpop.eup %18889  ;;  %v820_v19 = vadd.f32 %v819_v0, %v19826_v3  ;;  %18905 = vpow2.f32 %v14068_v58 }
 0x3bf   :  { %v14071_v21 = vmul.f32 -1.442695, %v825_v63  ;;  %18907 = vrcp.f32 %v703_v4 }
 0x3c0   :  { %v18892_v20 = vpop.eup %18891  ;;  %v16190_v22 = vpop.f32.mrb[16].mxu0  ;;  %18909 = vrcp.f32 %v702_v17  ;;  %v14070_v31 = vmul.f32 -1.442695, %v820_v19 }
 0x3c1   :  { %v18894_v23 = vpop.eup %18893  ;;  %v721_v24 = vmul.f32 %v18892_v20, %v18888_v2  ;;  %v835_v25 = vadd.f32 %v16190_v22, %v19830_v11  ;;  %v829_v26 = vpop.f32.mrb[17].mxu0  ;;  %18911 = vpow2.f32 %v14071_v21 }
 0x3c2   :  { %v720_v28 = vmul.f32 %v18894_v23, %v18890_v5  ;;  %v830_v38 = vadd.f32 %v829_v26, %v19832_v14 }
 0x3c3   :  { %v18896_v30 = vpop.eup %18895  ;;  %18913 = vtanh.f32 %v835_v25 }
 0x3c4   :  { %v18898_v32 = vpop.eup %18897  ;;  %v857_v37 = vadd.f32 1.0, %v18896_v30 }
 0x3c5   :  { %v18900_v39 = vpop.eup %18899  ;;  %v719_v40 = vmul.f32 0.0, %v18898_v32 }
 0x3c6   :  { %v18902_v57 = vpop.eup %18901  ;;  %v718_v58 = vmul.f32 0.0, %v18900_v39  ;;  %18915 = vrcp.f32 %v857_v37 }
 0x3c7   :  { %v18904_v62 = vpop.eup %18903  ;;  %v19943_v63 = vadd.f32 %v721_v24, %v719_v40  ;;  %v856_v0 = vadd.f32 1.0, %v18902_v57  ;;  %18917 = vpow2.f32 %v14070_v31 }
 0x3c8   :  { %v19945_v2 = vadd.f32 %v720_v28, %v718_v58  ;;  %v859_v4 = vadd.f32 1.0, %v18904_v62  ;;  %18919 = vtanh.f32 %v830_v38  ;;  %v18906_v5 = vpop.eup %18905 }
 0x3c9   :  { %18921 = vrcp.f32 %v856_v0  ;;  %v858_v17 = vadd.f32 1.0, %v18906_v5  ;;  %v18908_v19 = vpop.eup %18907 }
 0x3ca   :  { %18923 = vrcp.f32 %v859_v4  ;;  %v18910_v20 = vpop.eup %18909 }
 0x3cb   :  { %18925 = vtanh.f32 %v19943_v63  ;;  %v18912_v21 = vpop.eup %18911 }
 0x3cc   :  { %18927 = vtanh.f32 %v19945_v2  ;;  %v861_v39 = vadd.f32 1.0, %v18912_v21 }
 0x3cd   :  { %18929 = vrcp.f32 %v858_v17  ;;  %v18914_v22 = vpop.eup %18913 }
 0x3d0   :  { %v18916_v23 = vpop.eup %18915 }
 0x3d1   :  { %v18918_v24 = vpop.eup %18917  ;;  %v879_v25 = vmul.f32 %v18916_v23, %v18914_v22 }
 0x3d2   :  { %v18920_v26 = vpop.eup %18919  ;;  %v860_v58 = vadd.f32 1.0, %v18918_v24 }
 0x3d3   :  { %v18922_v28 = vpop.eup %18921 }
 0x3d4   :  { %v18924_v30 = vpop.eup %18923  ;;  %v878_v31 = vmul.f32 %v18922_v28, %v18920_v26 }
 0x3d5   :  { %v18926_v32 = vpop.eup %18925  ;;  %v877_v37 = vmul.f32 %v18924_v30, %v19836_v59 }
 0x3d6   :  { %v18928_v38 = vpop.eup %18927  ;;  %v19950_v40 = vmul.f32 %v18926_v32, %v18908_v19 }
 0x3d7   :  { %v18930_v57 = vpop.eup %18929  ;;  %v19952_v62 = vadd.f32 %v879_v25, %v877_v37  ;;  %v19954_v0 = vmul.f32 %v18928_v38, %v18910_v20 }
 0x3d8   :  { %v876_v4 = vmul.f32 %v18930_v57, %v19838_v60  ;;  %8593 = vrot.lane.b32.xlu1 %v19950_v40, %s19387_s3 }
 0x3d9   :  { %18931 = vtanh.f32 %v19952_v62  ;;  %8591 = vrot.lane.b32.xlu0 %v19954_v0, %s19387_s3  ;;  %v17857_v23 = vpack.c.bf16 %v19950_v40, %v19954_v0 }
 0x3da   :  { %18933 = vrcp.f32 %v861_v39  ;;  %v19962_v59 = vadd.f32 %v878_v31, %v876_v4 }
 0x3db   :  { %18935 = vrcp.f32 %v860_v58 }
 0x3dc   :  { %18937 = vtanh.f32 %v19962_v59 }
 0x3e3   :  { %v18932_v5 = vpop.eup %18931 }
 0x3e4   :  { %v18934_v17 = vpop.eup %18933 }
 0x3e5   :  { %v18936_v19 = vpop.eup %18935  ;;  %v885_v20 = vmul.f32 %v18934_v17, %v18932_v5 }
 0x3e6   :  { %v18938_v60 = vpop.eup %18937 }
 0x3e7   :  { %v884_v21 = vmul.f32 %v18938_v60, %v18936_v19 }
 0x3e9   :  { %v17853_v22 = vpack.c.bf16 %v885_v20, %v884_v21 }
 0x3eb   :  { %17854 = vmatprep.subr.bf16.mxu0 %v17853_v22  ;;  %17866 = vmatprep.subr.bf16.mxu1 %v17853_v22 }
 0x3ec   :  { %17856 = vmatpush3.bf16.msra.mxu0 %v17853_v22  ;;  %17868 = vmatpush3.bf16.msra.mxu1 %v17853_v22 }
 0x3ed   :  { %17858 = vmatprep.subr.bf16.mxu0 %v17857_v23  ;;  %17878 = vmatprep.subr.bf16.mxu1 %v19744_v34 }
 0x3ef   :  { %16220 = vmatmul.mubr.msk.f32.vlgmr.msra.gmra.mrb[10].mxu1 %vm333_vm5, %v19753_v41 }
 0x3f0   :  { %17860 = vmatpush3.bf16.msra.mxu0 %v17857_v23  ;;  %17880 = vmatpush3.bf16.msra.mxu1 %v19744_v34 }
 0x3f1   :  { %16222 = vmatprep.mubr.msk.f32.mxu1 %vm333_vm5, %v19760_v44 }
 0x3f3   :  { %16200 = vmatmul.mubr.msk.f32.vlgmr.msra.gmra.mrb[18].mxu0 %vm333_vm5, %v19845_v6  ;;  %16223 = vmatmul.mubr.msk.f32.gmra.mrb[12].mxu1 %vm333_vm5, %v19771_v46 }
 0x3f4   :  { %16202 = vmatprep.mubr.msk.f32.mxu0 %vm333_vm5, %v19851_v7  ;;  %16225 = vmatprep.mubr.msk.f32.mxu1 %vm333_vm5, %v19776_v47 }
 0x3f7   :  { %16203 = vmatmul.mubr.msk.f32.gmra.mrb[20].mxu0 %vm333_vm5, %v19861_v8  ;;  %16226 = vmatmul.mubr.msk.f32.gmra.mrb[14].mxu1 %vm333_vm5, %v19785_v48 }
 0x3f8   :  { %16205 = vmatprep.mubr.msk.f32.mxu0 %vm333_vm5, %v19866_v9  ;;  %16228 = vmatprep.mubr.msk.f32.mxu1 %vm333_vm5, %v19790_v49 }
 0x3fb   :  { %16206 = vmatmul.mubr.msk.f32.gmra.mrb[22].mxu0 %vm333_vm5, %v19875_v33  ;;  %16229 = vmatmul.mubr.msk.f32.gmra.mrb[16].mxu1 %vm333_vm5, %v19799_v50 }
 0x3fc   :  { %16208 = vmatprep.mubr.msk.f32.mxu0 %vm333_vm5, %v19880_v10  ;;  %16259 = vmatprep.mubr.msk.f32.mxu1 %vm333_vm5, %v19627_v43 }
 0x3ff   :  { %16209 = vmatmul.mubr.msk.f32.gmra.mrb[24].mxu0 %vm333_vm5, %v19889_v12 }
 0x400   :  { %16239 = vmatprep.mubr.msk.f32.mxu0 %vm333_vm5, %v19808_v51 }
 0x4c2   :  { %v16221_v34 = vpop.f32.mrb[10].mxu1 }
 0x4c3   :  { %v1116_v24 = vadd.f32 %v16221_v34, %v19814_v53  ;;  %v1110_v25 = vpop.f32.mrb[11].mxu1 }
 0x4c4   :  { %v1111_v26 = vadd.f32 %v1110_v25, %v19812_v52 }
 0x4c5   :  { %v14097_v28 = vmul.f32 -1.442695, %v1116_v24 }
 0x4c6   :  { %v14096_v30 = vmul.f32 -1.442695, %v1111_v26  ;;  %v16201_v31 = vpop.f32.mrb[18].mxu0  ;;  %v16224_v32 = vpop.f32.mrb[12].mxu1 }
 0x4c7   :  { %18939 = vpow2.f32 %v14097_v28  ;;  %v958_v37 = vadd.f32 %v16201_v31, %v19911_v13  ;;  %v1126_v43 = vadd.f32 %v16224_v32, %v19816_v54  ;;  %v952_v38 = vpop.f32.mrb[19].mxu0  ;;  %v1120_v39 = vpop.f32.mrb[13].mxu1 }
 0x4c8   :  { %v953_v57 = vadd.f32 %v952_v38, %v19913_v15  ;;  %v1121_v58 = vadd.f32 %v1120_v39, %v19818_v56  ;;  %18941 = vpow2.f32 %v14096_v30 }
 0x4c9   :  { %v14081_v4 = vmul.f32 -1.442695, %v958_v37  ;;  %v14099_v5 = vmul.f32 -1.442695, %v1126_v43 }
 0x4ca   :  { %v14080_v17 = vmul.f32 -1.442695, %v953_v57  ;;  %v14098_v19 = vmul.f32 -1.442695, %v1121_v58  ;;  %v16204_v20 = vpop.f32.mrb[20].mxu0  ;;  %v16227_v60 = vpop.f32.mrb[14].mxu1 }
 0x4cb   :  { %18943 = vpow2.f32 %v14081_v4  ;;  %v968_v21 = vadd.f32 %v16204_v20, %v19915_v16  ;;  %v962_v22 = vpop.f32.mrb[21].mxu0  ;;  %v1130_v23 = vpop.f32.mrb[15].mxu1  ;;  %v1136_v25 = vadd.f32 %v16227_v60, %v19823_v1 }
 0x4cc   :  { %18945 = vpow2.f32 %v14099_v5  ;;  %v963_v34 = vadd.f32 %v962_v22, %v19917_v18  ;;  %v1131_v31 = vadd.f32 %v1130_v23, %v19826_v3 }
 0x4cd   :  { %18947 = vpow2.f32 %v14080_v17  ;;  %v14083_v24 = vmul.f32 -1.442695, %v968_v21  ;;  %v14101_v39 = vmul.f32 -1.442695, %v1136_v25 }
 0x4ce   :  { %18949 = vpow2.f32 %v14098_v19  ;;  %v14082_v26 = vmul.f32 -1.442695, %v963_v34  ;;  %v16207_v28 = vpop.f32.mrb[22].mxu0  ;;  %v16230_v30 = vpop.f32.mrb[16].mxu1  ;;  %v14100_v17 = vmul.f32 -1.442695, %v1131_v31 }
 0x4cf   :  { %18951 = vpow2.f32 %v14083_v24  ;;  %v972_v32 = vpop.f32.mrb[23].mxu0  ;;  %v1140_v37 = vpop.f32.mrb[17].mxu1  ;;  %v978_v43 = vadd.f32 %v16207_v28, %v19922_v27  ;;  %v1146_v58 = vadd.f32 %v16230_v30, %v19830_v11 }
 0x4d0   :  { %18953 = vpow2.f32 %v14082_v26  ;;  %v973_v19 = vadd.f32 %v972_v32, %v19925_v29 }
 0x4d1   :  { %v18940_v38 = vpop.eup %18939  ;;  %v14085_v60 = vmul.f32 -1.442695, %v978_v43 }
 0x4d2   :  { %v1168_v57 = vadd.f32 1.0, %v18940_v38  ;;  %v16210_v4 = vpop.f32.mrb[24].mxu0  ;;  %v18942_v5 = vpop.eup %18941  ;;  %v14084_v25 = vmul.f32 -1.442695, %v973_v19 }
 0x4d3   :  { %v982_v20 = vpop.f32.mrb[25].mxu0  ;;  %v1167_v23 = vadd.f32 1.0, %v18942_v5  ;;  %v988_v5 = vadd.f32 %v16210_v4, %v19929_v55 }
 0x4d4   :  { %18955 = vrcp.f32 %v1168_v57  ;;  %v1141_v57 = vadd.f32 %v1140_v37, %v19832_v14  ;;  %v983_v19 = vadd.f32 %v982_v20, %v19931_v61 }
 0x4d5   :  { %v18944_v21 = vpop.eup %18943  ;;  %18957 = vpow2.f32 %v14101_v39 }
 0x4d6   :  { %v18946_v22 = vpop.eup %18945  ;;  %18959 = vtanh.f32 %v1146_v58  ;;  %v1010_v28 = vadd.f32 1.0, %v18944_v21 }
 0x4d7   :  { %v18948_v34 = vpop.eup %18947  ;;  %v1170_v24 = vadd.f32 1.0, %v18946_v22  ;;  %18961 = vpow2.f32 %v14100_v17 }
 0x4d8   :  { %v18950_v26 = vpop.eup %18949  ;;  %18963 = vpow2.f32 %v14085_v60  ;;  %v1009_v43 = vadd.f32 1.0, %v18948_v34 }
 0x4d9   :  { %v18952_v30 = vpop.eup %18951  ;;  %18965 = vrcp.f32 %v1170_v24  ;;  %v1169_v31 = vadd.f32 1.0, %v18950_v26 }
 0x4da   :  { %18967 = vrcp.f32 %v1167_v23  ;;  %v1012_v32 = vadd.f32 1.0, %v18952_v30  ;;  %v18954_v38 = vpop.eup %18953 }
 0x4db   :  { %18969 = vpow2.f32 %v14084_v25  ;;  %v1011_v39 = vadd.f32 1.0, %v18954_v38 }
 0x4dc   :  { %18971 = vrcp.f32 %v1010_v28 }
 0x4dd   :  { %18973 = vrcp.f32 %v1169_v31 }
 0x4de   :  { %v18956_v58 = vpop.eup %18955  ;;  %18975 = vrcp.f32 %v1012_v32 }
 0x4df   :  { %v18958_v17 = vpop.eup %18957  ;;  %18977 = vrcp.f32 %v1011_v39 }
 0x4e0   :  { %v18960_v60 = vpop.eup %18959  ;;  %18979 = vrcp.f32 %v1009_v43  ;;  %v1172_v30 = vadd.f32 1.0, %v18958_v17 }
 0x4e1   :  { %v18962_v21 = vpop.eup %18961  ;;  %v1190_v22 = vmul.f32 %v18960_v60, %v18956_v58  ;;  %18981 = vtanh.f32 %v1141_v57 }
 0x4e2   :  { %v18964_v23 = vpop.eup %18963  ;;  %18983 = vtanh.f32 %v988_v5  ;;  %v1171_v32 = vadd.f32 1.0, %v18962_v21 }
 0x4e3   :  { %v18966_v34 = vpop.eup %18965  ;;  %18985 = vtanh.f32 %v983_v19  ;;  %v1014_v39 = vadd.f32 1.0, %v18964_v23 }
 0x4e4   :  { %v18968_v24 = vpop.eup %18967  ;;  %v1188_v37 = vmul.f32 %v18966_v34, %v19952_v62  ;;  %18987 = vrcp.f32 %v1172_v30 }
 0x4e5   :  { %v18970_v25 = vpop.eup %18969 }
 0x4e6   :  { %v18972_v26 = vpop.eup %18971  ;;  %v20018_v28 = vadd.f32 %v1190_v22, %v1188_v37  ;;  %v1013_v5 = vadd.f32 1.0, %v18970_v25 }
 0x4e7   :  { %v18974_v4 = vpop.eup %18973 }
 0x4e8   :  { %v18976_v31 = vpop.eup %18975  ;;  %v1187_v43 = vmul.f32 %v18974_v4, %v19962_v59  ;;  %18989 = vtanh.f32 %v20018_v28 }
 0x4e9   :  { %v18978_v20 = vpop.eup %18977  ;;  %v1030_v58 = vmul.f32 %v18976_v31, %v19943_v63  ;;  %18991 = vrcp.f32 %v1171_v32 }
 0x4ea   :  { %v18980_v38 = vpop.eup %18979  ;;  %v1029_v62 = vmul.f32 %v18978_v20, %v19945_v2  ;;  %18993 = vrcp.f32 %v1014_v39 }
 0x4eb   :  { %v18982_v57 = vpop.eup %18981  ;;  %18995 = vrcp.f32 %v1013_v5 }
 0x4ec   :  { %v18984_v19 = vpop.eup %18983  ;;  %v1189_v60 = vmul.f32 %v18982_v57, %v18968_v24 }
 0x4ed   :  { %v18986_v22 = vpop.eup %18985  ;;  %v1032_v17 = vmul.f32 %v18984_v19, %v18972_v26 }
 0x4ee   :  { %v20024_v21 = vadd.f32 %v1189_v60, %v1187_v43  ;;  %v1031_v34 = vmul.f32 %v18986_v22, %v18980_v38  ;;  %v18988_v2 = vpop.eup %18987 }
 0x4ef   :  { %v20026_v59 = vadd.f32 %v1032_v17, %v1030_v58 }
 0x4f0   :  { %18997 = vtanh.f32 %v20024_v21  ;;  %v20029_v63 = vadd.f32 %v1031_v34, %v1029_v62 }
 0x4f1   :  { %18999 = vtanh.f32 %v20026_v59 }
 0x4f2   :  { %19001 = vtanh.f32 %v20029_v63  ;;  %v18990_v23 = vpop.eup %18989 }
 0x4f3   :  { %v18992_v24 = vpop.eup %18991  ;;  %v1196_v26 = vmul.f32 %v18990_v23, %v18988_v2 }
 0x4f4   :  { %v18994_v37 = vpop.eup %18993 }
 0x4f5   :  { %v18996_v25 = vpop.eup %18995 }
 0x4fa   :  { %v18998_v4 = vpop.eup %18997 }
 0x4fb   :  { %v19000_v30 = vpop.eup %18999  ;;  %v1195_v31 = vmul.f32 %v18998_v4, %v18992_v24 }
 0x4fc   :  { %v19002_v20 = vpop.eup %19001  ;;  %v20033_v32 = vmul.f32 %v19000_v30, %v18994_v37 }
 0x4fd   :  { %v17869_v38 = vpack.c.bf16 %v1196_v26, %v1195_v31  ;;  %v20035_v43 = vmul.f32 %v19002_v20, %v18996_v25 }
 0x4fe   :  { %8597 = vrot.lane.b32.xlu1 %v20033_v32, %s19387_s3 }
 0x4ff   :  { %17870 = vmatprep.subr.bf16.mxu0 %v17869_v38  ;;  %17882 = vmatprep.subr.bf16.mxu1 %v17869_v38  ;;  %v17873_v39 = vpack.c.bf16 %v20033_v32, %v20035_v43 }
 0x500   :  { %17872 = vmatpush3.bf16.msra.mxu0 %v17869_v38  ;;  %17884 = vmatpush3.bf16.msra.mxu1 %v17869_v38 }
 0x501   :  { %17894 = vmatprep.subr.bf16.mxu1 %v19746_v35  ;;  %8595 = vrot.lane.b32.xlu0 %v20035_v43, %s19387_s3 }
 0x502   :  { %17874 = vmatprep.subr.bf16.mxu0 %v17873_v39 }
 0x503   :  { %16260 = vmatmul.mubr.msk.f32.vlgmr.msra.gmra.mrb[18].mxu1 %vm333_vm5, %v19753_v41 }
 0x504   :  { %17876 = vmatpush3.bf16.msra.mxu0 %v17873_v39  ;;  %17896 = vmatpush3.bf16.msra.mxu1 %v19746_v35  ;;  %v20074_v35 = vld [vmem:[%s23594_s5] sm:$0xff] }
 0x505   :  { %16262 = vmatprep.mubr.msk.f32.mxu1 %vm333_vm5, %v19760_v44 }
 0x507   :  { %16240 = vmatmul.mubr.msk.f32.vlgmr.msra.gmra.mrb[26].mxu0 %vm333_vm5, %v19845_v6  ;;  %16263 = vmatmul.mubr.msk.f32.gmra.mrb[20].mxu1 %vm333_vm5, %v19771_v46 }
 0x508   :  { %16242 = vmatprep.mubr.msk.f32.mxu0 %vm333_vm5, %v19851_v7  ;;  %16265 = vmatprep.mubr.msk.f32.mxu1 %vm333_vm5, %v19776_v47 }
 0x50b   :  { %16243 = vmatmul.mubr.msk.f32.gmra.mrb[28].mxu0 %vm333_vm5, %v19861_v8  ;;  %16266 = vmatmul.mubr.msk.f32.gmra.mrb[22].mxu1 %vm333_vm5, %v19785_v48 }
 0x50c   :  { %16245 = vmatprep.mubr.msk.f32.mxu0 %vm333_vm5, %v19866_v9  ;;  %16268 = vmatprep.mubr.msk.f32.mxu1 %vm333_vm5, %v19790_v49 }
 0x50f   :  { %16246 = vmatmul.mubr.msk.f32.gmra.mrb[30].mxu0 %vm333_vm5, %v19875_v33  ;;  %16269 = vmatmul.mubr.msk.f32.gmra.mrb[24].mxu1 %vm333_vm5, %v19799_v50 }
 0x510   :  { %16248 = vmatprep.mubr.msk.f32.mxu0 %vm333_vm5, %v19880_v10  ;;  %16299 = vmatprep.mubr.msk.f32.mxu1 %vm333_vm5, %v20074_v35 }
 0x513   :  { %16249 = vmatmul.mubr.msk.f32.gmra.mrb[32].mxu0 %vm333_vm5, %v19889_v12 }
 0x514   :  { %16279 = vmatprep.mubr.msk.f32.mxu0 %vm333_vm5, %v19808_v51 }
 0x5d6   :  { %v16261_v41 = vpop.f32.mrb[18].mxu1 }
 0x5d7   :  { %v1427_v44 = vadd.f32 %v16261_v41, %v19814_v53  ;;  %v1421_v46 = vpop.f32.mrb[19].mxu1 }
 0x5d8   :  { %v1422_v47 = vadd.f32 %v1421_v46, %v19812_v52 }
 0x5d9   :  { %v14127_v48 = vmul.f32 -1.442695, %v1427_v44 }
 0x5da   :  { %v14126_v49 = vmul.f32 -1.442695, %v1422_v47  ;;  %v16241_v50 = vpop.f32.mrb[26].mxu0  ;;  %v16264_v6 = vpop.f32.mrb[20].mxu1 }
 0x5db   :  { %19003 = vpow2.f32 %v14127_v48  ;;  %v1269_v7 = vadd.f32 %v16241_v50, %v19911_v13  ;;  %v1437_v8 = vadd.f32 %v16264_v6, %v19816_v54  ;;  %v1263_v9 = vpop.f32.mrb[27].mxu0  ;;  %v1431_v57 = vpop.f32.mrb[21].mxu1 }
 0x5dc   :  { %v1264_v58 = vadd.f32 %v1263_v9, %v19913_v15  ;;  %v1432_v51 = vadd.f32 %v1431_v57, %v19818_v56  ;;  %19005 = vpow2.f32 %v14126_v49 }
 0x5dd   :  { %v14111_v5 = vmul.f32 -1.442695, %v1269_v7  ;;  %v14129_v19 = vmul.f32 -1.442695, %v1437_v8 }
 0x5de   :  { %v14110_v62 = vmul.f32 -1.442695, %v1264_v58  ;;  %v14128_v60 = vmul.f32 -1.442695, %v1432_v51  ;;  %v16244_v22 = vpop.f32.mrb[28].mxu0  ;;  %v16267_v17 = vpop.f32.mrb[22].mxu1 }
 0x5df   :  { %19007 = vpow2.f32 %v14111_v5  ;;  %v1279_v34 = vadd.f32 %v16244_v22, %v19915_v16  ;;  %v1273_v2 = vpop.f32.mrb[29].mxu0  ;;  %v1441_v23 = vpop.f32.mrb[23].mxu1  ;;  %v1447_v25 = vadd.f32 %v16267_v17, %v19823_v1 }
 0x5e0   :  { %19009 = vpow2.f32 %v14129_v19  ;;  %v1274_v24 = vadd.f32 %v1273_v2, %v19917_v18  ;;  %v1442_v31 = vadd.f32 %v1441_v23, %v19826_v3 }
 0x5e1   :  { %19011 = vpow2.f32 %v14110_v62  ;;  %v14113_v37 = vmul.f32 -1.442695, %v1279_v34  ;;  %v14131_v44 = vmul.f32 -1.442695, %v1447_v25 }
 0x5e2   :  { %19013 = vpow2.f32 %v14128_v60  ;;  %v14112_v26 = vmul.f32 -1.442695, %v1274_v24  ;;  %v16247_v4 = vpop.f32.mrb[30].mxu0  ;;  %v16270_v30 = vpop.f32.mrb[24].mxu1  ;;  %v14130_v50 = vmul.f32 -1.442695, %v1442_v31 }
 0x5e3   :  { %19015 = vpow2.f32 %v14113_v37  ;;  %v1283_v20 = vpop.f32.mrb[31].mxu0  ;;  %v1451_v38 = vpop.f32.mrb[25].mxu1  ;;  %v1289_v39 = vadd.f32 %v16247_v4, %v19922_v27  ;;  %v1457_v47 = vadd.f32 %v16270_v30, %v19830_v11 }
 0x5e4   :  { %19017 = vpow2.f32 %v14112_v26  ;;  %v1284_v6 = vadd.f32 %v1283_v20, %v19925_v29  ;;  %v1452_v37 = vadd.f32 %v1451_v38, %v19832_v14 }
 0x5e5   :  { %v19004_v41 = vpop.eup %19003  ;;  %v14115_v8 = vmul.f32 -1.442695, %v1289_v39 }
 0x5e6   :  { %v1479_v46 = vadd.f32 1.0, %v19004_v41  ;;  %v16250_v48 = vpop.f32.mrb[32].mxu0  ;;  %v19006_v49 = vpop.eup %19005  ;;  %v14114_v19 = vmul.f32 -1.442695, %v1284_v6 }
 0x5e7   :  { %v1293_v7 = vpop.f32.mrb[33].mxu0  ;;  %v1478_v58 = vadd.f32 1.0, %v19006_v49  ;;  %v1299_v26 = vadd.f32 %v16250_v48, %v19929_v55 }
 0x5e8   :  { %19019 = vrcp.f32 %v1479_v46  ;;  %v1294_v30 = vadd.f32 %v1293_v7, %v19931_v61 }
 0x5e9   :  { %v19008_v9 = vpop.eup %19007  ;;  %19021 = vpow2.f32 %v14131_v44 }
 0x5ea   :  { %v19010_v57 = vpop.eup %19009  ;;  %19023 = vtanh.f32 %v1457_v47  ;;  %v1321_v60 = vadd.f32 1.0, %v19008_v9 }
 0x5eb   :  { %v19012_v51 = vpop.eup %19011  ;;  %v1481_v5 = vadd.f32 1.0, %v19010_v57  ;;  %19025 = vpow2.f32 %v14130_v50 }
 0x5ec   :  { %v19014_v62 = vpop.eup %19013  ;;  %19027 = vpow2.f32 %v14115_v8  ;;  %v1320_v23 = vadd.f32 1.0, %v19012_v51 }
 0x5ed   :  { %v19016_v22 = vpop.eup %19015  ;;  %19029 = vrcp.f32 %v1481_v5  ;;  %v1480_v17 = vadd.f32 1.0, %v19014_v62 }
 0x5ee   :  { %19031 = vrcp.f32 %v1478_v58  ;;  %v1323_v34 = vadd.f32 1.0, %v19016_v22  ;;  %v19018_v2 = vpop.eup %19017 }
 0x5ef   :  { %19033 = vpow2.f32 %v14114_v19  ;;  %v1322_v24 = vadd.f32 1.0, %v19018_v2 }
 0x5f0   :  { %19035 = vrcp.f32 %v1321_v60 }
 0x5f1   :  { %19037 = vrcp.f32 %v1480_v17 }
 0x5f2   :  { %v19020_v25 = vpop.eup %19019  ;;  %19039 = vrcp.f32 %v1323_v34 }
 0x5f3   :  { %v19022_v4 = vpop.eup %19021  ;;  %19041 = vrcp.f32 %v1322_v24 }
 0x5f4   :  { %v19024_v31 = vpop.eup %19023  ;;  %19043 = vrcp.f32 %v1320_v23  ;;  %v1483_v6 = vadd.f32 1.0, %v19022_v4 }
 0x5f5   :  { %v19026_v20 = vpop.eup %19025  ;;  %v1501_v39 = vmul.f32 %v19024_v31, %v19020_v25  ;;  %19045 = vtanh.f32 %v1452_v37 }
 0x5f6   :  { %v19028_v41 = vpop.eup %19027  ;;  %19047 = vtanh.f32 %v1299_v26  ;;  %v1482_v9 = vadd.f32 1.0, %v19026_v20 }
 0x5f7   :  { %v19030_v44 = vpop.eup %19029  ;;  %19049 = vtanh.f32 %v1294_v30  ;;  %v1325_v51 = vadd.f32 1.0, %v19028_v41 }
 0x5f8   :  { %v19032_v46 = vpop.eup %19031  ;;  %v1499_v38 = vmul.f32 %v19030_v44, %v20018_v28  ;;  %19051 = vrcp.f32 %v1483_v6  ;;  %v20157_v6 = vld [vmem:[%s23596_s7 + $0x10] sm:$0xff] }
 0x5f9   :  { %v19034_v47 = vpop.eup %19033 }
 0x5fa   :  { %v19036_v49 = vpop.eup %19035  ;;  %v20099_v50 = vadd.f32 %v1501_v39, %v1499_v38  ;;  %v1324_v62 = vadd.f32 1.0, %v19034_v47  ;;  %v20128_v47 = vld [vmem:[%s23594_s5 + $0x8] sm:$0xff] }
 0x5fb   :  { %v19038_v48 = vpop.eup %19037 }
 0x5fc   :  { %v19040_v8 = vpop.eup %19039  ;;  %v1498_v58 = vmul.f32 %v19038_v48, %v20024_v21  ;;  %19053 = vtanh.f32 %v20099_v50  ;;  %v20143_v48 = vld [vmem:[%s23596_s7 + $0x8] sm:$0xff] }
 0x5fd   :  { %v19042_v7 = vpop.eup %19041  ;;  %v1341_v19 = vmul.f32 %v19040_v8, %v20026_v59  ;;  %19055 = vrcp.f32 %v1482_v9  ;;  %v20164_v8 = vld [vmem:[%s23594_s5 + $0x20] sm:$0xff]  ;;  %v20178_v9 = vld [vmem:[%s23594_s5 + $0x28] sm:$0xff] }
 0x5fe   :  { %v19044_v57 = vpop.eup %19043  ;;  %v1340_v28 = vmul.f32 %v19042_v7, %v20029_v63  ;;  %19057 = vrcp.f32 %v1325_v51  ;;  %v20171_v7 = vld [vmem:[%s23596_s7 + $0x18] sm:$0xff] }
 0x5ff   :  { %v19046_v5 = vpop.eup %19045  ;;  %19059 = vrcp.f32 %v1324_v62  ;;  %v20201_v51 = vld [vmem:[%s23594_s5 + $0x38] sm:$0xff] }
 0x600   :  { %v19048_v60 = vpop.eup %19047  ;;  %v1500_v22 = vmul.f32 %v19046_v5, %v19032_v46 }
 0x601   :  { %v19050_v17 = vpop.eup %19049  ;;  %v1343_v34 = vmul.f32 %v19048_v60, %v19036_v49  ;;  %v20136_v49 = vld [vmem:[%s23594_s5 + $0x10] sm:$0xff] }
 0x602   :  { %v20105_v2 = vadd.f32 %v1500_v22, %v1498_v58  ;;  %v1342_v23 = vmul.f32 %v19050_v17, %v19044_v57  ;;  %v19052_v63 = vpop.eup %19051  ;;  %v20185_v57 = vld [vmem:[%s23596_s7 + $0x20] sm:$0xff]  ;;  %v20192_v58 = vld [vmem:[%s23594_s5 + $0x30] sm:$0xff] }
 0x603   :  { %v20107_v21 = vadd.f32 %v1343_v34, %v1341_v19 }
 0x604   :  { %19061 = vtanh.f32 %v20105_v2  ;;  %v20110_v59 = vadd.f32 %v1342_v23, %v1340_v28 }
 0x605   :  { %19063 = vtanh.f32 %v20107_v21 }
 0x606   :  { %19065 = vtanh.f32 %v20110_v59  ;;  %v19054_v24 = vpop.eup %19053 }
 0x607   :  { %v19056_v37 = vpop.eup %19055  ;;  %v1507_v4 = vmul.f32 %v19054_v24, %v19052_v63 }
 0x608   :  { %v19058_v25 = vpop.eup %19057 }
 0x609   :  { %v19060_v26 = vpop.eup %19059 }
 0x60e   :  { %v19062_v30 = vpop.eup %19061 }
 0x60f   :  { %v19064_v31 = vpop.eup %19063  ;;  %v1506_v20 = vmul.f32 %v19062_v30, %v19056_v37 }
 0x610   :  { %v19066_v39 = vpop.eup %19065  ;;  %v20114_v41 = vmul.f32 %v19064_v31, %v19058_v25 }
 0x611   :  { %v17885_v44 = vpack.c.bf16 %v1507_v4, %v1506_v20  ;;  %v20116_v46 = vmul.f32 %v19066_v39, %v19060_v26 }
 0x612   :  { %23849 = vst [vmem:[#allocation3_spill] sm:$0xff] %v20114_v41  ;;  %8601 = vrot.lane.b32.xlu1 %v20114_v41, %s19387_s3 }
 0x613   :  { %23850 = vst [vmem:[#allocation4_spill] sm:$0xff] %v20116_v46  ;;  %17886 = vmatprep.subr.bf16.mxu0 %v17885_v44  ;;  %17898 = vmatprep.subr.bf16.mxu1 %v17885_v44  ;;  %v17889_v38 = vpack.c.bf16 %v20114_v41, %v20116_v46 }
 0x614   :  { %17888 = vmatpush3.bf16.msra.mxu0 %v17885_v44  ;;  %17900 = vmatpush3.bf16.msra.mxu1 %v17885_v44 }
 0x615   :  { %17910 = vmatprep.subr.bf16.mxu1 %v19748_v36  ;;  %8599 = vrot.lane.b32.xlu0 %v20116_v46, %s19387_s3 }
 0x616   :  { %17890 = vmatprep.subr.bf16.mxu0 %v17889_v38 }
 0x617   :  { %16300 = vmatmul.mubr.msk.f32.vlgmr.msra.gmra.mrb[26].mxu1 %vm333_vm5, %v20128_v47 }
 0x618   :  { %17892 = vmatpush3.bf16.msra.mxu0 %v17889_v38  ;;  %17912 = vmatpush3.bf16.msra.mxu1 %v19748_v36  ;;  %v20150_v36 = vld [vmem:[%s23594_s5 + $0x18] sm:$0xff] }
 0x619   :  { %16302 = vmatprep.mubr.msk.f32.mxu1 %vm333_vm5, %v20136_v49 }
 0x61b   :  { %16280 = vmatmul.mubr.msk.f32.vlgmr.msra.gmra.mrb[34].mxu0 %vm333_vm5, %v20143_v48  ;;  %16303 = vmatmul.mubr.msk.f32.gmra.mrb[28].mxu1 %vm333_vm5, %v20150_v36 }
 0x61c   :  { %16282 = vmatprep.mubr.msk.f32.mxu0 %vm333_vm5, %v20157_v6  ;;  %16305 = vmatprep.mubr.msk.f32.mxu1 %vm333_vm5, %v20164_v8 }
 0x61f   :  { %16283 = vmatmul.mubr.msk.f32.gmra.mrb[36].mxu0 %vm333_vm5, %v20171_v7  ;;  %16306 = vmatmul.mubr.msk.f32.gmra.mrb[30].mxu1 %vm333_vm5, %v20178_v9 }
 0x620   :  { %16285 = vmatprep.mubr.msk.f32.mxu0 %vm333_vm5, %v20185_v57  ;;  %16308 = vmatprep.mubr.msk.f32.mxu1 %vm333_vm5, %v20192_v58 }
 0x623   :  { %16286 = vmatmul.mubr.msk.f32.gmra.mrb[38].mxu0 %vm333_vm5, %v19875_v33  ;;  %16309 = vmatmul.mubr.msk.f32.gmra.mrb[32].mxu1 %vm333_vm5, %v20201_v51  ;;  %v20214_v33 = vld [vmem:[%s23596_s7] sm:$0xff] }
 0x624   :  { %16288 = vmatprep.mubr.msk.f32.mxu0 %vm333_vm5, %v19880_v10  ;;  %16339 = vmatprep.mubr.msk.f32.mxu1 %vm333_vm5, %v20074_v35 }
 0x627   :  { %16289 = vmatmul.mubr.msk.f32.gmra.mrb[40].mxu0 %vm333_vm5, %v19889_v12 }
 0x628   :  { %16319 = vmatprep.mubr.msk.f32.mxu0 %vm333_vm5, %v20214_v33 }
 0x6ea   :  { %v16301_v5 = vpop.f32.mrb[26].mxu1 }
 0x6eb   :  { %v1738_v19 = vadd.f32 %v16301_v5, %v19814_v53  ;;  %v1732_v62 = vpop.f32.mrb[27].mxu1 }
 0x6ec   :  { %v1733_v10 = vadd.f32 %v1732_v62, %v19812_v52 }
 0x6ed   :  { %v14157_v60 = vmul.f32 -1.442695, %v1738_v19 }
 0x6ee   :  { %v14156_v28 = vmul.f32 -1.442695, %v1733_v10  ;;  %v16281_v22 = vpop.f32.mrb[34].mxu0  ;;  %v16304_v17 = vpop.f32.mrb[28].mxu1 }
 0x6ef   :  { %19067 = vpow2.f32 %v14157_v60  ;;  %v1580_v12 = vadd.f32 %v16281_v22, %v19911_v13  ;;  %v1748_v34 = vadd.f32 %v16304_v17, %v19816_v54  ;;  %v1574_v23 = vpop.f32.mrb[35].mxu0  ;;  %v1742_v63 = vpop.f32.mrb[29].mxu1 }
 0x6f0   :  { %v1575_v24 = vadd.f32 %v1574_v23, %v19913_v15  ;;  %v1743_v37 = vadd.f32 %v1742_v63, %v19818_v56  ;;  %19069 = vpow2.f32 %v14156_v28 }
 0x6f1   :  { %v14141_v25 = vmul.f32 -1.442695, %v1580_v12  ;;  %v14159_v26 = vmul.f32 -1.442695, %v1748_v34 }
 0x6f2   :  { %v14140_v4 = vmul.f32 -1.442695, %v1575_v24  ;;  %v14158_v30 = vmul.f32 -1.442695, %v1743_v37  ;;  %v16284_v31 = vpop.f32.mrb[36].mxu0  ;;  %v16307_v20 = vpop.f32.mrb[30].mxu1 }
 0x6f3   :  { %19071 = vpow2.f32 %v14141_v25  ;;  %v1590_v39 = vadd.f32 %v16284_v31, %v19915_v16  ;;  %v1584_v44 = vpop.f32.mrb[37].mxu0  ;;  %v1752_v38 = vpop.f32.mrb[31].mxu1  ;;  %v1758_v62 = vadd.f32 %v16307_v20, %v19823_v1 }
 0x6f4   :  { %19073 = vpow2.f32 %v14159_v26  ;;  %v1585_v5 = vadd.f32 %v1584_v44, %v19917_v18  ;;  %v1753_v22 = vadd.f32 %v1752_v38, %v19826_v3 }
 0x6f5   :  { %19075 = vpow2.f32 %v14140_v4  ;;  %v14143_v19 = vmul.f32 -1.442695, %v1590_v39  ;;  %v14161_v63 = vmul.f32 -1.442695, %v1758_v62 }
 0x6f6   :  { %19077 = vpow2.f32 %v14158_v30  ;;  %v14142_v10 = vmul.f32 -1.442695, %v1585_v5  ;;  %v16287_v60 = vpop.f32.mrb[38].mxu0  ;;  %v16310_v28 = vpop.f32.mrb[32].mxu1  ;;  %v14160_v4 = vmul.f32 -1.442695, %v1753_v22 }
 0x6f7   :  { %19079 = vpow2.f32 %v14143_v19  ;;  %v1594_v17 = vpop.f32.mrb[39].mxu0  ;;  %v1762_v12 = vpop.f32.mrb[33].mxu1  ;;  %v1600_v34 = vadd.f32 %v16287_v60, %v19922_v27  ;;  %v1768_v37 = vadd.f32 %v16310_v28, %v19830_v11 }
 0x6f8   :  { %19081 = vpow2.f32 %v14142_v10  ;;  %v1595_v30 = vadd.f32 %v1594_v17, %v19925_v29 }
 0x6f9   :  { %v19068_v23 = vpop.eup %19067  ;;  %v14145_v20 = vmul.f32 -1.442695, %v1600_v34 }
 0x6fa   :  { %v1790_v24 = vadd.f32 1.0, %v19068_v23  ;;  %v16290_v25 = vpop.f32.mrb[40].mxu0  ;;  %v19070_v26 = vpop.eup %19069  ;;  %v14144_v62 = vmul.f32 -1.442695, %v1595_v30 }
 0x6fb   :  { %v1604_v31 = vpop.f32.mrb[41].mxu0  ;;  %v1789_v38 = vadd.f32 1.0, %v19070_v26  ;;  %v1610_v26 = vadd.f32 %v16290_v25, %v19929_v55 }
 0x6fc   :  { %19083 = vrcp.f32 %v1790_v24  ;;  %v1763_v24 = vadd.f32 %v1762_v12, %v19832_v14  ;;  %v1605_v30 = vadd.f32 %v1604_v31, %v19931_v61 }
 0x6fd   :  { %v19072_v39 = vpop.eup %19071  ;;  %19085 = vpow2.f32 %v14161_v63 }
 0x6fe   :  { %v19074_v44 = vpop.eup %19073  ;;  %19087 = vtanh.f32 %v1768_v37  ;;  %v1632_v60 = vadd.f32 1.0, %v19072_v39 }
 0x6ff   :  { %v19076_v5 = vpop.eup %19075  ;;  %v1792_v19 = vadd.f32 1.0, %v19074_v44  ;;  %19089 = vpow2.f32 %v14160_v4 }
 0x700   :  { %v19078_v10 = vpop.eup %19077  ;;  %19091 = vpow2.f32 %v14145_v20  ;;  %v1631_v34 = vadd.f32 1.0, %v19076_v5 }
 0x701   :  { %v19080_v28 = vpop.eup %19079  ;;  %19093 = vrcp.f32 %v1792_v19  ;;  %v1791_v22 = vadd.f32 1.0, %v19078_v10 }
 0x702   :  { %19095 = vrcp.f32 %v1789_v38  ;;  %v1634_v17 = vadd.f32 1.0, %v19080_v28  ;;  %v19082_v23 = vpop.eup %19081 }
 0x703   :  { %19097 = vpow2.f32 %v14144_v62  ;;  %v1633_v63 = vadd.f32 1.0, %v19082_v23 }
 0x704   :  { %19099 = vrcp.f32 %v1632_v60 }
 0x705   :  { %19101 = vrcp.f32 %v1791_v22 }
 0x706   :  { %v19084_v37 = vpop.eup %19083  ;;  %19103 = vrcp.f32 %v1634_v17 }
 0x707   :  { %v19086_v4 = vpop.eup %19085  ;;  %19105 = vrcp.f32 %v1633_v63 }
 0x708   :  { %v19088_v20 = vpop.eup %19087  ;;  %19107 = vrcp.f32 %v1631_v34  ;;  %v1794_v28 = vadd.f32 1.0, %v19086_v4 }
 0x709   :  { %v19090_v39 = vpop.eup %19089  ;;  %v1812_v44 = vmul.f32 %v19088_v20, %v19084_v37  ;;  %19109 = vtanh.f32 %v1763_v24 }
 0x70a   :  { %v19092_v38 = vpop.eup %19091  ;;  %19111 = vtanh.f32 %v1610_v26  ;;  %v1793_v17 = vadd.f32 1.0, %v19090_v39 }
 0x70b   :  { %v19094_v5 = vpop.eup %19093  ;;  %19113 = vtanh.f32 %v1605_v30  ;;  %v1636_v63 = vadd.f32 1.0, %v19092_v38 }
 0x70c   :  { %v19096_v19 = vpop.eup %19095  ;;  %v1810_v12 = vmul.f32 %v19094_v5, %v20099_v50  ;;  %19115 = vrcp.f32 %v1794_v28 }
 0x70d   :  { %v19098_v62 = vpop.eup %19097 }
 0x70e   :  { %v19100_v10 = vpop.eup %19099  ;;  %v20235_v60 = vadd.f32 %v1812_v44, %v1810_v12  ;;  %v1635_v26 = vadd.f32 1.0, %v19098_v62 }
 0x70f   :  { %v19102_v25 = vpop.eup %19101 }
 0x710   :  { %v19104_v22 = vpop.eup %19103  ;;  %v1809_v34 = vmul.f32 %v19102_v25, %v20105_v2  ;;  %19117 = vtanh.f32 %v20235_v60 }
 0x711   :  { %v19106_v31 = vpop.eup %19105  ;;  %v1652_v37 = vmul.f32 %v19104_v22, %v20107_v21  ;;  %19119 = vrcp.f32 %v1793_v17 }
 0x712   :  { %v19108_v23 = vpop.eup %19107  ;;  %v1651_v50 = vmul.f32 %v19106_v31, %v20110_v59  ;;  %19121 = vrcp.f32 %v1636_v63 }
 0x713   :  { %v19110_v24 = vpop.eup %19109  ;;  %19123 = vrcp.f32 %v1635_v26 }
 0x714   :  { %v19112_v30 = vpop.eup %19111  ;;  %v1811_v20 = vmul.f32 %v19110_v24, %v19096_v19  ;;  %v20294_v24 = vld [vmem:[%s23596_s7 + $0x30] sm:$0xff] }
 0x715   :  { %v19114_v44 = vpop.eup %19113  ;;  %v1654_v4 = vmul.f32 %v19112_v30, %v19100_v10 }
 0x716   :  { %v20241_v39 = vadd.f32 %v1811_v20, %v1809_v34  ;;  %v1653_v5 = vmul.f32 %v19114_v44, %v19108_v23  ;;  %v19116_v59 = vpop.eup %19115 }
 0x717   :  { %v20243_v2 = vadd.f32 %v1654_v4, %v1652_v37  ;;  %v20303_v37 = vld [vmem:[%s23596_s7 + $0x38] sm:$0xff] }
 0x718   :  { %19125 = vtanh.f32 %v20241_v39  ;;  %v20246_v21 = vadd.f32 %v1653_v5, %v1651_v50 }
 0x719   :  { %19127 = vtanh.f32 %v20243_v2 }
 0x71a   :  { %19129 = vtanh.f32 %v20246_v21  ;;  %v19118_v38 = vpop.eup %19117 }
 0x71b   :  { %v19120_v19 = vpop.eup %19119  ;;  %v1818_v10 = vmul.f32 %v19118_v38, %v19116_v59 }
 0x71c   :  { %v19122_v12 = vpop.eup %19121 }
 0x71d   :  { %v19124_v62 = vpop.eup %19123 }
 0x722   :  { %v19126_v25 = vpop.eup %19125 }
 0x723   :  { %v19128_v28 = vpop.eup %19127  ;;  %v1817_v22 = vmul.f32 %v19126_v25, %v19120_v19 }
 0x724   :  { %v19130_v31 = vpop.eup %19129  ;;  %v20250_v17 = vmul.f32 %v19128_v28, %v19122_v12 }
 0x725   :  { %v17901_v23 = vpack.c.bf16 %v1818_v10, %v1817_v22  ;;  %v20252_v34 = vmul.f32 %v19130_v31, %v19124_v62 }
 0x726   :  { %23851 = vst [vmem:[#allocation5_spill] sm:$0xff] %v20250_v17  ;;  %8605 = vrot.lane.b32.xlu1 %v20250_v17, %s19387_s3 }
 0x727   :  { %23852 = vst [vmem:[#allocation6_spill] sm:$0xff] %v20252_v34  ;;  %17902 = vmatprep.subr.bf16.mxu0 %v17901_v23  ;;  %17914 = vmatprep.subr.bf16.mxu1 %v17901_v23  ;;  %v17905_v63 = vpack.c.bf16 %v20250_v17, %v20252_v34 }
 0x728   :  { %17904 = vmatpush3.bf16.msra.mxu0 %v17901_v23  ;;  %17916 = vmatpush3.bf16.msra.mxu1 %v17901_v23 }
 0x729   :  { %17926 = vmatprep.subr.bf16.mxu1 %v19755_v42  ;;  %8603 = vrot.lane.b32.xlu0 %v20252_v34, %s19387_s3 }
 0x72a   :  { %17906 = vmatprep.subr.bf16.mxu0 %v17905_v63 }
 0x72b   :  { %16340 = vmatmul.mubr.msk.f32.vlgmr.msra.gmra.mrb[34].mxu1 %vm333_vm5, %v20128_v47 }
 0x72c   :  { %17908 = vmatpush3.bf16.msra.mxu0 %v17905_v63  ;;  %17928 = vmatpush3.bf16.msra.mxu1 %v19755_v42  ;;  %v20285_v42 = vld [vmem:[%s23596_s7 + $0x28] sm:$0xff] }
 0x72d   :  { %16342 = vmatprep.mubr.msk.f32.mxu1 %vm333_vm5, %v20136_v49 }
 0x72f   :  { %16320 = vmatmul.mubr.msk.f32.vlgmr.msra.gmra.mrb[42].mxu0 %vm333_vm5, %v20143_v48  ;;  %16343 = vmatmul.mubr.msk.f32.gmra.mrb[36].mxu1 %vm333_vm5, %v20150_v36 }
 0x730   :  { %16322 = vmatprep.mubr.msk.f32.mxu0 %vm333_vm5, %v20157_v6  ;;  %16345 = vmatprep.mubr.msk.f32.mxu1 %vm333_vm5, %v20164_v8 }
 0x733   :  { %16323 = vmatmul.mubr.msk.f32.gmra.mrb[44].mxu0 %vm333_vm5, %v20171_v7  ;;  %16346 = vmatmul.mubr.msk.f32.gmra.mrb[38].mxu1 %vm333_vm5, %v20178_v9 }
 0x734   :  { %16325 = vmatprep.mubr.msk.f32.mxu0 %vm333_vm5, %v20185_v57  ;;  %16348 = vmatprep.mubr.msk.f32.mxu1 %vm333_vm5, %v20192_v58 }
 0x737   :  { %16326 = vmatmul.mubr.msk.f32.gmra.mrb[46].mxu0 %vm333_vm5, %v20285_v42  ;;  %16349 = vmatmul.mubr.msk.f32.gmra.mrb[40].mxu1 %vm333_vm5, %v20201_v51 }
 0x738   :  { %16328 = vmatprep.mubr.msk.f32.mxu0 %vm333_vm5, %v20294_v24  ;;  %16379 = vmatprep.mubr.msk.f32.mxu1 %vm333_vm5, %v20074_v35 }
 0x73b   :  { %16329 = vmatmul.mubr.msk.f32.gmra.mrb[48].mxu0 %vm333_vm5, %v20303_v37 }
 0x73c   :  { %16359 = vmatprep.mubr.msk.f32.mxu0 %vm333_vm5, %v20214_v33 }
 0x7fe   :  { %v16341_v26 = vpop.f32.mrb[34].mxu1 }
 0x7ff   :  { %v2049_v30 = vadd.f32 %v16341_v26, %v19814_v53  ;;  %v2043_v50 = vpop.f32.mrb[35].mxu1 }
 0x800   :  { %v2044_v20 = vadd.f32 %v2043_v50, %v19812_v52 }
 0x801   :  { %v14187_v44 = vmul.f32 -1.442695, %v2049_v30 }
 0x802   :  { %v14186_v4 = vmul.f32 -1.442695, %v2044_v20  ;;  %v16321_v5 = vpop.f32.mrb[42].mxu0  ;;  %v16344_v59 = vpop.f32.mrb[36].mxu1 }
 0x803   :  { %19131 = vpow2.f32 %v14187_v44  ;;  %v1891_v38 = vadd.f32 %v16321_v5, %v19911_v13  ;;  %v2059_v19 = vadd.f32 %v16344_v59, %v19816_v54  ;;  %v1885_v12 = vpop.f32.mrb[43].mxu0  ;;  %v2053_v62 = vpop.f32.mrb[37].mxu1 }
 0x804   :  { %v1886_v10 = vadd.f32 %v1885_v12, %v19913_v15  ;;  %v2054_v25 = vadd.f32 %v2053_v62, %v19818_v56  ;;  %19133 = vpow2.f32 %v14186_v4 }
 0x805   :  { %v14171_v28 = vmul.f32 -1.442695, %v1891_v38  ;;  %v14189_v22 = vmul.f32 -1.442695, %v2059_v19 }
 0x806   :  { %v14170_v31 = vmul.f32 -1.442695, %v1886_v10  ;;  %v14188_v23 = vmul.f32 -1.442695, %v2054_v25  ;;  %v16324_v63 = vpop.f32.mrb[44].mxu0  ;;  %v16347_v26 = vpop.f32.mrb[38].mxu1 }
 0x807   :  { %19135 = vpow2.f32 %v14171_v28  ;;  %v1901_v30 = vadd.f32 %v16324_v63, %v19915_v16  ;;  %v1895_v50 = vpop.f32.mrb[45].mxu0  ;;  %v2063_v20 = vpop.f32.mrb[39].mxu1  ;;  %v2069_v59 = vadd.f32 %v16347_v26, %v19823_v1 }
 0x808   :  { %19137 = vpow2.f32 %v14189_v22  ;;  %v1896_v44 = vadd.f32 %v1895_v50, %v19917_v18  ;;  %v2064_v12 = vadd.f32 %v2063_v20, %v19826_v3 }
 0x809   :  { %19139 = vpow2.f32 %v14170_v31  ;;  %v14173_v5 = vmul.f32 -1.442695, %v1901_v30  ;;  %v14191_v63 = vmul.f32 -1.442695, %v2069_v59 }
 0x80a   :  { %19141 = vpow2.f32 %v14188_v23  ;;  %v14172_v4 = vmul.f32 -1.442695, %v1896_v44  ;;  %v16327_v38 = vpop.f32.mrb[46].mxu0  ;;  %v16350_v19 = vpop.f32.mrb[40].mxu1  ;;  %v14190_v26 = vmul.f32 -1.442695, %v2064_v12 }
 0x80b   :  { %19143 = vpow2.f32 %v14173_v5  ;;  %v1905_v62 = vpop.f32.mrb[47].mxu0  ;;  %v2073_v10 = vpop.f32.mrb[41].mxu1  ;;  %v1911_v25 = vadd.f32 %v16327_v38, %v19922_v27  ;;  %v2079_v31 = vadd.f32 %v16350_v19, %v19830_v11 }
 0x80c   :  { %19145 = vpow2.f32 %v14172_v4  ;;  %v1906_v23 = vadd.f32 %v1905_v62, %v19925_v29 }
 0x80d   :  { %v19132_v28 = vpop.eup %19131  ;;  %v14175_v5 = vmul.f32 -1.442695, %v1911_v25 }
 0x80e   :  { %v2101_v22 = vadd.f32 1.0, %v19132_v28  ;;  %v16330_v30 = vpop.f32.mrb[48].mxu0  ;;  %v19134_v50 = vpop.eup %19133  ;;  %v14174_v59 = vmul.f32 -1.442695, %v1906_v23 }
 0x80f   :  { %v1915_v44 = vpop.f32.mrb[49].mxu0  ;;  %v2100_v34 = vadd.f32 1.0, %v19134_v50  ;;  %v1921_v50 = vadd.f32 %v16330_v30, %v19929_v55 }
 0x810   :  { %19147 = vrcp.f32 %v2101_v22  ;;  %v2074_v22 = vadd.f32 %v2073_v10, %v19832_v14 }
 0x811   :  { %v19136_v17 = vpop.eup %19135  ;;  %19149 = vpow2.f32 %v14191_v63 }
 0x812   :  { %v19138_v20 = vpop.eup %19137  ;;  %19151 = vtanh.f32 %v2079_v31  ;;  %v1943_v28 = vadd.f32 1.0, %v19136_v17  ;;  %v1916_v17 = vadd.f32 %v1915_v44, %v19931_v61 }
 0x813   :  { %v19140_v38 = vpop.eup %19139  ;;  %v2103_v41 = vadd.f32 1.0, %v19138_v20  ;;  %19153 = vpow2.f32 %v14190_v26 }
 0x814   :  { %v19142_v4 = vpop.eup %19141  ;;  %19155 = vpow2.f32 %v14175_v5  ;;  %v1942_v25 = vadd.f32 1.0, %v19140_v38 }
 0x815   :  { %v19144_v19 = vpop.eup %19143  ;;  %19157 = vrcp.f32 %v2103_v41  ;;  %v2102_v12 = vadd.f32 1.0, %v19142_v4 }
 0x816   :  { %19159 = vrcp.f32 %v2100_v34  ;;  %v1945_v62 = vadd.f32 1.0, %v19144_v19  ;;  %v19146_v46 = vpop.eup %19145 }
 0x817   :  { %19161 = vpow2.f32 %v14174_v59  ;;  %v1944_v63 = vadd.f32 1.0, %v19146_v46 }
 0x818   :  { %19163 = vrcp.f32 %v1943_v28 }
 0x819   :  { %19165 = vrcp.f32 %v2102_v12 }
 0x81a   :  { %v19148_v31 = vpop.eup %19147  ;;  %19167 = vrcp.f32 %v1945_v62 }
 0x81b   :  { %v19150_v26 = vpop.eup %19149  ;;  %19169 = vrcp.f32 %v1944_v63 }
 0x81c   :  { %v19152_v41 = vpop.eup %19151  ;;  %19171 = vrcp.f32 %v1942_v25  ;;  %v2105_v28 = vadd.f32 1.0, %v19150_v26 }
 0x81d   :  { %v19154_v34 = vpop.eup %19153  ;;  %v2123_v23 = vmul.f32 %v19152_v41, %v19148_v31  ;;  %19173 = vtanh.f32 %v2074_v22 }
 0x81e   :  { %v19156_v5 = vpop.eup %19155  ;;  %19175 = vtanh.f32 %v1921_v50  ;;  %v2104_v12 = vadd.f32 1.0, %v19154_v34 }
 0x81f   :  { %v19158_v20 = vpop.eup %19157  ;;  %19177 = vtanh.f32 %v1916_v17  ;;  %v1947_v63 = vadd.f32 1.0, %v19156_v5 }
 0x820   :  { %v19160_v46 = vpop.eup %19159  ;;  %v2121_v10 = vmul.f32 %v19158_v20, %v20235_v60  ;;  %19179 = vrcp.f32 %v2105_v28 }
 0x821   :  { %v19162_v38 = vpop.eup %19161 }
 0x822   :  { %v19164_v59 = vpop.eup %19163  ;;  %v20326_v4 = vadd.f32 %v2123_v23, %v2121_v10  ;;  %v1946_v50 = vadd.f32 1.0, %v19162_v38 }
 0x823   :  { %v19166_v30 = vpop.eup %19165 }
 0x824   :  { %v19168_v19 = vpop.eup %19167  ;;  %v2120_v25 = vmul.f32 %v19166_v30, %v20241_v39  ;;  %19181 = vtanh.f32 %v20326_v4 }
 0x825   :  { %v19170_v44 = vpop.eup %19169  ;;  %v1963_v31 = vmul.f32 %v19168_v19, %v20243_v2  ;;  %19183 = vrcp.f32 %v2104_v12 }
 0x826   :  { %v19172_v62 = vpop.eup %19171  ;;  %v1962_v60 = vmul.f32 %v19170_v44, %v20246_v21  ;;  %19185 = vrcp.f32 %v1947_v63 }
 0x827   :  { %v19174_v22 = vpop.eup %19173  ;;  %19187 = vrcp.f32 %v1946_v50 }
 0x828   :  { %v19176_v17 = vpop.eup %19175  ;;  %v2122_v41 = vmul.f32 %v19174_v22, %v19160_v46 }
 0x829   :  { %v19178_v23 = vpop.eup %19177  ;;  %v1965_v26 = vmul.f32 %v19176_v17, %v19164_v59 }
 0x82a   :  { %v20332_v34 = vadd.f32 %v2122_v41, %v2120_v25  ;;  %v1964_v20 = vmul.f32 %v19178_v23, %v19172_v62  ;;  %v19180_v21 = vpop.eup %19179 }
 0x82b   :  { %v20334_v39 = vadd.f32 %v1965_v26, %v1963_v31 }
 0x82c   :  { %19189 = vtanh.f32 %v20332_v34  ;;  %v20337_v2 = vadd.f32 %v1964_v20, %v1962_v60 }
 0x82d   :  { %19191 = vtanh.f32 %v20334_v39 }
 0x82e   :  { %19193 = vtanh.f32 %v20337_v2  ;;  %v19182_v5 = vpop.eup %19181 }
 0x82f   :  { %v19184_v46 = vpop.eup %19183  ;;  %v2129_v59 = vmul.f32 %v19182_v5, %v19180_v21 }
 0x830   :  { %v19186_v10 = vpop.eup %19185 }
 0x831   :  { %v19188_v38 = vpop.eup %19187 }
 0x836   :  { %v19190_v30 = vpop.eup %19189 }
 0x837   :  { %v19192_v28 = vpop.eup %19191  ;;  %v2128_v19 = vmul.f32 %v19190_v30, %v19184_v46 }
 0x838   :  { %v19194_v44 = vpop.eup %19193  ;;  %v20341_v12 = vmul.f32 %v19192_v28, %v19186_v10 }
 0x839   :  { %v17917_v62 = vpack.c.bf16 %v2129_v59, %v2128_v19  ;;  %v20343_v25 = vmul.f32 %v19194_v44, %v19188_v38 }
 0x83a   :  { %8609 = vrot.lane.b32.xlu1 %v20341_v12, %s19387_s3 }
 0x83b   :  { %17918 = vmatprep.subr.bf16.mxu0 %v17917_v62  ;;  %17930 = vmatprep.subr.bf16.mxu1 %v17917_v62  ;;  %v17921_v63 = vpack.c.bf16 %v20341_v12, %v20343_v25 }
 0x83c   :  { %17920 = vmatpush3.bf16.msra.mxu0 %v17917_v62  ;;  %17932 = vmatpush3.bf16.msra.mxu1 %v17917_v62 }
 0x83d   :  { %17942 = vmatprep.subr.bf16.mxu1 %v19762_v45  ;;  %8607 = vrot.lane.b32.xlu0 %v20343_v25, %s19387_s3 }
 0x83e   :  { %17922 = vmatprep.subr.bf16.mxu0 %v17921_v63 }
 0x83f   :  { %16380 = vmatmul.mubr.msk.f32.vlgmr.msra.gmra.mrb[42].mxu1 %vm333_vm5, %v20128_v47 }
 0x840   :  { %17924 = vmatpush3.bf16.msra.mxu0 %v17921_v63  ;;  %17944 = vmatpush3.bf16.msra.mxu1 %v19762_v45 }
 0x841   :  { %16382 = vmatprep.mubr.msk.f32.mxu1 %vm333_vm5, %v20136_v49 }
 0x843   :  { %16360 = vmatmul.mubr.msk.f32.vlgmr.msra.gmra.mrb[50].mxu0 %vm333_vm5, %v20143_v48  ;;  %16383 = vmatmul.mubr.msk.f32.gmra.mrb[44].mxu1 %vm333_vm5, %v20150_v36 }
 0x844   :  { %16362 = vmatprep.mubr.msk.f32.mxu0 %vm333_vm5, %v20157_v6  ;;  %16385 = vmatprep.mubr.msk.f32.mxu1 %vm333_vm5, %v20164_v8 }
 0x847   :  { %16363 = vmatmul.mubr.msk.f32.gmra.mrb[52].mxu0 %vm333_vm5, %v20171_v7  ;;  %16386 = vmatmul.mubr.msk.f32.gmra.mrb[46].mxu1 %vm333_vm5, %v20178_v9 }
 0x848   :  { %16365 = vmatprep.mubr.msk.f32.mxu0 %vm333_vm5, %v20185_v57  ;;  %16388 = vmatprep.mubr.msk.f32.mxu1 %vm333_vm5, %v20192_v58 }
 0x84b   :  { %16366 = vmatmul.mubr.msk.f32.gmra.mrb[54].mxu0 %vm333_vm5, %v20285_v42  ;;  %16389 = vmatmul.mubr.msk.f32.gmra.mrb[48].mxu1 %vm333_vm5, %v20201_v51 }
 0x84c   :  { %16368 = vmatprep.mubr.msk.f32.mxu0 %vm333_vm5, %v20294_v24  ;;  %16419 = vmatprep.mubr.msk.f32.mxu1 %vm333_vm5, %v20074_v35 }
 0x84f   :  { %16369 = vmatmul.mubr.msk.f32.gmra.mrb[56].mxu0 %vm333_vm5, %v20303_v37 }
 0x850   :  { %16399 = vmatprep.mubr.msk.f32.mxu0 %vm333_vm5, %v20214_v33 }
 0x912   :  { %v16381_v45 = vpop.f32.mrb[42].mxu1 }
 0x913   :  { %v2360_v22 = vadd.f32 %v16381_v45, %v19814_v53  ;;  %v2354_v31 = vpop.f32.mrb[43].mxu1 }
 0x914   :  { %v2355_v50 = vadd.f32 %v2354_v31, %v19812_v52 }
 0x915   :  { %v14217_v17 = vmul.f32 -1.442695, %v2360_v22 }
 0x916   :  { %v14216_v60 = vmul.f32 -1.442695, %v2355_v50  ;;  %v16361_v41 = vpop.f32.mrb[50].mxu0  ;;  %v16384_v23 = vpop.f32.mrb[44].mxu1 }
 0x917   :  { %19195 = vpow2.f32 %v14217_v17  ;;  %v2202_v26 = vadd.f32 %v16361_v41, %v19911_v13  ;;  %v2370_v35 = vadd.f32 %v16384_v23, %v19816_v54  ;;  %v2196_v20 = vpop.f32.mrb[51].mxu0  ;;  %v2364_v21 = vpop.f32.mrb[45].mxu1 }
 0x918   :  { %v2197_v5 = vadd.f32 %v2196_v20, %v19913_v15  ;;  %v2365_v46 = vadd.f32 %v2364_v21, %v19818_v56  ;;  %19197 = vpow2.f32 %v14216_v60 }
 0x919   :  { %v14201_v10 = vmul.f32 -1.442695, %v2202_v26  ;;  %v14219_v38 = vmul.f32 -1.442695, %v2370_v35 }
 0x91a   :  { %v14200_v59 = vmul.f32 -1.442695, %v2197_v5  ;;  %v14218_v30 = vmul.f32 -1.442695, %v2365_v46  ;;  %v16364_v28 = vpop.f32.mrb[52].mxu0  ;;  %v16387_v19 = vpop.f32.mrb[46].mxu1 }
 0x91b   :  { %19199 = vpow2.f32 %v14201_v10  ;;  %v2212_v44 = vadd.f32 %v16364_v28, %v19915_v16  ;;  %v2206_v62 = vpop.f32.mrb[53].mxu0  ;;  %v2374_v63 = vpop.f32.mrb[47].mxu1  ;;  %v2380_v31 = vadd.f32 %v16387_v19, %v19823_v1 }
 0x91c   :  { %19201 = vpow2.f32 %v14219_v38  ;;  %v2207_v45 = vadd.f32 %v2206_v62, %v19917_v18  ;;  %v2375_v41 = vadd.f32 %v2374_v63, %v19826_v3 }
 0x91d   :  { %19203 = vpow2.f32 %v14200_v59  ;;  %v14203_v22 = vmul.f32 -1.442695, %v2212_v44  ;;  %v14221_v21 = vmul.f32 -1.442695, %v2380_v31 }
 0x91e   :  { %19205 = vpow2.f32 %v14218_v30  ;;  %v14202_v50 = vmul.f32 -1.442695, %v2207_v45  ;;  %v16367_v17 = vpop.f32.mrb[54].mxu0  ;;  %v16390_v60 = vpop.f32.mrb[48].mxu1  ;;  %v14220_v59 = vmul.f32 -1.442695, %v2375_v41 }
 0x91f   :  { %19207 = vpow2.f32 %v14203_v22  ;;  %v2216_v23 = vpop.f32.mrb[55].mxu0  ;;  %v2384_v26 = vpop.f32.mrb[49].mxu1  ;;  %v2222_v35 = vadd.f32 %v16367_v17, %v19922_v27  ;;  %v2390_v46 = vadd.f32 %v16390_v60, %v19830_v11 }
 0x920   :  { %19209 = vpow2.f32 %v14202_v50  ;;  %v2217_v30 = vadd.f32 %v2216_v23, %v19925_v29 }
 0x921   :  { %v19196_v20 = vpop.eup %19195  ;;  %v14205_v19 = vmul.f32 -1.442695, %v2222_v35 }
 0x922   :  { %v2412_v5 = vadd.f32 1.0, %v19196_v20  ;;  %v16370_v10 = vpop.f32.mrb[56].mxu0  ;;  %v19198_v38 = vpop.eup %19197  ;;  %v14204_v31 = vmul.f32 -1.442695, %v2217_v30 }
 0x923   :  { %v2226_v28 = vpop.f32.mrb[57].mxu0  ;;  %v2411_v63 = vadd.f32 1.0, %v19198_v38  ;;  %v2232_v38 = vadd.f32 %v16370_v10, %v19929_v55 }
 0x924   :  { %19211 = vrcp.f32 %v2412_v5  ;;  %v2385_v5 = vadd.f32 %v2384_v26, %v19832_v14  ;;  %v2227_v30 = vadd.f32 %v2226_v28, %v19931_v61 }
 0x925   :  { %v19200_v44 = vpop.eup %19199  ;;  %19213 = vpow2.f32 %v14221_v21 }
 0x926   :  { %v19202_v62 = vpop.eup %19201  ;;  %19215 = vtanh.f32 %v2390_v46  ;;  %v2254_v17 = vadd.f32 1.0, %v19200_v44 }
 0x927   :  { %v19204_v45 = vpop.eup %19203  ;;  %v2414_v22 = vadd.f32 1.0, %v19202_v62  ;;  %19217 = vpow2.f32 %v14220_v59 }
 0x928   :  { %v19206_v50 = vpop.eup %19205  ;;  %19219 = vpow2.f32 %v14205_v19  ;;  %v2253_v35 = vadd.f32 1.0, %v19204_v45 }
 0x929   :  { %v19208_v60 = vpop.eup %19207  ;;  %19221 = vrcp.f32 %v2414_v22  ;;  %v2413_v41 = vadd.f32 1.0, %v19206_v50 }
 0x92a   :  { %19223 = vrcp.f32 %v2411_v63  ;;  %v2256_v23 = vadd.f32 1.0, %v19208_v60  ;;  %v19210_v20 = vpop.eup %19209 }
 0x92b   :  { %19225 = vpow2.f32 %v14204_v31  ;;  %v2255_v21 = vadd.f32 1.0, %v19210_v20 }
 0x92c   :  { %19227 = vrcp.f32 %v2254_v17 }
 0x92d   :  { %19229 = vrcp.f32 %v2413_v41 }
 0x92e   :  { %v19212_v46 = vpop.eup %19211  ;;  %19231 = vrcp.f32 %v2256_v23 }
 0x92f   :  { %v19214_v59 = vpop.eup %19213  ;;  %19233 = vrcp.f32 %v2255_v21 }
 0x930   :  { %v19216_v19 = vpop.eup %19215  ;;  %19235 = vrcp.f32 %v2253_v35  ;;  %v2416_v60 = vadd.f32 1.0, %v19214_v59 }
 0x931   :  { %v19218_v44 = vpop.eup %19217  ;;  %v2434_v62 = vmul.f32 %v19216_v19, %v19212_v46  ;;  %19237 = vtanh.f32 %v2385_v5 }
 0x932   :  { %v19220_v63 = vpop.eup %19219  ;;  %19239 = vtanh.f32 %v2232_v38  ;;  %v2415_v23 = vadd.f32 1.0, %v19218_v44 }
 0x933   :  { %v19222_v45 = vpop.eup %19221  ;;  %19241 = vtanh.f32 %v2227_v30  ;;  %v2258_v21 = vadd.f32 1.0, %v19220_v63 }
 0x934   :  { %v19224_v22 = vpop.eup %19223  ;;  %v2432_v26 = vmul.f32 %v19222_v45, %v20326_v4  ;;  %19243 = vrcp.f32 %v2416_v60 }
 0x935   :  { %v19226_v31 = vpop.eup %19225 }
 0x936   :  { %v19228_v50 = vpop.eup %19227  ;;  %v20402_v17 = vadd.f32 %v2434_v62, %v2432_v26  ;;  %v2257_v38 = vadd.f32 1.0, %v19226_v31 }
 0x937   :  { %v19230_v10 = vpop.eup %19229 }
 0x938   :  { %v19232_v41 = vpop.eup %19231  ;;  %v2431_v35 = vmul.f32 %v19230_v10, %v20332_v34  ;;  %19245 = vtanh.f32 %v20402_v17 }
 0x939   :  { %v19234_v28 = vpop.eup %19233  ;;  %v2274_v46 = vmul.f32 %v19232_v41, %v20334_v39  ;;  %19247 = vrcp.f32 %v2415_v23 }
 0x93a   :  { %v19236_v20 = vpop.eup %19235  ;;  %v2273_v4 = vmul.f32 %v19234_v28, %v20337_v2  ;;  %19249 = vrcp.f32 %v2258_v21 }
 0x93b   :  { %v19238_v5 = vpop.eup %19237  ;;  %19251 = vrcp.f32 %v2257_v38 }
 0x93c   :  { %v19240_v30 = vpop.eup %19239  ;;  %v2433_v19 = vmul.f32 %v19238_v5, %v19224_v22  ;;  %v2959_v5 = vld [vmem:[%s23597_s9] sm:$0x1f] }
 0x93d   :  { %v19242_v62 = vpop.eup %19241  ;;  %v2276_v59 = vmul.f32 %v19240_v30, %v19228_v50 }
 0x93e   :  { %v20408_v44 = vadd.f32 %v2433_v19, %v2431_v35  ;;  %v2275_v45 = vmul.f32 %v19242_v62, %v19236_v20  ;;  %v19244_v2 = vpop.eup %19243 }
 0x93f   :  { %v20410_v34 = vadd.f32 %v2276_v59, %v2274_v46 }
 0x940   :  { %19253 = vtanh.f32 %v20408_v44  ;;  %v20413_v39 = vadd.f32 %v2275_v45, %v2273_v4 }
 0x941   :  { %19255 = vtanh.f32 %v20410_v34 }
 0x942   :  { %19257 = vtanh.f32 %v20413_v39  ;;  %v19246_v63 = vpop.eup %19245 }
 0x943   :  { %v19248_v22 = vpop.eup %19247  ;;  %v2440_v50 = vmul.f32 %v19246_v63, %v19244_v2 }
 0x944   :  { %v19250_v26 = vpop.eup %19249 }
 0x945   :  { %v19252_v31 = vpop.eup %19251 }
 0x94a   :  { %v19254_v10 = vpop.eup %19253 }
 0x94b   :  { %v19256_v60 = vpop.eup %19255  ;;  %v2439_v41 = vmul.f32 %v19254_v10, %v19248_v22 }
 0x94c   :  { %v19258_v28 = vpop.eup %19257  ;;  %v2282_v23 = vmul.f32 %v19256_v60, %v19250_v26 }
 0x94d   :  { %v17933_v20 = vpack.c.bf16 %v2440_v50, %v2439_v41  ;;  %v2281_v35 = vmul.f32 %v19258_v28, %v19252_v31  ;;  %v20490_v31 = vld [vmem:[%s23598_s10] ss:$0 sm:$0xff] }
 0x94e   :  { %8613 = vrot.lane.b32.xlu1 %v2282_v23, %s19387_s3 }
 0x94f   :  { %17934 = vmatprep.subr.bf16.mxu0 %v17933_v20  ;;  %17946 = vmatprep.subr.bf16.mxu1 %v17933_v20  ;;  %v17937_v21 = vpack.c.bf16 %v2282_v23, %v2281_v35 }
 0x950   :  { %17936 = vmatpush3.bf16.msra.mxu0 %v17933_v20  ;;  %17948 = vmatpush3.bf16.msra.mxu1 %v17933_v20 }
 0x951   :  { %8611 = vrot.lane.b32.xlu0 %v2281_v35, %s19387_s3  ;;  %17938 = vmatprep.subr.bf16.mxu0 %v17937_v21 }
 0x952   :  { %16451 = vmatprep.subr.msk.mxu1 %vm3025_vm7, %v2959_v5 }
 0x953   :  { %16420 = vmatmul.mubr.msk.f32.vlgmr.msra.gmra.mrb[50].mxu1 %vm333_vm5, %v20128_v47  ;;  %v23853_v47 = vld [vmem:[#allocation4_spill] sm:$0xff] }
 0x954   :  { %17940 = vmatpush3.bf16.msra.mxu0 %v17937_v21  ;;  %16422 = vmatprep.mubr.msk.f32.mxu1 %vm333_vm5, %v20136_v49  ;;  %v23855_v49 = vld [vmem:[#allocation6_spill] sm:$0xff] }
 0x955   :  { %16452 = vmatpush3.msk.msra.mxu1 %vm3025_vm7, %v2959_v5 }
 0x957   :  { %16400 = vmatmul.mubr.msk.f32.vlgmr.msra.gmra.mrb[58].mxu0 %vm333_vm5, %v20143_v48  ;;  %16423 = vmatmul.mubr.msk.f32.gmra.mrb[52].mxu1 %vm333_vm5, %v20150_v36  ;;  %v23856_v48 = vld [vmem:[#allocation5_spill] sm:$0xff] }
 0x958   :  { %16402 = vmatprep.mubr.msk.f32.mxu0 %vm333_vm5, %v20157_v6  ;;  %16425 = vmatprep.mubr.msk.f32.mxu1 %vm333_vm5, %v20164_v8 }
 0x95b   :  { %16403 = vmatmul.mubr.msk.f32.gmra.mrb[60].mxu0 %vm333_vm5, %v20171_v7  ;;  %16426 = vmatmul.mubr.msk.f32.gmra.mrb[54].mxu1 %vm333_vm5, %v20178_v9 }
 0x95c   :  { %16405 = vmatprep.mubr.msk.f32.mxu0 %vm333_vm5, %v20185_v57  ;;  %16428 = vmatprep.mubr.msk.f32.mxu1 %vm333_vm5, %v20192_v58 }
 0x95f   :  { %16406 = vmatmul.mubr.msk.f32.gmra.mrb[62].mxu0 %vm333_vm5, %v20285_v42  ;;  %16429 = vmatmul.mubr.msk.f32.gmra.mrb[56].mxu1 %vm333_vm5, %v20201_v51 }
 0x960   :  { %16453 = vmatprep.mubr.msk.f32.mxu1 %vm2976_vm8, %v19954_v0  ;;  %16408 = vmatprep.mubr.msk.f32.mxu0 %vm333_vm5, %v20294_v24  ;;  %v23854_v0 = vld [vmem:[#allocation3_spill] sm:$0xff] }
 0x963   :  { %16409 = vmatmul.mubr.msk.f32.gmra.mrb[64].mxu0 %vm333_vm5, %v20303_v37  ;;  %16454 = vmatmul.mubr.msk.f32.vlgmr.msra.gmra.mrb[58].mxu1 %vm2976_vm8, %v19950_v40 }
 0x964   :  { %16456 = vmatprep.mubr.msk.f32.mxu1 %vm2976_vm8, %v20035_v43  ;;  %16439 = vmatprep.mubr.msk.f32.mxu0 %vm333_vm5, %v20214_v33 }
 0x967   :  { %16457 = vmatmul.mubr.msk.f32.gmra.mrb[60].mxu1 %vm2976_vm8, %v20033_v32 }
 0x968   :  { %16459 = vmatprep.mubr.msk.f32.mxu1 %vm2976_vm8, %v23853_v47 }
 0x96b   :  { %16460 = vmatmul.mubr.msk.f32.gmra.mrb[62].mxu1 %vm2976_vm8, %v23854_v0 }
 0x96c   :  { %16462 = vmatprep.mubr.msk.f32.mxu1 %vm2976_vm8, %v23855_v49 }
 0x96f   :  { %16463 = vmatmul.mubr.msk.f32.gmra.mrb[64].mxu1 %vm2976_vm8, %v23856_v48 }
 0x970   :  { %16465 = vmatprep.mubr.msk.f32.mxu1 %vm2976_vm8, %v20343_v25 }
 0x973   :  { %16466 = vmatmul.mubr.msk.f32.gmra.mrb[66].mxu1 %vm2976_vm8, %v20341_v12 }
 0x974   :  { %16468 = vmatprep.mubr.msk.f32.mxu1 %vm2976_vm8, %v2281_v35 }
 0x977   :  { %16469 = vmatmul.mubr.msk.f32.gmra.mrb[68].mxu1 %vm2976_vm8, %v2282_v23 }
 0xa26   :  { %v16421_v40 = vpop.f32.mrb[50].mxu1 }
 0xa27   :  { %v2671_v32 = vadd.f32 %v16421_v40, %v19814_v53  ;;  %v2665_v43 = vpop.f32.mrb[51].mxu1 }
 0xa28   :  { %v2666_v36 = vadd.f32 %v2665_v43, %v19812_v52 }
 0xa29   :  { %v14247_v6 = vmul.f32 -1.442695, %v2671_v32 }
 0xa2a   :  { %v14246_v8 = vmul.f32 -1.442695, %v2666_v36  ;;  %v16401_v7 = vpop.f32.mrb[58].mxu0  ;;  %v16424_v9 = vpop.f32.mrb[52].mxu1 }
 0xa2b   :  { %19259 = vpow2.f32 %v14247_v6  ;;  %v2513_v57 = vadd.f32 %v16401_v7, %v19911_v13  ;;  %v2681_v58 = vadd.f32 %v16424_v9, %v19816_v54  ;;  %v2507_v51 = vpop.f32.mrb[59].mxu0  ;;  %v2675_v33 = vpop.f32.mrb[53].mxu1 }
 0xa2c   :  { %v2508_v42 = vadd.f32 %v2507_v51, %v19913_v15  ;;  %v2676_v24 = vadd.f32 %v2675_v33, %v19818_v56  ;;  %19261 = vpow2.f32 %v14246_v8 }
 0xa2d   :  { %v14231_v53 = vmul.f32 -1.442695, %v2513_v57  ;;  %v14249_v37 = vmul.f32 -1.442695, %v2681_v58 }
 0xa2e   :  { %v14230_v12 = vmul.f32 -1.442695, %v2508_v42  ;;  %v14248_v52 = vmul.f32 -1.442695, %v2676_v24  ;;  %v16404_v25 = vpop.f32.mrb[60].mxu0  ;;  %v16427_v46 = vpop.f32.mrb[54].mxu1 }
 0xa2f   :  { %19263 = vpow2.f32 %v14231_v53  ;;  %v2523_v38 = vadd.f32 %v16404_v25, %v19915_v16  ;;  %v2517_v30 = vpop.f32.mrb[61].mxu0  ;;  %v2685_v4 = vpop.f32.mrb[55].mxu1  ;;  %v2691_v62 = vadd.f32 %v16427_v46, %v19823_v1 }
 0xa30   :  { %19265 = vpow2.f32 %v14249_v37  ;;  %v2518_v54 = vadd.f32 %v2517_v30, %v19917_v18  ;;  %v2686_v2 = vadd.f32 %v2685_v4, %v19826_v3 }
 0xa31   :  { %19267 = vpow2.f32 %v14230_v12  ;;  %v14233_v19 = vmul.f32 -1.442695, %v2523_v38  ;;  %v14251_v10 = vmul.f32 -1.442695, %v2691_v62 }
 0xa32   :  { %19269 = vpow2.f32 %v14248_v52  ;;  %v14232_v56 = vmul.f32 -1.442695, %v2518_v54  ;;  %v16407_v59 = vpop.f32.mrb[62].mxu0  ;;  %v16430_v45 = vpop.f32.mrb[56].mxu1  ;;  %v14250_v20 = vmul.f32 -1.442695, %v2686_v2 }
 0xa33   :  { %19271 = vpow2.f32 %v14233_v19  ;;  %v2527_v63 = vpop.f32.mrb[63].mxu0  ;;  %v2695_v22 = vpop.f32.mrb[57].mxu1  ;;  %v2533_v26 = vadd.f32 %v16407_v59, %v19922_v27  ;;  %v2701_v60 = vadd.f32 %v16430_v45, %v19830_v11 }
 0xa34   :  { %19273 = vpow2.f32 %v14232_v56  ;;  %v2528_v3 = vadd.f32 %v2527_v63, %v19925_v29  ;;  %v2696_v54 = vadd.f32 %v2695_v22, %v19832_v14 }
 0xa35   :  { %v19260_v50 = vpop.eup %19259  ;;  %v14235_v47 = vmul.f32 -1.442695, %v2533_v26 }
 0xa36   :  { %v2723_v1 = vadd.f32 1.0, %v19260_v50  ;;  %v16410_v41 = vpop.f32.mrb[64].mxu0  ;;  %v16455_v28 = vpop.f32.mrb[58].mxu1  ;;  %v14234_v8 = vmul.f32 -1.442695, %v2528_v3 }
 0xa37   :  { %v19262_v23 = vpop.eup %19261  ;;  %v20495_v35 = vadd.f32 %v16455_v28, %v20490_v31  ;;  %v2537_v21 = vpop.f32.mrb[65].mxu0  ;;  %v2543_v56 = vadd.f32 %v16410_v41, %v19929_v55 }
 0xa38   :  { %v3095_v5 = vpop.f32.mrb[59].mxu1  ;;  %19275 = vrcp.f32 %v2723_v1  ;;  %v2722_v40 = vadd.f32 1.0, %v19262_v23  ;;  %v2538_v63 = vadd.f32 %v2537_v21, %v19931_v61 }
 0xa39   :  { %23857 = vst [vmem:[#allocation4_spill] sm:$0xff] %v20495_v35  ;;  %v20498_v0 = vadd.f32 %v20490_v31, %v3095_v5  ;;  %v19264_v49 = vpop.eup %19263  ;;  %19277 = vpow2.f32 %v14251_v10  ;;  %v23631_v11 = vmax.f32 %v20495_v35, 0.0 }
 0xa3a   :  { %v19266_v48 = vpop.eup %19265  ;;  %19279 = vtanh.f32 %v2701_v60  ;;  %v16458_v43 = vpop.f32.mrb[60].mxu1  ;;  %v2565_v58 = vadd.f32 1.0, %v19264_v49 }
 0xa3b   :  { %23858 = vst [vmem:[#allocation3_spill] sm:$0xff] %v20498_v0  ;;  %v23630_v32 = vmax.f32 %v20498_v0, 0.0  ;;  %v19268_v36 = vpop.eup %19267  ;;  %v2725_v6 = vadd.f32 1.0, %v19266_v48  ;;  %19281 = vpow2.f32 %v14250_v20  ;;  %3191 = vst.msk [vmem:[#allocation2 + $0x20] sm:$0xff] %vm333_vm5, %v23631_v11  ;;  %v20506_v7 = vadd.f32 %v16458_v43, %v20490_v31  ;;  %v3105_v9 = vpop.f32.mrb[61].mxu1 }
 0xa3c   :  { %v19270_v57 = vpop.eup %19269  ;;  %19283 = vpow2.f32 %v14235_v47  ;;  %v20512_v51 = vadd.f32 %v20490_v31, %v3105_v9  ;;  %v2564_v38 = vadd.f32 1.0, %v19268_v36 }
 0xa3d   :  { %23859 = vst [vmem:[#allocation6_spill] sm:$0xff] %v20506_v7  ;;  %3190 = vst.msk [vmem:[#allocation2 + $0x18] sm:$0xff] %vm333_vm5, %v23630_v32  ;;  %v19272_v33 = vpop.eup %19271  ;;  %19285 = vrcp.f32 %v2725_v6  ;;  %v2724_v42 = vadd.f32 1.0, %v19270_v57  ;;  %v23629_v24 = vmax.f32 %v20506_v7, 0.0 }
 0xa3e   :  { %23860 = vst [vmem:[#allocation5_spill] sm:$0xff] %v20512_v51  ;;  %19287 = vrcp.f32 %v2722_v40  ;;  %v2567_v53 = vadd.f32 1.0, %v19272_v33  ;;  %v23628_v37 = vmax.f32 %v20512_v51, 0.0  ;;  %v16461_v12 = vpop.f32.mrb[62].mxu1  ;;  %v19274_v52 = vpop.eup %19273 }
 0xa3f   :  { %19289 = vpow2.f32 %v14234_v8  ;;  %3193 = vst.msk [vmem:[#allocation2 + $0x30] sm:$0xff] %vm333_vm5, %v23629_v24  ;;  %v20520_v25 = vadd.f32 %v16461_v12, %v20490_v31  ;;  %v3115_v46 = vpop.f32.mrb[63].mxu1  ;;  %v2566_v30 = vadd.f32 1.0, %v19274_v52 }
 0xa40   :  { %19291 = vrcp.f32 %v2565_v58  ;;  %3192 = vst.msk [vmem:[#allocation2 + $0x28] sm:$0xff] %vm333_vm5, %v23628_v37  ;;  %v20526_v4 = vadd.f32 %v20490_v31, %v3115_v46 }
 0xa41   :  { %23861 = vst [vmem:[#allocation7_spill] sm:$0xff] %v20520_v25  ;;  %19293 = vrcp.f32 %v2724_v42  ;;  %v23627_v19 = vmax.f32 %v20520_v25, 0.0 }
 0xa42   :  { %23862 = vst [vmem:[#allocation8_spill] sm:$0xff] %v20526_v4  ;;  %v19276_v62 = vpop.eup %19275  ;;  %19295 = vrcp.f32 %v2567_v53  ;;  %v23625_v59 = vmax.f32 %v20526_v4, 0.0  ;;  %v16464_v45 = vpop.f32.mrb[64].mxu1 }
 0xa43   :  { %v19278_v2 = vpop.eup %19277  ;;  %19297 = vrcp.f32 %v2566_v30  ;;  %3195 = vst.msk [vmem:[#allocation2 + $0x40] sm:$0xff] %vm333_vm5, %v23627_v19  ;;  %v20537_v26 = vadd.f32 %v16464_v45, %v20490_v31  ;;  %v3125_v14 = vpop.f32.mrb[65].mxu1 }
 0xa44   :  { %v19280_v22 = vpop.eup %19279  ;;  %19299 = vrcp.f32 %v2564_v38  ;;  %3194 = vst.msk [vmem:[#allocation2 + $0x38] sm:$0xff] %vm333_vm5, %v23625_v59  ;;  %v20543_v50 = vadd.f32 %v20490_v31, %v3125_v14  ;;  %v2727_v3 = vadd.f32 1.0, %v19278_v2 }
 0xa45   :  { %23863 = vst [vmem:[#allocation9_spill] sm:$0xff] %v20537_v26  ;;  %v19282_v10 = vpop.eup %19281  ;;  %v2745_v1 = vmul.f32 %v19280_v22, %v19276_v62  ;;  %19301 = vtanh.f32 %v2696_v54  ;;  %v23624_v60 = vmax.f32 %v20537_v26, 0.0 }
 0xa46   :  { %23864 = vst [vmem:[#allocation10_spill] sm:$0xff] %v20543_v50  ;;  %v19284_v41 = vpop.eup %19283  ;;  %19303 = vtanh.f32 %v2543_v56  ;;  %v23623_v28 = vmax.f32 %v20543_v50, 0.0  ;;  %v16467_v23 = vpop.f32.mrb[66].mxu1  ;;  %v2726_v12 = vadd.f32 1.0, %v19282_v10 }
 0xa47   :  { %v19286_v20 = vpop.eup %19285  ;;  %19305 = vtanh.f32 %v2538_v63  ;;  %3197 = vst.msk [vmem:[#allocation2 + $0x50] sm:$0xff] %vm333_vm5, %v23624_v60  ;;  %v20551_v21 = vadd.f32 %v16467_v23, %v20490_v31  ;;  %v3135_v5 = vpop.f32.mrb[67].mxu1  ;;  %v2569_v30 = vadd.f32 1.0, %v19284_v41  ;;  %v3206_v60 = vld [vmem:[#allocation2 + $0x7] sm:$0xff] }
 0xa48   :  { %v19288_v47 = vpop.eup %19287  ;;  %v2743_v49 = vmul.f32 %v19286_v20, %v20402_v17  ;;  %3196 = vst.msk [vmem:[#allocation2 + $0x48] sm:$0xff] %vm333_vm5, %v23623_v28  ;;  %v20558_v48 = vadd.f32 %v20490_v31, %v3135_v5  ;;  %19307 = vrcp.f32 %v2727_v3 }
 0xa49   :  { %23865 = vst [vmem:[#allocation11_spill] sm:$0xff] %v20551_v21  ;;  %v19290_v40 = vpop.eup %19289  ;;  %v23621_v43 = vmax.f32 %v20551_v21, 0.0 }
 0xa4a   :  { %23866 = vst [vmem:[#allocation12_spill] sm:$0xff] %v20558_v48  ;;  %v19292_v36 = vpop.eup %19291  ;;  %v2747_v6 = vadd.f32 %v2745_v1, %v2743_v49  ;;  %v23620_v8 = vmax.f32 %v20558_v48, 0.0  ;;  %v16470_v9 = vpop.f32.mrb[68].mxu1  ;;  %v2568_v45 = vadd.f32 1.0, %v19290_v40 }
 0xa4b   :  { %v19294_v57 = vpop.eup %19293  ;;  %3199 = vst.msk [vmem:[#allocation2 + $0x60] sm:$0xff] %vm333_vm5, %v23621_v43  ;;  %v20566_v17 = vadd.f32 %v16470_v9, %v20490_v31  ;;  %v3145_v58 = vpop.f32.mrb[69].mxu1 }
 0xa4c   :  { %v19296_v33 = vpop.eup %19295  ;;  %19309 = vtanh.f32 %v2747_v6  ;;  %3198 = vst.msk [vmem:[#allocation2 + $0x58] sm:$0xff] %vm333_vm5, %v23620_v8  ;;  %v20572_v42 = vadd.f32 %v20490_v31, %v3145_v58  ;;  %v2742_v38 = vmul.f32 %v19294_v57, %v20408_v44 }
 0xa4d   :  { %23867 = vst [vmem:[#allocation13_spill] sm:$0xff] %v20566_v17  ;;  %v19298_v53 = vpop.eup %19297  ;;  %v23619_v52 = vmax.f32 %v20566_v17, 0.0  ;;  %v2585_v56 = vmul.f32 %v19296_v33, %v20410_v34  ;;  %19311 = vrcp.f32 %v2726_v12  ;;  %v14284_v33 = vld [vmem:[%s23599_s11 + $0x20] sm:$0xff] }
 0xa4e   :  { %23868 = vst [vmem:[#allocation14_spill] sm:$0xff] %v20572_v42  ;;  %v19300_v46 = vpop.eup %19299  ;;  %v23618_v54 = vmax.f32 %v20572_v42, 0.0  ;;  %v2584_v63 = vmul.f32 %v19298_v53, %v20413_v39  ;;  %19313 = vrcp.f32 %v2569_v30  ;;  %v14285_v53 = vld [vmem:[%s23599_s11 + $0x28] sm:$0xff]  ;;  %v14287_v30 = vld [vmem:[%s23599_s11 + $0x38] sm:$0xff] }
 0xa4f   :  { %v19302_v62 = vpop.eup %19301  ;;  %3201 = vst.msk [vmem:[#allocation2 + $0x70] sm:$0xff] %vm333_vm5, %v23619_v52  ;;  %19315 = vrcp.f32 %v2568_v45  ;;  %v19372_v45 = vld [vmem:[%s23596_s7 + $0x10] sm:$0xff] }
 0xa50   :  { %v19304_v2 = vpop.eup %19303  ;;  %v2744_v14 = vmul.f32 %v19302_v62, %v19288_v47  ;;  %3200 = vst.msk [vmem:[#allocation2 + $0x68] sm:$0xff] %vm333_vm5, %v23618_v54 }
 0xa51   :  { %v19306_v44 = vpop.eup %19305  ;;  %v2587_v22 = vmul.f32 %v19304_v2, %v19292_v36  ;;  %v19373_v2 = vld [vmem:[%s23596_s7 + $0x18] sm:$0xff] }
 0xa52   :  { %v2746_v10 = vadd.f32 %v2744_v14, %v2742_v38  ;;  %v2586_v1 = vmul.f32 %v19306_v44, %v19300_v46  ;;  %v19308_v23 = vpop.eup %19307  ;;  %v17957_v46 = vpack.c.bf16 %v14285_v53, %v14284_v33  ;;  %v14286_v38 = vld [vmem:[%s23599_s11 + $0x30] sm:$0xff]  ;;  %v19375_v14 = vld [vmem:[%s23596_s7 + $0x28] sm:$0xff] }
 0xa53   :  { %v20585_v34 = vadd.f32 %v2587_v22, %v2585_v56  ;;  %v17961_v62 = vpack.c.bf16 %v14287_v30, %v14286_v38  ;;  %v19371_v56 = vld [vmem:[%s23596_s7 + $0x8] sm:$0xff]  ;;  %v19376_v44 = vld [vmem:[%s23596_s7 + $0x30] sm:$0xff]  ;;  %v14320_v30 = vld [vmem:[%s23599_s11 + $0x40] sm:$0xff] }
 0xa54   :  { %19317 = vtanh.f32 %v2746_v10  ;;  %v20587_v41 = vadd.f32 %v2586_v1, %v2584_v63  ;;  %v19374_v63 = vld [vmem:[%s23596_s7 + $0x20] sm:$0xff]  ;;  %v3322_v22 = vld [vmem:[#allocation2 + $0x8] sm:$0xff]  ;;  %v19377_v10 = vld [vmem:[%s23596_s7 + $0x38] sm:$0xff] }
 0xa55   :  { %19319 = vtanh.f32 %v20585_v34  ;;  %v3323_v1 = vld [vmem:[#allocation2 + $0x10] sm:$0xff]  ;;  %v3319_v33 = vld [vmem:[%s23599_s11 + $0x8] sm:$0xff]  ;;  %v20824_v42 = vld [vmem:[#allocation2 + $0x5f] sm:$0xff] }
 0xa56   :  { %v19310_v39 = vpop.eup %19309  ;;  %19321 = vtanh.f32 %v20587_v41 }
 0xa57   :  { %v2751_v20 = vmul.f32 %v19310_v39, %v19308_v23  ;;  %v19312_v3 = vpop.eup %19311  ;;  %v20637_v23 = vld [vmem:[#allocation2 + $0x18] sm:$0xff]  ;;  %v20641_v39 = vld [vmem:[#allocation2 + $0x20] sm:$0xff] }
 0xa58   :  { %v19314_v5 = vpop.eup %19313 }
 0xa59   :  { %v19316_v47 = vpop.eup %19315 }
 0xa5e   :  { %v19318_v49 = vpop.eup %19317 }
 0xa5f   :  { %v19320_v40 = vpop.eup %19319  ;;  %v2750_v36 = vmul.f32 %v19318_v49, %v19312_v3  ;;  %v20649_v3 = vld [vmem:[#allocation2 + $0x30] sm:$0xff]  ;;  %v20661_v49 = vld [vmem:[#allocation2 + $0x48] sm:$0xff] }
 0xa60   :  { %v19322_v6 = vpop.eup %19321  ;;  %v2593_v9 = vmul.f32 %v19320_v40, %v19314_v5  ;;  %v20653_v5 = vld [vmem:[#allocation2 + $0x38] sm:$0xff]  ;;  %v20665_v40 = vld [vmem:[#allocation2 + $0x50] sm:$0xff] }
 0xa61   :  { %v17949_v57 = vpack.c.bf16 %v2751_v20, %v2750_v36  ;;  %v2592_v58 = vmul.f32 %v19322_v6, %v19316_v47  ;;  %v20645_v20 = vld [vmem:[#allocation2 + $0x28] sm:$0xff]  ;;  %v20657_v47 = vld [vmem:[#allocation2 + $0x40] sm:$0xff]  ;;  %v20669_v36 = vld [vmem:[#allocation2 + $0x58] sm:$0xff] }
 0xa62   :  { %8617 = vrot.lane.b32.xlu1 %v2593_v9, %s19387_s3  ;;  %v20673_v6 = vld [vmem:[#allocation2 + $0x60] sm:$0xff] }
 0xa63   :  { %17950 = vmatprep.subr.bf16.mxu0 %v17949_v57  ;;  %8615 = vrot.lane.b32.xlu0 %v2592_v58, %s19387_s3  ;;  %v17953_v12 = vpack.c.bf16 %v2593_v9, %v2592_v58 }
 0xa64   :  { %17952 = vmatpush3.bf16.msra.mxu0 %v17949_v57  ;;  %16471 = vmatprep.mubr.msk.f32.mxu1 %vm2976_vm8, %v2592_v58  ;;  %v20681_v57 = vld [vmem:[#allocation2 + $0x70] sm:$0xff]  ;;  %v3318_v58 = vld [vmem:[%s23599_s11] sm:$0xff] }
 0xa65   :  { %16472 = vmatmul.mubr.msk.f32.gmra.mrb[70].mxu1 %vm2976_vm8, %v2593_v9  ;;  %17954 = vmatprep.subr.bf16.mxu0 %v17953_v12  ;;  %v20677_v9 = vld [vmem:[#allocation2 + $0x68] sm:$0xff]  ;;  %v17965_v53 = vpack.c.bf16 %v3319_v33, %v3318_v58 }
 0xa68   :  { %17956 = vmatpush3.bf16.msra.mxu0 %v17953_v12  ;;  %v3320_v12 = vld [vmem:[%s23599_s11 + $0x10] sm:$0xff] }
 0xa69   :  { %17958 = vmatprep.subr.bf16.mxu0 %v17957_v46 }
 0xa6b   :  { %16440 = vmatmul.mubr.msk.f32.vlgmr.msra.gmra.mrb[66].mxu0 %vm333_vm5, %v19371_v56 }
 0xa6c   :  { %16442 = vmatprep.mubr.msk.f32.mxu0 %vm333_vm5, %v19372_v45  ;;  %17960 = vmatpush3.bf16.msra.mxu0 %v17957_v46  ;;  %v3321_v46 = vld [vmem:[%s23599_s11 + $0x18] sm:$0xff]  ;;  %v20706_v45 = vpop.permute.xlu0 %3224 }
 0xa6d   :  { %17962 = vmatprep.subr.bf16.mxu0 %v17961_v62  ;;  %v17969_v38 = vpack.c.bf16 %v3321_v46, %v3320_v12  ;;  %23869 = vst [vmem:[#allocation15_spill] sm:$0xff] %v20706_v45 }
 0xa6f   :  { %16443 = vmatmul.mubr.msk.f32.gmra.mrb[68].mxu0 %vm333_vm5, %v19373_v2  ;;  %v20708_v2 = vpop.permute.xlu1 %3229 }
 0xa70   :  { %16445 = vmatprep.mubr.msk.f32.mxu0 %vm333_vm5, %v19374_v63  ;;  %17964 = vmatpush3.bf16.msra.mxu0 %v17961_v62  ;;  %v14321_v62 = vld [vmem:[%s23599_s11 + $0x48] sm:$0xff]  ;;  %v20710_v63 = vpop.permute.xlu0 %3234 }
 0xa71   :  { %17966 = vmatprep.subr.bf16.mxu0 %v17965_v53  ;;  %v20703_v56 = vpack.c.bf16 %v14321_v62, %v14320_v30 }
 0xa73   :  { %16446 = vmatmul.mubr.msk.f32.gmra.mrb[70].mxu0 %vm333_vm5, %v19375_v14  ;;  %v20712_v14 = vpop.permute.xlu1 %3239 }
 0xa74   :  { %16448 = vmatprep.mubr.msk.f32.mxu0 %vm333_vm5, %v19376_v44  ;;  %v20714_v44 = vpop.permute.xlu0 %3244 }
 0xa77   :  { %16449 = vmatmul.mubr.msk.f32.gmra.mrb[72].mxu0 %vm333_vm5, %v19377_v10 }
 0xa78   :  { %16485 = vmatprep.mubr.msk.f32.mxu0 %vm333_vm5, %v3322_v22  ;;  %v20716_v22 = vpop.permute.xlu1 %3249 }
 0xa7b   :  { %16486 = vmatmul.mubr.msk.f32.vlgmr.msra.gmra.mrb[74].mxu0 %vm333_vm5, %v3323_v1  ;;  %v20718_v1 = vpop.permute.xlu0 %3254 }
 0xa7c   :  { %16488 = vmatprep.mubr.msk.f32.mxu0 %vm333_vm5, %v20637_v23  ;;  %17968 = vmatpush3.bf16.msra.mxu0 %v17965_v53 }
 0xa7d   :  { %17970 = vmatprep.subr.bf16.mxu0 %v17969_v38 }
 0xa7f   :  { %16489 = vmatmul.mubr.msk.f32.gmra.mrb[76].mxu0 %vm333_vm5, %v20641_v39  ;;  %v20736_v62 = vpop.permute.xlu0 %3264 }
 0xa80   :  { %16491 = vmatprep.mubr.msk.f32.mxu0 %vm333_vm5, %v20645_v20  ;;  %17972 = vmatpush3.bf16.msra.mxu0 %v17969_v38  ;;  %v20731_v38 = vpop.permute.xlu1 %3259 }
 0xa81   :  { %17974 = vmatprep.subr.bf16.mxu0 %v20703_v56 }
 0xa83   :  { %16492 = vmatmul.mubr.msk.f32.gmra.mrb[78].mxu0 %vm333_vm5, %v20649_v3  ;;  %v20744_v19 = vpop.permute.xlu0 %3274 }
 0xa84   :  { %16494 = vmatprep.mubr.msk.f32.mxu0 %vm333_vm5, %v20653_v5  ;;  %v20741_v59 = vpop.permute.xlu1 %3269 }
 0xa87   :  { %16495 = vmatmul.mubr.msk.f32.gmra.mrb[80].mxu0 %vm333_vm5, %v20657_v47  ;;  %v20773_v11 = vpop.permute.xlu0 %3284 }
 0xa88   :  { %16497 = vmatprep.mubr.msk.f32.mxu0 %vm333_vm5, %v20661_v49  ;;  %v20767_v24 = vpop.permute.xlu1 %3279 }
 0xa89   :  { %v3313_v4 = vmul.f32 %v20767_v24, %v20824_v42 }
 0xa8b   :  { %16498 = vmatmul.mubr.msk.f32.gmra.mrb[82].mxu0 %vm333_vm5, %v20665_v40 }
 0xa8c   :  { %16500 = vmatprep.mubr.msk.f32.mxu0 %vm333_vm5, %v20669_v36 }
 0xa8f   :  { %16501 = vmatmul.mubr.msk.f32.gmra.mrb[84].mxu0 %vm333_vm5, %v20673_v6 }
 0xa90   :  { %16503 = vmatprep.mubr.msk.f32.mxu0 %vm333_vm5, %v20677_v9 }
 0xa93   :  { %16504 = vmatmul.mubr.msk.f32.gmra.mrb[86].mxu0 %vm333_vm5, %v20681_v57 }
 0xb38   :  { %v16473_v10 = vpop.f32.mrb[70].mxu1 }
 0xb39   :  { %v20721_v58 = vadd.f32 %v16473_v10, %v20490_v31  ;;  %v3155_v33 = vpop.f32.mrb[71].mxu1 }
 0xb3a   :  { %v20724_v53 = vadd.f32 %v20490_v31, %v3155_v33 }
 0xb3b   :  { %23870 = vst [vmem:[#allocation16_spill] sm:$0xff] %v20721_v58  ;;  %v23622_v12 = vmax.f32 %v20721_v58, 0.0 }
 0xb3c   :  { %23871 = vst [vmem:[#allocation17_spill] sm:$0xff] %v20724_v53  ;;  %v23626_v46 = vmax.f32 %v20724_v53, 0.0 }
 0xb3d   :  { %3203 = vst.msk [vmem:[#allocation2 + $0x80] sm:$0xff] %vm333_vm5, %v23622_v12 }
 0xb3e   :  { %3202 = vst.msk [vmem:[#allocation2 + $0x78] sm:$0xff] %vm333_vm5, %v23626_v46  ;;  %v16441_v30 = vpop.f32.mrb[66].mxu0 }
 0xb3f   :  { %v2824_v10 = vadd.f32 %v16441_v30, %v19911_v13  ;;  %v2818_v33 = vpop.f32.mrb[67].mxu0  ;;  %v3207_v30 = vld [vmem:[#allocation2 + $0xf] sm:$0xff] }
 0xb40   :  { %v2819_v54 = vadd.f32 %v2818_v33, %v19913_v15 }
 0xb41   :  { %v14261_v52 = vmul.f32 -1.442695, %v2824_v10 }
 0xb42   :  { %v14260_v8 = vmul.f32 -1.442695, %v2819_v54  ;;  %v16444_v43 = vpop.f32.mrb[68].mxu0  ;;  %v20762_v54 = vld [vmem:[#allocation2 + $0x17] sm:$0xff] }
 0xb43   :  { %19323 = vpow2.f32 %v14261_v52  ;;  %v2834_v12 = vadd.f32 %v16444_v43, %v19915_v16  ;;  %v2828_v28 = vpop.f32.mrb[69].mxu0  ;;  %v3302_v16 = vmul.f32 %v20706_v45, %v3206_v60  ;;  %v14322_v43 = vld [vmem:[%s23599_s11 + $0x50] sm:$0xff] }
 0xb44   :  { %19325 = vpow2.f32 %v14260_v8  ;;  %v2829_v46 = vadd.f32 %v2828_v28, %v19917_v18  ;;  %v20750_v52 = vld [vmem:[#allocation2 + $0x80] sm:$0xff]  ;;  %v14323_v18 = vld [vmem:[%s23599_s11 + $0x58] sm:$0xff] }
 0xb45   :  { %v14263_v37 = vmul.f32 -1.442695, %v2834_v12  ;;  %v20746_v13 = vld [vmem:[#allocation2 + $0x78] sm:$0xff]  ;;  %23872 = vst [vmem:[#allocation18_spill] sm:$0xff] %v20750_v52  ;;  %v17977_v33 = vpack.c.bf16 %v14323_v18, %v14322_v43 }
 0xb46   :  { %v14262_v15 = vmul.f32 -1.442695, %v2829_v46  ;;  %v16447_v10 = vpop.f32.mrb[70].mxu0  ;;  %16506 = vmatprep.mubr.msk.f32.mxu0 %vm333_vm5, %v20746_v13  ;;  %v3303_v46 = vmul.f32 %v20708_v2, %v3207_v30 }
 0xb47   :  { %19327 = vpow2.f32 %v14263_v37  ;;  %v2844_v28 = vadd.f32 %v16447_v10, %v19922_v27  ;;  %v2838_v8 = vpop.f32.mrb[71].mxu0  ;;  %16507 = vmatmul.mubr.msk.f32.gmra.mrb[88].mxu0 %vm333_vm5, %v20750_v52  ;;  %v3304_v27 = vmul.f32 %v20710_v63, %v20762_v54  ;;  %v20771_v10 = vld [vmem:[#allocation2 + $0x1f] sm:$0xff] }
 0xb48   :  { %19329 = vpow2.f32 %v14262_v15  ;;  %v2839_v60 = vadd.f32 %v2838_v8, %v19925_v29  ;;  %16517 = vmatprep.mubr.msk.f32.mxu0 %vm333_vm5, %v3302_v16  ;;  %v20777_v16 = vld [vmem:[#allocation2 + $0x27] sm:$0xff]  ;;  %v3305_v18 = vmul.f32 %v20712_v14, %v20771_v10  ;;  %v20786_v8 = vld [vmem:[#allocation2 + $0x2f] sm:$0xff] }
 0xb49   :  { %v14265_v12 = vmul.f32 -1.442695, %v2844_v28 }
 0xb4a   :  { %v14264_v37 = vmul.f32 -1.442695, %v2839_v60  ;;  %v16450_v32 = vpop.f32.mrb[72].mxu0 }
 0xb4b   :  { %v2854_v15 = vadd.f32 %v16450_v32, %v19929_v55  ;;  %v2848_v29 = vpop.f32.mrb[73].mxu0  ;;  %16518 = vmatmul.mubr.msk.f32.vlgmr.msra.gmra.mrb[74].mxu0 %vm333_vm5, %v3303_v46  ;;  %19331 = vpow2.f32 %v14265_v12  ;;  %v3306_v32 = vmul.f32 %v20714_v44, %v20777_v16  ;;  %v20794_v46 = vpop.permute.xlu0 %3294 }
 0xb4c   :  { %v2849_v30 = vadd.f32 %v2848_v29, %v19931_v61  ;;  %16520 = vmatprep.mubr.msk.f32.mxu0 %vm333_vm5, %v3304_v27  ;;  %17976 = vmatpush3.bf16.msra.mxu0 %v20703_v56  ;;  %19333 = vpow2.f32 %v14264_v37  ;;  %v20789_v61 = vld [vmem:[#allocation2 + $0x37] sm:$0xff]  ;;  %v20791_v56 = vpop.permute.xlu1 %3289  ;;  %v3307_v37 = vmul.f32 %v20716_v22, %v20786_v8 }
 0xb4d   :  { %v19324_v43 = vpop.eup %19323  ;;  %17978 = vmatprep.subr.bf16.mxu0 %v17977_v33  ;;  %19335 = vtanh.f32 %v2854_v15  ;;  %v3308_v29 = vmul.f32 %v20718_v1, %v20789_v61 }
 0xb4e   :  { %v19326_v28 = vpop.eup %19325  ;;  %v2876_v55 = vadd.f32 1.0, %v19324_v43  ;;  %19337 = vtanh.f32 %v2849_v30  ;;  %v20800_v30 = vld [vmem:[#allocation2 + $0x3f] sm:$0xff] }
 0xb4f   :  { %v2875_v60 = vadd.f32 1.0, %v19326_v28  ;;  %16521 = vmatmul.mubr.msk.f32.gmra.mrb[76].mxu0 %vm333_vm5, %v3305_v18  ;;  %v20803_v18 = vld [vmem:[#allocation2 + $0x47] sm:$0xff] }
 0xb50   :  { %19339 = vrcp.f32 %v2876_v55  ;;  %16523 = vmatprep.mubr.msk.f32.mxu0 %vm333_vm5, %v3306_v32  ;;  %17980 = vmatpush3.bf16.msra.mxu0 %v17977_v33  ;;  %v3309_v33 = vmul.f32 %v20731_v38, %v20800_v30  ;;  %v20808_v55 = vpop.permute.xlu1 %3299  ;;  %v3310_v32 = vmul.f32 %v20736_v62, %v20803_v18 }
 0xb51   :  { %v19328_v12 = vpop.eup %19327  ;;  %19341 = vrcp.f32 %v2875_v60  ;;  %v20812_v60 = vld [vmem:[#allocation2 + $0x4f] sm:$0xff] }
 0xb52   :  { %v19330_v27 = vpop.eup %19329  ;;  %v2878_v15 = vadd.f32 1.0, %v19328_v12 }
 0xb53   :  { %v2877_v43 = vadd.f32 1.0, %v19330_v27  ;;  %16524 = vmatmul.mubr.msk.f32.gmra.mrb[78].mxu0 %vm333_vm5, %v3307_v37  ;;  %v20814_v27 = vpop.permute.xlu0 %3747  ;;  %v20817_v37 = vld [vmem:[#allocation2 + $0x57] sm:$0xff] }
 0xb54   :  { %19343 = vrcp.f32 %v2878_v15  ;;  %16526 = vmatprep.mubr.msk.f32.mxu0 %vm333_vm5, %v3308_v29  ;;  %23873 = vst [vmem:[#allocation19_spill] sm:$0xff] %v20814_v27  ;;  %v3312_v58 = vmul.f32 %v20744_v19, %v20817_v37  ;;  %v20829_v21 = vpop.permute.xlu1 %3752 }
 0xb55   :  { %19345 = vrcp.f32 %v2877_v43  ;;  %v19332_v28 = vpop.eup %19331  ;;  %v3311_v43 = vmul.f32 %v20741_v59, %v20812_v60  ;;  %23874 = vst [vmem:[#allocation20_spill] sm:$0xff] %v20829_v21 }
 0xb56   :  { %v19334_v12 = vpop.eup %19333  ;;  %v2880_v26 = vadd.f32 1.0, %v19332_v28 }
 0xb57   :  { %16527 = vmatmul.mubr.msk.f32.gmra.mrb[80].mxu0 %vm333_vm5, %v3309_v33  ;;  %v19336_v15 = vpop.eup %19335  ;;  %v20827_v33 = vld [vmem:[#allocation2 + $0x67] sm:$0xff]  ;;  %v2879_v51 = vadd.f32 1.0, %v19334_v12 }
 0xb58   :  { %16529 = vmatprep.mubr.msk.f32.mxu0 %vm333_vm5, %v3310_v32  ;;  %v19338_v29 = vpop.eup %19337  ;;  %v20832_v32 = vpop.permute.xlu0 %3757  ;;  %19347 = vrcp.f32 %v2880_v26  ;;  %v3730_v26 = vld [vmem:[#allocation2 + $0x11] sm:$0xff] }
 0xb59   :  { %23875 = vst [vmem:[#allocation21_spill] sm:$0xff] %v20832_v32  ;;  %19349 = vrcp.f32 %v2879_v51 }
 0xb5a   :  { %v19340_v53 = vpop.eup %19339 }
 0xb5b   :  { %v19342_v17 = vpop.eup %19341  ;;  %v2898_v48 = vmul.f32 %v19340_v53, %v19336_v15  ;;  %16530 = vmatmul.mubr.msk.f32.gmra.mrb[82].mxu0 %vm333_vm5, %v3311_v43  ;;  %v3314_v53 = vmul.f32 %v20773_v11, %v20827_v33  ;;  %v20838_v15 = vld [vmem:[#allocation2 + $0x6f] sm:$0xff] }
 0xb5c   :  { %v2897_v50 = vmul.f32 %v19342_v17, %v19338_v29  ;;  %16532 = vmatprep.mubr.msk.f32.mxu0 %vm333_vm5, %v3312_v58  ;;  %v20842_v17 = vld [vmem:[#allocation2 + $0x77] sm:$0xff]  ;;  %v3315_v12 = vmul.f32 %v20791_v56, %v20838_v15  ;;  %v20848_v29 = vpop.permute.xlu1 %3762 }
 0xb5d   :  { %23876 = vst [vmem:[#allocation22_spill] sm:$0xff] %v20848_v29 }
 0xb5e   :  { %v19344_v25 = vpop.eup %19343 }
 0xb5f   :  { %v19346_v43 = vpop.eup %19345  ;;  %v2896_v7 = vmul.f32 %v19344_v25, %v20585_v34  ;;  %16533 = vmatmul.mubr.msk.f32.gmra.mrb[84].mxu0 %vm333_vm5, %v3313_v4  ;;  %v3316_v25 = vmul.f32 %v20794_v46, %v20842_v17  ;;  %v20852_v34 = vld [vmem:[#allocation2 + $0x7f] sm:$0xff]  ;;  %v20854_v4 = vpop.permute.xlu0 %3767 }
 0xb60   :  { %v2895_v58 = vmul.f32 %v19346_v43, %v20587_v41  ;;  %16535 = vmatprep.mubr.msk.f32.mxu0 %vm333_vm5, %v3314_v53  ;;  %23877 = vst [vmem:[#allocation23_spill] sm:$0xff] %v20854_v4  ;;  %v3729_v41 = vld [vmem:[#allocation2 + $0x9] sm:$0xff] }
 0xb61   :  { %v2900_v28 = vadd.f32 %v2898_v48, %v2896_v7  ;;  %v3317_v7 = vmul.f32 %v20808_v55, %v20852_v34  ;;  %v3825_v51 = vmul.f32 %v20814_v27, %v3729_v41  ;;  %v20864_v48 = vpop.permute.xlu1 %3772 }
 0xb62   :  { %v2899_v0 = vadd.f32 %v2897_v50, %v2895_v58  ;;  %v20862_v50 = vld [vmem:[#allocation2 + $0x19] sm:$0xff]  ;;  %23879 = vst [vmem:[#allocation25_spill] sm:$0xff] %v20864_v48  ;;  %v20872_v58 = vld [vmem:[#allocation2 + $0x21] sm:$0xff] }
 0xb63   :  { %19351 = vtanh.f32 %v2900_v28  ;;  %16536 = vmatmul.mubr.msk.f32.gmra.mrb[86].mxu0 %vm333_vm5, %v3315_v12  ;;  %23878 = vst [vmem:[#allocation24_spill] sm:$0xff] %v20862_v50  ;;  %v20867_v53 = vpop.permute.xlu0 %3777  ;;  %v3827_v43 = vmul.f32 %v20832_v32, %v20862_v50  ;;  %v19348_v28 = vpop.eup %19347  ;;  %v20875_v12 = vld [vmem:[#allocation2 + $0x29] sm:$0xff]  ;;  %v20889_v50 = vld [vmem:[#allocation2 + $0x39] sm:$0xff] }
 0xb64   :  { %19353 = vtanh.f32 %v2899_v0  ;;  %16538 = vmatprep.mubr.msk.f32.mxu0 %vm333_vm5, %v3316_v25  ;;  %23880 = vst [vmem:[#allocation26_spill] sm:$0xff] %v20867_v53  ;;  %v3826_v0 = vmul.f32 %v20829_v21, %v3730_v26  ;;  %v19350_v25 = vpop.eup %19349  ;;  %v3829_v32 = vmul.f32 %v20854_v4, %v20875_v12  ;;  %v20884_v21 = vld [vmem:[#allocation2 + $0x31] sm:$0xff] }
 0xb65   :  { %v20880_v35 = vpop.permute.xlu1 %3782 }
 0xb66   :  { %23881 = vst [vmem:[#allocation27_spill] sm:$0xff] %v20880_v35 }
 0xb67   :  { %16539 = vmatmul.mubr.msk.f32.gmra.mrb[88].mxu0 %vm333_vm5, %v3317_v7  ;;  %v3828_v7 = vmul.f32 %v20848_v29, %v20872_v58  ;;  %v20886_v27 = vpop.permute.xlu0 %3787 }
 0xb68   :  { %16549 = vmatprep.mubr.msk.f32.mxu0 %vm333_vm5, %v3825_v51  ;;  %23882 = vst [vmem:[#allocation28_spill] sm:$0xff] %v20886_v27 }
 0xb6b   :  { %16550 = vmatmul.mubr.msk.f32.vlgmr.msra.gmra.mrb[74].mxu0 %vm333_vm5, %v3826_v0 }
 0xb6c   :  { %16552 = vmatprep.mubr.msk.f32.mxu0 %vm333_vm5, %v3827_v43  ;;  %v3830_v43 = vmul.f32 %v20864_v48, %v20884_v21  ;;  %v20920_v48 = vld [vmem:[#allocation2 + $0x51] sm:$0xff] }
 0xb6d   :  { %v19352_v41 = vpop.eup %19351  ;;  %23887 = vst [vmem:[#allocation33_spill] sm:$0xff] %v20920_v48 }
 0xb6e   :  { %v19354_v51 = vpop.eup %19353  ;;  %v2904_v26 = vmul.f32 %v19352_v41, %v19348_v28  ;;  %v2964_v28 = vld [vmem:[%s23600_s16 + $0x8] sm:$0xff] }
 0xb6f   :  { %16553 = vmatmul.mubr.msk.f32.gmra.mrb[76].mxu0 %vm333_vm5, %v3828_v7  ;;  %v2903_v0 = vmul.f32 %v19354_v51, %v19350_v25  ;;  %v3831_v25 = vmul.f32 %v20867_v53, %v20889_v50  ;;  %v20906_v41 = vld [vmem:[#allocation2 + $0x41] sm:$0xff]  ;;  %v20909_v7 = vld [vmem:[#allocation2 + $0x49] sm:$0xff]  ;;  %v20911_v51 = vpop.permute.xlu1 %3792 }
 0xb70   :  { %8621 = vrot.lane.b32.xlu1 %v2904_v26, %s19387_s3  ;;  %16555 = vmatprep.mubr.msk.f32.mxu0 %vm333_vm5, %v3829_v32  ;;  %v2963_v32 = vld [vmem:[%s23600_s16] sm:$0xff]  ;;  %23883 = vst [vmem:[#allocation29_spill] sm:$0xff] %v20906_v41  ;;  %23884 = vst [vmem:[#allocation30_spill] sm:$0xff] %v20909_v7  ;;  %v3833_v53 = vmul.f32 %v20886_v27, %v20909_v7  ;;  %v20937_v27 = vld [vmem:[#allocation2 + $0x69] sm:$0xff] }
 0xb71   :  { %8619 = vrot.lane.b32.xlu0 %v2903_v0, %s19387_s3  ;;  %16474 = vmatprep.mubr.msk.f32.mxu1 %vm2976_vm8, %v2903_v0  ;;  %23885 = vst [vmem:[#allocation31_spill] sm:$0xff] %v20911_v51  ;;  %v20914_v0 = vpop.permute.xlu0 %3797  ;;  %23891 = vst [vmem:[#allocation37_spill] sm:$0xff] %v20937_v27 }
 0xb72   :  { %16475 = vmatmul.mubr.msk.f32.gmra.mrb[72].mxu1 %vm2976_vm8, %v2904_v26  ;;  %23886 = vst [vmem:[#allocation32_spill] sm:$0xff] %v20914_v0  ;;  %v3832_v26 = vmul.f32 %v20880_v35, %v20906_v41  ;;  %v20932_v35 = vld [vmem:[#allocation2 + $0x61] sm:$0xff] }
 0xb73   :  { %16556 = vmatmul.mubr.msk.f32.gmra.mrb[78].mxu0 %vm333_vm5, %v3830_v43  ;;  %v20923_v43 = vld [vmem:[#allocation2 + $0x59] sm:$0xff] }
 0xb74   :  { %7749 = vperm.xlu1 %18842, %v2964_v28   ;;  %16558 = vmatprep.mubr.msk.f32.mxu0 %vm333_vm5, %v3831_v25  ;;  %23888 = vst [vmem:[#allocation34_spill] sm:$0xff] %v20923_v43  ;;  %v3834_v28 = vmul.f32 %v20911_v51, %v20920_v48  ;;  %v20928_v25 = vpop.permute.xlu1 %3802  ;;  %v20944_v51 = vld [vmem:[#allocation2 + $0x71] sm:$0xff] }
 0xb75   :  { %7744 = vperm.xlu0 %18841, %v2963_v32   ;;  %23889 = vst [vmem:[#allocation35_spill] sm:$0xff] %v20928_v25  ;;  %v3835_v32 = vmul.f32 %v20914_v0, %v20923_v43  ;;  %v20934_v41 = vpop.permute.xlu0 %3807  ;;  %23892 = vst [vmem:[#allocation38_spill] sm:$0xff] %v20944_v51  ;;  %v20947_v0 = vld [vmem:[#allocation2 + $0x79] sm:$0xff] }
 0xb76   :  { %23890 = vst [vmem:[#allocation36_spill] sm:$0xff] %v20934_v41  ;;  %23893 = vst [vmem:[#allocation39_spill] sm:$0xff] %v20947_v0 }
 0xb77   :  { %16559 = vmatmul.mubr.msk.f32.gmra.mrb[80].mxu0 %vm333_vm5, %v3832_v26  ;;  %v3837_v26 = vmul.f32 %v20934_v41, %v20937_v27 }
 0xb78   :  { %16561 = vmatprep.mubr.msk.f32.mxu0 %vm333_vm5, %v3833_v53  ;;  %v3836_v53 = vmul.f32 %v20928_v25, %v20932_v35  ;;  %v20949_v43 = vpop.permute.xlu1 %3812 }
 0xb79   :  { %23894 = vst [vmem:[#allocation40_spill] sm:$0xff] %v20949_v43 }
 0xb7b   :  { %16562 = vmatmul.mubr.msk.f32.gmra.mrb[82].mxu0 %vm333_vm5, %v3834_v28  ;;  %v20952_v28 = vpop.permute.xlu0 %3817 }
 0xb7c   :  { %16564 = vmatprep.mubr.msk.f32.mxu0 %vm333_vm5, %v3835_v32  ;;  %23895 = vst [vmem:[#allocation41_spill] sm:$0xff] %v20952_v28  ;;  %v3838_v32 = vmul.f32 %v20949_v43, %v20944_v51  ;;  %v3839_v25 = vmul.f32 %v20952_v28, %v20947_v0  ;;  %v14342_v43 = vld [vmem:[%s23599_s11 + $0x70] sm:$0xff]  ;;  %v14360_v28 = vld [vmem:[%s23599_s11 + $0x80] sm:$0xff] }
 0xb7f   :  { %16565 = vmatmul.mubr.msk.f32.gmra.mrb[84].mxu0 %vm333_vm5, %v3836_v53  ;;  %v14340_v53 = vld [vmem:[%s23599_s11 + $0x60] sm:$0xff] }
 0xb80   :  { %16567 = vmatprep.mubr.msk.f32.mxu0 %vm333_vm5, %v3837_v26  ;;  %v14341_v26 = vld [vmem:[%s23599_s11 + $0x68] sm:$0xff] }
 0xb81   :  { %v17981_v41 = vpack.c.bf16 %v14341_v26, %v14340_v53  ;;  %v14361_v53 = vld [vmem:[%s23599_s11 + $0x88] sm:$0xff] }
 0xb83   :  { %16568 = vmatmul.mubr.msk.f32.gmra.mrb[86].mxu0 %vm333_vm5, %v3838_v32  ;;  %17982 = vmatprep.subr.bf16.mxu0 %v17981_v41  ;;  %v14343_v32 = vld [vmem:[%s23599_s11 + $0x78] sm:$0xff] }
 0xb84   :  { %16570 = vmatprep.mubr.msk.f32.mxu0 %vm333_vm5, %v3839_v25  ;;  %17984 = vmatpush3.bf16.msra.mxu0 %v17981_v41  ;;  %v17985_v25 = vpack.c.bf16 %v14343_v32, %v14342_v43  ;;  %v17989_v41 = vpack.c.bf16 %v14361_v53, %v14360_v28  ;;  %v20992_v28 = vpop.permute.xlu1 %3822  ;;  %v14362_v53 = vld [vmem:[%s23599_s11 + $0x90] sm:$0xff] }
 0xb85   :  { %23898 = vst [vmem:[#allocation44_spill] sm:$0xff] %v20992_v28 }
 0xb86   :  { %17986 = vmatprep.subr.bf16.mxu0 %v17985_v25 }
 0xb88   :  { %17988 = vmatpush3.bf16.msra.mxu0 %v17985_v25 }
 0xb89   :  { %17990 = vmatprep.subr.bf16.mxu0 %v17989_v41 }
 0xc45   :  { %v16476_v26 = vpop.f32.mrb[72].mxu1 }
 0xc46   :  { %v20979_v0 = vadd.f32 %v16476_v26, %v20490_v31  ;;  %v3165_v51 = vpop.f32.mrb[73].mxu1  ;;  %v14363_v26 = vld [vmem:[%s23599_s11 + $0x98] sm:$0xff] }
 0xc47   :  { %v20982_v27 = vadd.f32 %v20490_v31, %v3165_v51  ;;  %v4071_v51 = vmul.f32 %v20706_v45, %v20762_v54  ;;  %v14380_v54 = vld [vmem:[%s23599_s11 + $0xa0] sm:$0xff] }
 0xc48   :  { %23896 = vst [vmem:[#allocation42_spill] sm:$0xff] %v20979_v0  ;;  %v23684_v43 = vmax.f32 %v20979_v0, 0.0  ;;  %v14381_v0 = vld [vmem:[%s23599_s11 + $0xa8] sm:$0xff] }
 0xc49   :  { %23897 = vst [vmem:[#allocation43_spill] sm:$0xff] %v20982_v27  ;;  %v23683_v32 = vmax.f32 %v20982_v27, 0.0  ;;  %v4073_v27 = vmul.f32 %v20710_v63, %v20777_v16 }
 0xc4a   :  { %3205 = vst.msk [vmem:[#allocation2 + $0x90] sm:$0xff] %vm333_vm5, %v23684_v43  ;;  %v17993_v43 = vpack.c.bf16 %v14363_v26, %v14362_v53  ;;  %v4076_v53 = vmul.f32 %v20716_v22, %v20800_v30  ;;  %v4082_v26 = vmul.f32 %v20767_v24, %v20838_v15 }
 0xc4b   :  { %3204 = vst.msk [vmem:[#allocation2 + $0x88] sm:$0xff] %vm333_vm5, %v23683_v32  ;;  %v4072_v32 = vmul.f32 %v20708_v2, %v20771_v10  ;;  %v4074_v10 = vmul.f32 %v20712_v14, %v20786_v8 }
 0xc52   :  { %v20994_v25 = vld [vmem:[#allocation2 + $0x81] sm:$0xff] }
 0xc53   :  { %v3840_v31 = vmul.f32 %v20992_v28, %v20994_v25 }
 0xc55   :  { %16571 = vmatmul.mubr.msk.f32.gmra.mrb[88].mxu0 %vm333_vm5, %v3840_v31  ;;  %v17997_v31 = vpack.c.bf16 %v14381_v0, %v14380_v54  ;;  %v4078_v0 = vmul.f32 %v20731_v38, %v20812_v60  ;;  %v4083_v54 = vmul.f32 %v20773_v11, %v20842_v17 }
 0xc56   :  { %16581 = vmatprep.mubr.msk.f32.mxu0 %vm333_vm5, %v4071_v51  ;;  %v4075_v51 = vmul.f32 %v20714_v44, %v20789_v61 }
 0xc59   :  { %16582 = vmatmul.mubr.msk.f32.vlgmr.msra.gmra.mrb[74].mxu0 %vm333_vm5, %v4072_v32  ;;  %v4081_v32 = vmul.f32 %v20744_v19, %v20827_v33 }
 0xc5a   :  { %16584 = vmatprep.mubr.msk.f32.mxu0 %vm333_vm5, %v4073_v27  ;;  %17992 = vmatpush3.bf16.msra.mxu0 %v17989_v41  ;;  %v4077_v27 = vmul.f32 %v20718_v1, %v20803_v18  ;;  %v4079_v41 = vmul.f32 %v20736_v62, %v20817_v37 }
 0xc5b   :  { %17994 = vmatprep.subr.bf16.mxu0 %v17993_v43 }
 0xc5d   :  { %16585 = vmatmul.mubr.msk.f32.gmra.mrb[76].mxu0 %vm333_vm5, %v4074_v10  ;;  %v21049_v10 = vld [vmem:[#allocation2 + $0x87] sm:$0xff] }
 0xc5e   :  { %16587 = vmatprep.mubr.msk.f32.mxu0 %vm333_vm5, %v4075_v51  ;;  %17996 = vmatpush3.bf16.msra.mxu0 %v17993_v43  ;;  %v4080_v43 = vmul.f32 %v20741_v59, %v20824_v42  ;;  %v4084_v51 = vmul.f32 %v20791_v56, %v20852_v34 }
 0xc5f   :  { %17998 = vmatprep.subr.bf16.mxu0 %v17997_v31 }
 0xc61   :  { %16588 = vmatmul.mubr.msk.f32.gmra.mrb[78].mxu0 %vm333_vm5, %v4076_v53  ;;  %v4085_v53 = vmul.f32 %v21049_v10, %v20794_v46 }
 0xc62   :  { %16590 = vmatprep.mubr.msk.f32.mxu0 %vm333_vm5, %v4077_v27  ;;  %v21056_v27 = vld [vmem:[#allocation2 + $0x8f] sm:$0xff] }
 0xc65   :  { %16591 = vmatmul.mubr.msk.f32.gmra.mrb[80].mxu0 %vm333_vm5, %v4078_v0  ;;  %v4086_v0 = vmul.f32 %v21056_v27, %v20808_v55 }
 0xc66   :  { %16593 = vmatprep.mubr.msk.f32.mxu0 %vm333_vm5, %v4079_v41  ;;  %v14382_v41 = vld [vmem:[%s23599_s11 + $0xb0] sm:$0xff] }
 0xc69   :  { %16594 = vmatmul.mubr.msk.f32.gmra.mrb[82].mxu0 %vm333_vm5, %v4080_v43  ;;  %v14383_v43 = vld [vmem:[%s23599_s11 + $0xb8] sm:$0xff] }
 0xc6a   :  { %16596 = vmatprep.mubr.msk.f32.mxu0 %vm333_vm5, %v4081_v32  ;;  %v18001_v32 = vpack.c.bf16 %v14383_v43, %v14382_v41  ;;  %v14402_v41 = vld [vmem:[%s23599_s11 + $0xd0] sm:$0xff]  ;;  %v14403_v43 = vld [vmem:[%s23599_s11 + $0xd8] sm:$0xff] }
 0xc6d   :  { %16597 = vmatmul.mubr.msk.f32.gmra.mrb[84].mxu0 %vm333_vm5, %v4082_v26  ;;  %v14400_v26 = vld [vmem:[%s23599_s11 + $0xc0] sm:$0xff] }
 0xc6e   :  { %16599 = vmatprep.mubr.msk.f32.mxu0 %vm333_vm5, %v4083_v54  ;;  %v14401_v54 = vld [vmem:[%s23599_s11 + $0xc8] sm:$0xff] }
 0xc71   :  { %16600 = vmatmul.mubr.msk.f32.gmra.mrb[86].mxu0 %vm333_vm5, %v4084_v51  ;;  %v18005_v51 = vpack.c.bf16 %v14401_v54, %v14400_v26  ;;  %v18009_v54 = vpack.c.bf16 %v14403_v43, %v14402_v41  ;;  %v4551_v41 = vmul.f32 %v20854_v4, %v20889_v50  ;;  %v23904_v43 = vld [vmem:[#allocation29_spill] sm:$0xff]  ;;  %v23909_v4 = vld [vmem:[#allocation28_spill] sm:$0xff] }
 0xc72   :  { %16602 = vmatprep.mubr.msk.f32.mxu0 %vm333_vm5, %v4085_v53  ;;  %v23901_v53 = vld [vmem:[#allocation19_spill] sm:$0xff] }
 0xc75   :  { %16603 = vmatmul.mubr.msk.f32.gmra.mrb[88].mxu0 %vm333_vm5, %v4086_v0 }
 0xc76   :  { %16613 = vmatprep.mubr.msk.f32.mxu0 %vm333_vm5, %v20637_v23  ;;  %v21103_v23 = vld [vmem:[#allocation2 + $0x88] sm:$0xff] }
 0xc77   :  { %23899 = vst [vmem:[#allocation45_spill] sm:$0xff] %v21103_v23 }
 0xc79   :  { %16614 = vmatmul.mubr.msk.f32.vlgmr.msra.gmra.mrb[74].mxu0 %vm333_vm5, %v20641_v39  ;;  %v21107_v39 = vld [vmem:[#allocation2 + $0x90] sm:$0xff] }
 0xc7a   :  { %16616 = vmatprep.mubr.msk.f32.mxu0 %vm333_vm5, %v20645_v20  ;;  %18000 = vmatpush3.bf16.msra.mxu0 %v17997_v31  ;;  %v23900_v31 = vld [vmem:[#allocation24_spill] sm:$0xff] }
 0xc7b   :  { %18002 = vmatprep.subr.bf16.mxu0 %v18001_v32  ;;  %v4547_v0 = vmul.f32 %v23901_v53, %v23900_v31  ;;  %v14420_v53 = vld [vmem:[%s23599_s11 + $0xe0] sm:$0xff] }
 0xc7d   :  { %16617 = vmatmul.mubr.msk.f32.gmra.mrb[76].mxu0 %vm333_vm5, %v20649_v3 }
 0xc7e   :  { %16619 = vmatprep.mubr.msk.f32.mxu0 %vm333_vm5, %v20653_v5  ;;  %18004 = vmatpush3.bf16.msra.mxu0 %v18001_v32  ;;  %v23902_v32 = vld [vmem:[#allocation20_spill] sm:$0xff] }
 0xc7f   :  { %18006 = vmatprep.subr.bf16.mxu0 %v18005_v51  ;;  %v4548_v26 = vmul.f32 %v23902_v32, %v20872_v58  ;;  %v4550_v58 = vmul.f32 %v20848_v29, %v20884_v21  ;;  %v23912_v29 = vld [vmem:[#allocation32_spill] sm:$0xff] }
 0xc81   :  { %16620 = vmatmul.mubr.msk.f32.gmra.mrb[78].mxu0 %vm333_vm5, %v20657_v47 }
 0xc82   :  { %16622 = vmatprep.mubr.msk.f32.mxu0 %vm333_vm5, %v20661_v49 }
 0xc85   :  { %16623 = vmatmul.mubr.msk.f32.gmra.mrb[80].mxu0 %vm333_vm5, %v20665_v40 }
 0xc86   :  { %16625 = vmatprep.mubr.msk.f32.mxu0 %vm333_vm5, %v20669_v36 }
 0xc89   :  { %16626 = vmatmul.mubr.msk.f32.gmra.mrb[82].mxu0 %vm333_vm5, %v20673_v6 }
 0xc8a   :  { %16628 = vmatprep.mubr.msk.f32.mxu0 %vm333_vm5, %v20677_v9 }
 0xc8d   :  { %16629 = vmatmul.mubr.msk.f32.gmra.mrb[84].mxu0 %vm333_vm5, %v20681_v57 }
 0xc8e   :  { %16631 = vmatprep.mubr.msk.f32.mxu0 %vm333_vm5, %v20746_v13 }
 0xc91   :  { %16632 = vmatmul.mubr.msk.f32.gmra.mrb[86].mxu0 %vm333_vm5, %v20750_v52  ;;  %v14421_v52 = vld [vmem:[%s23599_s11 + $0xe8] sm:$0xff] }
 0xc92   :  { %16634 = vmatprep.mubr.msk.f32.mxu0 %vm333_vm5, %v21103_v23  ;;  %v23903_v23 = vld [vmem:[#allocation21_spill] sm:$0xff] }
 0xc93   :  { %v4549_v31 = vmul.f32 %v23903_v23, %v20875_v12  ;;  %v23905_v23 = vld [vmem:[#allocation25_spill] sm:$0xff] }
 0xc94   :  { %v4552_v32 = vmul.f32 %v23905_v23, %v23904_v43  ;;  %v23911_v23 = vld [vmem:[#allocation37_spill] sm:$0xff] }
 0xc95   :  { %16635 = vmatmul.mubr.msk.f32.gmra.mrb[88].mxu0 %vm333_vm5, %v21107_v39 }
 0xc96   :  { %16645 = vmatprep.mubr.msk.f32.mxu0 %vm333_vm5, %v4547_v0  ;;  %v18013_v0 = vpack.c.bf16 %v14421_v52, %v14420_v53  ;;  %v23907_v52 = vld [vmem:[#allocation27_spill] sm:$0xff] }
 0xc97   :  { %v4554_v53 = vmul.f32 %v23907_v52, %v20920_v48  ;;  %v23915_v48 = vld [vmem:[#allocation39_spill] sm:$0xff] }
 0xc99   :  { %16646 = vmatmul.mubr.msk.f32.vlgmr.msra.gmra.mrb[74].mxu0 %vm333_vm5, %v4548_v26  ;;  %v23906_v26 = vld [vmem:[#allocation26_spill] sm:$0xff] }
 0xc9a   :  { %16648 = vmatprep.mubr.msk.f32.mxu0 %vm333_vm5, %v4549_v31  ;;  %18008 = vmatpush3.bf16.msra.mxu0 %v18005_v51  ;;  %v4553_v51 = vmul.f32 %v23906_v26, %v20909_v7  ;;  %v23908_v31 = vld [vmem:[#allocation34_spill] sm:$0xff]  ;;  %v4557_v26 = vmul.f32 %v23912_v29, %v23911_v23  ;;  %v23916_v7 = vld [vmem:[#allocation36_spill] sm:$0xff]  ;;  %v23918_v29 = vld [vmem:[#allocation41_spill] sm:$0xff] }
 0xc9b   :  { %18010 = vmatprep.subr.bf16.mxu0 %v18009_v54  ;;  %v21168_v23 = vld [vmem:[#allocation2 + $0x91] sm:$0xff] }
 0xc9d   :  { %16649 = vmatmul.mubr.msk.f32.gmra.mrb[76].mxu0 %vm333_vm5, %v4550_v58  ;;  %v4555_v58 = vmul.f32 %v23909_v4, %v23908_v31  ;;  %v4559_v4 = vmul.f32 %v23916_v7, %v23915_v48 }
 0xc9e   :  { %16651 = vmatprep.mubr.msk.f32.mxu0 %vm333_vm5, %v4551_v41  ;;  %18012 = vmatpush3.bf16.msra.mxu0 %v18009_v54  ;;  %v23910_v54 = vld [vmem:[#allocation31_spill] sm:$0xff] }
 0xc9f   :  { %18014 = vmatprep.subr.bf16.mxu0 %v18013_v0  ;;  %v4556_v41 = vmul.f32 %v23910_v54, %v20932_v35 }
 0xca1   :  { %16652 = vmatmul.mubr.msk.f32.gmra.mrb[78].mxu0 %vm333_vm5, %v4552_v32  ;;  %v23913_v32 = vld [vmem:[#allocation38_spill] sm:$0xff] }
 0xca2   :  { %16654 = vmatprep.mubr.msk.f32.mxu0 %vm333_vm5, %v4553_v51  ;;  %v23914_v51 = vld [vmem:[#allocation35_spill] sm:$0xff] }
 0xca3   :  { %v4558_v52 = vmul.f32 %v23914_v51, %v23913_v32 }
 0xca5   :  { %16655 = vmatmul.mubr.msk.f32.gmra.mrb[80].mxu0 %vm333_vm5, %v4554_v53  ;;  %v21161_v53 = vld [vmem:[#allocation2 + $0x89] sm:$0xff] }
 0xca6   :  { %16657 = vmatprep.mubr.msk.f32.mxu0 %vm333_vm5, %v4555_v58  ;;  %v23917_v58 = vld [vmem:[#allocation40_spill] sm:$0xff] }
 0xca7   :  { %v4560_v54 = vmul.f32 %v23917_v58, %v20994_v25 }
 0xca9   :  { %16658 = vmatmul.mubr.msk.f32.gmra.mrb[82].mxu0 %vm333_vm5, %v4556_v41  ;;  %v4561_v41 = vmul.f32 %v21161_v53, %v23918_v29  ;;  %v14423_v29 = vld [vmem:[%s23599_s11 + $0xf8] sm:$0xff] }
 0xcaa   :  { %16660 = vmatprep.mubr.msk.f32.mxu0 %vm333_vm5, %v4557_v26  ;;  %v4562_v26 = vmul.f32 %v21168_v23, %v20992_v28  ;;  %v4795_v28 = vmul.f32 %v20710_v63, %v20789_v61  ;;  %v4797_v61 = vmul.f32 %v20714_v44, %v20803_v18  ;;  %v4802_v18 = vmul.f32 %v20741_v59, %v20838_v15 }
 0xcab   :  { %v4806_v15 = vmul.f32 %v21056_v27, %v20791_v56 }
 0xcad   :  { %16661 = vmatmul.mubr.msk.f32.gmra.mrb[84].mxu0 %vm333_vm5, %v4558_v52  ;;  %v4793_v52 = vmul.f32 %v20706_v45, %v20777_v16  ;;  %v14440_v16 = vld [vmem:[%s23599_s11 + $0x100] sm:$0xff]  ;;  %v14441_v45 = vld [vmem:[%s23599_s11 + $0x108] sm:$0xff] }
 0xcae   :  { %16663 = vmatprep.mubr.msk.f32.mxu0 %vm333_vm5, %v4559_v4  ;;  %v14422_v4 = vld [vmem:[%s23599_s11 + $0xf0] sm:$0xff] }
 0xcb1   :  { %16664 = vmatmul.mubr.msk.f32.gmra.mrb[86].mxu0 %vm333_vm5, %v4560_v54  ;;  %v4794_v54 = vmul.f32 %v20708_v2, %v20786_v8  ;;  %v4796_v8 = vmul.f32 %v20712_v14, %v20800_v30  ;;  %v4801_v30 = vmul.f32 %v20736_v62, %v20827_v33  ;;  %v4791_v33 = vld [vmem:[#allocation2 + $0x97] sm:$0xff] }
 0xcb2   :  { %16666 = vmatprep.mubr.msk.f32.mxu0 %vm333_vm5, %v4561_v41  ;;  %v18017_v41 = vpack.c.bf16 %v14423_v29, %v14422_v4  ;;  %v18021_v29 = vpack.c.bf16 %v14441_v45, %v14440_v16  ;;  %v4800_v45 = vmul.f32 %v20731_v38, %v20824_v42  ;;  %v4804_v42 = vmul.f32 %v20767_v24, %v20852_v34  ;;  %v23925_v4 = vld [vmem:[#allocation30_spill] sm:$0xff]  ;;  %v23928_v16 = vld [vmem:[#allocation25_spill] sm:$0xff] }
 0xcb5   :  { %16667 = vmatmul.mubr.msk.f32.gmra.mrb[88].mxu0 %vm333_vm5, %v4562_v26  ;;  %v4798_v26 = vmul.f32 %v20716_v22, %v20812_v60  ;;  %v4803_v60 = vmul.f32 %v20744_v19, %v20842_v17  ;;  %v4807_v17 = vmul.f32 %v4791_v33, %v20794_v46  ;;  %v5268_v33 = vld [vmem:[#allocation2 + $0xa1] sm:$0xff] }
 0xcb6   :  { %16677 = vmatprep.mubr.msk.f32.mxu0 %vm333_vm5, %v4793_v52  ;;  %v14443_v52 = vld [vmem:[%s23599_s11 + $0x118] sm:$0xff] }
 0xcb9   :  { %16678 = vmatmul.mubr.msk.f32.vlgmr.msra.gmra.mrb[74].mxu0 %vm333_vm5, %v4794_v54  ;;  %v23926_v54 = vld [vmem:[#allocation23_spill] sm:$0xff] }
 0xcba   :  { %16680 = vmatprep.mubr.msk.f32.mxu0 %vm333_vm5, %v4795_v28  ;;  %18016 = vmatpush3.bf16.msra.mxu0 %v18013_v0  ;;  %v4799_v28 = vmul.f32 %v20718_v1, %v20817_v37  ;;  %v4805_v37 = vmul.f32 %v21049_v10, %v20773_v11  ;;  %v4792_v0 = vld [vmem:[#allocation2 + $0x9f] sm:$0xff]  ;;  %v14442_v10 = vld [vmem:[%s23599_s11 + $0x110] sm:$0xff] }
 0xcbb   :  { %18018 = vmatprep.subr.bf16.mxu0 %v18017_v41  ;;  %v4808_v34 = vmul.f32 %v4792_v0, %v20808_v55  ;;  %v18025_v27 = vpack.c.bf16 %v14443_v52, %v14442_v10  ;;  %v14463_v0 = vld [vmem:[%s23601_s13 + $0x30] sm:$0xff]  ;;  %v5590_v52 = vld [vmem:[#allocation2 + $0x8] sm:$0xff] }
 0xcbc   :  { %16773 = vmatprep.mubr.msk.f32.mxu1 %vm333_vm5, %v5590_v52 }
 0xcbd   :  { %16681 = vmatmul.mubr.msk.f32.gmra.mrb[76].mxu0 %vm333_vm5, %v4796_v8  ;;  %v23929_v8 = vld [vmem:[#allocation26_spill] sm:$0xff] }
 0xcbe   :  { %16683 = vmatprep.mubr.msk.f32.mxu0 %vm333_vm5, %v4797_v61  ;;  %18020 = vmatpush3.bf16.msra.mxu0 %v18017_v41  ;;  %v23927_v41 = vld [vmem:[#allocation33_spill] sm:$0xff] }
 0xcbf   :  { %18022 = vmatprep.subr.bf16.mxu0 %v18021_v29  ;;  %v23931_v61 = vld [vmem:[#allocation37_spill] sm:$0xff] }
 0xcc1   :  { %16684 = vmatmul.mubr.msk.f32.gmra.mrb[78].mxu0 %vm333_vm5, %v4798_v26  ;;  %v23932_v26 = vld [vmem:[#allocation28_spill] sm:$0xff] }
 0xcc2   :  { %16686 = vmatprep.mubr.msk.f32.mxu0 %vm333_vm5, %v4799_v28  ;;  %v5277_v28 = vmul.f32 %v23932_v26, %v23931_v61 }
 0xcc5   :  { %16687 = vmatmul.mubr.msk.f32.gmra.mrb[80].mxu0 %vm333_vm5, %v4800_v45  ;;  %v23933_v45 = vld [vmem:[#allocation31_spill] sm:$0xff] }
 0xcc6   :  { %16689 = vmatprep.mubr.msk.f32.mxu0 %vm333_vm5, %v4801_v30  ;;  %v5278_v30 = vmul.f32 %v23933_v45, %v23913_v32  ;;  %v5282_v32 = vmul.f32 %v21168_v23, %v23917_v58 }
 0xcc9   :  { %16690 = vmatmul.mubr.msk.f32.gmra.mrb[82].mxu0 %vm333_vm5, %v4802_v18  ;;  %v23934_v18 = vld [vmem:[#allocation32_spill] sm:$0xff] }
 0xcca   :  { %16692 = vmatprep.mubr.msk.f32.mxu0 %vm333_vm5, %v4803_v60  ;;  %v5281_v60 = vmul.f32 %v21161_v53, %v23916_v7  ;;  %v14461_v53 = vld [vmem:[%s23601_s13 + $0x20] sm:$0xff] }
 0xccd   :  { %16693 = vmatmul.mubr.msk.f32.gmra.mrb[84].mxu0 %vm333_vm5, %v4804_v42  ;;  %v5267_v42 = vld [vmem:[#allocation2 + $0x99] sm:$0xff] }
 0xcce   :  { %16695 = vmatprep.mubr.msk.f32.mxu0 %vm333_vm5, %v4805_v37  ;;  %v23935_v37 = vld [vmem:[#allocation41_spill] sm:$0xff] }
 0xcd1   :  { %16696 = vmatmul.mubr.msk.f32.gmra.mrb[86].mxu0 %vm333_vm5, %v4806_v15  ;;  %v23936_v15 = vld [vmem:[#allocation44_spill] sm:$0xff] }
 0xcd2   :  { %16698 = vmatprep.mubr.msk.f32.mxu0 %vm333_vm5, %v4807_v17  ;;  %v14462_v17 = vld [vmem:[%s23601_s13 + $0x28] sm:$0xff] }
 0xcd3   :  { %v18029_v23 = vpack.c.bf16 %v14462_v17, %v14461_v53 }
 0xcd5   :  { %16699 = vmatmul.mubr.msk.f32.gmra.mrb[88].mxu0 %vm333_vm5, %v4808_v34  ;;  %18030 = vmatprep.subr.bf16.mxu1 %v18029_v23  ;;  %v14464_v34 = vld [vmem:[%s23601_s13 + $0x38] sm:$0xff] }
 0xcd6   :  { %16709 = vmatprep.mubr.msk.f32.mxu0 %vm333_vm5, %v20645_v20  ;;  %v23919_v20 = vld [vmem:[#allocation18_spill] sm:$0xff]  ;;  %18032 = vmatpush3.bf16.msra.mxu1 %v18029_v23  ;;  %v18033_v10 = vpack.c.bf16 %v14464_v34, %v14463_v0 }
 0xcd8   :  { %18034 = vmatprep.subr.bf16.mxu1 %v18033_v10 }
 0xcd9   :  { %16710 = vmatmul.mubr.msk.f32.vlgmr.msra.gmra.mrb[74].mxu0 %vm333_vm5, %v20649_v3  ;;  %v23920_v3 = vld [vmem:[#allocation45_spill] sm:$0xff] }
 0xcda   :  { %16712 = vmatprep.mubr.msk.f32.mxu0 %vm333_vm5, %v20653_v5  ;;  %18024 = vmatpush3.bf16.msra.mxu0 %v18021_v29  ;;  %v5037_v5 = vld [vmem:[#allocation2 + $0x98] sm:$0xff]  ;;  %v23930_v29 = vld [vmem:[#allocation27_spill] sm:$0xff] }
 0xcdb   :  { %18026 = vmatprep.subr.bf16.mxu0 %v18025_v27  ;;  %18036 = vmatpush3.bf16.msra.mxu1 %v18033_v10 }
 0xcdd   :  { %16713 = vmatmul.mubr.msk.f32.gmra.mrb[76].mxu0 %vm333_vm5, %v20657_v47  ;;  %v5038_v47 = vld [vmem:[#allocation2 + $0xa0] sm:$0xff] }
 0xcde   :  { %16715 = vmatprep.mubr.msk.f32.mxu0 %vm333_vm5, %v20661_v49  ;;  %18028 = vmatpush3.bf16.msra.mxu0 %v18025_v27  ;;  %v23921_v49 = vld [vmem:[#allocation19_spill] sm:$0xff] }
 0xcdf   :  { %v5591_v27 = vld [vmem:[#allocation2 + $0x10] sm:$0xff] }
 0xce0   :  { %16774 = vmatmul.mubr.msk.f32.vlgmr.msra.gmra.mrb[74].mxu1 %vm333_vm5, %v5591_v27 }
 0xce1   :  { %16716 = vmatmul.mubr.msk.f32.gmra.mrb[78].mxu0 %vm333_vm5, %v20665_v40  ;;  %v5269_v40 = vmul.f32 %v23921_v49, %v20875_v12  ;;  %v5273_v12 = vmul.f32 %v23926_v54, %v23925_v4 }
 0xce2   :  { %16718 = vmatprep.mubr.msk.f32.mxu0 %vm333_vm5, %v20669_v36  ;;  %v23922_v36 = vld [vmem:[#allocation20_spill] sm:$0xff] }
 0xce5   :  { %16719 = vmatmul.mubr.msk.f32.gmra.mrb[80].mxu0 %vm333_vm5, %v20673_v6  ;;  %v5270_v6 = vmul.f32 %v23922_v36, %v20884_v21  ;;  %v5274_v21 = vmul.f32 %v23928_v16, %v23927_v41 }
 0xce6   :  { %16721 = vmatprep.mubr.msk.f32.mxu0 %vm333_vm5, %v20677_v9  ;;  %v23923_v9 = vld [vmem:[#allocation21_spill] sm:$0xff] }
 0xce9   :  { %16722 = vmatmul.mubr.msk.f32.gmra.mrb[82].mxu0 %vm333_vm5, %v20681_v57  ;;  %v5271_v57 = vmul.f32 %v23923_v9, %v20889_v50  ;;  %v5275_v50 = vmul.f32 %v23929_v8, %v23908_v31  ;;  %v5279_v31 = vmul.f32 %v23934_v18, %v23915_v48  ;;  %v5283_v48 = vmul.f32 %v5267_v42, %v23935_v37 }
 0xcea   :  { %16724 = vmatprep.mubr.msk.f32.mxu0 %vm333_vm5, %v20746_v13  ;;  %v23924_v13 = vld [vmem:[#allocation22_spill] sm:$0xff] }
 0xced   :  { %16725 = vmatmul.mubr.msk.f32.gmra.mrb[84].mxu0 %vm333_vm5, %v23919_v20  ;;  %v5586_v20 = vld [vmem:[%s23601_s13] sm:$0xff] }
 0xcee   :  { %16727 = vmatprep.mubr.msk.f32.mxu0 %vm333_vm5, %v23920_v3  ;;  %v5587_v3 = vld [vmem:[%s23601_s13 + $0x8] sm:$0xff] }
 0xcf1   :  { %16728 = vmatmul.mubr.msk.f32.gmra.mrb[86].mxu0 %vm333_vm5, %v21107_v39  ;;  %v5272_v39 = vmul.f32 %v23924_v13, %v23904_v43  ;;  %v5276_v43 = vmul.f32 %v23930_v29, %v20932_v35  ;;  %v5280_v35 = vmul.f32 %v23914_v51, %v20994_v25  ;;  %v5284_v25 = vmul.f32 %v5268_v33, %v23936_v15 }
 0xcf2   :  { %16730 = vmatprep.mubr.msk.f32.mxu0 %vm333_vm5, %v5037_v5  ;;  %v18037_v5 = vpack.c.bf16 %v5587_v3, %v5586_v20 }
 0xcf4   :  { %18038 = vmatprep.subr.bf16.mxu1 %v18037_v5 }
 0xcf5   :  { %16731 = vmatmul.mubr.msk.f32.gmra.mrb[88].mxu0 %vm333_vm5, %v5038_v47  ;;  %18040 = vmatpush3.bf16.msra.mxu1 %v18037_v5  ;;  %v5588_v47 = vld [vmem:[%s23601_s13 + $0x10] sm:$0xff] }
 0xcf6   :  { %16741 = vmatprep.mubr.msk.f32.mxu0 %vm333_vm5, %v5269_v40  ;;  %v5589_v40 = vld [vmem:[%s23601_s13 + $0x18] sm:$0xff] }
 0xcf9   :  { %16742 = vmatmul.mubr.msk.f32.vlgmr.msra.gmra.mrb[74].mxu0 %vm333_vm5, %v5270_v6  ;;  %v18041_v6 = vpack.c.bf16 %v5589_v40, %v5588_v47 }
 0xcfa   :  { %16744 = vmatprep.mubr.msk.f32.mxu0 %vm333_vm5, %v5271_v57  ;;  %v14497_v57 = vld [vmem:[%s23601_s13 + $0x40] sm:$0xff] }
 0xcfb   :  { %18042 = vmatprep.subr.bf16.mxu1 %v18041_v6 }
 0xcfc   :  { %18044 = vmatpush3.bf16.msra.mxu1 %v18041_v6 }
 0xcfd   :  { %16745 = vmatmul.mubr.msk.f32.gmra.mrb[76].mxu0 %vm333_vm5, %v5272_v39  ;;  %v14498_v39 = vld [vmem:[%s23601_s13 + $0x48] sm:$0xff] }
 0xcfe   :  { %16747 = vmatprep.mubr.msk.f32.mxu0 %vm333_vm5, %v5273_v12  ;;  %v21347_v4 = vpack.c.bf16 %v14498_v39, %v14497_v57  ;;  %v21353_v12 = vld [vmem:[%s23602_s12] ss:$0 sm:$0xff] }
 0xd00   :  { %18046 = vmatprep.subr.bf16.mxu1 %v21347_v4 }
 0xd01   :  { %16748 = vmatmul.mubr.msk.f32.gmra.mrb[78].mxu0 %vm333_vm5, %v5274_v21 }
 0xd02   :  { %16750 = vmatprep.mubr.msk.f32.mxu0 %vm333_vm5, %v5275_v50 }
 0xd05   :  { %16751 = vmatmul.mubr.msk.f32.gmra.mrb[80].mxu0 %vm333_vm5, %v5276_v43 }
 0xd06   :  { %16753 = vmatprep.mubr.msk.f32.mxu0 %vm333_vm5, %v5277_v28 }
 0xd09   :  { %16754 = vmatmul.mubr.msk.f32.gmra.mrb[82].mxu0 %vm333_vm5, %v5278_v30 }
 0xd0a   :  { %16756 = vmatprep.mubr.msk.f32.mxu0 %vm333_vm5, %v5279_v31 }
 0xd0d   :  { %16757 = vmatmul.mubr.msk.f32.gmra.mrb[84].mxu0 %vm333_vm5, %v5280_v35 }
 0xd0e   :  { %16759 = vmatprep.mubr.msk.f32.mxu0 %vm333_vm5, %v5281_v60 }
 0xd11   :  { %16760 = vmatmul.mubr.msk.f32.gmra.mrb[86].mxu0 %vm333_vm5, %v5282_v32 }
 0xd12   :  { %16762 = vmatprep.mubr.msk.f32.mxu0 %vm333_vm5, %v5283_v48 }
 0xd15   :  { %16763 = vmatmul.mubr.msk.f32.gmra.mrb[88].mxu0 %vm333_vm5, %v5284_v25 }
 0xdcc   :  { %v16743_v41 = vpop.f32.mrb[74].mxu0 }
 0xdcd   :  { %v5507_v21 = vadd.f32 %v16743_v41, %v21353_v12  ;;  %v5404_v50 = vpop.f32.mrb[75].mxu0 }
 0xdce   :  { %v5506_v43 = vadd.f32 %v21353_v12, %v5404_v50 }
 0xdcf   :  { %v5523_v61 = vmax.f32 %v5507_v21, 0.0 }
 0xdd0   :  { %v5522_v28 = vmax.f32 %v5506_v43, 0.0  ;;  %v16746_v30 = vpop.f32.mrb[76].mxu0 }
 0xdd1   :  { %5539 = vst.msk [vmem:[#allocation2 + $0x20] sm:$0xff] %vm333_vm5, %v5523_v61  ;;  %v5509_v31 = vadd.f32 %v16746_v30, %v21353_v12  ;;  %v5414_v35 = vpop.f32.mrb[77].mxu0 }
 0xdd2   :  { %5538 = vst.msk [vmem:[#allocation2 + $0x18] sm:$0xff] %vm333_vm5, %v5522_v28  ;;  %v5508_v60 = vadd.f32 %v21353_v12, %v5414_v35 }
 0xdd3   :  { %v5525_v42 = vmax.f32 %v5509_v31, 0.0 }
 0xdd4   :  { %v5524_v32 = vmax.f32 %v5508_v60, 0.0  ;;  %v16749_v48 = vpop.f32.mrb[78].mxu0 }
 0xdd5   :  { %5541 = vst.msk [vmem:[#allocation2 + $0x30] sm:$0xff] %vm333_vm5, %v5525_v42  ;;  %v5511_v33 = vadd.f32 %v16749_v48, %v21353_v12  ;;  %v5424_v25 = vpop.f32.mrb[79].mxu0 }
 0xdd6   :  { %5540 = vst.msk [vmem:[#allocation2 + $0x28] sm:$0xff] %vm333_vm5, %v5524_v32  ;;  %v5510_v53 = vadd.f32 %v21353_v12, %v5424_v25 }
 0xdd7   :  { %v5527_v17 = vmax.f32 %v5511_v33, 0.0 }
 0xdd8   :  { %v5526_v23 = vmax.f32 %v5510_v53, 0.0  ;;  %v16752_v0 = vpop.f32.mrb[80].mxu0  ;;  %v21373_v20 = vld [vmem:[#allocation2 + $0x20] sm:$0xff] }
 0xdd9   :  { %5543 = vst.msk [vmem:[#allocation2 + $0x40] sm:$0xff] %vm333_vm5, %v5527_v17  ;;  %v5513_v34 = vadd.f32 %v16752_v0, %v21353_v12  ;;  %v5434_v10 = vpop.f32.mrb[81].mxu0  ;;  %v21367_v52 = vld [vmem:[#allocation2 + $0x18] sm:$0xff] }
 0xdda   :  { %5542 = vst.msk [vmem:[#allocation2 + $0x38] sm:$0xff] %vm333_vm5, %v5526_v23  ;;  %v5512_v27 = vadd.f32 %v21353_v12, %v5434_v10  ;;  %16776 = vmatprep.mubr.msk.f32.mxu1 %vm333_vm5, %v21367_v52 }
 0xddb   :  { %v5529_v3 = vmax.f32 %v5513_v34, 0.0  ;;  %16777 = vmatmul.mubr.msk.f32.gmra.mrb[76].mxu1 %vm333_vm5, %v21373_v20 }
 0xddc   :  { %v5528_v5 = vmax.f32 %v5512_v27, 0.0  ;;  %v16755_v47 = vpop.f32.mrb[82].mxu0  ;;  %v21385_v41 = vld [vmem:[#allocation2 + $0x30] sm:$0xff] }
 0xddd   :  { %5545 = vst.msk [vmem:[#allocation2 + $0x50] sm:$0xff] %vm333_vm5, %v5529_v3  ;;  %v5515_v40 = vadd.f32 %v16755_v47, %v21353_v12  ;;  %v5444_v6 = vpop.f32.mrb[83].mxu0  ;;  %v21379_v57 = vld [vmem:[#allocation2 + $0x28] sm:$0xff] }
 0xdde   :  { %5544 = vst.msk [vmem:[#allocation2 + $0x48] sm:$0xff] %vm333_vm5, %v5528_v5  ;;  %v5514_v39 = vadd.f32 %v21353_v12, %v5444_v6  ;;  %16779 = vmatprep.mubr.msk.f32.mxu1 %vm333_vm5, %v21379_v57 }
 0xddf   :  { %v5531_v21 = vmax.f32 %v5515_v40, 0.0  ;;  %16780 = vmatmul.mubr.msk.f32.gmra.mrb[78].mxu1 %vm333_vm5, %v21385_v41 }
 0xde0   :  { %v5530_v50 = vmax.f32 %v5514_v39, 0.0  ;;  %v16758_v43 = vpop.f32.mrb[84].mxu0  ;;  %v21397_v35 = vld [vmem:[#allocation2 + $0x40] sm:$0xff] }
 0xde1   :  { %5547 = vst.msk [vmem:[#allocation2 + $0x60] sm:$0xff] %vm333_vm5, %v5531_v21  ;;  %v5517_v61 = vadd.f32 %v16758_v43, %v21353_v12  ;;  %v5454_v28 = vpop.f32.mrb[85].mxu0  ;;  %v21391_v30 = vld [vmem:[#allocation2 + $0x38] sm:$0xff]  ;;  %v5554_v21 = vld [vmem:[#allocation2 + $0x7] sm:$0xff]  ;;  %v5555_v43 = vld [vmem:[#allocation2 + $0xf] sm:$0xff] }
 0xde2   :  { %5546 = vst.msk [vmem:[#allocation2 + $0x58] sm:$0xff] %vm333_vm5, %v5530_v50  ;;  %v5516_v31 = vadd.f32 %v21353_v12, %v5454_v28  ;;  %16782 = vmatprep.mubr.msk.f32.mxu1 %vm333_vm5, %v21391_v30  ;;  %v23945_v28 = vld [vmem:[#allocation15_spill] sm:$0xff] }
 0xde3   :  { %v5533_v60 = vmax.f32 %v5517_v61, 0.0  ;;  %16783 = vmatmul.mubr.msk.f32.gmra.mrb[80].mxu1 %vm333_vm5, %v21397_v35 }
 0xde4   :  { %v5532_v42 = vmax.f32 %v5516_v31, 0.0  ;;  %v16761_v32 = vpop.f32.mrb[86].mxu0  ;;  %v21409_v17 = vld [vmem:[#allocation2 + $0x50] sm:$0xff]  ;;  %v5570_v31 = vmul.f32 %v5554_v21, %v23945_v28 }
 0xde5   :  { %5549 = vst.msk [vmem:[#allocation2 + $0x70] sm:$0xff] %vm333_vm5, %v5533_v60  ;;  %v5519_v48 = vadd.f32 %v16761_v32, %v21353_v12  ;;  %v5464_v33 = vpop.f32.mrb[87].mxu0  ;;  %v21403_v25 = vld [vmem:[#allocation2 + $0x48] sm:$0xff]  ;;  %23938 = vst [vmem:[#allocation29_spill] sm:$0xff] %v21409_v17  ;;  %v14499_v60 = vld [vmem:[%s23601_s13 + $0x50] sm:$0xff] }
 0xde6   :  { %23937 = vst [vmem:[#allocation24_spill] sm:$0xff] %v21403_v25  ;;  %5548 = vst.msk [vmem:[#allocation2 + $0x68] sm:$0xff] %vm333_vm5, %v5532_v42  ;;  %v5518_v53 = vadd.f32 %v21353_v12, %v5464_v33  ;;  %16785 = vmatprep.mubr.msk.f32.mxu1 %vm333_vm5, %v21403_v25  ;;  %v14500_v42 = vld [vmem:[%s23601_s13 + $0x58] sm:$0xff]  ;;  %v21552_v25 = vld [vmem:[#allocation2 + $0x29] sm:$0xff] }
 0xde7   :  { %v5535_v23 = vmax.f32 %v5519_v48, 0.0  ;;  %16786 = vmatmul.mubr.msk.f32.gmra.mrb[82].mxu1 %vm333_vm5, %v21409_v17  ;;  %v21450_v32 = vld [vmem:[#allocation2 + $0x17] sm:$0xff]  ;;  %v5571_v48 = vmul.f32 %v5555_v43, %v20708_v2  ;;  %v18049_v33 = vpack.c.bf16 %v14500_v42, %v14499_v60  ;;  %v21486_v60 = vld [vmem:[#allocation2 + $0x47] sm:$0xff] }
 0xde8   :  { %v5534_v0 = vmax.f32 %v5518_v53, 0.0  ;;  %v16764_v34 = vpop.f32.mrb[88].mxu0  ;;  %v21421_v47 = vld [vmem:[#allocation2 + $0x60] sm:$0xff]  ;;  %v5572_v53 = vmul.f32 %v21450_v32, %v20710_v63  ;;  %v21476_v21 = vld [vmem:[#allocation2 + $0x37] sm:$0xff] }
 0xde9   :  { %5551 = vst.msk [vmem:[#allocation2 + $0x80] sm:$0xff] %vm333_vm5, %v5535_v23  ;;  %v5521_v10 = vadd.f32 %v16764_v34, %v21353_v12  ;;  %v5474_v27 = vpop.f32.mrb[89].mxu0  ;;  %v21415_v3 = vld [vmem:[#allocation2 + $0x58] sm:$0xff]  ;;  %23940 = vst [vmem:[#allocation38_spill] sm:$0xff] %v21421_v47  ;;  %v14518_v34 = vld [vmem:[%s23601_s13 + $0x68] sm:$0xff]  ;;  %v5576_v43 = vmul.f32 %v21476_v21, %v20718_v1 }
 0xdea   :  { %23939 = vst [vmem:[#allocation34_spill] sm:$0xff] %v21415_v3  ;;  %5550 = vst.msk [vmem:[#allocation2 + $0x78] sm:$0xff] %vm333_vm5, %v5534_v0  ;;  %v5520_v5 = vadd.f32 %v21353_v12, %v5474_v27  ;;  %16788 = vmatprep.mubr.msk.f32.mxu1 %vm333_vm5, %v21415_v3  ;;  %v21456_v23 = vld [vmem:[#allocation2 + $0x1f] sm:$0xff] }
 0xdeb   :  { %v5537_v40 = vmax.f32 %v5521_v10, 0.0  ;;  %16789 = vmatmul.mubr.msk.f32.gmra.mrb[84].mxu1 %vm333_vm5, %v21421_v47  ;;  %v14517_v0 = vld [vmem:[%s23601_s13 + $0x60] sm:$0xff]  ;;  %v5573_v27 = vmul.f32 %v21456_v23, %v20712_v14  ;;  %v14520_v47 = vld [vmem:[%s23601_s13 + $0x78] sm:$0xff] }
 0xdec   :  { %v5536_v6 = vmax.f32 %v5520_v5, 0.0  ;;  %v21431_v12 = vld [vmem:[#allocation2 + $0x70] sm:$0xff]  ;;  %v21465_v10 = vld [vmem:[#allocation2 + $0x27] sm:$0xff]  ;;  %v18053_v5 = vpack.c.bf16 %v14518_v34, %v14517_v0 }
 0xded   :  { %5553 = vst.msk [vmem:[#allocation2 + $0x90] sm:$0xff] %vm333_vm5, %v5537_v40  ;;  %v21426_v39 = vld [vmem:[#allocation2 + $0x68] sm:$0xff]  ;;  %23942 = vst [vmem:[#allocation18_spill] sm:$0xff] %v21431_v12  ;;  %v5574_v40 = vmul.f32 %v21465_v10, %v20714_v44  ;;  %v14537_v17 = vld [vmem:[%s23601_s13 + $0x80] sm:$0xff] }
 0xdee   :  { %23941 = vst [vmem:[#allocation39_spill] sm:$0xff] %v21426_v39  ;;  %5552 = vst.msk [vmem:[#allocation2 + $0x88] sm:$0xff] %vm333_vm5, %v5536_v6  ;;  %16791 = vmatprep.mubr.msk.f32.mxu1 %vm333_vm5, %v21426_v39  ;;  %v21473_v6 = vld [vmem:[#allocation2 + $0x2f] sm:$0xff] }
 0xdef   :  { %16792 = vmatmul.mubr.msk.f32.gmra.mrb[86].mxu1 %vm333_vm5, %v21431_v12  ;;  %v5998_v39 = vld [vmem:[#allocation2 + $0x11] sm:$0xff] }
 0xdf0   :  { %v21439_v61 = vld [vmem:[#allocation2 + $0x80] sm:$0xff] }
 0xdf1   :  { %v21435_v50 = vld [vmem:[#allocation2 + $0x78] sm:$0xff]  ;;  %23944 = vst [vmem:[#allocation20_spill] sm:$0xff] %v21439_v61 }
 0xdf2   :  { %23943 = vst [vmem:[#allocation45_spill] sm:$0xff] %v21435_v50  ;;  %16794 = vmatprep.mubr.msk.f32.mxu1 %vm333_vm5, %v21435_v50  ;;  %v5997_v50 = vld [vmem:[#allocation2 + $0x9] sm:$0xff] }
 0xdf3   :  { %16795 = vmatmul.mubr.msk.f32.gmra.mrb[88].mxu1 %vm333_vm5, %v21439_v61  ;;  %v21523_v61 = vld [vmem:[#allocation2 + $0x7f] sm:$0xff]  ;;  %v6013_v12 = vmul.f32 %v5997_v50, %v23921_v49 }
 0xdf4   :  { %16805 = vmatprep.mubr.msk.f32.mxu1 %vm333_vm5, %v5570_v31  ;;  %v21483_v31 = vld [vmem:[#allocation2 + $0x3f] sm:$0xff] }
 0xdf5   :  { %v5577_v42 = vmul.f32 %v21483_v31, %v20731_v38  ;;  %v21543_v49 = vld [vmem:[#allocation2 + $0x21] sm:$0xff] }
 0xdf7   :  { %16806 = vmatmul.mubr.msk.f32.vlgmr.msra.gmra.mrb[74].mxu1 %vm333_vm5, %v5571_v48  ;;  %v5578_v48 = vmul.f32 %v21486_v60, %v20736_v62 }
 0xdf8   :  { %16808 = vmatprep.mubr.msk.f32.mxu1 %vm333_vm5, %v5572_v53  ;;  %18048 = vmatpush3.bf16.msra.mxu1 %v21347_v4  ;;  %v5575_v4 = vmul.f32 %v21473_v6, %v20716_v22  ;;  %v21496_v53 = vld [vmem:[#allocation2 + $0x57] sm:$0xff] }
 0xdf9   :  { %18050 = vmatprep.subr.bf16.mxu1 %v18049_v33  ;;  %v5580_v34 = vmul.f32 %v21496_v53, %v20744_v19 }
 0xdfb   :  { %16809 = vmatmul.mubr.msk.f32.gmra.mrb[76].mxu1 %vm333_vm5, %v5573_v27  ;;  %v21503_v27 = vld [vmem:[#allocation2 + $0x5f] sm:$0xff] }
 0xdfc   :  { %16811 = vmatprep.mubr.msk.f32.mxu1 %vm333_vm5, %v5574_v40  ;;  %18052 = vmatpush3.bf16.msra.mxu1 %v18049_v33  ;;  %v21493_v33 = vld [vmem:[#allocation2 + $0x4f] sm:$0xff]  ;;  %v21506_v40 = vld [vmem:[#allocation2 + $0x67] sm:$0xff] }
 0xdfd   :  { %18054 = vmatprep.subr.bf16.mxu1 %v18053_v5  ;;  %v5579_v0 = vmul.f32 %v21493_v33, %v20741_v59 }
 0xdff   :  { %16812 = vmatmul.mubr.msk.f32.gmra.mrb[78].mxu1 %vm333_vm5, %v5575_v4  ;;  %v5581_v4 = vmul.f32 %v21503_v27, %v20767_v24 }
 0xe00   :  { %16814 = vmatprep.mubr.msk.f32.mxu1 %vm333_vm5, %v5576_v43  ;;  %v5582_v43 = vmul.f32 %v21506_v40, %v20773_v11 }
 0xe03   :  { %16815 = vmatmul.mubr.msk.f32.gmra.mrb[80].mxu1 %vm333_vm5, %v5577_v42  ;;  %v21513_v42 = vld [vmem:[#allocation2 + $0x6f] sm:$0xff] }
 0xe04   :  { %16817 = vmatprep.mubr.msk.f32.mxu1 %vm333_vm5, %v5578_v48  ;;  %v21516_v48 = vld [vmem:[#allocation2 + $0x77] sm:$0xff] }
 0xe07   :  { %16818 = vmatmul.mubr.msk.f32.gmra.mrb[82].mxu1 %vm333_vm5, %v5579_v0  ;;  %v5583_v0 = vmul.f32 %v21513_v42, %v20791_v56 }
 0xe08   :  { %16820 = vmatprep.mubr.msk.f32.mxu1 %vm333_vm5, %v5580_v34  ;;  %v5584_v34 = vmul.f32 %v21516_v48, %v20794_v46 }
 0xe0b   :  { %16821 = vmatmul.mubr.msk.f32.gmra.mrb[84].mxu1 %vm333_vm5, %v5581_v4  ;;  %v5585_v4 = vmul.f32 %v21523_v61, %v20808_v55 }
 0xe0c   :  { %16823 = vmatprep.mubr.msk.f32.mxu1 %vm333_vm5, %v5582_v43  ;;  %v14519_v43 = vld [vmem:[%s23601_s13 + $0x70] sm:$0xff] }
 0xe0d   :  { %v18057_v3 = vpack.c.bf16 %v14520_v47, %v14519_v43  ;;  %v6016_v47 = vmul.f32 %v21543_v49, %v23924_v13  ;;  %v21559_v43 = vld [vmem:[#allocation2 + $0x31] sm:$0xff] }
 0xe0f   :  { %16824 = vmatmul.mubr.msk.f32.gmra.mrb[86].mxu1 %vm333_vm5, %v5583_v0  ;;  %v21537_v0 = vld [vmem:[#allocation2 + $0x19] sm:$0xff] }
 0xe10   :  { %16826 = vmatprep.mubr.msk.f32.mxu1 %vm333_vm5, %v5584_v34  ;;  %v6014_v34 = vmul.f32 %v5998_v39, %v23922_v36  ;;  %v6015_v50 = vmul.f32 %v21537_v0, %v23923_v9  ;;  %v21562_v9 = vld [vmem:[#allocation2 + $0x39] sm:$0xff] }
 0xe13   :  { %16827 = vmatmul.mubr.msk.f32.gmra.mrb[88].mxu1 %vm333_vm5, %v5585_v4  ;;  %v14538_v4 = vld [vmem:[%s23601_s13 + $0x88] sm:$0xff] }
 0xe14   :  { %16837 = vmatprep.mubr.msk.f32.mxu1 %vm333_vm5, %v6013_v12  ;;  %v18061_v39 = vpack.c.bf16 %v14538_v4, %v14537_v17  ;;  %v6017_v12 = vmul.f32 %v21552_v25, %v23926_v54  ;;  %v21569_v17 = vld [vmem:[#allocation2 + $0x41] sm:$0xff] }
 0xe15   :  { %v6020_v4 = vmul.f32 %v21569_v17, %v23930_v29  ;;  %v21592_v29 = vld [vmem:[#allocation2 + $0x69] sm:$0xff] }
 0xe17   :  { %16838 = vmatmul.mubr.msk.f32.vlgmr.msra.gmra.mrb[74].mxu1 %vm333_vm5, %v6014_v34  ;;  %v6019_v34 = vmul.f32 %v21562_v9, %v23929_v8  ;;  %v21589_v8 = vld [vmem:[#allocation2 + $0x61] sm:$0xff] }
 0xe18   :  { %16840 = vmatprep.mubr.msk.f32.mxu1 %vm333_vm5, %v6015_v50  ;;  %18056 = vmatpush3.bf16.msra.mxu1 %v18053_v5  ;;  %v6018_v5 = vmul.f32 %v21559_v43, %v23928_v16  ;;  %v21572_v50 = vld [vmem:[#allocation2 + $0x49] sm:$0xff] }
 0xe19   :  { %18058 = vmatprep.subr.bf16.mxu1 %v18057_v3 }
 0xe1b   :  { %16841 = vmatmul.mubr.msk.f32.gmra.mrb[76].mxu1 %vm333_vm5, %v6016_v47  ;;  %v21579_v47 = vld [vmem:[#allocation2 + $0x51] sm:$0xff] }
 0xe1c   :  { %16843 = vmatprep.mubr.msk.f32.mxu1 %vm333_vm5, %v6017_v12  ;;  %18060 = vmatpush3.bf16.msra.mxu1 %v18057_v3  ;;  %v6021_v3 = vmul.f32 %v21572_v50, %v23932_v26  ;;  %v21582_v12 = vld [vmem:[#allocation2 + $0x59] sm:$0xff]  ;;  %v21599_v26 = vld [vmem:[#allocation2 + $0x71] sm:$0xff] }
 0xe1d   :  { %18062 = vmatprep.subr.bf16.mxu1 %v18061_v39 }
 0xe1f   :  { %16844 = vmatmul.mubr.msk.f32.gmra.mrb[78].mxu1 %vm333_vm5, %v6018_v5  ;;  %v6022_v5 = vmul.f32 %v21579_v47, %v23933_v45  ;;  %v21602_v45 = vld [vmem:[#allocation2 + $0x79] sm:$0xff] }
 0xe20   :  { %16846 = vmatprep.mubr.msk.f32.mxu1 %vm333_vm5, %v6019_v34  ;;  %v6023_v34 = vmul.f32 %v21582_v12, %v23934_v18  ;;  %v21609_v18 = vld [vmem:[#allocation2 + $0x81] sm:$0xff] }
 0xe23   :  { %16847 = vmatmul.mubr.msk.f32.gmra.mrb[80].mxu1 %vm333_vm5, %v6020_v4  ;;  %v6024_v4 = vmul.f32 %v21589_v8, %v23914_v51 }
 0xe24   :  { %16849 = vmatprep.mubr.msk.f32.mxu1 %vm333_vm5, %v6021_v3  ;;  %v6025_v3 = vmul.f32 %v21592_v29, %v23916_v7  ;;  %v6028_v7 = vmul.f32 %v21609_v18, %v23936_v15  ;;  %v6261_v15 = vmul.f32 %v21465_v10, %v20710_v63 }
 0xe27   :  { %16850 = vmatmul.mubr.msk.f32.gmra.mrb[82].mxu1 %vm333_vm5, %v6022_v5  ;;  %v6026_v5 = vmul.f32 %v21599_v26, %v23917_v58 }
 0xe28   :  { %16852 = vmatprep.mubr.msk.f32.mxu1 %vm333_vm5, %v6023_v34  ;;  %v6027_v34 = vmul.f32 %v21602_v45, %v23935_v37  ;;  %v14540_v37 = vld [vmem:[%s23601_s13 + $0x98] sm:$0xff] }
 0xe2b   :  { %16853 = vmatmul.mubr.msk.f32.gmra.mrb[84].mxu1 %vm333_vm5, %v6024_v4  ;;  %v6259_v4 = vmul.f32 %v21450_v32, %v23945_v28  ;;  %v14557_v32 = vld [vmem:[%s23601_s13 + $0xa0] sm:$0xff]  ;;  %v14558_v28 = vld [vmem:[%s23601_s13 + $0xa8] sm:$0xff] }
 0xe2c   :  { %16855 = vmatprep.mubr.msk.f32.mxu1 %vm333_vm5, %v6025_v3  ;;  %v14539_v3 = vld [vmem:[%s23601_s13 + $0x90] sm:$0xff] }
 0xe2f   :  { %16856 = vmatmul.mubr.msk.f32.gmra.mrb[86].mxu1 %vm333_vm5, %v6026_v5  ;;  %v6260_v5 = vmul.f32 %v21456_v23, %v20708_v2  ;;  %v6263_v23 = vmul.f32 %v21476_v21, %v20714_v44 }
 0xe30   :  { %16858 = vmatprep.mubr.msk.f32.mxu1 %vm333_vm5, %v6027_v34  ;;  %v18065_v34 = vpack.c.bf16 %v14540_v37, %v14539_v3  ;;  %v18069_v37 = vpack.c.bf16 %v14558_v28, %v14557_v32  ;;  %v6266_v28 = vmul.f32 %v21493_v33, %v20731_v38  ;;  %v6268_v3 = vmul.f32 %v21503_v27, %v20741_v59 }
 0xe31   :  { %v6271_v32 = vmul.f32 %v21516_v48, %v20773_v11 }
 0xe33   :  { %16859 = vmatmul.mubr.msk.f32.gmra.mrb[88].mxu1 %vm333_vm5, %v6028_v7  ;;  %v6262_v7 = vmul.f32 %v21473_v6, %v20712_v14 }
 0xe34   :  { %16869 = vmatprep.mubr.msk.f32.mxu1 %vm333_vm5, %v6259_v4  ;;  %v6264_v4 = vmul.f32 %v21483_v31, %v20716_v22 }
 0xe37   :  { %16870 = vmatmul.mubr.msk.f32.vlgmr.msra.gmra.mrb[74].mxu1 %vm333_vm5, %v6260_v5  ;;  %v6269_v5 = vmul.f32 %v21506_v40, %v20744_v19 }
 0xe38   :  { %16872 = vmatprep.mubr.msk.f32.mxu1 %vm333_vm5, %v6261_v15  ;;  %18064 = vmatpush3.bf16.msra.mxu1 %v18061_v39  ;;  %v6265_v15 = vmul.f32 %v21486_v60, %v20718_v1  ;;  %v6267_v39 = vmul.f32 %v21496_v53, %v20736_v62 }
 0xe39   :  { %18066 = vmatprep.subr.bf16.mxu1 %v18065_v34 }
 0xe3b   :  { %16873 = vmatmul.mubr.msk.f32.gmra.mrb[76].mxu1 %vm333_vm5, %v6262_v7  ;;  %v21666_v7 = vld [vmem:[#allocation2 + $0x87] sm:$0xff] }
 0xe3c   :  { %16875 = vmatprep.mubr.msk.f32.mxu1 %vm333_vm5, %v6263_v23  ;;  %18068 = vmatpush3.bf16.msra.mxu1 %v18065_v34  ;;  %v6270_v34 = vmul.f32 %v21513_v42, %v20767_v24  ;;  %v6272_v23 = vmul.f32 %v21523_v61, %v20791_v56 }
 0xe3d   :  { %18070 = vmatprep.subr.bf16.mxu1 %v18069_v37 }
 0xe3f   :  { %16876 = vmatmul.mubr.msk.f32.gmra.mrb[78].mxu1 %vm333_vm5, %v6264_v4  ;;  %v6273_v4 = vmul.f32 %v21666_v7, %v20794_v46 }
 0xe40   :  { %16878 = vmatprep.mubr.msk.f32.mxu1 %vm333_vm5, %v6265_v15  ;;  %v21673_v15 = vld [vmem:[#allocation2 + $0x8f] sm:$0xff] }
 0xe43   :  { %16879 = vmatmul.mubr.msk.f32.gmra.mrb[80].mxu1 %vm333_vm5, %v6266_v28  ;;  %v6274_v28 = vmul.f32 %v21673_v15, %v20808_v55 }
 0xe44   :  { %16881 = vmatprep.mubr.msk.f32.mxu1 %vm333_vm5, %v6267_v39  ;;  %v14559_v39 = vld [vmem:[%s23601_s13 + $0xb0] sm:$0xff] }
 0xe47   :  { %16882 = vmatmul.mubr.msk.f32.gmra.mrb[82].mxu1 %vm333_vm5, %v6268_v3  ;;  %v14560_v3 = vld [vmem:[%s23601_s13 + $0xb8] sm:$0xff] }
 0xe48   :  { %16884 = vmatprep.mubr.msk.f32.mxu1 %vm333_vm5, %v6269_v5  ;;  %v18073_v5 = vpack.c.bf16 %v14560_v3, %v14559_v39  ;;  %v23951_v39 = vld [vmem:[#allocation18_spill] sm:$0xff]  ;;  %v23952_v3 = vld [vmem:[#allocation45_spill] sm:$0xff] }
 0xe4b   :  { %16885 = vmatmul.mubr.msk.f32.gmra.mrb[84].mxu1 %vm333_vm5, %v6270_v34  ;;  %v14577_v34 = vld [vmem:[%s23601_s13 + $0xc0] sm:$0xff] }
 0xe4c   :  { %16887 = vmatprep.mubr.msk.f32.mxu1 %vm333_vm5, %v6271_v32  ;;  %v14578_v32 = vld [vmem:[%s23601_s13 + $0xc8] sm:$0xff] }
 0xe4f   :  { %16888 = vmatmul.mubr.msk.f32.gmra.mrb[86].mxu1 %vm333_vm5, %v6272_v23  ;;  %v18077_v23 = vpack.c.bf16 %v14578_v32, %v14577_v34  ;;  %v21720_v34 = vld [vmem:[#allocation2 + $0x88] sm:$0xff]  ;;  %v21724_v32 = vld [vmem:[#allocation2 + $0x90] sm:$0xff] }
 0xe50   :  { %16890 = vmatprep.mubr.msk.f32.mxu1 %vm333_vm5, %v6273_v4  ;;  %v23949_v4 = vld [vmem:[#allocation38_spill] sm:$0xff]  ;;  %23954 = vst [vmem:[#allocation22_spill] sm:$0xff] %v21720_v34 }
 0xe53   :  { %16891 = vmatmul.mubr.msk.f32.gmra.mrb[88].mxu1 %vm333_vm5, %v6274_v28  ;;  %v23950_v28 = vld [vmem:[#allocation39_spill] sm:$0xff] }
 0xe54   :  { %16901 = vmatprep.mubr.msk.f32.mxu1 %vm333_vm5, %v21367_v52  ;;  %v23946_v52 = vld [vmem:[#allocation24_spill] sm:$0xff] }
 0xe57   :  { %16902 = vmatmul.mubr.msk.f32.vlgmr.msra.gmra.mrb[74].mxu1 %vm333_vm5, %v21373_v20  ;;  %v23947_v20 = vld [vmem:[#allocation29_spill] sm:$0xff] }
 0xe58   :  { %16904 = vmatprep.mubr.msk.f32.mxu1 %vm333_vm5, %v21379_v57  ;;  %18072 = vmatpush3.bf16.msra.mxu1 %v18069_v37  ;;  %v23948_v37 = vld [vmem:[#allocation34_spill] sm:$0xff] }
 0xe59   :  { %18074 = vmatprep.subr.bf16.mxu1 %v18073_v5 }
 0xe5b   :  { %16905 = vmatmul.mubr.msk.f32.gmra.mrb[76].mxu1 %vm333_vm5, %v21385_v41 }
 0xe5c   :  { %16907 = vmatprep.mubr.msk.f32.mxu1 %vm333_vm5, %v21391_v30  ;;  %18076 = vmatpush3.bf16.msra.mxu1 %v18073_v5  ;;  %v23953_v5 = vld [vmem:[#allocation20_spill] sm:$0xff] }
 0xe5d   :  { %18078 = vmatprep.subr.bf16.mxu1 %v18077_v23 }
 0xe5f   :  { %16908 = vmatmul.mubr.msk.f32.gmra.mrb[78].mxu1 %vm333_vm5, %v21397_v35 }
 0xe60   :  { %16910 = vmatprep.mubr.msk.f32.mxu1 %vm333_vm5, %v23946_v52 }
 0xe63   :  { %16911 = vmatmul.mubr.msk.f32.gmra.mrb[80].mxu1 %vm333_vm5, %v23947_v20  ;;  %v14598_v20 = vld [vmem:[%s23601_s13 + $0xe8] sm:$0xff] }
 0xe64   :  { %16913 = vmatprep.mubr.msk.f32.mxu1 %vm333_vm5, %v23948_v37 }
 0xe67   :  { %16914 = vmatmul.mubr.msk.f32.gmra.mrb[82].mxu1 %vm333_vm5, %v23949_v4  ;;  %v23955_v4 = vld [vmem:[#allocation19_spill] sm:$0xff] }
 0xe68   :  { %16916 = vmatprep.mubr.msk.f32.mxu1 %vm333_vm5, %v23950_v28  ;;  %v6735_v37 = vmul.f32 %v21537_v0, %v23955_v4  ;;  %v23956_v28 = vld [vmem:[#allocation21_spill] sm:$0xff] }
 0xe69   :  { %v6737_v0 = vmul.f32 %v21552_v25, %v23956_v28  ;;  %v14597_v4 = vld [vmem:[%s23601_s13 + $0xe0] sm:$0xff] }
 0xe6b   :  { %16917 = vmatmul.mubr.msk.f32.gmra.mrb[84].mxu1 %vm333_vm5, %v23951_v39  ;;  %v14579_v39 = vld [vmem:[%s23601_s13 + $0xd0] sm:$0xff] }
 0xe6c   :  { %16919 = vmatprep.mubr.msk.f32.mxu1 %vm333_vm5, %v23952_v3  ;;  %v14580_v3 = vld [vmem:[%s23601_s13 + $0xd8] sm:$0xff] }
 0xe6f   :  { %16920 = vmatmul.mubr.msk.f32.gmra.mrb[86].mxu1 %vm333_vm5, %v23953_v5  ;;  %v18081_v5 = vpack.c.bf16 %v14580_v3, %v14579_v39  ;;  %v6739_v39 = vmul.f32 %v21562_v9, %v23926_v54  ;;  %v6740_v3 = vmul.f32 %v21569_v17, %v23928_v16  ;;  %v23961_v16 = vld [vmem:[#allocation32_spill] sm:$0xff] }
 0xe70   :  { %16922 = vmatprep.mubr.msk.f32.mxu1 %vm333_vm5, %v21720_v34  ;;  %v6736_v34 = vmul.f32 %v21543_v49, %v23922_v36  ;;  %v6738_v49 = vmul.f32 %v21559_v43, %v23924_v13 }
 0xe73   :  { %16923 = vmatmul.mubr.msk.f32.gmra.mrb[88].mxu1 %vm333_vm5, %v21724_v32 }
 0xe74   :  { %16933 = vmatprep.mubr.msk.f32.mxu1 %vm333_vm5, %v6735_v37  ;;  %v18085_v37 = vpack.c.bf16 %v14598_v20, %v14597_v4  ;;  %v23958_v20 = vld [vmem:[#allocation27_spill] sm:$0xff] }
 0xe75   :  { %v6742_v4 = vmul.f32 %v21579_v47, %v23958_v20 }
 0xe77   :  { %16934 = vmatmul.mubr.msk.f32.vlgmr.msra.gmra.mrb[74].mxu1 %vm333_vm5, %v6736_v34  ;;  %v23957_v34 = vld [vmem:[#allocation26_spill] sm:$0xff] }
 0xe78   :  { %16936 = vmatprep.mubr.msk.f32.mxu1 %vm333_vm5, %v6737_v0  ;;  %18080 = vmatpush3.bf16.msra.mxu1 %v18077_v23  ;;  %v6741_v23 = vmul.f32 %v21572_v50, %v23957_v34  ;;  %v23959_v0 = vld [vmem:[#allocation28_spill] sm:$0xff]  ;;  %v6745_v34 = vmul.f32 %v21592_v29, %v23961_v16  ;;  %v23963_v16 = vld [vmem:[#allocation41_spill] sm:$0xff] }
 0xe79   :  { %18082 = vmatprep.subr.bf16.mxu1 %v18081_v5 }
 0xe7b   :  { %16937 = vmatmul.mubr.msk.f32.gmra.mrb[76].mxu1 %vm333_vm5, %v6738_v49  ;;  %v6743_v49 = vmul.f32 %v21582_v12, %v23959_v0 }
 0xe7c   :  { %16939 = vmatprep.mubr.msk.f32.mxu1 %vm333_vm5, %v6739_v39  ;;  %18084 = vmatpush3.bf16.msra.mxu1 %v18081_v5  ;;  %v23960_v5 = vld [vmem:[#allocation31_spill] sm:$0xff] }
 0xe7d   :  { %18086 = vmatprep.subr.bf16.mxu1 %v18085_v37  ;;  %v6744_v39 = vmul.f32 %v21589_v8, %v23960_v5  ;;  %v21785_v5 = vld [vmem:[#allocation2 + $0x91] sm:$0xff] }
 0xe7f   :  { %16940 = vmatmul.mubr.msk.f32.gmra.mrb[78].mxu1 %vm333_vm5, %v6740_v3  ;;  %v6746_v3 = vmul.f32 %v21599_v26, %v23914_v51 }
 0xe80   :  { %16942 = vmatprep.mubr.msk.f32.mxu1 %vm333_vm5, %v6741_v23  ;;  %v23962_v23 = vld [vmem:[#allocation36_spill] sm:$0xff] }
 0xe81   :  { %v6747_v0 = vmul.f32 %v21602_v45, %v23962_v23 }
 0xe83   :  { %16943 = vmatmul.mubr.msk.f32.gmra.mrb[80].mxu1 %vm333_vm5, %v6742_v4  ;;  %v21778_v4 = vld [vmem:[#allocation2 + $0x89] sm:$0xff] }
 0xe84   :  { %16945 = vmatprep.mubr.msk.f32.mxu1 %vm333_vm5, %v6743_v49  ;;  %v6748_v49 = vmul.f32 %v21609_v18, %v23917_v58 }
 0xe87   :  { %16946 = vmatmul.mubr.msk.f32.gmra.mrb[82].mxu1 %vm333_vm5, %v6744_v39  ;;  %v6749_v39 = vmul.f32 %v21778_v4, %v23963_v16  ;;  %v14600_v16 = vld [vmem:[%s23601_s13 + $0xf8] sm:$0xff] }
 0xe88   :  { %16948 = vmatprep.mubr.msk.f32.mxu1 %vm333_vm5, %v6745_v34  ;;  %v23964_v34 = vld [vmem:[#allocation44_spill] sm:$0xff] }
 0xe89   :  { %v6750_v23 = vmul.f32 %v21785_v5, %v23964_v34  ;;  %v6983_v34 = vmul.f32 %v21476_v21, %v20710_v63  ;;  %v6986_v21 = vmul.f32 %v21493_v33, %v20716_v22  ;;  %v6990_v33 = vmul.f32 %v21513_v42, %v20741_v59 }
 0xe8a   :  { %v6994_v42 = vmul.f32 %v21673_v15, %v20791_v56 }
 0xe8b   :  { %16949 = vmatmul.mubr.msk.f32.gmra.mrb[84].mxu1 %vm333_vm5, %v6746_v3  ;;  %v23965_v3 = vld [vmem:[#allocation15_spill] sm:$0xff] }
 0xe8c   :  { %16951 = vmatprep.mubr.msk.f32.mxu1 %vm333_vm5, %v6747_v0  ;;  %v6981_v51 = vmul.f32 %v21465_v10, %v23965_v3  ;;  %v14599_v0 = vld [vmem:[%s23601_s13 + $0xf0] sm:$0xff]  ;;  %v14617_v10 = vld [vmem:[%s23601_s13 + $0x100] sm:$0xff]  ;;  %v14618_v3 = vld [vmem:[%s23601_s13 + $0x108] sm:$0xff] }
 0xe8f   :  { %16952 = vmatmul.mubr.msk.f32.gmra.mrb[86].mxu1 %vm333_vm5, %v6748_v49  ;;  %v6982_v49 = vmul.f32 %v21473_v6, %v20708_v2  ;;  %v6985_v6 = vmul.f32 %v21486_v60, %v20714_v44  ;;  %v6989_v60 = vmul.f32 %v21506_v40, %v20736_v62  ;;  %v6993_v40 = vmul.f32 %v21666_v7, %v20773_v11  ;;  %v14619_v7 = vld [vmem:[%s23601_s13 + $0x110] sm:$0xff] }
 0xe90   :  { %16954 = vmatprep.mubr.msk.f32.mxu1 %vm333_vm5, %v6749_v39  ;;  %v18089_v39 = vpack.c.bf16 %v14600_v16, %v14599_v0  ;;  %v18093_v16 = vpack.c.bf16 %v14618_v3, %v14617_v10  ;;  %v14620_v3 = vld [vmem:[%s23601_s13 + $0x118] sm:$0xff]  ;;  %v23966_v0 = vld [vmem:[#allocation29_spill] sm:$0xff] }
 0xe91   :  { %v18097_v15 = vpack.c.bf16 %v14620_v3, %v14619_v7  ;;  %v7225_v10 = vld [vmem:[#allocation2 + $0x98] sm:$0xff]  ;;  %v2966_v7 = vld [vmem:[%s23604_s17 + $0x8] sm:$0xff] }
 0xe93   :  { %16955 = vmatmul.mubr.msk.f32.gmra.mrb[88].mxu1 %vm333_vm5, %v6750_v23  ;;  %v6979_v23 = vld [vmem:[#allocation2 + $0x97] sm:$0xff] }
 0xe94   :  { %16965 = vmatprep.mubr.msk.f32.mxu1 %vm333_vm5, %v6981_v51  ;;  %v6984_v51 = vmul.f32 %v21483_v31, %v20712_v14  ;;  %v6988_v31 = vmul.f32 %v21503_v27, %v20731_v38  ;;  %v6992_v27 = vmul.f32 %v21523_v61, %v20767_v24 }
 0xe97   :  { %16966 = vmatmul.mubr.msk.f32.vlgmr.msra.gmra.mrb[74].mxu1 %vm333_vm5, %v6982_v49  ;;  %v23968_v49 = vld [vmem:[#allocation38_spill] sm:$0xff] }
 0xe98   :  { %16968 = vmatprep.mubr.msk.f32.mxu1 %vm333_vm5, %v6983_v34  ;;  %18088 = vmatpush3.bf16.msra.mxu1 %v18085_v37  ;;  %v6987_v37 = vmul.f32 %v21496_v53, %v20718_v1  ;;  %v6991_v53 = vmul.f32 %v21516_v48, %v20744_v19  ;;  %v6995_v48 = vmul.f32 %v6979_v23, %v20794_v46  ;;  %v6980_v34 = vld [vmem:[#allocation2 + $0x9f] sm:$0xff] }
 0xe99   :  { %18090 = vmatprep.subr.bf16.mxu1 %v18089_v39  ;;  %v6996_v61 = vmul.f32 %v6980_v34, %v20808_v55  ;;  %v23981_v23 = vld [vmem:[#allocation36_spill] sm:$0xff]  ;;  %v7456_v34 = vld [vmem:[#allocation2 + $0xa1] sm:$0xff] }
 0xe9b   :  { %16969 = vmatmul.mubr.msk.f32.gmra.mrb[76].mxu1 %vm333_vm5, %v6984_v51  ;;  %v7226_v51 = vld [vmem:[#allocation2 + $0xa0] sm:$0xff] }
 0xe9c   :  { %16971 = vmatprep.mubr.msk.f32.mxu1 %vm333_vm5, %v6985_v6  ;;  %18092 = vmatpush3.bf16.msra.mxu1 %v18089_v39  ;;  %v23973_v39 = vld [vmem:[#allocation22_spill] sm:$0xff] }
 0xe9d   :  { %18094 = vmatprep.subr.bf16.mxu1 %v18093_v16 }
 0xe9f   :  { %16972 = vmatmul.mubr.msk.f32.gmra.mrb[78].mxu1 %vm333_vm5, %v6986_v21  ;;  %v7458_v21 = vmul.f32 %v21559_v43, %v23922_v36 }
 0xea0   :  { %16974 = vmatprep.mubr.msk.f32.mxu1 %vm333_vm5, %v6987_v37  ;;  %v7459_v37 = vmul.f32 %v21562_v9, %v23956_v28 }
 0xea3   :  { %16975 = vmatmul.mubr.msk.f32.gmra.mrb[80].mxu1 %vm333_vm5, %v6988_v31  ;;  %v23975_v31 = vld [vmem:[#allocation25_spill] sm:$0xff] }
 0xea4   :  { %16977 = vmatprep.mubr.msk.f32.mxu1 %vm333_vm5, %v6989_v60  ;;  %v7462_v43 = vmul.f32 %v21579_v47, %v23975_v31  ;;  %v23976_v60 = vld [vmem:[#allocation26_spill] sm:$0xff] }
 0xea5   :  { %v7463_v9 = vmul.f32 %v21582_v12, %v23976_v60 }
 0xea7   :  { %16978 = vmatmul.mubr.msk.f32.gmra.mrb[82].mxu1 %vm333_vm5, %v6990_v33  ;;  %v23977_v33 = vld [vmem:[#allocation28_spill] sm:$0xff] }
 0xea8   :  { %16980 = vmatprep.mubr.msk.f32.mxu1 %vm333_vm5, %v6991_v53  ;;  %v23978_v53 = vld [vmem:[#allocation31_spill] sm:$0xff] }
 0xea9   :  { %v7466_v47 = vmul.f32 %v21599_v26, %v23978_v53  ;;  %v7470_v26 = vmul.f32 %v21785_v5, %v23917_v58  ;;  %v2965_v5 = vld [vmem:[%s23604_s17] sm:$0xff] }
 0xeaa   :  { %v21945_v3 = vpack.c.bf16 %v2966_v7, %v2965_v5  ;;  %v23993_v7 = vld [vmem:[#allocation7_spill] sm:$0xff] }
 0xeab   :  { %16981 = vmatmul.mubr.msk.f32.gmra.mrb[84].mxu1 %vm333_vm5, %v6992_v27  ;;  %v23979_v27 = vld [vmem:[#allocation32_spill] sm:$0xff] }
 0xeac   :  { %16983 = vmatprep.mubr.msk.f32.mxu1 %vm333_vm5, %v6993_v40  ;;  %v7467_v12 = vmul.f32 %v21602_v45, %v23979_v27  ;;  %v23980_v40 = vld [vmem:[#allocation35_spill] sm:$0xff]  ;;  %23984 = vst [vmem:[#allocation30_spill] sm:$0xff] %v21945_v3 }
 0xeaf   :  { %16984 = vmatmul.mubr.msk.f32.gmra.mrb[86].mxu1 %vm333_vm5, %v6994_v42  ;;  %v7455_v42 = vld [vmem:[#allocation2 + $0x99] sm:$0xff] }
 0xeb0   :  { %16986 = vmatprep.mubr.msk.f32.mxu1 %vm333_vm5, %v6995_v48  ;;  %v23982_v48 = vld [vmem:[#allocation41_spill] sm:$0xff] }
 0xeb1   :  { %v7471_v45 = vmul.f32 %v7455_v42, %v23982_v48 }
 0xeb3   :  { %16987 = vmatmul.mubr.msk.f32.gmra.mrb[88].mxu1 %vm333_vm5, %v6996_v61  ;;  %v23983_v61 = vld [vmem:[#allocation44_spill] sm:$0xff] }
 0xeb4   :  { %16997 = vmatprep.mubr.msk.f32.mxu1 %vm333_vm5, %v21379_v57  ;;  %v23967_v57 = vld [vmem:[#allocation34_spill] sm:$0xff] }
 0xeb7   :  { %16998 = vmatmul.mubr.msk.f32.vlgmr.msra.gmra.mrb[74].mxu1 %vm333_vm5, %v21385_v41  ;;  %v23969_v41 = vld [vmem:[#allocation39_spill] sm:$0xff] }
 0xeb8   :  { %17000 = vmatprep.mubr.msk.f32.mxu1 %vm333_vm5, %v21391_v30  ;;  %18096 = vmatpush3.bf16.msra.mxu1 %v18093_v16  ;;  %v23970_v30 = vld [vmem:[#allocation18_spill] sm:$0xff]  ;;  %v23974_v16 = vld [vmem:[#allocation19_spill] sm:$0xff] }
 0xeb9   :  { %18098 = vmatprep.subr.bf16.mxu1 %v18097_v15  ;;  %v7457_v6 = vmul.f32 %v21552_v25, %v23974_v16  ;;  %v7461_v25 = vmul.f32 %v21572_v50, %v23926_v54  ;;  %v7465_v50 = vmul.f32 %v21592_v29, %v23977_v33  ;;  %v7469_v29 = vmul.f32 %v21778_v4, %v23981_v23  ;;  %v21935_v4 = vld [vmem:[%s23603_s15] sm:$0xff] }
 0xeba   :  { %17057 = vmatprep.mubr.msk.f32.mxu0 %vm7752_vm9, %v21935_v4 }
 0xebb   :  { %17001 = vmatmul.mubr.msk.f32.gmra.mrb[76].mxu1 %vm333_vm5, %v21397_v35  ;;  %v23971_v35 = vld [vmem:[#allocation45_spill] sm:$0xff] }
 0xebc   :  { %17003 = vmatprep.mubr.msk.f32.mxu1 %vm333_vm5, %v23946_v52  ;;  %18100 = vmatpush3.bf16.msra.mxu1 %v18097_v15  ;;  %v23972_v52 = vld [vmem:[#allocation20_spill] sm:$0xff]  ;;  %v21952_v15 = vld [vmem:[%s23605_s14] ss:$0 sm:$0xff] }
 0xebd   :  { %18134 = vmatprep.subr.bf16.mxu1 %v21945_v3 }
 0xebf   :  { %17004 = vmatmul.mubr.msk.f32.gmra.mrb[78].mxu1 %vm333_vm5, %v23966_v0 }
 0xec0   :  { %17006 = vmatprep.mubr.msk.f32.mxu1 %vm333_vm5, %v23967_v57 }
 0xec3   :  { %17007 = vmatmul.mubr.msk.f32.gmra.mrb[80].mxu1 %vm333_vm5, %v23968_v49 }
 0xec4   :  { %17009 = vmatprep.mubr.msk.f32.mxu1 %vm333_vm5, %v23969_v41 }
 0xec7   :  { %17010 = vmatmul.mubr.msk.f32.gmra.mrb[82].mxu1 %vm333_vm5, %v23970_v30  ;;  %v23985_v30 = vld [vmem:[#allocation4_spill] sm:$0xff] }
 0xec8   :  { %17012 = vmatprep.mubr.msk.f32.mxu1 %vm333_vm5, %v23971_v35  ;;  %v23986_v35 = vmax.f32 %v23985_v30, 0.0 }
 0xecb   :  { %17013 = vmatmul.mubr.msk.f32.gmra.mrb[84].mxu1 %vm333_vm5, %v23972_v52 }
 0xecc   :  { %17015 = vmatprep.mubr.msk.f32.mxu1 %vm333_vm5, %v23973_v39  ;;  %v23987_v39 = vld [vmem:[#allocation3_spill] sm:$0xff] }
 0xecf   :  { %17016 = vmatmul.mubr.msk.f32.gmra.mrb[86].mxu1 %vm333_vm5, %v21724_v32  ;;  %v7460_v32 = vmul.f32 %v21569_v17, %v23924_v13  ;;  %v7464_v17 = vmul.f32 %v21589_v8, %v23958_v20  ;;  %v7468_v8 = vmul.f32 %v21609_v18, %v23980_v40  ;;  %v7472_v18 = vmul.f32 %v7456_v34, %v23983_v61 }
 0xed0   :  { %17018 = vmatprep.mubr.msk.f32.mxu1 %vm333_vm5, %v7225_v10  ;;  %v23988_v10 = vmax.f32 %v23987_v39, 0.0 }
 0xed3   :  { %17019 = vmatmul.mubr.msk.f32.gmra.mrb[88].mxu1 %vm333_vm5, %v7226_v51 }
 0xed4   :  { %17029 = vmatprep.mubr.msk.f32.mxu1 %vm333_vm5, %v7457_v6 }
 0xed7   :  { %17030 = vmatmul.mubr.msk.f32.vlgmr.msra.gmra.mrb[74].mxu1 %vm333_vm5, %v7458_v21 }
 0xed8   :  { %17032 = vmatprep.mubr.msk.f32.mxu1 %vm333_vm5, %v7459_v37  ;;  %18136 = vmatpush3.bf16.msra.mxu1 %v21945_v3 }
 0xedb   :  { %17033 = vmatmul.mubr.msk.f32.gmra.mrb[76].mxu1 %vm333_vm5, %v7460_v32 }
 0xedc   :  { %17035 = vmatprep.mubr.msk.f32.mxu1 %vm333_vm5, %v7461_v25 }
 0xedf   :  { %17036 = vmatmul.mubr.msk.f32.gmra.mrb[78].mxu1 %vm333_vm5, %v7462_v43 }
 0xee0   :  { %17038 = vmatprep.mubr.msk.f32.mxu1 %vm333_vm5, %v7463_v9  ;;  %v23989_v9 = vld [vmem:[#allocation6_spill] sm:$0xff] }
 0xee3   :  { %17039 = vmatmul.mubr.msk.f32.gmra.mrb[80].mxu1 %vm333_vm5, %v7464_v17  ;;  %v23990_v17 = vmax.f32 %v23989_v9, 0.0  ;;  %v23999_v9 = vld [vmem:[#allocation10_spill] sm:$0xff] }
 0xee4   :  { %17041 = vmatprep.mubr.msk.f32.mxu1 %vm333_vm5, %v7465_v50 }
 0xee7   :  { %17042 = vmatmul.mubr.msk.f32.gmra.mrb[82].mxu1 %vm333_vm5, %v7466_v47  ;;  %v23991_v47 = vld [vmem:[#allocation5_spill] sm:$0xff] }
 0xee8   :  { %17044 = vmatprep.mubr.msk.f32.mxu1 %vm333_vm5, %v7467_v12  ;;  %v23992_v12 = vmax.f32 %v23991_v47, 0.0 }
 0xeeb   :  { %17045 = vmatmul.mubr.msk.f32.gmra.mrb[84].mxu1 %vm333_vm5, %v7468_v8 }
 0xeec   :  { %17047 = vmatprep.mubr.msk.f32.mxu1 %vm333_vm5, %v7469_v29 }
 0xeef   :  { %17048 = vmatmul.mubr.msk.f32.gmra.mrb[86].mxu1 %vm333_vm5, %v7470_v26 }
 0xef0   :  { %17050 = vmatprep.mubr.msk.f32.mxu1 %vm333_vm5, %v7471_v45 }
 0xef3   :  { %17051 = vmatmul.mubr.msk.f32.gmra.mrb[88].mxu1 %vm333_vm5, %v7472_v18 }
 0xfaa   :  { %v17031_v0 = vpop.f32.mrb[74].mxu1 }
 0xfab   :  { %v7695_v57 = vadd.f32 %v17031_v0, %v21952_v15  ;;  %v7592_v49 = vpop.f32.mrb[75].mxu1  ;;  %v23994_v0 = vmax.f32 %v23993_v7, 0.0  ;;  %v24003_v7 = vld [vmem:[#allocation12_spill] sm:$0xff] }
 0xfac   :  { %v7694_v41 = vadd.f32 %v21952_v15, %v7592_v49  ;;  %v21973_v49 = vld [vmem:[%s23603_s15 + $0x8] sm:$0xff] }
 0xfad   :  { %v7711_v52 = vadd.f32 %v7695_v57, %v23986_v35 }
 0xfae   :  { %v7710_v51 = vadd.f32 %v7694_v41, %v23988_v10  ;;  %v17034_v6 = vpop.f32.mrb[76].mxu1  ;;  %v23995_v41 = vld [vmem:[#allocation8_spill] sm:$0xff] }
 0xfaf   :  { %v7727_v21 = vmax.f32 %v7711_v52, 0.0  ;;  %v7697_v37 = vadd.f32 %v17034_v6, %v21952_v15  ;;  %v7602_v32 = vpop.f32.mrb[77].mxu1  ;;  %v23996_v30 = vmax.f32 %v23995_v41, 0.0 }
 0xfb0   :  { %v7726_v25 = vmax.f32 %v7710_v51, 0.0  ;;  %v7696_v43 = vadd.f32 %v21952_v15, %v7602_v32  ;;  %v23997_v32 = vld [vmem:[#allocation9_spill] sm:$0xff] }
 0xfb1   :  { %v7713_v50 = vadd.f32 %v7697_v37, %v23990_v17  ;;  %v24000_v17 = vmax.f32 %v23999_v9, 0.0 }
 0xfb2   :  { %v7712_v8 = vadd.f32 %v7696_v43, %v23992_v12  ;;  %v17037_v29 = vpop.f32.mrb[78].mxu1  ;;  %v18101_v42 = vpack.c.bf16 %v7727_v21, %v7726_v25  ;;  %v23998_v25 = vmax.f32 %v23997_v32, 0.0  ;;  %v24007_v32 = vld [vmem:[#allocation14_spill] sm:$0xff] }
 0xfb3   :  { %v7729_v26 = vmax.f32 %v7713_v50, 0.0  ;;  %v7699_v45 = vadd.f32 %v17037_v29, %v21952_v15  ;;  %v7612_v34 = vpop.f32.mrb[79].mxu1 }
 0xfb4   :  { %v7728_v18 = vmax.f32 %v7712_v8, 0.0  ;;  %v7698_v5 = vadd.f32 %v21952_v15, %v7612_v34  ;;  %18102 = vmatprep.subr.bf16.mxu0 %v18101_v42  ;;  %v24001_v34 = vld [vmem:[#allocation11_spill] sm:$0xff] }
 0xfb5   :  { %v7715_v57 = vadd.f32 %v7699_v45, %v23994_v0  ;;  %18104 = vmatpush3.bf16.msra.mxu0 %v18101_v42  ;;  %v24004_v0 = vmax.f32 %v24003_v7, 0.0 }
 0xfb6   :  { %v7714_v35 = vadd.f32 %v7698_v5, %v23996_v30  ;;  %v17040_v52 = vpop.f32.mrb[80].mxu1  ;;  %v18105_v39 = vpack.c.bf16 %v7729_v26, %v7728_v18  ;;  %v24002_v18 = vmax.f32 %v24001_v34, 0.0  ;;  %v24011_v34 = vld [vmem:[#allocation17_spill] sm:$0xff] }
 0xfb7   :  { %v7731_v10 = vmax.f32 %v7715_v57, 0.0  ;;  %v7701_v51 = vadd.f32 %v17040_v52, %v21952_v15  ;;  %v7622_v6 = vpop.f32.mrb[81].mxu1 }
 0xfb8   :  { %v7730_v21 = vmax.f32 %v7714_v35, 0.0  ;;  %v7700_v37 = vadd.f32 %v21952_v15, %v7622_v6  ;;  %17058 = vmatmul.mubr.msk.f32.vlgmr.msra.gmra.mrb[90].mxu0 %vm7752_vm9, %v21973_v49  ;;  %18106 = vmatprep.subr.bf16.mxu0 %v18105_v39  ;;  %v24005_v6 = vld [vmem:[#allocation13_spill] sm:$0xff] }
 0xfb9   :  { %v7717_v43 = vadd.f32 %v7701_v51, %v23998_v25  ;;  %18108 = vmatpush3.bf16.msra.mxu0 %v18105_v39  ;;  %17064 = vmatprep.mubr.msk.f32.mxu0 %vm7752_vm9, %v21935_v4  ;;  %v24008_v25 = vmax.f32 %v24007_v32, 0.0 }
 0xfba   :  { %v7716_v50 = vadd.f32 %v7700_v37, %v24000_v17  ;;  %v17043_v47 = vpop.f32.mrb[82].mxu1  ;;  %v18109_v12 = vpack.c.bf16 %v7731_v10, %v7730_v21  ;;  %v24006_v21 = vmax.f32 %v24005_v6, 0.0  ;;  %v24015_v6 = vld [vmem:[#allocation43_spill] sm:$0xff] }
 0xfbb   :  { %v7733_v8 = vmax.f32 %v7717_v43, 0.0  ;;  %v7703_v29 = vadd.f32 %v17043_v47, %v21952_v15  ;;  %v7632_v42 = vpop.f32.mrb[83].mxu1 }
 0xfbc   :  { %v7732_v26 = vmax.f32 %v7716_v50, 0.0  ;;  %v7702_v45 = vadd.f32 %v21952_v15, %v7632_v42  ;;  %17065 = vmatmul.mubr.msk.f32.vlgmr.msra.gmra.mrb[92].mxu0 %vm7752_vm9, %v21973_v49  ;;  %18110 = vmatprep.subr.bf16.mxu0 %v18109_v12  ;;  %v24009_v42 = vld [vmem:[#allocation16_spill] sm:$0xff] }
 0xfbd   :  { %v7719_v5 = vadd.f32 %v7703_v29, %v24002_v18  ;;  %18112 = vmatpush3.bf16.msra.mxu0 %v18109_v12  ;;  %17071 = vmatprep.mubr.msk.f32.mxu0 %vm7752_vm9, %v21935_v4  ;;  %v24012_v18 = vmax.f32 %v24011_v34, 0.0 }
 0xfbe   :  { %v7718_v57 = vadd.f32 %v7702_v45, %v24004_v0  ;;  %v17046_v41 = vpop.f32.mrb[84].mxu1  ;;  %v18113_v30 = vpack.c.bf16 %v7733_v8, %v7732_v26  ;;  %v24010_v26 = vmax.f32 %v24009_v42, 0.0 }
 0xfbf   :  { %v7735_v35 = vmax.f32 %v7719_v5, 0.0  ;;  %v7705_v52 = vadd.f32 %v17046_v41, %v21952_v15  ;;  %v7642_v39 = vpop.f32.mrb[85].mxu1 }
 0xfc0   :  { %v7734_v10 = vmax.f32 %v7718_v57, 0.0  ;;  %v7704_v51 = vadd.f32 %v21952_v15, %v7642_v39  ;;  %17072 = vmatmul.mubr.msk.f32.vlgmr.msra.gmra.mrb[94].mxu0 %vm7752_vm9, %v21973_v49  ;;  %18114 = vmatprep.subr.bf16.mxu0 %v18113_v30  ;;  %v24013_v39 = vld [vmem:[#allocation42_spill] sm:$0xff] }
 0xfc1   :  { %v7721_v37 = vadd.f32 %v7705_v52, %v24006_v21  ;;  %18116 = vmatpush3.bf16.msra.mxu0 %v18113_v30  ;;  %17078 = vmatprep.mubr.msk.f32.mxu0 %vm7752_vm9, %v21935_v4  ;;  %v24016_v21 = vmax.f32 %v24015_v6, 0.0  ;;  %v14691_v6 = vld [vmem:[%s23599_s11 + $0x38] sm:$0xff] }
 0xfc2   :  { %v7720_v43 = vadd.f32 %v7704_v51, %v24008_v25  ;;  %v17049_v9 = vpop.f32.mrb[86].mxu1  ;;  %v18117_v17 = vpack.c.bf16 %v7735_v35, %v7734_v10  ;;  %v24014_v10 = vmax.f32 %v24013_v39, 0.0 }
 0xfc3   :  { %v7737_v50 = vmax.f32 %v7721_v37, 0.0  ;;  %v7707_v47 = vadd.f32 %v17049_v9, %v21952_v15  ;;  %v7652_v12 = vpop.f32.mrb[87].mxu1  ;;  %v19378_v9 = vld [vmem:[%s23597_s9] sm:$0x1f] }
 0xfc4   :  { %v7736_v8 = vmax.f32 %v7720_v43, 0.0  ;;  %v7706_v29 = vadd.f32 %v21952_v15, %v7652_v12  ;;  %17079 = vmatmul.mubr.msk.f32.vlgmr.msra.gmra.mrb[96].mxu0 %vm7752_vm9, %v21973_v49  ;;  %18118 = vmatprep.subr.bf16.mxu0 %v18117_v17 }
 0xfc5   :  { %v7723_v45 = vadd.f32 %v7707_v47, %v24010_v26  ;;  %18120 = vmatpush3.bf16.msra.mxu0 %v18117_v17  ;;  %17085 = vmatprep.mubr.msk.f32.mxu0 %vm7752_vm9, %v21935_v4  ;;  %v8592_v17 = vpop.permute.xlu0 %8591 }
 0xfc6   :  { %v7722_v5 = vadd.f32 %v7706_v29, %v24012_v18  ;;  %v17052_v7 = vpop.f32.mrb[88].mxu1  ;;  %v18121_v0 = vpack.c.bf16 %v7737_v50, %v7736_v8  ;;  %v8594_v50 = vpop.permute.xlu1 %8593 }
 0xfc7   :  { %v7739_v57 = vmax.f32 %v7723_v45, 0.0  ;;  %v7709_v41 = vadd.f32 %v17052_v7, %v21952_v15  ;;  %v7662_v30 = vpop.f32.mrb[89].mxu1 }
 0xfc8   :  { %v7738_v35 = vmax.f32 %v7722_v5, 0.0  ;;  %v7708_v52 = vadd.f32 %v21952_v15, %v7662_v30  ;;  %17086 = vmatmul.mubr.msk.f32.vlgmr.msra.gmra.mrb[98].mxu0 %vm7752_vm9, %v21973_v49  ;;  %18122 = vmatprep.subr.bf16.mxu0 %v18121_v0 }
 0xfc9   :  { %v7725_v51 = vadd.f32 %v7709_v41, %v24014_v10  ;;  %18124 = vmatpush3.bf16.msra.mxu0 %v18121_v0  ;;  %17092 = vmatprep.mubr.msk.f32.mxu0 %vm7752_vm9, %v21935_v4  ;;  %v8596_v47 = vpop.permute.xlu0 %8595  ;;  %v2968_v41 = vld [vmem:[%s23604_s17 + $0x18] sm:$0xff] }
 0xfca   :  { %v7724_v37 = vadd.f32 %v7708_v52, %v24016_v21  ;;  %v18125_v32 = vpack.c.bf16 %v7739_v57, %v7738_v35  ;;  %v2967_v57 = vld [vmem:[%s23604_s17 + $0x10] sm:$0xff]  ;;  %v14688_v35 = vld [vmem:[%s23599_s11 + $0x20] sm:$0xff]  ;;  %v14689_v52 = vld [vmem:[%s23599_s11 + $0x28] sm:$0xff] }
 0xfcb   :  { %v7741_v25 = vmax.f32 %v7725_v51, 0.0  ;;  %v22064_v30 = vpack.c.bf16 %v2968_v41, %v2967_v57  ;;  %v18141_v39 = vpack.c.bf16 %v14689_v52, %v14688_v35  ;;  %v14690_v51 = vld [vmem:[%s23599_s11 + $0x30] sm:$0xff] }
 0xfcc   :  { %v7740_v43 = vmax.f32 %v7724_v37, 0.0  ;;  %17093 = vmatmul.mubr.msk.f32.vlgmr.msra.gmra.mrb[100].mxu0 %vm7752_vm9, %v21973_v49  ;;  %18126 = vmatprep.subr.bf16.mxu0 %v18125_v32 }
 0xfcd   :  { %18128 = vmatpush3.bf16.msra.mxu0 %v18125_v32  ;;  %17099 = vmatprep.mubr.msk.f32.mxu0 %vm7752_vm9, %v21935_v4  ;;  %v8600_v12 = vpop.permute.xlu0 %8599  ;;  %24017 = vst [vmem:[#allocation23_spill] sm:$0xff] %v22064_v30 }
 0xfce   :  { %v18129_v15 = vpack.c.bf16 %v7741_v25, %v7740_v43  ;;  %18138 = vmatprep.subr.bf16.mxu1 %v22064_v30 }
 0xfcf   :  { %18140 = vmatpush3.bf16.msra.mxu1 %v22064_v30 }
 0xfd0   :  { %17100 = vmatmul.mubr.msk.f32.vlgmr.msra.gmra.mrb[102].mxu0 %vm7752_vm9, %v21973_v49  ;;  %18130 = vmatprep.subr.bf16.mxu0 %v18129_v15 }
 0xfd1   :  { %18132 = vmatpush3.bf16.msra.mxu0 %v18129_v15  ;;  %17106 = vmatprep.mubr.msk.f32.mxu0 %vm7752_vm9, %v21935_v4  ;;  %v8598_v4 = vpop.permute.xlu1 %8597  ;;  %v8604_v29 = vpop.permute.xlu0 %8603  ;;  %v18145_v15 = vpack.c.bf16 %v14691_v6, %v14690_v51 }
 0xfd2   :  { %17141 = vmatprep.subr.msk.mxu0 %vm3025_vm7, %v19378_v9  ;;  %18142 = vmatprep.subr.bf16.mxu1 %v18141_v39 }
 0xfd4   :  { %17107 = vmatmul.mubr.msk.f32.vlgmr.msra.gmra.mrb[104].mxu0 %vm7752_vm9, %v21973_v49 }
 0xfd5   :  { %17143 = vmatprep.mubr.msk.f32.mxu0 %vm2976_vm8, %v8592_v17  ;;  %17142 = vmatpush3.msk.msra.mxu0 %vm3025_vm7, %v19378_v9  ;;  %v8602_v8 = vpop.permute.xlu1 %8601  ;;  %v8608_v42 = vpop.permute.xlu0 %8607  ;;  %v8864_v17 = vld [vmem:[%s23599_s11] sm:$0xff] }
 0xfd8   :  { %17144 = vmatmul.mubr.msk.f32.vlgmr.msra.gmra.mrb[106].mxu0 %vm2976_vm8, %v8594_v50  ;;  %v8865_v50 = vld [vmem:[%s23599_s11 + $0x8] sm:$0xff] }
 0xfd9   :  { %17146 = vmatprep.mubr.msk.f32.mxu0 %vm2976_vm8, %v8596_v47  ;;  %v8606_v49 = vpop.permute.xlu1 %8605  ;;  %v8612_v45 = vpop.permute.xlu0 %8611 }
 0xfdc   :  { %17147 = vmatmul.mubr.msk.f32.gmra.mrb[108].mxu0 %vm2976_vm8, %v8598_v4 }
 0xfdd   :  { %17149 = vmatprep.mubr.msk.f32.mxu0 %vm2976_vm8, %v8600_v12  ;;  %v8610_v26 = vpop.permute.xlu1 %8609  ;;  %v8616_v18 = vpop.permute.xlu0 %8615 }
 0xfe0   :  { %17150 = vmatmul.mubr.msk.f32.gmra.mrb[110].mxu0 %vm2976_vm8, %v8602_v8  ;;  %v22096_v8 = vpack.c.bf16 %v8865_v50, %v8864_v17  ;;  %v8868_v50 = vld [vmem:[#allocation2 + $0x8] sm:$0xff] }
 0xfe1   :  { %17152 = vmatprep.mubr.msk.f32.mxu0 %vm2976_vm8, %v8604_v29  ;;  %v8614_v34 = vpop.permute.xlu1 %8613  ;;  %v8620_v7 = vpop.permute.xlu0 %8619 }
 0xfe4   :  { %17153 = vmatmul.mubr.msk.f32.gmra.mrb[112].mxu0 %vm2976_vm8, %v8606_v49 }
 0xfe5   :  { %17155 = vmatprep.mubr.msk.f32.mxu0 %vm2976_vm8, %v8608_v42  ;;  %v8618_v5 = vpop.permute.xlu1 %8617  ;;  %v22080_v21 = vpop.permute.xlu0 %7744 }
 0xfe6   :  { %24018 = vst [vmem:[#allocation33_spill] sm:$0xff] %v22080_v21 }
 0xfe8   :  { %17156 = vmatmul.mubr.msk.f32.gmra.mrb[114].mxu0 %vm2976_vm8, %v8610_v26 }
 0xfe9   :  { %17158 = vmatprep.mubr.msk.f32.mxu0 %vm2976_vm8, %v8612_v45  ;;  %v8622_v0 = vpop.permute.xlu1 %8621 }
 0xfec   :  { %17159 = vmatmul.mubr.msk.f32.gmra.mrb[116].mxu0 %vm2976_vm8, %v8614_v34 }
 0xfed   :  { %17161 = vmatprep.mubr.msk.f32.mxu0 %vm2976_vm8, %v8616_v18  ;;  %v22082_v32 = vpop.permute.xlu1 %7749 }
 0xfee   :  { %24019 = vst [vmem:[#allocation37_spill] sm:$0xff] %v22082_v32 }
 0xff0   :  { %17162 = vmatmul.mubr.msk.f32.gmra.mrb[118].mxu0 %vm2976_vm8, %v8618_v5 }
 0xff1   :  { %17164 = vmatprep.mubr.msk.f32.mxu0 %vm2976_vm8, %v8620_v7 }
 0xff4   :  { %17165 = vmatmul.mubr.msk.f32.gmra.mrb[120].mxu0 %vm2976_vm8, %v8622_v0 }
0x108b   :  { %v17059_v10 = vpop.f32.mrb[90].mxu0 }
0x108c   :  { %v7825_v37 = vpop.f32.mrb[91].mxu0  ;;  %v7831_v43 = vadd.f32 %v17059_v10, %v22082_v32 }
0x108d   :  { %v7826_v25 = vadd.f32 %v7825_v37, %v22080_v21 }
0x108f   :  { %v17066_v9 = vpop.f32.mrb[92].mxu0  ;;  %17117 = vmatprep.mubr.msk.f32.mxu1 %vm333_vm5, %v7826_v25 }
0x1090   :  { %v7900_v47 = vpop.f32.mrb[93].mxu0  ;;  %17118 = vmatmul.mubr.msk.f32.vlgmr.msra.gmra.mrb[90].mxu1 %vm333_vm5, %v7831_v43  ;;  %v7906_v12 = vadd.f32 %v17066_v9, %v22082_v32 }
0x1091   :  { %v7901_v4 = vadd.f32 %v7900_v47, %v22080_v21  ;;  %18144 = vmatpush3.bf16.msra.mxu1 %v18141_v39 }
0x1092   :  { %18146 = vmatprep.subr.bf16.mxu1 %v18145_v15 }
0x1093   :  { %v17073_v29 = vpop.f32.mrb[94].mxu0  ;;  %17120 = vmatprep.mubr.msk.f32.mxu1 %vm333_vm5, %v7901_v4  ;;  %v8866_v4 = vld [vmem:[%s23599_s11 + $0x10] sm:$0xff] }
0x1094   :  { %v7975_v49 = vpop.f32.mrb[95].mxu0  ;;  %17121 = vmatmul.mubr.msk.f32.gmra.mrb[92].mxu1 %vm333_vm5, %v7906_v12  ;;  %v7981_v26 = vadd.f32 %v17073_v29, %v22082_v32  ;;  %v8867_v12 = vld [vmem:[%s23599_s11 + $0x18] sm:$0xff]  ;;  %v22133_v29 = vld [vmem:[%s23598_s10] ss:$0 sm:$0xff] }
0x1095   :  { %v7976_v42 = vadd.f32 %v7975_v49, %v22080_v21  ;;  %18148 = vmatpush3.bf16.msra.mxu1 %v18145_v15 }
0x1096   :  { %18150 = vmatprep.subr.bf16.mxu1 %v22096_v8 }
0x1097   :  { %v17080_v45 = vpop.f32.mrb[96].mxu0  ;;  %17123 = vmatprep.mubr.msk.f32.mxu1 %vm333_vm5, %v7976_v42 }
0x1098   :  { %v8050_v34 = vpop.f32.mrb[97].mxu0  ;;  %17124 = vmatmul.mubr.msk.f32.gmra.mrb[94].mxu1 %vm333_vm5, %v7981_v26  ;;  %v8056_v5 = vadd.f32 %v17080_v45, %v22082_v32  ;;  %v8869_v45 = vld [vmem:[#allocation2 + $0x10] sm:$0xff] }
0x1099   :  { %v8051_v18 = vadd.f32 %v8050_v34, %v22080_v21 }
0x109b   :  { %v17087_v7 = vpop.f32.mrb[98].mxu0  ;;  %17126 = vmatprep.mubr.msk.f32.mxu1 %vm333_vm5, %v8051_v18  ;;  %v18153_v18 = vpack.c.bf16 %v8867_v12, %v8866_v4 }
0x109c   :  { %v8125_v0 = vpop.f32.mrb[99].mxu0  ;;  %17127 = vmatmul.mubr.msk.f32.gmra.mrb[96].mxu1 %vm333_vm5, %v8056_v5  ;;  %v8131_v41 = vadd.f32 %v17087_v7, %v22082_v32 }
0x109d   :  { %v8126_v57 = vadd.f32 %v8125_v0, %v22080_v21  ;;  %v14724_v0 = vld [vmem:[%s23599_s11 + $0x40] sm:$0xff] }
0x109f   :  { %v17094_v35 = vpop.f32.mrb[100].mxu0  ;;  %17129 = vmatprep.mubr.msk.f32.mxu1 %vm333_vm5, %v8126_v57  ;;  %v14725_v57 = vld [vmem:[%s23599_s11 + $0x48] sm:$0xff] }
0x10a0   :  { %v8200_v52 = vpop.f32.mrb[101].mxu0  ;;  %17130 = vmatmul.mubr.msk.f32.gmra.mrb[98].mxu1 %vm333_vm5, %v8131_v41  ;;  %v8206_v10 = vadd.f32 %v17094_v35, %v22082_v32 }
0x10a1   :  { %v8201_v39 = vadd.f32 %v8200_v52, %v22080_v21 }
0x10a3   :  { %v17101_v51 = vpop.f32.mrb[102].mxu0  ;;  %17132 = vmatprep.mubr.msk.f32.mxu1 %vm333_vm5, %v8201_v39 }
0x10a4   :  { %v8275_v6 = vpop.f32.mrb[103].mxu0  ;;  %17133 = vmatmul.mubr.msk.f32.gmra.mrb[100].mxu1 %vm333_vm5, %v8206_v10  ;;  %v8281_v25 = vadd.f32 %v17101_v51, %v22082_v32  ;;  %v22166_v10 = vpack.c.bf16 %v14725_v57, %v14724_v0 }
0x10a5   :  { %v8276_v37 = vadd.f32 %v8275_v6, %v22080_v21 }
0x10a7   :  { %v17108_v43 = vpop.f32.mrb[104].mxu0  ;;  %17135 = vmatprep.mubr.msk.f32.mxu1 %vm333_vm5, %v8276_v37 }
0x10a8   :  { %v8350_v15 = vpop.f32.mrb[105].mxu0  ;;  %17136 = vmatmul.mubr.msk.f32.gmra.mrb[102].mxu1 %vm333_vm5, %v8281_v25  ;;  %v8356_v17 = vadd.f32 %v17108_v43, %v22082_v32 }
0x10a9   :  { %v8351_v9 = vadd.f32 %v8350_v15, %v22080_v21 }
0x10ab   :  { %17138 = vmatprep.mubr.msk.f32.mxu1 %vm333_vm5, %v8351_v9  ;;  %v17145_v47 = vpop.f32.mrb[106].mxu0 }
0x10ac   :  { %v22136_v49 = vadd.f32 %v22133_v29, %v17145_v47  ;;  %17139 = vmatmul.mubr.msk.f32.gmra.mrb[104].mxu1 %vm333_vm5, %v8356_v17  ;;  %v8721_v42 = vpop.f32.mrb[107].mxu0 }
0x10ad   :  { %v22140_v26 = vadd.f32 %v22133_v29, %v8721_v42  ;;  %17175 = vmatprep.mubr.msk.f32.mxu1 %vm333_vm5, %v8868_v50 }
0x10ae   :  { %24020 = vst [vmem:[#allocation24_spill] sm:$0xff] %v22136_v49  ;;  %v23739_v34 = vmax.f32 %v22136_v49, 0.0 }
0x10af   :  { %24021 = vst [vmem:[#allocation29_spill] sm:$0xff] %v22140_v26  ;;  %v23737_v5 = vmax.f32 %v22140_v26, 0.0  ;;  %v17148_v7 = vpop.f32.mrb[108].mxu0 }
0x10b0   :  { %8817 = vst.msk [vmem:[#allocation2 + $0x20] sm:$0xff] %vm333_vm5, %v23739_v34  ;;  %v22155_v41 = vadd.f32 %v22133_v29, %v17148_v7  ;;  %v8731_v35 = vpop.f32.mrb[109].mxu0  ;;  %17176 = vmatmul.mubr.msk.f32.vlgmr.msra.gmra.mrb[106].mxu1 %vm333_vm5, %v8869_v45 }
0x10b1   :  { %8816 = vst.msk [vmem:[#allocation2 + $0x18] sm:$0xff] %vm333_vm5, %v23737_v5  ;;  %v22162_v52 = vadd.f32 %v22133_v29, %v8731_v35  ;;  %18152 = vmatpush3.bf16.msra.mxu1 %v22096_v8 }
0x10b2   :  { %24022 = vst [vmem:[#allocation34_spill] sm:$0xff] %v22155_v41  ;;  %v23736_v39 = vmax.f32 %v22155_v41, 0.0  ;;  %18154 = vmatprep.subr.bf16.mxu1 %v18153_v18 }
0x10b3   :  { %24023 = vst [vmem:[#allocation38_spill] sm:$0xff] %v22162_v52  ;;  %v23735_v51 = vmax.f32 %v22162_v52, 0.0  ;;  %v17151_v6 = vpop.f32.mrb[110].mxu0 }
0x10b4   :  { %8819 = vst.msk [vmem:[#allocation2 + $0x30] sm:$0xff] %vm333_vm5, %v23736_v39  ;;  %v22173_v37 = vadd.f32 %v22133_v29, %v17151_v6  ;;  %v8741_v25 = vpop.f32.mrb[111].mxu0 }
0x10b5   :  { %8818 = vst.msk [vmem:[#allocation2 + $0x28] sm:$0xff] %vm333_vm5, %v23735_v51  ;;  %v22179_v8 = vadd.f32 %v22133_v29, %v8741_v25  ;;  %18156 = vmatpush3.bf16.msra.mxu1 %v18153_v18 }
0x10b6   :  { %24024 = vst [vmem:[#allocation39_spill] sm:$0xff] %v22173_v37  ;;  %v23733_v43 = vmax.f32 %v22173_v37, 0.0  ;;  %18158 = vmatprep.subr.bf16.mxu1 %v22166_v10 }
0x10b7   :  { %24025 = vst [vmem:[#allocation18_spill] sm:$0xff] %v22179_v8  ;;  %v23731_v15 = vmax.f32 %v22179_v8, 0.0  ;;  %v17154_v9 = vpop.f32.mrb[112].mxu0  ;;  %v22200_v12 = vld [vmem:[#allocation2 + $0x20] sm:$0xff] }
0x10b8   :  { %8821 = vst.msk [vmem:[#allocation2 + $0x40] sm:$0xff] %vm333_vm5, %v23733_v43  ;;  %v22188_v17 = vadd.f32 %v22133_v29, %v17154_v9  ;;  %v8751_v50 = vpop.f32.mrb[113].mxu0  ;;  %v22190_v47 = vld [vmem:[#allocation2 + $0x18] sm:$0xff] }
0x10b9   :  { %8820 = vst.msk [vmem:[#allocation2 + $0x38] sm:$0xff] %vm333_vm5, %v23731_v15  ;;  %v22196_v4 = vadd.f32 %v22133_v29, %v8751_v50  ;;  %17178 = vmatprep.mubr.msk.f32.mxu1 %vm333_vm5, %v22190_v47 }
0x10ba   :  { %24026 = vst [vmem:[#allocation45_spill] sm:$0xff] %v22188_v17  ;;  %v23730_v42 = vmax.f32 %v22188_v17, 0.0  ;;  %17179 = vmatmul.mubr.msk.f32.gmra.mrb[108].mxu1 %vm333_vm5, %v22200_v12  ;;  %v14745_v17 = vld [vmem:[%s23599_s11 + $0x68] sm:$0xff] }
0x10bb   :  { %24027 = vst [vmem:[#allocation20_spill] sm:$0xff] %v22196_v4  ;;  %v23729_v45 = vmax.f32 %v22196_v4, 0.0  ;;  %v17157_v18 = vpop.f32.mrb[114].mxu0  ;;  %v22222_v6 = vld [vmem:[#allocation2 + $0x30] sm:$0xff]  ;;  %v14744_v4 = vld [vmem:[%s23599_s11 + $0x60] sm:$0xff] }
0x10bc   :  { %8823 = vst.msk [vmem:[#allocation2 + $0x50] sm:$0xff] %vm333_vm5, %v23730_v42  ;;  %v22210_v7 = vadd.f32 %v22133_v29, %v17157_v18  ;;  %v8761_v0 = vpop.f32.mrb[115].mxu0  ;;  %v22212_v57 = vld [vmem:[#allocation2 + $0x28] sm:$0xff] }
0x10bd   :  { %8822 = vst.msk [vmem:[#allocation2 + $0x48] sm:$0xff] %vm333_vm5, %v23729_v45  ;;  %v22218_v35 = vadd.f32 %v22133_v29, %v8761_v0  ;;  %17181 = vmatprep.mubr.msk.f32.mxu1 %vm333_vm5, %v22212_v57  ;;  %v22338_v8 = vld [vmem:[#allocation2 + $0x27] sm:$0xff] }
0x10be   :  { %24028 = vst [vmem:[#allocation22_spill] sm:$0xff] %v22210_v7  ;;  %v23732_v25 = vmax.f32 %v22210_v7, 0.0  ;;  %17182 = vmatmul.mubr.msk.f32.gmra.mrb[110].mxu1 %vm333_vm5, %v22222_v6  ;;  %v22329_v7 = vld [vmem:[#allocation2 + $0x1f] sm:$0xff] }
0x10bf   :  { %24029 = vst [vmem:[#allocation4_spill] sm:$0xff] %v22218_v35  ;;  %v23734_v9 = vmax.f32 %v22218_v35, 0.0  ;;  %v17160_v50 = vpop.f32.mrb[116].mxu0  ;;  %v22244_v15 = vld [vmem:[#allocation2 + $0x40] sm:$0xff] }
0x10c0   :  { %8825 = vst.msk [vmem:[#allocation2 + $0x60] sm:$0xff] %vm333_vm5, %v23732_v25  ;;  %v22232_v18 = vadd.f32 %v22133_v29, %v17160_v50  ;;  %v8771_v0 = vpop.f32.mrb[117].mxu0  ;;  %v22234_v45 = vld [vmem:[#allocation2 + $0x38] sm:$0xff] }
0x10c1   :  { %8824 = vst.msk [vmem:[#allocation2 + $0x58] sm:$0xff] %vm333_vm5, %v23734_v9  ;;  %v22240_v42 = vadd.f32 %v22133_v29, %v8771_v0  ;;  %17184 = vmatprep.mubr.msk.f32.mxu1 %vm333_vm5, %v22234_v45  ;;  %v22349_v37 = vld [vmem:[#allocation2 + $0x37] sm:$0xff] }
0x10c2   :  { %24030 = vst [vmem:[#allocation3_spill] sm:$0xff] %v22232_v18  ;;  %v23738_v25 = vmax.f32 %v22232_v18, 0.0  ;;  %17185 = vmatmul.mubr.msk.f32.gmra.mrb[112].mxu1 %vm333_vm5, %v22244_v15 }
0x10c3   :  { %24031 = vst [vmem:[#allocation6_spill] sm:$0xff] %v22240_v42  ;;  %v23740_v50 = vmax.f32 %v22240_v42, 0.0  ;;  %v17163_v43 = vpop.f32.mrb[118].mxu0  ;;  %v22266_v5 = vld [vmem:[#allocation2 + $0x50] sm:$0xff] }
0x10c4   :  { %8827 = vst.msk [vmem:[#allocation2 + $0x70] sm:$0xff] %vm333_vm5, %v23738_v25  ;;  %v22254_v0 = vadd.f32 %v22133_v29, %v17163_v43  ;;  %v8781_v9 = vpop.f32.mrb[119].mxu0  ;;  %v22256_v51 = vld [vmem:[#allocation2 + $0x48] sm:$0xff]  ;;  %24035 = vst [vmem:[#allocation9_spill] sm:$0xff] %v22266_v5  ;;  %v22323_v42 = vld [vmem:[#allocation2 + $0x17] sm:$0xff] }
0x10c5   :  { %24033 = vst [vmem:[#allocation7_spill] sm:$0xff] %v22256_v51  ;;  %8826 = vst.msk [vmem:[#allocation2 + $0x68] sm:$0xff] %vm333_vm5, %v23740_v50  ;;  %v22262_v39 = vadd.f32 %v22133_v29, %v8781_v9  ;;  %17187 = vmatprep.mubr.msk.f32.mxu1 %vm333_vm5, %v22256_v51  ;;  %v22425_v51 = vld [vmem:[#allocation2 + $0x29] sm:$0xff] }
0x10c6   :  { %24032 = vst [vmem:[#allocation5_spill] sm:$0xff] %v22254_v0  ;;  %v23747_v25 = vmax.f32 %v22254_v0, 0.0  ;;  %17188 = vmatmul.mubr.msk.f32.gmra.mrb[114].mxu1 %vm333_vm5, %v22266_v5  ;;  %v14727_v0 = vld [vmem:[%s23599_s11 + $0x58] sm:$0xff]  ;;  %v14764_v5 = vld [vmem:[%s23599_s11 + $0x80] sm:$0xff] }
0x10c7   :  { %24034 = vst [vmem:[#allocation8_spill] sm:$0xff] %v22262_v39  ;;  %v23748_v43 = vmax.f32 %v22262_v39, 0.0  ;;  %v17166_v34 = vpop.f32.mrb[120].mxu0  ;;  %v22288_v30 = vld [vmem:[#allocation2 + $0x60] sm:$0xff] }
0x10c8   :  { %8829 = vst.msk [vmem:[#allocation2 + $0x80] sm:$0xff] %vm333_vm5, %v23747_v25  ;;  %v22276_v9 = vadd.f32 %v22133_v29, %v17166_v34  ;;  %v8791_v50 = vpop.f32.mrb[121].mxu0  ;;  %v22278_v32 = vld [vmem:[#allocation2 + $0x58] sm:$0xff]  ;;  %24039 = vst [vmem:[#allocation13_spill] sm:$0xff] %v22288_v30 }
0x10c9   :  { %24037 = vst [vmem:[#allocation11_spill] sm:$0xff] %v22278_v32  ;;  %8828 = vst.msk [vmem:[#allocation2 + $0x78] sm:$0xff] %vm333_vm5, %v23748_v43  ;;  %v22284_v21 = vadd.f32 %v22133_v29, %v8791_v50  ;;  %17190 = vmatprep.mubr.msk.f32.mxu1 %vm333_vm5, %v22278_v32  ;;  %v8832_v50 = vld [vmem:[#allocation2 + $0x7] sm:$0xff]  ;;  %v22376_v52 = vld [vmem:[#allocation2 + $0x5f] sm:$0xff] }
0x10ca   :  { %24036 = vst [vmem:[#allocation10_spill] sm:$0xff] %v22276_v9  ;;  %v23752_v25 = vmax.f32 %v22276_v9, 0.0  ;;  %17191 = vmatmul.mubr.msk.f32.gmra.mrb[116].mxu1 %vm333_vm5, %v22288_v30  ;;  %v8833_v9 = vld [vmem:[#allocation2 + $0xf] sm:$0xff]  ;;  %v14747_v30 = vld [vmem:[%s23599_s11 + $0x78] sm:$0xff] }
0x10cb   :  { %24038 = vst [vmem:[#allocation12_spill] sm:$0xff] %v22284_v21  ;;  %v23755_v34 = vmax.f32 %v22284_v21, 0.0  ;;  %v22304_v29 = vld [vmem:[#allocation2 + $0x70] sm:$0xff]  ;;  %v8849_v18 = vmul.f32 %v8833_v9, %v20708_v2  ;;  %v8852_v9 = vmul.f32 %v22338_v8, %v20714_v44 }
0x10cc   :  { %8831 = vst.msk [vmem:[#allocation2 + $0x90] sm:$0xff] %vm333_vm5, %v23752_v25  ;;  %v22297_v43 = vld [vmem:[#allocation2 + $0x68] sm:$0xff]  ;;  %24041 = vst [vmem:[#allocation16_spill] sm:$0xff] %v22304_v29  ;;  %v24044_v21 = vld [vmem:[#allocation15_spill] sm:$0xff] }
0x10cd   :  { %24040 = vst [vmem:[#allocation14_spill] sm:$0xff] %v22297_v43  ;;  %8830 = vst.msk [vmem:[#allocation2 + $0x88] sm:$0xff] %vm333_vm5, %v23755_v34  ;;  %17193 = vmatprep.mubr.msk.f32.mxu1 %vm333_vm5, %v22297_v43  ;;  %v8848_v39 = vmul.f32 %v8832_v50, %v24044_v21  ;;  %v14726_v34 = vld [vmem:[%s23599_s11 + $0x50] sm:$0xff]  ;;  %v8850_v50 = vmul.f32 %v22323_v42, %v20710_v63  ;;  %v22379_v41 = vld [vmem:[#allocation2 + $0x67] sm:$0xff] }
0x10ce   :  { %17194 = vmatmul.mubr.msk.f32.gmra.mrb[118].mxu1 %vm333_vm5, %v22304_v29  ;;  %v18161_v35 = vpack.c.bf16 %v14727_v0, %v14726_v34  ;;  %v18165_v0 = vpack.c.bf16 %v14745_v17, %v14744_v4  ;;  %v22346_v34 = vld [vmem:[#allocation2 + $0x2f] sm:$0xff]  ;;  %v22356_v17 = vld [vmem:[#allocation2 + $0x3f] sm:$0xff]  ;;  %v22359_v4 = vld [vmem:[#allocation2 + $0x47] sm:$0xff] }
0x10cf   :  { %v22312_v25 = vld [vmem:[#allocation2 + $0x80] sm:$0xff]  ;;  %v22386_v26 = vld [vmem:[#allocation2 + $0x6f] sm:$0xff] }
0x10d0   :  { %v22308_v3 = vld [vmem:[#allocation2 + $0x78] sm:$0xff]  ;;  %24043 = vst [vmem:[#allocation42_spill] sm:$0xff] %v22312_v25 }
0x10d1   :  { %24042 = vst [vmem:[#allocation17_spill] sm:$0xff] %v22308_v3  ;;  %17196 = vmatprep.mubr.msk.f32.mxu1 %vm333_vm5, %v22308_v3  ;;  %v22389_v49 = vld [vmem:[#allocation2 + $0x77] sm:$0xff]  ;;  %v9274_v3 = vld [vmem:[#allocation2 + $0x9] sm:$0xff] }
0x10d2   :  { %17197 = vmatmul.mubr.msk.f32.gmra.mrb[120].mxu1 %vm333_vm5, %v22312_v25  ;;  %v22396_v25 = vld [vmem:[#allocation2 + $0x7f] sm:$0xff]  ;;  %v9290_v29 = vmul.f32 %v9274_v3, %v23974_v16  ;;  %v9275_v43 = vld [vmem:[#allocation2 + $0x11] sm:$0xff] }
0x10d3   :  { %17207 = vmatprep.mubr.msk.f32.mxu1 %vm333_vm5, %v8848_v39  ;;  %v8851_v39 = vmul.f32 %v22329_v7, %v20712_v14  ;;  %v22416_v16 = vld [vmem:[#allocation2 + $0x21] sm:$0xff] }
0x10d6   :  { %17208 = vmatmul.mubr.msk.f32.vlgmr.msra.gmra.mrb[106].mxu1 %vm333_vm5, %v8849_v18  ;;  %v8854_v18 = vmul.f32 %v22349_v37, %v20718_v1 }
0x10d7   :  { %17210 = vmatprep.mubr.msk.f32.mxu1 %vm333_vm5, %v8850_v50  ;;  %18160 = vmatpush3.bf16.msra.mxu1 %v22166_v10  ;;  %v8853_v10 = vmul.f32 %v22346_v34, %v20716_v22  ;;  %v8855_v50 = vmul.f32 %v22356_v17, %v20731_v38 }
0x10d8   :  { %18162 = vmatprep.subr.bf16.mxu1 %v18161_v35 }
0x10da   :  { %17211 = vmatmul.mubr.msk.f32.gmra.mrb[108].mxu1 %vm333_vm5, %v8851_v39  ;;  %v22366_v39 = vld [vmem:[#allocation2 + $0x4f] sm:$0xff] }
0x10db   :  { %17213 = vmatprep.mubr.msk.f32.mxu1 %vm333_vm5, %v8852_v9  ;;  %18164 = vmatpush3.bf16.msra.mxu1 %v18161_v35  ;;  %v8856_v35 = vmul.f32 %v22359_v4, %v20736_v62  ;;  %v22369_v9 = vld [vmem:[#allocation2 + $0x57] sm:$0xff] }
0x10dc   :  { %18166 = vmatprep.subr.bf16.mxu1 %v18165_v0 }
0x10de   :  { %17214 = vmatmul.mubr.msk.f32.gmra.mrb[110].mxu1 %vm333_vm5, %v8853_v10  ;;  %v8857_v10 = vmul.f32 %v22366_v39, %v20741_v59 }
0x10df   :  { %17216 = vmatprep.mubr.msk.f32.mxu1 %vm333_vm5, %v8854_v18  ;;  %v8858_v18 = vmul.f32 %v22369_v9, %v20744_v19 }
0x10e2   :  { %17217 = vmatmul.mubr.msk.f32.gmra.mrb[112].mxu1 %vm333_vm5, %v8855_v50  ;;  %v8859_v50 = vmul.f32 %v22376_v52, %v20767_v24 }
0x10e3   :  { %17219 = vmatprep.mubr.msk.f32.mxu1 %vm333_vm5, %v8856_v35  ;;  %v8860_v35 = vmul.f32 %v22379_v41, %v20773_v11 }
0x10e6   :  { %17220 = vmatmul.mubr.msk.f32.gmra.mrb[114].mxu1 %vm333_vm5, %v8857_v10  ;;  %v8861_v10 = vmul.f32 %v22386_v26, %v20791_v56 }
0x10e7   :  { %17222 = vmatprep.mubr.msk.f32.mxu1 %vm333_vm5, %v8858_v18  ;;  %v8862_v18 = vmul.f32 %v22389_v49, %v20794_v46 }
0x10ea   :  { %17223 = vmatmul.mubr.msk.f32.gmra.mrb[116].mxu1 %vm333_vm5, %v8859_v50  ;;  %v8863_v50 = vmul.f32 %v22396_v25, %v20808_v55 }
0x10eb   :  { %17225 = vmatprep.mubr.msk.f32.mxu1 %vm333_vm5, %v8860_v35  ;;  %v14746_v35 = vld [vmem:[%s23599_s11 + $0x70] sm:$0xff] }
0x10ec   :  { %v18169_v32 = vpack.c.bf16 %v14747_v30, %v14746_v35  ;;  %v9293_v30 = vmul.f32 %v22416_v16, %v23924_v13  ;;  %v22432_v35 = vld [vmem:[#allocation2 + $0x31] sm:$0xff] }
0x10ee   :  { %17226 = vmatmul.mubr.msk.f32.gmra.mrb[118].mxu1 %vm333_vm5, %v8861_v10  ;;  %v22410_v10 = vld [vmem:[#allocation2 + $0x19] sm:$0xff] }
0x10ef   :  { %17228 = vmatprep.mubr.msk.f32.mxu1 %vm333_vm5, %v8862_v18  ;;  %v9291_v18 = vmul.f32 %v9275_v43, %v23922_v36  ;;  %v9292_v3 = vmul.f32 %v22410_v10, %v23956_v28  ;;  %v22435_v28 = vld [vmem:[#allocation2 + $0x39] sm:$0xff] }
0x10f2   :  { %17229 = vmatmul.mubr.msk.f32.gmra.mrb[120].mxu1 %vm333_vm5, %v8863_v50  ;;  %v14765_v50 = vld [vmem:[%s23599_s11 + $0x88] sm:$0xff] }
0x10f3   :  { %17239 = vmatprep.mubr.msk.f32.mxu1 %vm333_vm5, %v9290_v29  ;;  %v18173_v43 = vpack.c.bf16 %v14765_v50, %v14764_v5  ;;  %v9294_v29 = vmul.f32 %v22425_v51, %v23926_v54  ;;  %v22442_v5 = vld [vmem:[#allocation2 + $0x41] sm:$0xff] }
0x10f4   :  { %v9297_v50 = vmul.f32 %v22442_v5, %v23958_v20  ;;  %v22465_v20 = vld [vmem:[#allocation2 + $0x69] sm:$0xff] }
0x10f6   :  { %17240 = vmatmul.mubr.msk.f32.vlgmr.msra.gmra.mrb[106].mxu1 %vm333_vm5, %v9291_v18  ;;  %v9296_v18 = vmul.f32 %v22435_v28, %v23976_v60  ;;  %v22462_v60 = vld [vmem:[#allocation2 + $0x61] sm:$0xff] }
0x10f7   :  { %17242 = vmatprep.mubr.msk.f32.mxu1 %vm333_vm5, %v9292_v3  ;;  %18168 = vmatpush3.bf16.msra.mxu1 %v18165_v0  ;;  %v9295_v0 = vmul.f32 %v22432_v35, %v23975_v31  ;;  %v22445_v3 = vld [vmem:[#allocation2 + $0x49] sm:$0xff] }
0x10f8   :  { %18170 = vmatprep.subr.bf16.mxu1 %v18169_v32  ;;  %24045 = vst [vmem:[#allocation43_spill] sm:$0xff] %v22445_v3 }
0x10fa   :  { %17243 = vmatmul.mubr.msk.f32.gmra.mrb[108].mxu1 %vm333_vm5, %v9293_v30  ;;  %v22452_v30 = vld [vmem:[#allocation2 + $0x51] sm:$0xff] }
0x10fb   :  { %17245 = vmatprep.mubr.msk.f32.mxu1 %vm333_vm5, %v9294_v29  ;;  %18172 = vmatpush3.bf16.msra.mxu1 %v18169_v32  ;;  %v9298_v32 = vmul.f32 %v22445_v3, %v23977_v33  ;;  %24046 = vst [vmem:[#allocation46_spill] sm:$0xff] %v22452_v30  ;;  %v22455_v29 = vld [vmem:[#allocation2 + $0x59] sm:$0xff]  ;;  %v22472_v33 = vld [vmem:[#allocation2 + $0x71] sm:$0xff] }
0x10fc   :  { %18174 = vmatprep.subr.bf16.mxu1 %v18173_v43  ;;  %24047 = vst [vmem:[#allocation47_spill] sm:$0xff] %v22455_v29  ;;  %24048 = vst [vmem:[#allocation48_spill] sm:$0xff] %v22472_v33 }
0x10fe   :  { %17246 = vmatmul.mubr.msk.f32.gmra.mrb[110].mxu1 %vm333_vm5, %v9295_v0  ;;  %v9299_v0 = vmul.f32 %v22452_v30, %v23978_v53  ;;  %v22475_v53 = vld [vmem:[#allocation2 + $0x79] sm:$0xff] }
0x10ff   :  { %17248 = vmatprep.mubr.msk.f32.mxu1 %vm333_vm5, %v9296_v18  ;;  %v9300_v18 = vmul.f32 %v22455_v29, %v23979_v27  ;;  %24049 = vst [vmem:[#allocation49_spill] sm:$0xff] %v22475_v53  ;;  %v22482_v27 = vld [vmem:[#allocation2 + $0x81] sm:$0xff] }
0x1102   :  { %17249 = vmatmul.mubr.msk.f32.gmra.mrb[112].mxu1 %vm333_vm5, %v9297_v50  ;;  %v9301_v50 = vmul.f32 %v22462_v60, %v23980_v40 }
0x1103   :  { %17251 = vmatprep.mubr.msk.f32.mxu1 %vm333_vm5, %v9298_v32  ;;  %v9302_v32 = vmul.f32 %v22465_v20, %v23981_v23  ;;  %v9305_v23 = vmul.f32 %v22482_v27, %v23983_v61  ;;  %v9537_v61 = vmul.f32 %v22338_v8, %v20710_v63 }
0x1106   :  { %17252 = vmatmul.mubr.msk.f32.gmra.mrb[114].mxu1 %vm333_vm5, %v9299_v0  ;;  %v9303_v0 = vmul.f32 %v22472_v33, %v23917_v58 }
0x1107   :  { %17254 = vmatprep.mubr.msk.f32.mxu1 %vm333_vm5, %v9300_v18  ;;  %v9304_v18 = vmul.f32 %v22475_v53, %v23982_v48  ;;  %v14767_v48 = vld [vmem:[%s23599_s11 + $0x98] sm:$0xff] }
0x110a   :  { %17255 = vmatmul.mubr.msk.f32.gmra.mrb[116].mxu1 %vm333_vm5, %v9301_v50  ;;  %v9535_v50 = vmul.f32 %v22323_v42, %v24044_v21  ;;  %v14784_v42 = vld [vmem:[%s23599_s11 + $0xa0] sm:$0xff]  ;;  %v14785_v21 = vld [vmem:[%s23599_s11 + $0xa8] sm:$0xff] }
0x110b   :  { %17257 = vmatprep.mubr.msk.f32.mxu1 %vm333_vm5, %v9302_v32  ;;  %v14766_v32 = vld [vmem:[%s23599_s11 + $0x90] sm:$0xff] }
0x110e   :  { %17258 = vmatmul.mubr.msk.f32.gmra.mrb[118].mxu1 %vm333_vm5, %v9303_v0  ;;  %v9536_v0 = vmul.f32 %v22329_v7, %v20708_v2  ;;  %v9539_v7 = vmul.f32 %v22349_v37, %v20714_v44 }
0x110f   :  { %17260 = vmatprep.mubr.msk.f32.mxu1 %vm333_vm5, %v9304_v18  ;;  %v18177_v18 = vpack.c.bf16 %v14767_v48, %v14766_v32  ;;  %v18181_v48 = vpack.c.bf16 %v14785_v21, %v14784_v42  ;;  %v9542_v21 = vmul.f32 %v22366_v39, %v20731_v38  ;;  %v9544_v32 = vmul.f32 %v22376_v52, %v20741_v59 }
0x1110   :  { %v9547_v42 = vmul.f32 %v22389_v49, %v20773_v11 }
0x1112   :  { %17261 = vmatmul.mubr.msk.f32.gmra.mrb[120].mxu1 %vm333_vm5, %v9305_v23  ;;  %v9538_v23 = vmul.f32 %v22346_v34, %v20712_v14 }
0x1113   :  { %17271 = vmatprep.mubr.msk.f32.mxu1 %vm333_vm5, %v9535_v50  ;;  %v9540_v50 = vmul.f32 %v22356_v17, %v20716_v22 }
0x1116   :  { %17272 = vmatmul.mubr.msk.f32.vlgmr.msra.gmra.mrb[106].mxu1 %vm333_vm5, %v9536_v0  ;;  %v9545_v0 = vmul.f32 %v22379_v41, %v20744_v19 }
0x1117   :  { %17274 = vmatprep.mubr.msk.f32.mxu1 %vm333_vm5, %v9537_v61  ;;  %18176 = vmatpush3.bf16.msra.mxu1 %v18173_v43  ;;  %v9541_v61 = vmul.f32 %v22359_v4, %v20718_v1  ;;  %v9543_v43 = vmul.f32 %v22369_v9, %v20736_v62 }
0x1118   :  { %18178 = vmatprep.subr.bf16.mxu1 %v18177_v18 }
0x111a   :  { %17275 = vmatmul.mubr.msk.f32.gmra.mrb[108].mxu1 %vm333_vm5, %v9538_v23  ;;  %v22539_v23 = vld [vmem:[#allocation2 + $0x87] sm:$0xff] }
0x111b   :  { %17277 = vmatprep.mubr.msk.f32.mxu1 %vm333_vm5, %v9539_v7  ;;  %18180 = vmatpush3.bf16.msra.mxu1 %v18177_v18  ;;  %v9546_v18 = vmul.f32 %v22386_v26, %v20767_v24  ;;  %v9548_v7 = vmul.f32 %v22396_v25, %v20791_v56 }
0x111c   :  { %18182 = vmatprep.subr.bf16.mxu1 %v18181_v48 }
0x111e   :  { %17278 = vmatmul.mubr.msk.f32.gmra.mrb[110].mxu1 %vm333_vm5, %v9540_v50  ;;  %v9549_v50 = vmul.f32 %v22539_v23, %v20794_v46 }
0x111f   :  { %17280 = vmatprep.mubr.msk.f32.mxu1 %vm333_vm5, %v9541_v61  ;;  %v22546_v61 = vld [vmem:[#allocation2 + $0x8f] sm:$0xff] }
0x1122   :  { %17281 = vmatmul.mubr.msk.f32.gmra.mrb[112].mxu1 %vm333_vm5, %v9542_v21  ;;  %v9550_v21 = vmul.f32 %v22546_v61, %v20808_v55 }
0x1123   :  { %17283 = vmatprep.mubr.msk.f32.mxu1 %vm333_vm5, %v9543_v43  ;;  %v14786_v43 = vld [vmem:[%s23599_s11 + $0xb0] sm:$0xff] }
0x1126   :  { %17284 = vmatmul.mubr.msk.f32.gmra.mrb[114].mxu1 %vm333_vm5, %v9544_v32  ;;  %v14787_v32 = vld [vmem:[%s23599_s11 + $0xb8] sm:$0xff] }
0x1127   :  { %17286 = vmatprep.mubr.msk.f32.mxu1 %vm333_vm5, %v9545_v0  ;;  %v18185_v0 = vpack.c.bf16 %v14787_v32, %v14786_v43  ;;  %v24055_v43 = vld [vmem:[#allocation16_spill] sm:$0xff]  ;;  %v24056_v32 = vld [vmem:[#allocation17_spill] sm:$0xff] }
0x112a   :  { %17287 = vmatmul.mubr.msk.f32.gmra.mrb[116].mxu1 %vm333_vm5, %v9546_v18  ;;  %v14804_v18 = vld [vmem:[%s23599_s11 + $0xc0] sm:$0xff] }
0x112b   :  { %17289 = vmatprep.mubr.msk.f32.mxu1 %vm333_vm5, %v9547_v42  ;;  %v14805_v42 = vld [vmem:[%s23599_s11 + $0xc8] sm:$0xff] }
0x112e   :  { %17290 = vmatmul.mubr.msk.f32.gmra.mrb[118].mxu1 %vm333_vm5, %v9548_v7  ;;  %v18189_v7 = vpack.c.bf16 %v14805_v42, %v14804_v18  ;;  %v22593_v18 = vld [vmem:[#allocation2 + $0x88] sm:$0xff]  ;;  %v22597_v42 = vld [vmem:[#allocation2 + $0x90] sm:$0xff] }
0x112f   :  { %17292 = vmatprep.mubr.msk.f32.mxu1 %vm333_vm5, %v9549_v50  ;;  %v24053_v50 = vld [vmem:[#allocation13_spill] sm:$0xff] }
0x1132   :  { %17293 = vmatmul.mubr.msk.f32.gmra.mrb[120].mxu1 %vm333_vm5, %v9550_v21  ;;  %v24054_v21 = vld [vmem:[#allocation14_spill] sm:$0xff] }
0x1133   :  { %17303 = vmatprep.mubr.msk.f32.mxu1 %vm333_vm5, %v22190_v47  ;;  %v24050_v47 = vld [vmem:[#allocation7_spill] sm:$0xff] }
0x1134   :  { %24058 = vst [vmem:[#allocation7_spill] sm:$0xff] %v22593_v18 }
0x1136   :  { %17304 = vmatmul.mubr.msk.f32.vlgmr.msra.gmra.mrb[106].mxu1 %vm333_vm5, %v22200_v12  ;;  %v24051_v12 = vld [vmem:[#allocation9_spill] sm:$0xff] }
0x1137   :  { %17306 = vmatprep.mubr.msk.f32.mxu1 %vm333_vm5, %v22212_v57  ;;  %18184 = vmatpush3.bf16.msra.mxu1 %v18181_v48  ;;  %v24052_v48 = vld [vmem:[#allocation11_spill] sm:$0xff] }
0x1138   :  { %18186 = vmatprep.subr.bf16.mxu1 %v18185_v0 }
0x113a   :  { %17307 = vmatmul.mubr.msk.f32.gmra.mrb[108].mxu1 %vm333_vm5, %v22222_v6 }
0x113b   :  { %17309 = vmatprep.mubr.msk.f32.mxu1 %vm333_vm5, %v22234_v45  ;;  %18188 = vmatpush3.bf16.msra.mxu1 %v18185_v0  ;;  %v24057_v0 = vld [vmem:[#allocation42_spill] sm:$0xff] }
0x113c   :  { %18190 = vmatprep.subr.bf16.mxu1 %v18189_v7 }
0x113e   :  { %17310 = vmatmul.mubr.msk.f32.gmra.mrb[110].mxu1 %vm333_vm5, %v22244_v15 }
0x113f   :  { %17312 = vmatprep.mubr.msk.f32.mxu1 %vm333_vm5, %v24050_v47 }
0x1142   :  { %17313 = vmatmul.mubr.msk.f32.gmra.mrb[112].mxu1 %vm333_vm5, %v24051_v12  ;;  %v14825_v12 = vld [vmem:[%s23599_s11 + $0xe8] sm:$0xff] }
0x1143   :  { %17315 = vmatprep.mubr.msk.f32.mxu1 %vm333_vm5, %v24052_v48 }
0x1146   :  { %17316 = vmatmul.mubr.msk.f32.gmra.mrb[114].mxu1 %vm333_vm5, %v24053_v50  ;;  %v24059_v50 = vld [vmem:[#allocation19_spill] sm:$0xff] }
0x1147   :  { %17318 = vmatprep.mubr.msk.f32.mxu1 %vm333_vm5, %v24054_v21  ;;  %v10009_v48 = vmul.f32 %v22410_v10, %v24059_v50  ;;  %v24060_v21 = vld [vmem:[#allocation21_spill] sm:$0xff] }
0x1148   :  { %v10011_v10 = vmul.f32 %v22425_v51, %v24060_v21  ;;  %v14824_v50 = vld [vmem:[%s23599_s11 + $0xe0] sm:$0xff] }
0x114a   :  { %17319 = vmatmul.mubr.msk.f32.gmra.mrb[116].mxu1 %vm333_vm5, %v24055_v43  ;;  %v14806_v43 = vld [vmem:[%s23599_s11 + $0xd0] sm:$0xff] }
0x114b   :  { %17321 = vmatprep.mubr.msk.f32.mxu1 %vm333_vm5, %v24056_v32  ;;  %v14807_v32 = vld [vmem:[%s23599_s11 + $0xd8] sm:$0xff] }
0x114e   :  { %17322 = vmatmul.mubr.msk.f32.gmra.mrb[118].mxu1 %vm333_vm5, %v24057_v0  ;;  %v18193_v0 = vpack.c.bf16 %v14807_v32, %v14806_v43  ;;  %v10013_v43 = vmul.f32 %v22435_v28, %v23926_v54  ;;  %v10014_v32 = vmul.f32 %v22442_v5, %v23975_v31 }
0x114f   :  { %17324 = vmatprep.mubr.msk.f32.mxu1 %vm333_vm5, %v22593_v18  ;;  %v10010_v18 = vmul.f32 %v22416_v16, %v23922_v36  ;;  %v10012_v16 = vmul.f32 %v22432_v35, %v23924_v13 }
0x1152   :  { %17325 = vmatmul.mubr.msk.f32.gmra.mrb[120].mxu1 %vm333_vm5, %v22597_v42 }
0x1153   :  { %17335 = vmatprep.mubr.msk.f32.mxu1 %vm333_vm5, %v10009_v48  ;;  %v22624_v48 = vpack.c.bf16 %v14825_v12, %v14824_v50  ;;  %v24062_v12 = vld [vmem:[#allocation27_spill] sm:$0xff] }
0x1154   :  { %v10016_v50 = vmul.f32 %v22452_v30, %v24062_v12  ;;  %v24065_v12 = vld [vmem:[#allocation32_spill] sm:$0xff] }
0x1155   :  { %v10019_v30 = vmul.f32 %v22465_v20, %v24065_v12 }
0x1156   :  { %17336 = vmatmul.mubr.msk.f32.vlgmr.msra.gmra.mrb[106].mxu1 %vm333_vm5, %v10010_v18 }
0x1157   :  { %17338 = vmatprep.mubr.msk.f32.mxu1 %vm333_vm5, %v10011_v10  ;;  %18192 = vmatpush3.bf16.msra.mxu1 %v18189_v7  ;;  %v24061_v7 = vld [vmem:[#allocation26_spill] sm:$0xff]  ;;  %v24063_v10 = vld [vmem:[#allocation28_spill] sm:$0xff] }
0x1158   :  { %18194 = vmatprep.subr.bf16.mxu1 %v18193_v0  ;;  %v10015_v18 = vmul.f32 %v22445_v3, %v24061_v7  ;;  %v24066_v3 = vld [vmem:[#allocation36_spill] sm:$0xff] }
0x115a   :  { %17339 = vmatmul.mubr.msk.f32.gmra.mrb[108].mxu1 %vm333_vm5, %v10012_v16  ;;  %v10017_v16 = vmul.f32 %v22455_v29, %v24063_v10  ;;  %v10020_v29 = vmul.f32 %v22472_v33, %v23980_v40  ;;  %v24067_v40 = vld [vmem:[#allocation41_spill] sm:$0xff]  ;;  %v22669_v33 = vld [vmem:[#allocation2 + $0x91] sm:$0xff] }
0x115b   :  { %17341 = vmatprep.mubr.msk.f32.mxu1 %vm333_vm5, %v10013_v43  ;;  %18196 = vmatpush3.bf16.msra.mxu1 %v18193_v0  ;;  %v22645_v0 = vld [vmem:[%s23606_s18] ss:$0 sm:$0xff] }
0x115c   :  { %18198 = vmatprep.subr.bf16.mxu1 %v22624_v48 }
0x115e   :  { %17342 = vmatmul.mubr.msk.f32.gmra.mrb[110].mxu1 %vm333_vm5, %v10014_v32  ;;  %v24064_v32 = vld [vmem:[#allocation31_spill] sm:$0xff] }
0x115f   :  { %17344 = vmatprep.mubr.msk.f32.mxu1 %vm333_vm5, %v10015_v18  ;;  %v10018_v18 = vmul.f32 %v22462_v60, %v24064_v32  ;;  %v10021_v32 = vmul.f32 %v22475_v53, %v24066_v3  ;;  %v24068_v3 = vld [vmem:[#allocation44_spill] sm:$0xff] }
0x1162   :  { %17345 = vmatmul.mubr.msk.f32.gmra.mrb[112].mxu1 %vm333_vm5, %v10016_v50 }
0x1163   :  { %v17119_v43 = vpop.f32.mrb[90].mxu1  ;;  %17347 = vmatprep.mubr.msk.f32.mxu1 %vm333_vm5, %v10017_v16 }
0x1164   :  { %v8479_v7 = vpop.f32.mrb[91].mxu1  ;;  %v8485_v16 = vadd.f32 %v17119_v43, %v22645_v0 }
0x1165   :  { %v8480_v31 = vadd.f32 %v22645_v0, %v8479_v7  ;;  %v22661_v7 = vld [vmem:[#allocation2 + $0x89] sm:$0xff] }
0x1166   :  { %17348 = vmatmul.mubr.msk.f32.gmra.mrb[114].mxu1 %vm333_vm5, %v10018_v18  ;;  %v10023_v43 = vmul.f32 %v22661_v7, %v24067_v40  ;;  %v14826_v40 = vld [vmem:[%s23599_s11 + $0xf0] sm:$0xff] }
0x1167   :  { %v17122_v50 = vpop.f32.mrb[92].mxu1  ;;  %8558 = vxpose.xlu0.b32.start [1/16] (narrow) %v8480_v31, 8  ;;  %17350 = vmatprep.mubr.msk.f32.mxu1 %vm333_vm5, %v10019_v30  ;;  %v10022_v30 = vmul.f32 %v22482_v27, %v23917_v58  ;;  %v24069_v58 = vld [vmem:[#allocation15_spill] sm:$0xff] }
0x1168   :  { %v8489_v10 = vpop.f32.mrb[93].mxu1  ;;  %v8495_v53 = vadd.f32 %v17122_v50, %v22645_v0  ;;  %v10255_v50 = vmul.f32 %v22346_v34, %v20708_v2 }
0x1169   :  { %v8490_v18 = vadd.f32 %v22645_v0, %v8489_v10  ;;  %v10254_v10 = vmul.f32 %v22338_v8, %v24069_v58 }
0x116a   :  { %17351 = vmatmul.mubr.msk.f32.gmra.mrb[116].mxu1 %vm333_vm5, %v10020_v29 }
0x116b   :  { %v17125_v12 = vpop.f32.mrb[94].mxu1  ;;  %8559 = vxpose.xlu0.b32.cont [2/16] (narrow) %v8485_v16, 8  ;;  %17353 = vmatprep.mubr.msk.f32.mxu1 %vm333_vm5, %v10021_v32  ;;  %v10024_v32 = vmul.f32 %v22669_v33, %v24068_v3  ;;  %v14844_v3 = vld [vmem:[%s23599_s11 + $0x100] sm:$0xff] }
0x116c   :  { %v8499_v31 = vpop.f32.mrb[95].mxu1 }
0x116d   :  { %v8500_v8 = vadd.f32 %v22645_v0, %v8499_v31  ;;  %v10257_v31 = vmul.f32 %v22356_v17, %v20712_v14 }
0x116e   :  { %17354 = vmatmul.mubr.msk.f32.gmra.mrb[118].mxu1 %vm333_vm5, %v10022_v30  ;;  %v14827_v30 = vld [vmem:[%s23599_s11 + $0xf8] sm:$0xff] }
0x116f   :  { %v17128_v29 = vpop.f32.mrb[96].mxu1  ;;  %8560 = vxpose.xlu0.b32.cont [3/16] (narrow) %v8490_v18, 8  ;;  %17356 = vmatprep.mubr.msk.f32.mxu1 %vm333_vm5, %v10023_v43  ;;  %v18201_v58 = vpack.c.bf16 %v14827_v30, %v14826_v40  ;;  %v8505_v40 = vadd.f32 %v17125_v12, %v22645_v0  ;;  %v10261_v12 = vmul.f32 %v22376_v52, %v20731_v38 }
0x1170   :  { %v8509_v16 = vpop.f32.mrb[97].mxu1 }
0x1171   :  { %v8510_v17 = vadd.f32 %v22645_v0, %v8509_v16  ;;  %v10264_v16 = vmul.f32 %v22389_v49, %v20744_v19  ;;  %v10267_v49 = vmul.f32 %v22546_v61, %v20791_v56  ;;  %v14846_v61 = vld [vmem:[%s23599_s11 + $0x110] sm:$0xff] }
0x1172   :  { %17357 = vmatmul.mubr.msk.f32.gmra.mrb[120].mxu1 %vm333_vm5, %v10024_v32  ;;  %v10256_v32 = vmul.f32 %v22349_v37, %v20710_v63  ;;  %v10258_v37 = vmul.f32 %v22359_v4, %v20714_v44 }
0x1173   :  { %v17131_v18 = vpop.f32.mrb[98].mxu1  ;;  %8561 = vxpose.xlu0.b32.cont [4/16] (narrow) %v8495_v53, 8  ;;  %17367 = vmatprep.mubr.msk.f32.mxu1 %vm333_vm5, %v10254_v10  ;;  %v14845_v53 = vld [vmem:[%s23599_s11 + $0x108] sm:$0xff] }
0x1174   :  { %v8519_v43 = vpop.f32.mrb[99].mxu1  ;;  %v18205_v30 = vpack.c.bf16 %v14845_v53, %v14844_v3  ;;  %v8515_v53 = vadd.f32 %v17128_v29, %v22645_v0  ;;  %v8525_v52 = vadd.f32 %v17131_v18, %v22645_v0  ;;  %v10266_v29 = vmul.f32 %v22539_v23, %v20773_v11  ;;  %v14847_v18 = vld [vmem:[%s23599_s11 + $0x118] sm:$0xff] }
0x1176   :  { %17368 = vmatmul.mubr.msk.f32.vlgmr.msra.gmra.mrb[106].mxu1 %vm333_vm5, %v10255_v50 }
0x1177   :  { %v17134_v10 = vpop.f32.mrb[100].mxu1  ;;  %8562 = vxpose.xlu0.b32.cont [5/16] (narrow) %v8500_v8, 8  ;;  %17370 = vmatprep.mubr.msk.f32.mxu1 %vm333_vm5, %v10256_v32  ;;  %v10259_v32 = vmul.f32 %v22366_v39, %v20716_v22  ;;  %v10263_v39 = vmul.f32 %v22386_v26, %v20741_v59  ;;  %v10252_v26 = vld [vmem:[#allocation2 + $0x97] sm:$0xff] }
0x1178   :  { %v8529_v34 = vpop.f32.mrb[101].mxu1  ;;  %18200 = vmatpush3.bf16.msra.mxu1 %v22624_v48  ;;  %v10260_v48 = vmul.f32 %v22369_v9, %v20718_v1  ;;  %v8520_v9 = vadd.f32 %v22645_v0, %v8519_v43  ;;  %v8535_v23 = vadd.f32 %v17134_v10, %v22645_v0 }
0x1179   :  { %18202 = vmatprep.subr.bf16.mxu1 %v18201_v58  ;;  %v8530_v43 = vadd.f32 %v22645_v0, %v8529_v34 }
0x117a   :  { %17371 = vmatmul.mubr.msk.f32.gmra.mrb[108].mxu1 %vm333_vm5, %v10257_v31  ;;  %v10268_v31 = vmul.f32 %v10252_v26, %v20794_v46 }
0x117b   :  { %v17137_v50 = vpop.f32.mrb[102].mxu1  ;;  %8563 = vxpose.xlu0.b32.cont [6/16] (narrow) %v8505_v40, 8  ;;  %17373 = vmatprep.mubr.msk.f32.mxu1 %vm333_vm5, %v10258_v37  ;;  %v10253_v40 = vld [vmem:[#allocation2 + $0x9f] sm:$0xff]  ;;  %v18209_v37 = vpack.c.bf16 %v14847_v18, %v14846_v61  ;;  %v24090_v61 = vld [vmem:[#allocation35_spill] sm:$0xff] }
0x117c   :  { %v8539_v8 = vpop.f32.mrb[103].mxu1  ;;  %18204 = vmatpush3.bf16.msra.mxu1 %v18201_v58  ;;  %v10262_v58 = vmul.f32 %v22379_v41, %v20736_v62  ;;  %v10265_v41 = vmul.f32 %v22396_v25, %v20767_v24  ;;  %v10269_v25 = vmul.f32 %v10253_v40, %v20808_v55  ;;  %v8545_v10 = vadd.f32 %v17137_v50, %v22645_v0  ;;  %v24075_v50 = vld [vmem:[#allocation17_spill] sm:$0xff]  ;;  %v24088_v40 = vld [vmem:[#allocation32_spill] sm:$0xff] }
0x117d   :  { %18206 = vmatprep.subr.bf16.mxu1 %v18205_v30  ;;  %v8540_v34 = vadd.f32 %v22645_v0, %v8539_v8  ;;  %v24070_v8 = vld [vmem:[#allocation9_spill] sm:$0xff]  ;;  %v24091_v18 = vld [vmem:[#allocation36_spill] sm:$0xff] }
0x117e   :  { %17374 = vmatmul.mubr.msk.f32.gmra.mrb[110].mxu1 %vm333_vm5, %v10259_v32  ;;  %v24076_v32 = vld [vmem:[#allocation42_spill] sm:$0xff] }
0x117f   :  { %8564 = vxpose.xlu0.b32.cont [7/16] (narrow) %v8510_v17, 8  ;;  %v17140_v4 = vpop.f32.mrb[104].mxu1  ;;  %17376 = vmatprep.mubr.msk.f32.mxu1 %vm333_vm5, %v10260_v48  ;;  %v24077_v17 = vld [vmem:[#allocation7_spill] sm:$0xff]  ;;  %v10498_v48 = vld [vmem:[#allocation2 + $0xa0] sm:$0xff] }
0x1180   :  { %v8549_v3 = vpop.f32.mrb[105].mxu1 }
0x1182   :  { %17377 = vmatmul.mubr.msk.f32.gmra.mrb[112].mxu1 %vm333_vm5, %v10261_v12  ;;  %v10729_v12 = vmul.f32 %v22432_v35, %v23922_v36 }
0x1183   :  { %8565 = vxpose.xlu0.b32.cont [8/16] (narrow) %v8515_v53, 8  ;;  %17379 = vmatprep.mubr.msk.f32.mxu1 %vm333_vm5, %v10262_v58  ;;  %v10730_v53 = vmul.f32 %v22435_v28, %v24060_v21  ;;  %v24079_v58 = vld [vmem:[#allocation43_spill] sm:$0xff] }
0x1186   :  { %17380 = vmatmul.mubr.msk.f32.gmra.mrb[114].mxu1 %vm333_vm5, %v10263_v39  ;;  %v24080_v39 = vld [vmem:[#allocation25_spill] sm:$0xff] }
0x1187   :  { %8566 = vxpose.xlu0.b32.cont [9/16] (narrow) %v8520_v9, 8  ;;  %17382 = vmatprep.mubr.msk.f32.mxu1 %vm333_vm5, %v10264_v16  ;;  %v24081_v9 = vld [vmem:[#allocation46_spill] sm:$0xff] }
0x1188   :  { %v10733_v35 = vmul.f32 %v24081_v9, %v24080_v39  ;;  %v24082_v16 = vld [vmem:[#allocation26_spill] sm:$0xff] }
0x1189   :  { %v14902_v9 = vld [vmem:[%s23601_s13 + $0x48] sm:$0xff] }
0x118a   :  { %17383 = vmatmul.mubr.msk.f32.gmra.mrb[116].mxu1 %vm333_vm5, %v10265_v41  ;;  %v24083_v41 = vld [vmem:[#allocation47_spill] sm:$0xff] }
0x118b   :  { %8567 = vxpose.xlu0.b32.cont [10/16] (narrow) %v8525_v52, 8  ;;  %17385 = vmatprep.mubr.msk.f32.mxu1 %vm333_vm5, %v10266_v29  ;;  %v10734_v28 = vmul.f32 %v24083_v41, %v24082_v16  ;;  %v24084_v52 = vld [vmem:[#allocation27_spill] sm:$0xff]  ;;  %v24085_v29 = vld [vmem:[#allocation28_spill] sm:$0xff]  ;;  %v22875_v41 = vld [vmem:[%s23602_s12] ss:$0 sm:$0xff] }
0x118c   :  { %v10736_v26 = vmul.f32 %v22465_v20, %v24085_v29  ;;  %v10740_v20 = vmul.f32 %v22661_v7, %v24091_v18  ;;  %v22833_v7 = vld [vmem:[%s23603_s15] sm:$0xff] }
0x118d   :  { %24095 = vst [vmem:[#allocation9_spill] sm:$0xff] %v22833_v7 }
0x118e   :  { %17386 = vmatmul.mubr.msk.f32.gmra.mrb[118].mxu1 %vm333_vm5, %v10267_v49  ;;  %v24086_v49 = vld [vmem:[#allocation31_spill] sm:$0xff] }
0x118f   :  { %8568 = vxpose.xlu0.b32.cont [11/16] (narrow) %v8530_v43, 8  ;;  %17388 = vmatprep.mubr.msk.f32.mxu1 %vm333_vm5, %v10268_v31  ;;  %v24087_v43 = vld [vmem:[#allocation48_spill] sm:$0xff] }
0x1190   :  { %v10737_v31 = vmul.f32 %v24087_v43, %v24086_v49 }
0x1192   :  { %17389 = vmatmul.mubr.msk.f32.gmra.mrb[120].mxu1 %vm333_vm5, %v10269_v25  ;;  %v24089_v25 = vld [vmem:[#allocation49_spill] sm:$0xff] }
0x1193   :  { %8569 = vxpose.xlu0.b32.cont [12/16] (narrow) %v8535_v23, 8  ;;  %17399 = vmatprep.mubr.msk.f32.mxu1 %vm333_vm5, %v22212_v57  ;;  %v8550_v57 = vadd.f32 %v22645_v0, %v8549_v3  ;;  %v10738_v23 = vmul.f32 %v24089_v25, %v24088_v40 }
0x1196   :  { %17400 = vmatmul.mubr.msk.f32.vlgmr.msra.gmra.mrb[106].mxu1 %vm333_vm5, %v22222_v6  ;;  %v24071_v6 = vld [vmem:[#allocation11_spill] sm:$0xff] }
0x1197   :  { %8570 = vxpose.xlu0.b32.cont [13/16] (narrow) %v8540_v34, 8  ;;  %17402 = vmatprep.mubr.msk.f32.mxu1 %vm333_vm5, %v22234_v45  ;;  %v8555_v45 = vadd.f32 %v17140_v4, %v22645_v0  ;;  %v10497_v0 = vld [vmem:[#allocation2 + $0x98] sm:$0xff]  ;;  %v24078_v4 = vld [vmem:[#allocation19_spill] sm:$0xff] }
0x1198   :  { %18208 = vmatpush3.bf16.msra.mxu1 %v18205_v30  ;;  %v24072_v30 = vld [vmem:[#allocation13_spill] sm:$0xff]  ;;  %v10728_v3 = vmul.f32 %v22425_v51, %v24078_v4  ;;  %v10732_v51 = vmul.f32 %v24079_v58, %v23926_v54 }
0x1199   :  { %18210 = vmatprep.subr.bf16.mxu1 %v18209_v37  ;;  %v10726_v34 = vld [vmem:[#allocation2 + $0x99] sm:$0xff] }
0x119a   :  { %17403 = vmatmul.mubr.msk.f32.gmra.mrb[108].mxu1 %vm333_vm5, %v22244_v15  ;;  %v24073_v15 = vld [vmem:[#allocation14_spill] sm:$0xff] }
0x119b   :  { %8571 = vxpose.xlu0.b32.cont [14/16] (narrow) %v8545_v10, 8  ;;  %17405 = vmatprep.mubr.msk.f32.mxu1 %vm333_vm5, %v24050_v47  ;;  %v24074_v47 = vld [vmem:[#allocation16_spill] sm:$0xff] }
0x119c   :  { %18212 = vmatpush3.bf16.msra.mxu1 %v18209_v37  ;;  %v24092_v37 = vld [vmem:[#allocation40_spill] sm:$0xff] }
0x119d   :  { %v10741_v10 = vmul.f32 %v22669_v33, %v24092_v37  ;;  %v14865_v33 = vld [vmem:[%s23601_s13 + $0x20] sm:$0xff] }
0x119e   :  { %17406 = vmatmul.mubr.msk.f32.gmra.mrb[110].mxu1 %vm333_vm5, %v24070_v8 }
0x119f   :  { %17408 = vmatprep.mubr.msk.f32.mxu1 %vm333_vm5, %v24071_v6  ;;  %8572 = vxpose.xlu0.b32.cont [15/16] (narrow) %v8550_v57, 8  ;;  %v24093_v57 = vld [vmem:[#allocation41_spill] sm:$0xff] }
0x11a0   :  { %v10742_v8 = vmul.f32 %v10726_v34, %v24093_v57  ;;  %v10727_v6 = vld [vmem:[#allocation2 + $0xa1] sm:$0xff] }
0x11a2   :  { %17409 = vmatmul.mubr.msk.f32.gmra.mrb[112].mxu1 %vm333_vm5, %v24072_v30  ;;  %v14866_v30 = vld [vmem:[%s23601_s13 + $0x28] sm:$0xff] }
0x11a3   :  { %17411 = vmatprep.mubr.msk.f32.mxu1 %vm333_vm5, %v24073_v15  ;;  %8573 = vxpose.xlu0.b32.end [16/16] (narrow) %v8555_v45, 8  ;;  %v24094_v45 = vld [vmem:[#allocation44_spill] sm:$0xff]  ;;  %v18213_v15 = vpack.c.bf16 %v14866_v30, %v14865_v33 }
0x11a5   :  { %18214 = vmatprep.subr.bf16.mxu0 %v18213_v15 }
0x11a6   :  { %17412 = vmatmul.mubr.msk.f32.gmra.mrb[114].mxu1 %vm333_vm5, %v24074_v47  ;;  %18216 = vmatpush3.bf16.msra.mxu0 %v18213_v15  ;;  %v14867_v47 = vld [vmem:[%s23601_s13 + $0x30] sm:$0xff] }
0x11a7   :  { %17414 = vmatprep.mubr.msk.f32.mxu1 %vm333_vm5, %v24075_v50  ;;  %v14868_v50 = vld [vmem:[%s23601_s13 + $0x38] sm:$0xff] }
0x11aa   :  { %17415 = vmatmul.mubr.msk.f32.gmra.mrb[116].mxu1 %vm333_vm5, %v24076_v32  ;;  %v18217_v32 = vpack.c.bf16 %v14868_v50, %v14867_v47 }
0x11ab   :  { %17417 = vmatprep.mubr.msk.f32.mxu1 %vm333_vm5, %v24077_v17  ;;  %v11048_v17 = vld [vmem:[#allocation2 + $0x8] sm:$0xff] }
0x11ac   :  { %18218 = vmatprep.subr.bf16.mxu0 %v18217_v32  ;;  %17463 = vmatprep.mubr.msk.f32.mxu0 %vm333_vm5, %v11048_v17 }
0x11ad   :  { %18220 = vmatpush3.bf16.msra.mxu0 %v18217_v32 }
0x11ae   :  { %17418 = vmatmul.mubr.msk.f32.gmra.mrb[118].mxu1 %vm333_vm5, %v22597_v42  ;;  %v10731_v42 = vmul.f32 %v22442_v5, %v23924_v13  ;;  %v10735_v5 = vmul.f32 %v22462_v60, %v24084_v52  ;;  %v10739_v60 = vmul.f32 %v22482_v27, %v24090_v61  ;;  %v10743_v27 = vmul.f32 %v10727_v6, %v24094_v45 }
0x11af   :  { %17420 = vmatprep.mubr.msk.f32.mxu1 %vm333_vm5, %v10497_v0  ;;  %v11049_v0 = vld [vmem:[#allocation2 + $0x10] sm:$0xff] }
0x11b0   :  { %17464 = vmatmul.mubr.msk.f32.vlgmr.msra.gmra.mrb[122].mxu0 %vm333_vm5, %v11049_v0 }
0x11b2   :  { %17421 = vmatmul.mubr.msk.f32.gmra.mrb[120].mxu1 %vm333_vm5, %v10498_v48  ;;  %v11044_v48 = vld [vmem:[%s23601_s13] sm:$0xff] }
0x11b3   :  { %17431 = vmatprep.mubr.msk.f32.mxu1 %vm333_vm5, %v10728_v3  ;;  %v11045_v3 = vld [vmem:[%s23601_s13 + $0x8] sm:$0xff] }
0x11b6   :  { %17432 = vmatmul.mubr.msk.f32.vlgmr.msra.gmra.mrb[106].mxu1 %vm333_vm5, %v10729_v12  ;;  %v18221_v12 = vpack.c.bf16 %v11045_v3, %v11044_v48 }
0x11b7   :  { %17434 = vmatprep.mubr.msk.f32.mxu1 %vm333_vm5, %v10730_v53  ;;  %v11046_v53 = vld [vmem:[%s23601_s13 + $0x10] sm:$0xff] }
0x11b8   :  { %18222 = vmatprep.subr.bf16.mxu0 %v18221_v12 }
0x11b9   :  { %18224 = vmatpush3.bf16.msra.mxu0 %v18221_v12 }
0x11ba   :  { %17435 = vmatmul.mubr.msk.f32.gmra.mrb[108].mxu1 %vm333_vm5, %v10731_v42  ;;  %v11047_v42 = vld [vmem:[%s23601_s13 + $0x18] sm:$0xff] }
0x11bb   :  { %17437 = vmatprep.mubr.msk.f32.mxu1 %vm333_vm5, %v10732_v51  ;;  %v18225_v58 = vpack.c.bf16 %v11047_v42, %v11046_v53  ;;  %v14901_v51 = vld [vmem:[%s23601_s13 + $0x40] sm:$0xff] }
0x11bd   :  { %18226 = vmatprep.subr.bf16.mxu0 %v18225_v58 }
0x11be   :  { %17438 = vmatmul.mubr.msk.f32.gmra.mrb[110].mxu1 %vm333_vm5, %v10733_v35  ;;  %18228 = vmatpush3.bf16.msra.mxu0 %v18225_v58  ;;  %v22869_v35 = vpack.c.bf16 %v14902_v9, %v14901_v51 }
0x11bf   :  { %17440 = vmatprep.mubr.msk.f32.mxu1 %vm333_vm5, %v10734_v28 }
0x11c0   :  { %18230 = vmatprep.subr.bf16.mxu0 %v22869_v35 }
0x11c2   :  { %17441 = vmatmul.mubr.msk.f32.gmra.mrb[112].mxu1 %vm333_vm5, %v10735_v5 }
0x11c3   :  { %17443 = vmatprep.mubr.msk.f32.mxu1 %vm333_vm5, %v10736_v26 }
0x11c6   :  { %17444 = vmatmul.mubr.msk.f32.gmra.mrb[114].mxu1 %vm333_vm5, %v10737_v31 }
0x11c7   :  { %17446 = vmatprep.mubr.msk.f32.mxu1 %vm333_vm5, %v10738_v23 }
0x11ca   :  { %17447 = vmatmul.mubr.msk.f32.gmra.mrb[116].mxu1 %vm333_vm5, %v10739_v60 }
0x11cb   :  { %17449 = vmatprep.mubr.msk.f32.mxu1 %vm333_vm5, %v10740_v20 }
0x11ce   :  { %17450 = vmatmul.mubr.msk.f32.gmra.mrb[118].mxu1 %vm333_vm5, %v10741_v10 }
0x11cf   :  { %17452 = vmatprep.mubr.msk.f32.mxu1 %vm333_vm5, %v10742_v8 }
0x11d2   :  { %17453 = vmatmul.mubr.msk.f32.gmra.mrb[120].mxu1 %vm333_vm5, %v10743_v27 }
0x11d3   :  { %17747 = vmatprep.mubr.msk.f32.mxu1 %vm7752_vm9, %v22833_v7 }
0x1289   :  { %v17433_v28 = vpop.f32.mrb[106].mxu1 }
0x128a   :  { %v10965_v5 = vadd.f32 %v17433_v28, %v22875_v41  ;;  %v10862_v26 = vpop.f32.mrb[107].mxu1 }
0x128b   :  { %v10964_v43 = vadd.f32 %v22875_v41, %v10862_v26 }
0x128c   :  { %v10981_v31 = vmax.f32 %v10965_v5, 0.0 }
0x128d   :  { %v10980_v25 = vmax.f32 %v10964_v43, 0.0  ;;  %v17436_v23 = vpop.f32.mrb[108].mxu1 }
0x128e   :  { %10997 = vst.msk [vmem:[#allocation2 + $0x20] sm:$0xff] %vm333_vm5, %v10981_v31  ;;  %v10967_v60 = vadd.f32 %v17436_v23, %v22875_v41  ;;  %v10872_v20 = vpop.f32.mrb[109].mxu1 }
0x128f   :  { %10996 = vst.msk [vmem:[#allocation2 + $0x18] sm:$0xff] %vm333_vm5, %v10980_v25  ;;  %v10966_v34 = vadd.f32 %v22875_v41, %v10872_v20 }
0x1290   :  { %v10983_v10 = vmax.f32 %v10967_v60, 0.0 }
0x1291   :  { %v10982_v8 = vmax.f32 %v10966_v34, 0.0  ;;  %v17439_v6 = vpop.f32.mrb[110].mxu1 }
0x1292   :  { %10999 = vst.msk [vmem:[#allocation2 + $0x30] sm:$0xff] %vm333_vm5, %v10983_v10  ;;  %v10969_v27 = vadd.f32 %v17439_v6, %v22875_v41  ;;  %v10882_v33 = vpop.f32.mrb[111].mxu1 }
0x1293   :  { %10998 = vst.msk [vmem:[#allocation2 + $0x28] sm:$0xff] %vm333_vm5, %v10982_v8  ;;  %v10968_v30 = vadd.f32 %v22875_v41, %v10882_v33 }
0x1294   :  { %v10985_v15 = vmax.f32 %v10969_v27, 0.0 }
0x1295   :  { %v10984_v47 = vmax.f32 %v10968_v30, 0.0  ;;  %v17442_v50 = vpop.f32.mrb[112].mxu1  ;;  %v22895_v3 = vld [vmem:[#allocation2 + $0x20] sm:$0xff] }
0x1296   :  { %11001 = vst.msk [vmem:[#allocation2 + $0x40] sm:$0xff] %vm333_vm5, %v10985_v15  ;;  %v10971_v32 = vadd.f32 %v17442_v50, %v22875_v41  ;;  %v10892_v17 = vpop.f32.mrb[113].mxu1  ;;  %v22889_v0 = vld [vmem:[#allocation2 + $0x18] sm:$0xff] }
0x1297   :  { %11000 = vst.msk [vmem:[#allocation2 + $0x38] sm:$0xff] %vm333_vm5, %v10984_v47  ;;  %v10970_v48 = vadd.f32 %v22875_v41, %v10892_v17  ;;  %17466 = vmatprep.mubr.msk.f32.mxu0 %vm333_vm5, %v22889_v0 }
0x1298   :  { %v10987_v12 = vmax.f32 %v10971_v32, 0.0  ;;  %17467 = vmatmul.mubr.msk.f32.gmra.mrb[124].mxu0 %vm333_vm5, %v22895_v3 }
0x1299   :  { %v10986_v53 = vmax.f32 %v10970_v48, 0.0  ;;  %v17445_v42 = vpop.f32.mrb[114].mxu1  ;;  %v22907_v5 = vld [vmem:[#allocation2 + $0x30] sm:$0xff] }
0x129a   :  { %11003 = vst.msk [vmem:[#allocation2 + $0x50] sm:$0xff] %vm333_vm5, %v10987_v12  ;;  %v10973_v58 = vadd.f32 %v17445_v42, %v22875_v41  ;;  %v10902_v51 = vpop.f32.mrb[115].mxu1  ;;  %v22901_v9 = vld [vmem:[#allocation2 + $0x28] sm:$0xff] }
0x129b   :  { %11002 = vst.msk [vmem:[#allocation2 + $0x48] sm:$0xff] %vm333_vm5, %v10986_v53  ;;  %v10972_v28 = vadd.f32 %v22875_v41, %v10902_v51  ;;  %17469 = vmatprep.mubr.msk.f32.mxu0 %vm333_vm5, %v22901_v9 }
0x129c   :  { %v10989_v26 = vmax.f32 %v10973_v58, 0.0  ;;  %17470 = vmatmul.mubr.msk.f32.gmra.mrb[126].mxu0 %vm333_vm5, %v22907_v5 }
0x129d   :  { %v10988_v43 = vmax.f32 %v10972_v28, 0.0  ;;  %v17448_v31 = vpop.f32.mrb[116].mxu1  ;;  %v22919_v34 = vld [vmem:[#allocation2 + $0x40] sm:$0xff] }
0x129e   :  { %11005 = vst.msk [vmem:[#allocation2 + $0x60] sm:$0xff] %vm333_vm5, %v10989_v26  ;;  %v10975_v25 = vadd.f32 %v17448_v31, %v22875_v41  ;;  %v10912_v23 = vpop.f32.mrb[117].mxu1  ;;  %v22913_v60 = vld [vmem:[#allocation2 + $0x38] sm:$0xff] }
0x129f   :  { %11004 = vst.msk [vmem:[#allocation2 + $0x58] sm:$0xff] %vm333_vm5, %v10988_v43  ;;  %v10974_v20 = vadd.f32 %v22875_v41, %v10912_v23  ;;  %17472 = vmatprep.mubr.msk.f32.mxu0 %vm333_vm5, %v22913_v60  ;;  %v11012_v43 = vld [vmem:[#allocation2 + $0x7] sm:$0xff] }
0x12a0   :  { %v10991_v10 = vmax.f32 %v10975_v25, 0.0  ;;  %17473 = vmatmul.mubr.msk.f32.gmra.mrb[128].mxu0 %vm333_vm5, %v22919_v34  ;;  %v11013_v25 = vld [vmem:[#allocation2 + $0xf] sm:$0xff] }
0x12a1   :  { %v10990_v8 = vmax.f32 %v10974_v20, 0.0  ;;  %v17451_v6 = vpop.f32.mrb[118].mxu1  ;;  %v22931_v47 = vld [vmem:[#allocation2 + $0x50] sm:$0xff] }
0x12a2   :  { %11007 = vst.msk [vmem:[#allocation2 + $0x70] sm:$0xff] %vm333_vm5, %v10991_v10  ;;  %v10977_v27 = vadd.f32 %v17451_v6, %v22875_v41  ;;  %v10922_v33 = vpop.f32.mrb[119].mxu1  ;;  %v22925_v30 = vld [vmem:[#allocation2 + $0x48] sm:$0xff]  ;;  %24097 = vst [vmem:[#allocation13_spill] sm:$0xff] %v22931_v47  ;;  %v24104_v20 = vld [vmem:[#allocation15_spill] sm:$0xff] }
0x12a3   :  { %24096 = vst [vmem:[#allocation11_spill] sm:$0xff] %v22925_v30  ;;  %11006 = vst.msk [vmem:[#allocation2 + $0x68] sm:$0xff] %vm333_vm5, %v10990_v8  ;;  %v10976_v15 = vadd.f32 %v22875_v41, %v10922_v33  ;;  %17475 = vmatprep.mubr.msk.f32.mxu0 %vm333_vm5, %v22925_v30  ;;  %v11028_v10 = vmul.f32 %v11012_v43, %v24104_v20  ;;  %v14903_v8 = vld [vmem:[%s23601_s13 + $0x50] sm:$0xff]  ;;  %v14904_v6 = vld [vmem:[%s23601_s13 + $0x58] sm:$0xff]  ;;  %v11029_v33 = vmul.f32 %v11013_v25, %v20708_v2 }
0x12a4   :  { %v10993_v50 = vmax.f32 %v10977_v27, 0.0  ;;  %17476 = vmatmul.mubr.msk.f32.gmra.mrb[130].mxu0 %vm333_vm5, %v22931_v47  ;;  %v22972_v27 = vld [vmem:[#allocation2 + $0x17] sm:$0xff]  ;;  %v22995_v43 = vld [vmem:[#allocation2 + $0x2f] sm:$0xff]  ;;  %v14941_v47 = vld [vmem:[%s23601_s13 + $0x80] sm:$0xff] }
0x12a5   :  { %v10992_v32 = vmax.f32 %v10976_v15, 0.0  ;;  %v17454_v17 = vpop.f32.mrb[120].mxu1  ;;  %v22943_v58 = vld [vmem:[#allocation2 + $0x60] sm:$0xff]  ;;  %v18233_v15 = vpack.c.bf16 %v14904_v6, %v14903_v8  ;;  %v22998_v25 = vld [vmem:[#allocation2 + $0x37] sm:$0xff]  ;;  %v23074_v30 = vld [vmem:[#allocation2 + $0x29] sm:$0xff] }
0x12a6   :  { %11009 = vst.msk [vmem:[#allocation2 + $0x80] sm:$0xff] %vm333_vm5, %v10993_v50  ;;  %v10979_v48 = vadd.f32 %v17454_v17, %v22875_v41  ;;  %v10932_v12 = vpop.f32.mrb[121].mxu1  ;;  %v22937_v53 = vld [vmem:[#allocation2 + $0x58] sm:$0xff]  ;;  %24099 = vst [vmem:[#allocation16_spill] sm:$0xff] %v22943_v58  ;;  %v11030_v50 = vmul.f32 %v22972_v27, %v20710_v63  ;;  %v14921_v17 = vld [vmem:[%s23601_s13 + $0x60] sm:$0xff] }
0x12a7   :  { %24098 = vst [vmem:[#allocation14_spill] sm:$0xff] %v22937_v53  ;;  %11008 = vst.msk [vmem:[#allocation2 + $0x78] sm:$0xff] %vm333_vm5, %v10992_v32  ;;  %v10978_v42 = vadd.f32 %v22875_v41, %v10932_v12  ;;  %17478 = vmatprep.mubr.msk.f32.mxu0 %vm333_vm5, %v22937_v53  ;;  %v22978_v32 = vld [vmem:[#allocation2 + $0x1f] sm:$0xff]  ;;  %v22987_v12 = vld [vmem:[#allocation2 + $0x27] sm:$0xff] }
0x12a8   :  { %v10995_v51 = vmax.f32 %v10979_v48, 0.0  ;;  %17479 = vmatmul.mubr.msk.f32.gmra.mrb[132].mxu0 %vm333_vm5, %v22943_v58  ;;  %v14922_v48 = vld [vmem:[%s23601_s13 + $0x68] sm:$0xff]  ;;  %v23005_v8 = vld [vmem:[#allocation2 + $0x3f] sm:$0xff] }
0x12a9   :  { %v10994_v28 = vmax.f32 %v10978_v42, 0.0  ;;  %v22953_v41 = vld [vmem:[#allocation2 + $0x70] sm:$0xff]  ;;  %v11031_v42 = vmul.f32 %v22978_v32, %v20712_v14  ;;  %v23008_v6 = vld [vmem:[#allocation2 + $0x47] sm:$0xff]  ;;  %v14924_v58 = vld [vmem:[%s23601_s13 + $0x78] sm:$0xff] }
0x12aa   :  { %11011 = vst.msk [vmem:[#allocation2 + $0x90] sm:$0xff] %vm333_vm5, %v10995_v51  ;;  %v22948_v26 = vld [vmem:[#allocation2 + $0x68] sm:$0xff]  ;;  %24101 = vst [vmem:[#allocation42_spill] sm:$0xff] %v22953_v41  ;;  %v18237_v51 = vpack.c.bf16 %v14922_v48, %v14921_v17  ;;  %v23018_v17 = vld [vmem:[#allocation2 + $0x57] sm:$0xff] }
0x12ab   :  { %24100 = vst [vmem:[#allocation17_spill] sm:$0xff] %v22948_v26  ;;  %11010 = vst.msk [vmem:[#allocation2 + $0x88] sm:$0xff] %vm333_vm5, %v10994_v28  ;;  %17481 = vmatprep.mubr.msk.f32.mxu0 %vm333_vm5, %v22948_v26  ;;  %v11032_v28 = vmul.f32 %v22987_v12, %v20714_v44  ;;  %v11455_v26 = vld [vmem:[#allocation2 + $0x11] sm:$0xff] }
0x12ac   :  { %17482 = vmatmul.mubr.msk.f32.gmra.mrb[134].mxu0 %vm333_vm5, %v22953_v41 }
0x12ad   :  { %v22961_v23 = vld [vmem:[#allocation2 + $0x80] sm:$0xff] }
0x12ae   :  { %v22957_v31 = vld [vmem:[#allocation2 + $0x78] sm:$0xff]  ;;  %24103 = vst [vmem:[#allocation43_spill] sm:$0xff] %v22961_v23 }
0x12af   :  { %24102 = vst [vmem:[#allocation7_spill] sm:$0xff] %v22957_v31  ;;  %17484 = vmatprep.mubr.msk.f32.mxu0 %vm333_vm5, %v22957_v31  ;;  %v23038_v7 = vld [vmem:[#allocation2 + $0x77] sm:$0xff]  ;;  %v11454_v31 = vld [vmem:[#allocation2 + $0x9] sm:$0xff] }
0x12b0   :  { %17485 = vmatmul.mubr.msk.f32.gmra.mrb[136].mxu0 %vm333_vm5, %v22961_v23  ;;  %v23045_v23 = vld [vmem:[#allocation2 + $0x7f] sm:$0xff]  ;;  %v11470_v41 = vmul.f32 %v11454_v31, %v24078_v4 }
0x12b1   :  { %17495 = vmatprep.mubr.msk.f32.mxu0 %vm333_vm5, %v11028_v10  ;;  %v11034_v10 = vmul.f32 %v22998_v25, %v20718_v1  ;;  %v23065_v4 = vld [vmem:[#allocation2 + $0x21] sm:$0xff] }
0x12b4   :  { %17496 = vmatmul.mubr.msk.f32.vlgmr.msra.gmra.mrb[122].mxu0 %vm333_vm5, %v11029_v33  ;;  %v11035_v33 = vmul.f32 %v23005_v8, %v20731_v38 }
0x12b5   :  { %17498 = vmatprep.mubr.msk.f32.mxu0 %vm333_vm5, %v11030_v50  ;;  %18232 = vmatpush3.bf16.msra.mxu0 %v22869_v35  ;;  %v11033_v35 = vmul.f32 %v22995_v43, %v20716_v22  ;;  %v23015_v50 = vld [vmem:[#allocation2 + $0x4f] sm:$0xff] }
0x12b6   :  { %18234 = vmatprep.subr.bf16.mxu0 %v18233_v15  ;;  %v11037_v48 = vmul.f32 %v23015_v50, %v20741_v59 }
0x12b8   :  { %17499 = vmatmul.mubr.msk.f32.gmra.mrb[124].mxu0 %vm333_vm5, %v11031_v42  ;;  %v11038_v42 = vmul.f32 %v23018_v17, %v20744_v19 }
0x12b9   :  { %17501 = vmatprep.mubr.msk.f32.mxu0 %vm333_vm5, %v11032_v28  ;;  %18236 = vmatpush3.bf16.msra.mxu0 %v18233_v15  ;;  %v11036_v15 = vmul.f32 %v23008_v6, %v20736_v62  ;;  %v23025_v28 = vld [vmem:[#allocation2 + $0x5f] sm:$0xff] }
0x12ba   :  { %18238 = vmatprep.subr.bf16.mxu0 %v18237_v51 }
0x12bc   :  { %17502 = vmatmul.mubr.msk.f32.gmra.mrb[126].mxu0 %vm333_vm5, %v11033_v35  ;;  %v23028_v35 = vld [vmem:[#allocation2 + $0x67] sm:$0xff] }
0x12bd   :  { %17504 = vmatprep.mubr.msk.f32.mxu0 %vm333_vm5, %v11034_v10  ;;  %v11039_v10 = vmul.f32 %v23025_v28, %v20767_v24 }
0x12c0   :  { %17505 = vmatmul.mubr.msk.f32.gmra.mrb[128].mxu0 %vm333_vm5, %v11035_v33  ;;  %v11040_v33 = vmul.f32 %v23028_v35, %v20773_v11 }
0x12c1   :  { %17507 = vmatprep.mubr.msk.f32.mxu0 %vm333_vm5, %v11036_v15  ;;  %v23035_v15 = vld [vmem:[#allocation2 + $0x6f] sm:$0xff] }
0x12c4   :  { %17508 = vmatmul.mubr.msk.f32.gmra.mrb[130].mxu0 %vm333_vm5, %v11037_v48  ;;  %v11041_v48 = vmul.f32 %v23035_v15, %v20791_v56 }
0x12c5   :  { %17510 = vmatprep.mubr.msk.f32.mxu0 %vm333_vm5, %v11038_v42  ;;  %v11042_v42 = vmul.f32 %v23038_v7, %v20794_v46 }
0x12c8   :  { %17511 = vmatmul.mubr.msk.f32.gmra.mrb[132].mxu0 %vm333_vm5, %v11039_v10  ;;  %v11043_v10 = vmul.f32 %v23045_v23, %v20808_v55 }
0x12c9   :  { %17513 = vmatprep.mubr.msk.f32.mxu0 %vm333_vm5, %v11040_v33  ;;  %v14923_v33 = vld [vmem:[%s23601_s13 + $0x70] sm:$0xff] }
0x12ca   :  { %v18241_v53 = vpack.c.bf16 %v14924_v58, %v14923_v33  ;;  %v11473_v58 = vmul.f32 %v23065_v4, %v23924_v13  ;;  %v23081_v33 = vld [vmem:[#allocation2 + $0x31] sm:$0xff] }
0x12cc   :  { %17514 = vmatmul.mubr.msk.f32.gmra.mrb[134].mxu0 %vm333_vm5, %v11041_v48  ;;  %v23059_v48 = vld [vmem:[#allocation2 + $0x19] sm:$0xff] }
0x12cd   :  { %17516 = vmatprep.mubr.msk.f32.mxu0 %vm333_vm5, %v11042_v42  ;;  %v11471_v42 = vmul.f32 %v11455_v26, %v23922_v36  ;;  %v11472_v31 = vmul.f32 %v23059_v48, %v24060_v21  ;;  %v23084_v21 = vld [vmem:[#allocation2 + $0x39] sm:$0xff] }
0x12d0   :  { %17517 = vmatmul.mubr.msk.f32.gmra.mrb[136].mxu0 %vm333_vm5, %v11043_v10  ;;  %v14942_v10 = vld [vmem:[%s23601_s13 + $0x88] sm:$0xff] }
0x12d1   :  { %17527 = vmatprep.mubr.msk.f32.mxu0 %vm333_vm5, %v11470_v41  ;;  %v18245_v26 = vpack.c.bf16 %v14942_v10, %v14941_v47  ;;  %v11474_v41 = vmul.f32 %v23074_v30, %v23926_v54  ;;  %v23091_v47 = vld [vmem:[#allocation2 + $0x41] sm:$0xff] }
0x12d2   :  { %v11477_v10 = vmul.f32 %v23091_v47, %v24084_v52  ;;  %v23114_v52 = vld [vmem:[#allocation2 + $0x69] sm:$0xff] }
0x12d4   :  { %17528 = vmatmul.mubr.msk.f32.vlgmr.msra.gmra.mrb[122].mxu0 %vm333_vm5, %v11471_v42  ;;  %v11476_v42 = vmul.f32 %v23084_v21, %v24082_v16  ;;  %v23111_v16 = vld [vmem:[#allocation2 + $0x61] sm:$0xff] }
0x12d5   :  { %17530 = vmatprep.mubr.msk.f32.mxu0 %vm333_vm5, %v11472_v31  ;;  %18240 = vmatpush3.bf16.msra.mxu0 %v18237_v51  ;;  %v11475_v51 = vmul.f32 %v23081_v33, %v24080_v39  ;;  %v23094_v31 = vld [vmem:[#allocation2 + $0x49] sm:$0xff] }
0x12d6   :  { %18242 = vmatprep.subr.bf16.mxu0 %v18241_v53 }
0x12d8   :  { %17531 = vmatmul.mubr.msk.f32.gmra.mrb[124].mxu0 %vm333_vm5, %v11473_v58  ;;  %v23101_v58 = vld [vmem:[#allocation2 + $0x51] sm:$0xff] }
0x12d9   :  { %17533 = vmatprep.mubr.msk.f32.mxu0 %vm333_vm5, %v11474_v41  ;;  %18244 = vmatpush3.bf16.msra.mxu0 %v18241_v53  ;;  %v11478_v53 = vmul.f32 %v23094_v31, %v24085_v29  ;;  %v23104_v41 = vld [vmem:[#allocation2 + $0x59] sm:$0xff]  ;;  %v23121_v29 = vld [vmem:[#allocation2 + $0x71] sm:$0xff] }
0x12da   :  { %18246 = vmatprep.subr.bf16.mxu0 %v18245_v26 }
0x12dc   :  { %17534 = vmatmul.mubr.msk.f32.gmra.mrb[126].mxu0 %vm333_vm5, %v11475_v51  ;;  %v11479_v51 = vmul.f32 %v23101_v58, %v24086_v49  ;;  %v23124_v49 = vld [vmem:[#allocation2 + $0x79] sm:$0xff] }
0x12dd   :  { %17536 = vmatprep.mubr.msk.f32.mxu0 %vm333_vm5, %v11476_v42  ;;  %v11480_v42 = vmul.f32 %v23104_v41, %v24088_v40  ;;  %v23131_v40 = vld [vmem:[#allocation2 + $0x81] sm:$0xff] }
0x12e0   :  { %17537 = vmatmul.mubr.msk.f32.gmra.mrb[128].mxu0 %vm333_vm5, %v11477_v10  ;;  %v11481_v10 = vmul.f32 %v23111_v16, %v24090_v61 }
0x12e1   :  { %17539 = vmatprep.mubr.msk.f32.mxu0 %vm333_vm5, %v11478_v53  ;;  %v11482_v53 = vmul.f32 %v23114_v52, %v24091_v18  ;;  %v11485_v18 = vmul.f32 %v23131_v40, %v24094_v45  ;;  %v11717_v45 = vmul.f32 %v22987_v12, %v20710_v63 }
0x12e4   :  { %17540 = vmatmul.mubr.msk.f32.gmra.mrb[130].mxu0 %vm333_vm5, %v11479_v51  ;;  %v11483_v51 = vmul.f32 %v23121_v29, %v24092_v37 }
0x12e5   :  { %17542 = vmatprep.mubr.msk.f32.mxu0 %vm333_vm5, %v11480_v42  ;;  %v11484_v42 = vmul.f32 %v23124_v49, %v24093_v57  ;;  %v14944_v57 = vld [vmem:[%s23601_s13 + $0x98] sm:$0xff] }
0x12e8   :  { %17543 = vmatmul.mubr.msk.f32.gmra.mrb[132].mxu0 %vm333_vm5, %v11481_v10  ;;  %v11715_v10 = vmul.f32 %v22972_v27, %v24104_v20  ;;  %v14961_v27 = vld [vmem:[%s23601_s13 + $0xa0] sm:$0xff]  ;;  %v14962_v20 = vld [vmem:[%s23601_s13 + $0xa8] sm:$0xff] }
0x12e9   :  { %17545 = vmatprep.mubr.msk.f32.mxu0 %vm333_vm5, %v11482_v53  ;;  %v14943_v53 = vld [vmem:[%s23601_s13 + $0x90] sm:$0xff] }
0x12ec   :  { %17546 = vmatmul.mubr.msk.f32.gmra.mrb[134].mxu0 %vm333_vm5, %v11483_v51  ;;  %v11716_v51 = vmul.f32 %v22978_v32, %v20708_v2  ;;  %v11719_v32 = vmul.f32 %v22998_v25, %v20714_v44 }
0x12ed   :  { %17548 = vmatprep.mubr.msk.f32.mxu0 %vm333_vm5, %v11484_v42  ;;  %v18249_v42 = vpack.c.bf16 %v14944_v57, %v14943_v53  ;;  %v18253_v57 = vpack.c.bf16 %v14962_v20, %v14961_v27  ;;  %v11722_v20 = vmul.f32 %v23015_v50, %v20731_v38  ;;  %v11724_v53 = vmul.f32 %v23025_v28, %v20741_v59 }
0x12ee   :  { %v11727_v27 = vmul.f32 %v23038_v7, %v20773_v11 }
0x12f0   :  { %17549 = vmatmul.mubr.msk.f32.gmra.mrb[136].mxu0 %vm333_vm5, %v11485_v18  ;;  %v11718_v18 = vmul.f32 %v22995_v43, %v20712_v14 }
0x12f1   :  { %17559 = vmatprep.mubr.msk.f32.mxu0 %vm333_vm5, %v11715_v10  ;;  %v11720_v10 = vmul.f32 %v23005_v8, %v20716_v22 }
0x12f4   :  { %17560 = vmatmul.mubr.msk.f32.vlgmr.msra.gmra.mrb[122].mxu0 %vm333_vm5, %v11716_v51  ;;  %v11725_v51 = vmul.f32 %v23028_v35, %v20744_v19 }
0x12f5   :  { %17562 = vmatprep.mubr.msk.f32.mxu0 %vm333_vm5, %v11717_v45  ;;  %18248 = vmatpush3.bf16.msra.mxu0 %v18245_v26  ;;  %v11721_v45 = vmul.f32 %v23008_v6, %v20718_v1  ;;  %v11723_v26 = vmul.f32 %v23018_v17, %v20736_v62 }
0x12f6   :  { %18250 = vmatprep.subr.bf16.mxu0 %v18249_v42 }
0x12f8   :  { %17563 = vmatmul.mubr.msk.f32.gmra.mrb[124].mxu0 %vm333_vm5, %v11718_v18  ;;  %v23188_v18 = vld [vmem:[#allocation2 + $0x87] sm:$0xff] }
0x12f9   :  { %17565 = vmatprep.mubr.msk.f32.mxu0 %vm333_vm5, %v11719_v32  ;;  %18252 = vmatpush3.bf16.msra.mxu0 %v18249_v42  ;;  %v11726_v42 = vmul.f32 %v23035_v15, %v20767_v24  ;;  %v11728_v32 = vmul.f32 %v23045_v23, %v20791_v56 }
0x12fa   :  { %18254 = vmatprep.subr.bf16.mxu0 %v18253_v57 }
0x12fc   :  { %17566 = vmatmul.mubr.msk.f32.gmra.mrb[126].mxu0 %vm333_vm5, %v11720_v10  ;;  %v11729_v10 = vmul.f32 %v23188_v18, %v20794_v46 }
0x12fd   :  { %17568 = vmatprep.mubr.msk.f32.mxu0 %vm333_vm5, %v11721_v45  ;;  %v23195_v45 = vld [vmem:[#allocation2 + $0x8f] sm:$0xff] }
0x1300   :  { %17569 = vmatmul.mubr.msk.f32.gmra.mrb[128].mxu0 %vm333_vm5, %v11722_v20  ;;  %v11730_v20 = vmul.f32 %v23195_v45, %v20808_v55 }
0x1301   :  { %17571 = vmatprep.mubr.msk.f32.mxu0 %vm333_vm5, %v11723_v26  ;;  %v14963_v26 = vld [vmem:[%s23601_s13 + $0xb0] sm:$0xff] }
0x1304   :  { %17572 = vmatmul.mubr.msk.f32.gmra.mrb[130].mxu0 %vm333_vm5, %v11724_v53  ;;  %v14964_v53 = vld [vmem:[%s23601_s13 + $0xb8] sm:$0xff] }
0x1305   :  { %17574 = vmatprep.mubr.msk.f32.mxu0 %vm333_vm5, %v11725_v51  ;;  %v18257_v51 = vpack.c.bf16 %v14964_v53, %v14963_v26  ;;  %v24110_v26 = vld [vmem:[#allocation42_spill] sm:$0xff]  ;;  %v24111_v53 = vld [vmem:[#allocation7_spill] sm:$0xff] }
0x1308   :  { %17575 = vmatmul.mubr.msk.f32.gmra.mrb[132].mxu0 %vm333_vm5, %v11726_v42  ;;  %v14981_v42 = vld [vmem:[%s23601_s13 + $0xc0] sm:$0xff] }
0x1309   :  { %17577 = vmatprep.mubr.msk.f32.mxu0 %vm333_vm5, %v11727_v27  ;;  %v14982_v27 = vld [vmem:[%s23601_s13 + $0xc8] sm:$0xff] }
0x130c   :  { %17578 = vmatmul.mubr.msk.f32.gmra.mrb[134].mxu0 %vm333_vm5, %v11728_v32  ;;  %v18261_v32 = vpack.c.bf16 %v14982_v27, %v14981_v42  ;;  %v23242_v42 = vld [vmem:[#allocation2 + $0x88] sm:$0xff]  ;;  %v23246_v27 = vld [vmem:[#allocation2 + $0x90] sm:$0xff] }
0x130d   :  { %17580 = vmatprep.mubr.msk.f32.mxu0 %vm333_vm5, %v11729_v10  ;;  %v24108_v10 = vld [vmem:[#allocation16_spill] sm:$0xff]  ;;  %24113 = vst [vmem:[#allocation46_spill] sm:$0xff] %v23242_v42 }
0x1310   :  { %17581 = vmatmul.mubr.msk.f32.gmra.mrb[136].mxu0 %vm333_vm5, %v11730_v20  ;;  %v24109_v20 = vld [vmem:[#allocation17_spill] sm:$0xff] }
0x1311   :  { %17591 = vmatprep.mubr.msk.f32.mxu0 %vm333_vm5, %v22889_v0  ;;  %v24105_v0 = vld [vmem:[#allocation11_spill] sm:$0xff] }
0x1314   :  { %17592 = vmatmul.mubr.msk.f32.vlgmr.msra.gmra.mrb[122].mxu0 %vm333_vm5, %v22895_v3  ;;  %v24106_v3 = vld [vmem:[#allocation13_spill] sm:$0xff] }
0x1315   :  { %17594 = vmatprep.mubr.msk.f32.mxu0 %vm333_vm5, %v22901_v9  ;;  %18256 = vmatpush3.bf16.msra.mxu0 %v18253_v57  ;;  %v24107_v57 = vld [vmem:[#allocation14_spill] sm:$0xff] }
0x1316   :  { %18258 = vmatprep.subr.bf16.mxu0 %v18257_v51 }
0x1318   :  { %17595 = vmatmul.mubr.msk.f32.gmra.mrb[124].mxu0 %vm333_vm5, %v22907_v5 }
0x1319   :  { %17597 = vmatprep.mubr.msk.f32.mxu0 %vm333_vm5, %v22913_v60  ;;  %18260 = vmatpush3.bf16.msra.mxu0 %v18257_v51  ;;  %v24112_v51 = vld [vmem:[#allocation43_spill] sm:$0xff] }
0x131a   :  { %18262 = vmatprep.subr.bf16.mxu0 %v18261_v32 }
0x131c   :  { %17598 = vmatmul.mubr.msk.f32.gmra.mrb[126].mxu0 %vm333_vm5, %v22919_v34 }
0x131d   :  { %17600 = vmatprep.mubr.msk.f32.mxu0 %vm333_vm5, %v24105_v0 }
0x1320   :  { %17601 = vmatmul.mubr.msk.f32.gmra.mrb[128].mxu0 %vm333_vm5, %v24106_v3  ;;  %v15002_v3 = vld [vmem:[%s23601_s13 + $0xe8] sm:$0xff] }
0x1321   :  { %17603 = vmatprep.mubr.msk.f32.mxu0 %vm333_vm5, %v24107_v57 }
0x1324   :  { %17604 = vmatmul.mubr.msk.f32.gmra.mrb[130].mxu0 %vm333_vm5, %v24108_v10  ;;  %v24114_v10 = vld [vmem:[#allocation19_spill] sm:$0xff] }
0x1325   :  { %17606 = vmatprep.mubr.msk.f32.mxu0 %vm333_vm5, %v24109_v20  ;;  %v12189_v57 = vmul.f32 %v23059_v48, %v24114_v10  ;;  %v24115_v20 = vld [vmem:[#allocation21_spill] sm:$0xff] }
0x1326   :  { %v12191_v48 = vmul.f32 %v23074_v30, %v24115_v20  ;;  %v15001_v10 = vld [vmem:[%s23601_s13 + $0xe0] sm:$0xff] }
0x1328   :  { %17607 = vmatmul.mubr.msk.f32.gmra.mrb[132].mxu0 %vm333_vm5, %v24110_v26  ;;  %v14983_v26 = vld [vmem:[%s23601_s13 + $0xd0] sm:$0xff] }
0x1329   :  { %17609 = vmatprep.mubr.msk.f32.mxu0 %vm333_vm5, %v24111_v53  ;;  %v14984_v53 = vld [vmem:[%s23601_s13 + $0xd8] sm:$0xff] }
0x132c   :  { %17610 = vmatmul.mubr.msk.f32.gmra.mrb[134].mxu0 %vm333_vm5, %v24112_v51  ;;  %v18265_v51 = vpack.c.bf16 %v14984_v53, %v14983_v26  ;;  %v12193_v26 = vmul.f32 %v23084_v21, %v23926_v54  ;;  %v12194_v53 = vmul.f32 %v23091_v47, %v24080_v39  ;;  %v24120_v39 = vld [vmem:[#allocation32_spill] sm:$0xff] }
0x132d   :  { %17612 = vmatprep.mubr.msk.f32.mxu0 %vm333_vm5, %v23242_v42  ;;  %v12190_v42 = vmul.f32 %v23065_v4, %v23922_v36  ;;  %v12192_v4 = vmul.f32 %v23081_v33, %v23924_v13 }
0x1330   :  { %17613 = vmatmul.mubr.msk.f32.gmra.mrb[136].mxu0 %vm333_vm5, %v23246_v27 }
0x1331   :  { %17623 = vmatprep.mubr.msk.f32.mxu0 %vm333_vm5, %v12189_v57  ;;  %v18269_v57 = vpack.c.bf16 %v15002_v3, %v15001_v10  ;;  %v24117_v3 = vld [vmem:[#allocation27_spill] sm:$0xff] }
0x1332   :  { %v12196_v10 = vmul.f32 %v23101_v58, %v24117_v3 }
0x1334   :  { %17624 = vmatmul.mubr.msk.f32.vlgmr.msra.gmra.mrb[122].mxu0 %vm333_vm5, %v12190_v42  ;;  %v24116_v42 = vld [vmem:[#allocation26_spill] sm:$0xff] }
0x1335   :  { %17626 = vmatprep.mubr.msk.f32.mxu0 %vm333_vm5, %v12191_v48  ;;  %18264 = vmatpush3.bf16.msra.mxu0 %v18261_v32  ;;  %v12195_v32 = vmul.f32 %v23094_v31, %v24116_v42  ;;  %v24118_v48 = vld [vmem:[#allocation28_spill] sm:$0xff]  ;;  %v12199_v42 = vmul.f32 %v23114_v52, %v24120_v39  ;;  %v24122_v39 = vld [vmem:[#allocation41_spill] sm:$0xff] }
0x1336   :  { %18266 = vmatprep.subr.bf16.mxu0 %v18265_v51 }
0x1338   :  { %17627 = vmatmul.mubr.msk.f32.gmra.mrb[124].mxu0 %vm333_vm5, %v12192_v4  ;;  %v12197_v4 = vmul.f32 %v23104_v41, %v24118_v48 }
0x1339   :  { %17629 = vmatprep.mubr.msk.f32.mxu0 %vm333_vm5, %v12193_v26  ;;  %18268 = vmatpush3.bf16.msra.mxu0 %v18265_v51  ;;  %v24119_v51 = vld [vmem:[#allocation31_spill] sm:$0xff] }
0x133a   :  { %18270 = vmatprep.subr.bf16.mxu0 %v18269_v57  ;;  %v12198_v26 = vmul.f32 %v23111_v16, %v24119_v51  ;;  %v23307_v51 = vld [vmem:[#allocation2 + $0x91] sm:$0xff] }
0x133c   :  { %17630 = vmatmul.mubr.msk.f32.gmra.mrb[126].mxu0 %vm333_vm5, %v12194_v53  ;;  %v12200_v53 = vmul.f32 %v23121_v29, %v24090_v61 }
0x133d   :  { %17632 = vmatprep.mubr.msk.f32.mxu0 %vm333_vm5, %v12195_v32  ;;  %v24121_v32 = vld [vmem:[#allocation36_spill] sm:$0xff] }
0x133e   :  { %v12201_v48 = vmul.f32 %v23124_v49, %v24121_v32 }
0x1340   :  { %17633 = vmatmul.mubr.msk.f32.gmra.mrb[128].mxu0 %vm333_vm5, %v12196_v10  ;;  %v23300_v10 = vld [vmem:[#allocation2 + $0x89] sm:$0xff] }
0x1341   :  { %17635 = vmatprep.mubr.msk.f32.mxu0 %vm333_vm5, %v12197_v4  ;;  %v12202_v4 = vmul.f32 %v23131_v40, %v24092_v37 }
0x1344   :  { %17636 = vmatmul.mubr.msk.f32.gmra.mrb[130].mxu0 %vm333_vm5, %v12198_v26  ;;  %v12203_v26 = vmul.f32 %v23300_v10, %v24122_v39  ;;  %v15004_v39 = vld [vmem:[%s23601_s13 + $0xf8] sm:$0xff] }
0x1345   :  { %17638 = vmatprep.mubr.msk.f32.mxu0 %vm333_vm5, %v12199_v42  ;;  %v24123_v42 = vld [vmem:[#allocation44_spill] sm:$0xff] }
0x1346   :  { %v12204_v32 = vmul.f32 %v23307_v51, %v24123_v42  ;;  %v12436_v42 = vmul.f32 %v22998_v25, %v20710_v63  ;;  %v12438_v63 = vmul.f32 %v23008_v6, %v20714_v44  ;;  %v12442_v44 = vmul.f32 %v23028_v35, %v20736_v62  ;;  %v12432_v25 = vld [vmem:[#allocation2 + $0x97] sm:$0xff]  ;;  %v24132_v6 = vld [vmem:[#allocation46_spill] sm:$0xff] }
0x1347   :  { %v12446_v62 = vmul.f32 %v23188_v18, %v20773_v11  ;;  %v15023_v11 = vld [vmem:[%s23601_s13 + $0x110] sm:$0xff]  ;;  %v12910_v18 = vmul.f32 %v23084_v21, %v24115_v20  ;;  %v24138_v20 = vld [vmem:[#allocation32_spill] sm:$0xff] }
0x1348   :  { %17639 = vmatmul.mubr.msk.f32.gmra.mrb[132].mxu0 %vm333_vm5, %v12200_v53  ;;  %v24124_v53 = vld [vmem:[#allocation15_spill] sm:$0xff] }
0x1349   :  { %17641 = vmatprep.mubr.msk.f32.mxu0 %vm333_vm5, %v12201_v48  ;;  %v12434_v61 = vmul.f32 %v22987_v12, %v24124_v53  ;;  %v15003_v48 = vld [vmem:[%s23601_s13 + $0xf0] sm:$0xff]  ;;  %v15021_v12 = vld [vmem:[%s23601_s13 + $0x100] sm:$0xff]  ;;  %v15022_v53 = vld [vmem:[%s23601_s13 + $0x108] sm:$0xff] }
0x134c   :  { %17642 = vmatmul.mubr.msk.f32.gmra.mrb[134].mxu0 %vm333_vm5, %v12202_v4  ;;  %v12435_v4 = vmul.f32 %v22995_v43, %v20708_v2  ;;  %v12437_v2 = vmul.f32 %v23005_v8, %v20712_v14  ;;  %v12440_v43 = vmul.f32 %v23018_v17, %v20718_v1  ;;  %v12441_v14 = vmul.f32 %v23025_v28, %v20731_v38  ;;  %v24131_v8 = vld [vmem:[#allocation43_spill] sm:$0xff]  ;;  %v12678_v17 = vld [vmem:[#allocation2 + $0xa0] sm:$0xff] }
0x134d   :  { %17644 = vmatprep.mubr.msk.f32.mxu0 %vm333_vm5, %v12203_v26  ;;  %v18273_v26 = vpack.c.bf16 %v15004_v39, %v15003_v48  ;;  %v18277_v39 = vpack.c.bf16 %v15022_v53, %v15021_v12  ;;  %v12444_v1 = vmul.f32 %v23038_v7, %v20744_v19  ;;  %v12445_v38 = vmul.f32 %v23045_v23, %v20767_v24  ;;  %v12433_v7 = vld [vmem:[#allocation2 + $0x9f] sm:$0xff]  ;;  %v24133_v28 = vld [vmem:[#allocation19_spill] sm:$0xff] }
0x134e   :  { %v12448_v19 = vmul.f32 %v12432_v25, %v20794_v46  ;;  %v12449_v24 = vmul.f32 %v12433_v7, %v20808_v55  ;;  %v15024_v23 = vld [vmem:[%s23601_s13 + $0x118] sm:$0xff]  ;;  %v24125_v46 = vld [vmem:[#allocation13_spill] sm:$0xff]  ;;  %v24126_v55 = vld [vmem:[#allocation14_spill] sm:$0xff]  ;;  %v12908_v35 = vmul.f32 %v23074_v30, %v24133_v28  ;;  %v12912_v30 = vmul.f32 %v23094_v31, %v23926_v54 }
0x134f   :  { %v24137_v31 = vld [vmem:[#allocation31_spill] sm:$0xff]  ;;  %v24142_v48 = vld [vmem:[#allocation44_spill] sm:$0xff]  ;;  %v24148_v25 = vld [vmem:[#allocation34_spill] sm:$0xff] }
0x1350   :  { %17645 = vmatmul.mubr.msk.f32.gmra.mrb[136].mxu0 %vm333_vm5, %v12204_v32  ;;  %v24141_v32 = vld [vmem:[#allocation41_spill] sm:$0xff]  ;;  %v24144_v53 = vld [vmem:[#allocation24_spill] sm:$0xff]  ;;  %v24150_v7 = vld [vmem:[#allocation38_spill] sm:$0xff] }
0x1351   :  { %17655 = vmatprep.mubr.msk.f32.mxu0 %vm333_vm5, %v12434_v61  ;;  %v12439_v61 = vmul.f32 %v23015_v50, %v20716_v22  ;;  %v12443_v22 = vmul.f32 %v23035_v15, %v20741_v59  ;;  %v12447_v59 = vmul.f32 %v23195_v45, %v20791_v56  ;;  %v18281_v56 = vpack.c.bf16 %v15024_v23, %v15023_v11  ;;  %v12677_v50 = vld [vmem:[#allocation2 + $0x98] sm:$0xff] }
0x1352   :  { %v12909_v15 = vmul.f32 %v23081_v33, %v23922_v36  ;;  %v12911_v45 = vmul.f32 %v23091_v47, %v23924_v13  ;;  %v24135_v33 = vld [vmem:[#allocation26_spill] sm:$0xff]  ;;  %v12915_v13 = vmul.f32 %v23111_v16, %v24117_v3  ;;  %v24136_v47 = vld [vmem:[#allocation28_spill] sm:$0xff] }
0x1353   :  { %v12914_v21 = vmul.f32 %v23104_v41, %v24135_v33  ;;  %v12916_v54 = vmul.f32 %v23114_v52, %v24136_v47  ;;  %v12918_v41 = vmul.f32 %v23124_v49, %v24138_v20  ;;  %v12906_v3 = vld [vmem:[#allocation2 + $0x99] sm:$0xff]  ;;  %v23484_v33 = vld [vmem:[%s23603_s15 + $0x8] sm:$0xff] }
0x1354   :  { %17656 = vmatmul.mubr.msk.f32.vlgmr.msra.gmra.mrb[122].mxu0 %vm333_vm5, %v12435_v4  ;;  %v12922_v49 = vmul.f32 %v12906_v3, %v24141_v32  ;;  %v23459_v4 = vld [vmem:[%s23605_s14] ss:$0 sm:$0xff] }
0x1355   :  { %17658 = vmatprep.mubr.msk.f32.mxu0 %vm333_vm5, %v12436_v42  ;;  %18272 = vmatpush3.bf16.msra.mxu0 %v18269_v57  ;;  %v24140_v57 = vld [vmem:[#allocation36_spill] sm:$0xff]  ;;  %v12907_v42 = vld [vmem:[#allocation2 + $0xa1] sm:$0xff] }
0x1356   :  { %18274 = vmatprep.subr.bf16.mxu0 %v18273_v26  ;;  %v12920_v52 = vmul.f32 %v23300_v10, %v24140_v57  ;;  %v24143_v10 = vld [vmem:[#allocation9_spill] sm:$0xff] }
0x1358   :  { %17659 = vmatmul.mubr.msk.f32.gmra.mrb[124].mxu0 %vm333_vm5, %v12437_v2  ;;  %v24145_v2 = vmax.f32 %v24144_v53, 0.0 }
0x1359   :  { %17661 = vmatprep.mubr.msk.f32.mxu0 %vm333_vm5, %v12438_v63  ;;  %18276 = vmatpush3.bf16.msra.mxu0 %v18273_v26  ;;  %v24146_v63 = vld [vmem:[#allocation29_spill] sm:$0xff] }
0x135a   :  { %18278 = vmatprep.subr.bf16.mxu0 %v18277_v39 }
0x135c   :  { %17662 = vmatmul.mubr.msk.f32.gmra.mrb[126].mxu0 %vm333_vm5, %v12439_v61  ;;  %v24147_v61 = vmax.f32 %v24146_v63, 0.0  ;;  %v24164_v63 = vld [vmem:[#allocation3_spill] sm:$0xff] }
0x135d   :  { %17664 = vmatprep.mubr.msk.f32.mxu0 %vm333_vm5, %v12440_v43 }
0x1360   :  { %17665 = vmatmul.mubr.msk.f32.gmra.mrb[128].mxu0 %vm333_vm5, %v12441_v14 }
0x1361   :  { %17667 = vmatprep.mubr.msk.f32.mxu0 %vm333_vm5, %v12442_v44 }
0x1364   :  { %17668 = vmatmul.mubr.msk.f32.gmra.mrb[130].mxu0 %vm333_vm5, %v12443_v22 }
0x1365   :  { %17670 = vmatprep.mubr.msk.f32.mxu0 %vm333_vm5, %v12444_v1 }
0x1368   :  { %17671 = vmatmul.mubr.msk.f32.gmra.mrb[132].mxu0 %vm333_vm5, %v12445_v38 }
0x1369   :  { %17673 = vmatprep.mubr.msk.f32.mxu0 %vm333_vm5, %v12446_v62 }
0x136c   :  { %17674 = vmatmul.mubr.msk.f32.gmra.mrb[134].mxu0 %vm333_vm5, %v12447_v59  ;;  %v24149_v59 = vmax.f32 %v24148_v25, 0.0 }
0x136d   :  { %17676 = vmatprep.mubr.msk.f32.mxu0 %vm333_vm5, %v12448_v19 }
0x1370   :  { %17677 = vmatmul.mubr.msk.f32.gmra.mrb[136].mxu0 %vm333_vm5, %v12449_v24  ;;  %v24151_v24 = vmax.f32 %v24150_v7, 0.0 }
0x1371   :  { %17687 = vmatprep.mubr.msk.f32.mxu0 %vm333_vm5, %v22901_v9  ;;  %v24127_v9 = vld [vmem:[#allocation16_spill] sm:$0xff] }
0x1374   :  { %17688 = vmatmul.mubr.msk.f32.vlgmr.msra.gmra.mrb[122].mxu0 %vm333_vm5, %v22907_v5  ;;  %v24128_v5 = vld [vmem:[#allocation17_spill] sm:$0xff] }
0x1375   :  { %17690 = vmatprep.mubr.msk.f32.mxu0 %vm333_vm5, %v22913_v60  ;;  %18280 = vmatpush3.bf16.msra.mxu0 %v18277_v39  ;;  %v24129_v60 = vld [vmem:[#allocation42_spill] sm:$0xff] }
0x1376   :  { %18282 = vmatprep.subr.bf16.mxu0 %v18281_v56 }
0x1378   :  { %17691 = vmatmul.mubr.msk.f32.gmra.mrb[124].mxu0 %vm333_vm5, %v22919_v34  ;;  %v24130_v34 = vld [vmem:[#allocation7_spill] sm:$0xff] }
0x1379   :  { %17693 = vmatprep.mubr.msk.f32.mxu0 %vm333_vm5, %v24105_v0  ;;  %18284 = vmatpush3.bf16.msra.mxu0 %v18281_v56  ;;  %v24134_v0 = vld [vmem:[#allocation25_spill] sm:$0xff] }
0x137a   :  { %v12913_v36 = vmul.f32 %v23101_v58, %v24134_v0  ;;  %v12917_v58 = vmul.f32 %v23121_v29, %v24137_v31  ;;  %v12921_v29 = vmul.f32 %v23307_v51, %v24092_v37 }
0x137c   :  { %17694 = vmatmul.mubr.msk.f32.gmra.mrb[126].mxu0 %vm333_vm5, %v24125_v46 }
0x137d   :  { %17696 = vmatprep.mubr.msk.f32.mxu0 %vm333_vm5, %v24126_v55 }
0x1380   :  { %17697 = vmatmul.mubr.msk.f32.gmra.mrb[128].mxu0 %vm333_vm5, %v24127_v9 }
0x1381   :  { %17699 = vmatprep.mubr.msk.f32.mxu0 %vm333_vm5, %v24128_v5 }
0x1384   :  { %17700 = vmatmul.mubr.msk.f32.gmra.mrb[130].mxu0 %vm333_vm5, %v24129_v60 }
0x1385   :  { %17702 = vmatprep.mubr.msk.f32.mxu0 %vm333_vm5, %v24130_v34  ;;  %v24152_v34 = vld [vmem:[#allocation39_spill] sm:$0xff] }
0x1388   :  { %17703 = vmatmul.mubr.msk.f32.gmra.mrb[132].mxu0 %vm333_vm5, %v24131_v8  ;;  %v24153_v8 = vmax.f32 %v24152_v34, 0.0 }
0x1389   :  { %17705 = vmatprep.mubr.msk.f32.mxu0 %vm333_vm5, %v24132_v6 }
0x138c   :  { %17706 = vmatmul.mubr.msk.f32.gmra.mrb[134].mxu0 %vm333_vm5, %v23246_v27  ;;  %v24139_v27 = vld [vmem:[#allocation35_spill] sm:$0xff] }
0x138d   :  { %17708 = vmatprep.mubr.msk.f32.mxu0 %vm333_vm5, %v12677_v50  ;;  %v12919_v16 = vmul.f32 %v23131_v40, %v24139_v27  ;;  %v12923_v40 = vmul.f32 %v12907_v42, %v24142_v48  ;;  %v24154_v50 = vld [vmem:[#allocation18_spill] sm:$0xff]  ;;  %v24162_v42 = vld [vmem:[#allocation4_spill] sm:$0xff] }
0x138e   :  { %v24163_v48 = vmax.f32 %v24162_v42, 0.0 }
0x1390   :  { %17709 = vmatmul.mubr.msk.f32.gmra.mrb[136].mxu0 %vm333_vm5, %v12678_v17  ;;  %v24155_v17 = vmax.f32 %v24154_v50, 0.0 }
0x1391   :  { %17719 = vmatprep.mubr.msk.f32.mxu0 %vm333_vm5, %v12908_v35 }
0x1394   :  { %17720 = vmatmul.mubr.msk.f32.vlgmr.msra.gmra.mrb[122].mxu0 %vm333_vm5, %v12909_v15 }
0x1395   :  { %17722 = vmatprep.mubr.msk.f32.mxu0 %vm333_vm5, %v12910_v18 }
0x1398   :  { %17723 = vmatmul.mubr.msk.f32.gmra.mrb[124].mxu0 %vm333_vm5, %v12911_v45 }
0x1399   :  { %17725 = vmatprep.mubr.msk.f32.mxu0 %vm333_vm5, %v12912_v30 }
0x139c   :  { %17726 = vmatmul.mubr.msk.f32.gmra.mrb[126].mxu0 %vm333_vm5, %v12913_v36 }
0x139d   :  { %17728 = vmatprep.mubr.msk.f32.mxu0 %vm333_vm5, %v12914_v21  ;;  %v24156_v21 = vld [vmem:[#allocation45_spill] sm:$0xff] }
0x13a0   :  { %17729 = vmatmul.mubr.msk.f32.gmra.mrb[128].mxu0 %vm333_vm5, %v12915_v13  ;;  %v24157_v13 = vmax.f32 %v24156_v21, 0.0  ;;  %v24176_v21 = vld [vmem:[#allocation30_spill] sm:$0xff] }
0x13a1   :  { %17731 = vmatprep.mubr.msk.f32.mxu0 %vm333_vm5, %v12916_v54  ;;  %v24158_v54 = vld [vmem:[#allocation20_spill] sm:$0xff] }
0x13a2   :  { %v24159_v31 = vmax.f32 %v24158_v54, 0.0 }
0x13a4   :  { %17732 = vmatmul.mubr.msk.f32.gmra.mrb[130].mxu0 %vm333_vm5, %v12917_v58 }
0x13a5   :  { %17734 = vmatprep.mubr.msk.f32.mxu0 %vm333_vm5, %v12918_v41 }
0x13a8   :  { %17735 = vmatmul.mubr.msk.f32.gmra.mrb[132].mxu0 %vm333_vm5, %v12919_v16 }
0x13a9   :  { %17737 = vmatprep.mubr.msk.f32.mxu0 %vm333_vm5, %v12920_v52 }
0x13ac   :  { %17738 = vmatmul.mubr.msk.f32.gmra.mrb[134].mxu0 %vm333_vm5, %v12921_v29  ;;  %v24160_v29 = vld [vmem:[#allocation22_spill] sm:$0xff] }
0x13ad   :  { %17740 = vmatprep.mubr.msk.f32.mxu0 %vm333_vm5, %v12922_v49  ;;  %v24161_v32 = vmax.f32 %v24160_v29, 0.0 }
0x13b0   :  { %17741 = vmatmul.mubr.msk.f32.gmra.mrb[136].mxu0 %vm333_vm5, %v12923_v40 }
0x13b1   :  { %17754 = vmatprep.mubr.msk.f32.mxu0 %vm7752_vm9, %v24143_v10 }
0x1467   :  { %v17721_v37 = vpop.f32.mrb[122].mxu0 }
0x1468   :  { %v13145_v51 = vadd.f32 %v17721_v37, %v23459_v4  ;;  %v13042_v26 = vpop.f32.mrb[123].mxu0 }
0x1469   :  { %v13144_v12 = vadd.f32 %v23459_v4, %v13042_v26 }
0x146a   :  { %v13161_v39 = vadd.f32 %v13145_v51, %v24145_v2 }
0x146b   :  { %v13160_v43 = vadd.f32 %v13144_v12, %v24147_v61  ;;  %v17724_v14 = vpop.f32.mrb[124].mxu0  ;;  %v24165_v61 = vmax.f32 %v24164_v63, 0.0 }
0x146c   :  { %v13177_v44 = vmax.f32 %v13161_v39, 0.0  ;;  %v13147_v22 = vadd.f32 %v17724_v14, %v23459_v4  ;;  %v13052_v1 = vpop.f32.mrb[125].mxu0  ;;  %v24166_v14 = vld [vmem:[#allocation6_spill] sm:$0xff] }
0x146d   :  { %v13176_v38 = vmax.f32 %v13160_v43, 0.0  ;;  %v13146_v62 = vadd.f32 %v23459_v4, %v13052_v1 }
0x146e   :  { %v13163_v19 = vadd.f32 %v13147_v22, %v24149_v59 }
0x146f   :  { %v13162_v11 = vadd.f32 %v13146_v62, %v24151_v24  ;;  %v17727_v23 = vpop.f32.mrb[126].mxu0  ;;  %v18285_v56 = vpack.c.bf16 %v13177_v44, %v13176_v38  ;;  %v24167_v44 = vmax.f32 %v24166_v14, 0.0  ;;  %v24168_v24 = vld [vmem:[#allocation5_spill] sm:$0xff] }
0x1470   :  { %v13179_v46 = vmax.f32 %v13163_v19, 0.0  ;;  %v13149_v55 = vadd.f32 %v17727_v23, %v23459_v4  ;;  %v13062_v9 = vpop.f32.mrb[127].mxu0 }
0x1471   :  { %v13178_v5 = vmax.f32 %v13162_v11, 0.0  ;;  %v13148_v60 = vadd.f32 %v23459_v4, %v13062_v9  ;;  %18286 = vmatprep.subr.bf16.mxu1 %v18285_v56  ;;  %v24169_v11 = vmax.f32 %v24168_v24, 0.0 }
0x1472   :  { %v13165_v6 = vadd.f32 %v13149_v55, %v24153_v8  ;;  %18288 = vmatpush3.bf16.msra.mxu1 %v18285_v56  ;;  %v24170_v56 = vld [vmem:[#allocation8_spill] sm:$0xff] }
0x1473   :  { %v13164_v28 = vadd.f32 %v13148_v60, %v24155_v17  ;;  %v17730_v35 = vpop.f32.mrb[128].mxu0  ;;  %v18289_v15 = vpack.c.bf16 %v13179_v46, %v13178_v5  ;;  %v24171_v46 = vmax.f32 %v24170_v56, 0.0  ;;  %v24172_v17 = vld [vmem:[#allocation10_spill] sm:$0xff] }
0x1474   :  { %v13181_v18 = vmax.f32 %v13165_v6, 0.0  ;;  %v13151_v45 = vadd.f32 %v17730_v35, %v23459_v4  ;;  %v13072_v30 = vpop.f32.mrb[129].mxu0 }
0x1475   :  { %v13180_v0 = vmax.f32 %v13164_v28, 0.0  ;;  %v13150_v36 = vadd.f32 %v23459_v4, %v13072_v30  ;;  %17748 = vmatmul.mubr.msk.f32.vlgmr.msra.gmra.mrb[122].mxu1 %vm7752_vm9, %v23484_v33  ;;  %18290 = vmatprep.subr.bf16.mxu0 %v18289_v15  ;;  %v24173_v28 = vmax.f32 %v24172_v17, 0.0 }
0x1476   :  { %v13167_v47 = vadd.f32 %v13151_v45, %v24157_v13  ;;  %18292 = vmatpush3.bf16.msra.mxu0 %v18289_v15  ;;  %17761 = vmatprep.mubr.msk.f32.mxu1 %vm7752_vm9, %v24143_v10  ;;  %v24174_v15 = vld [vmem:[#allocation12_spill] sm:$0xff]  ;;  %v24177_v13 = vld [vmem:[#allocation23_spill] sm:$0xff] }
0x1477   :  { %v13166_v58 = vadd.f32 %v13150_v36, %v24159_v31  ;;  %v17733_v20 = vpop.f32.mrb[130].mxu0  ;;  %v18293_v41 = vpack.c.bf16 %v13181_v18, %v13180_v0  ;;  %v24175_v18 = vmax.f32 %v24174_v15, 0.0  ;;  %v24178_v31 = vld [vmem:[#allocation33_spill] sm:$0xff] }
0x1478   :  { %v13183_v27 = vmax.f32 %v13167_v47, 0.0  ;;  %v13153_v16 = vadd.f32 %v17733_v20, %v23459_v4  ;;  %v13082_v57 = vpop.f32.mrb[131].mxu0  ;;  %v24179_v20 = vld [vmem:[#allocation37_spill] sm:$0xff] }
0x1479   :  { %v13182_v52 = vmax.f32 %v13166_v58, 0.0  ;;  %v13152_v3 = vadd.f32 %v23459_v4, %v13082_v57  ;;  %17755 = vmatmul.mubr.msk.f32.vlgmr.msra.gmra.mrb[138].mxu0 %vm7752_vm9, %v23484_v33  ;;  %18294 = vmatprep.subr.bf16.mxu1 %v18293_v41 }
0x147a   :  { %v13169_v49 = vadd.f32 %v13153_v16, %v24161_v32  ;;  %18296 = vmatpush3.bf16.msra.mxu1 %v18293_v41  ;;  %17768 = vmatprep.mubr.msk.f32.mxu0 %vm7752_vm9, %v24143_v10  ;;  %v19382_v10 = vld [vmem:[%s23603_s15] sm:$0xff] }
0x147b   :  { %v13168_v40 = vadd.f32 %v13152_v3, %v24163_v48  ;;  %v17736_v37 = vpop.f32.mrb[132].mxu0  ;;  %v18297_v51 = vpack.c.bf16 %v13183_v27, %v13182_v52 }
0x147c   :  { %v13185_v26 = vmax.f32 %v13169_v49, 0.0  ;;  %v13155_v12 = vadd.f32 %v17736_v37, %v23459_v4  ;;  %v13092_v53 = vpop.f32.mrb[133].mxu0 }
0x147d   :  { %v13184_v2 = vmax.f32 %v13168_v40, 0.0  ;;  %v13154_v39 = vadd.f32 %v23459_v4, %v13092_v53  ;;  %17762 = vmatmul.mubr.msk.f32.vlgmr.msra.gmra.mrb[124].mxu1 %vm7752_vm9, %v23484_v33  ;;  %18298 = vmatprep.subr.bf16.mxu0 %v18297_v51 }
0x147e   :  { %v13171_v43 = vadd.f32 %v13155_v12, %v24165_v61  ;;  %18300 = vmatpush3.bf16.msra.mxu0 %v18297_v51  ;;  %17775 = vmatprep.mubr.msk.f32.mxu1 %vm7752_vm9, %v19382_v10 }
0x147f   :  { %v13170_v22 = vadd.f32 %v13154_v39, %v24167_v44  ;;  %v17739_v1 = vpop.f32.mrb[134].mxu0  ;;  %v18301_v38 = vpack.c.bf16 %v13185_v26, %v13184_v2 }
0x1480   :  { %v13187_v62 = vmax.f32 %v13171_v43, 0.0  ;;  %v13157_v25 = vadd.f32 %v17739_v1, %v23459_v4  ;;  %v13102_v59 = vpop.f32.mrb[135].mxu0 }
0x1481   :  { %v13186_v19 = vmax.f32 %v13170_v22, 0.0  ;;  %v13156_v7 = vadd.f32 %v23459_v4, %v13102_v59  ;;  %17769 = vmatmul.mubr.msk.f32.vlgmr.msra.gmra.mrb[140].mxu0 %vm7752_vm9, %v23484_v33  ;;  %18302 = vmatprep.subr.bf16.mxu1 %v18301_v38  ;;  %v19383_v59 = vld [vmem:[%s23606_s18] ss:$0 sm:$0xff] }
0x1482   :  { %v13173_v23 = vadd.f32 %v13157_v25, %v24169_v11  ;;  %18304 = vmatpush3.bf16.msra.mxu1 %v18301_v38  ;;  %17782 = vmatprep.mubr.msk.f32.mxu0 %vm7752_vm9, %v19382_v10  ;;  %v8574_v11 = vpop.trf.xlu0 }
0x1483   :  { %v13172_v55 = vadd.f32 %v13156_v7, %v24171_v46  ;;  %v17742_v9 = vpop.f32.mrb[136].mxu0  ;;  %v18305_v5 = vpack.c.bf16 %v13187_v62, %v13186_v19  ;;  %8590 = vst [vmem:[%s23607_s21] sm:$0x3] %v8574_v11 }
0x1484   :  { %v13189_v60 = vmax.f32 %v13173_v23, 0.0  ;;  %v13159_v34 = vadd.f32 %v17742_v9, %v23459_v4  ;;  %v13112_v8 = vpop.f32.mrb[137].mxu0 }
0x1485   :  { %v13188_v6 = vmax.f32 %v13172_v55, 0.0  ;;  %v13158_v50 = vadd.f32 %v23459_v4, %v13112_v8  ;;  %17776 = vmatmul.mubr.msk.f32.vlgmr.msra.gmra.mrb[126].mxu1 %vm7752_vm9, %v23484_v33  ;;  %18306 = vmatprep.subr.bf16.mxu0 %v18305_v5 }
0x1486   :  { %v13175_v35 = vadd.f32 %v13159_v34, %v24173_v28  ;;  %18308 = vmatpush3.bf16.msra.mxu0 %v18305_v5  ;;  %17789 = vmatprep.mubr.msk.f32.mxu1 %vm7752_vm9, %v19382_v10 }
0x1487   :  { %v13174_v45 = vadd.f32 %v13158_v50, %v24175_v18  ;;  %v18309_v30 = vpack.c.bf16 %v13189_v60, %v13188_v6 }
0x1488   :  { %v13191_v0 = vmax.f32 %v13175_v35, 0.0 }
0x1489   :  { %v13190_v36 = vmax.f32 %v13174_v45, 0.0  ;;  %17783 = vmatmul.mubr.msk.f32.vlgmr.msra.gmra.mrb[142].mxu0 %vm7752_vm9, %v23484_v33  ;;  %18310 = vmatprep.subr.bf16.mxu1 %v18309_v30 }
0x148a   :  { %18312 = vmatpush3.bf16.msra.mxu1 %v18309_v30  ;;  %17796 = vmatprep.mubr.msk.f32.mxu0 %vm7752_vm9, %v19382_v10 }
0x148b   :  { %v18313_v4 = vpack.c.bf16 %v13191_v0, %v13190_v36  ;;  %18318 = vmatprep.subr.bf16.mxu1 %v24176_v21 }
0x148d   :  { %17790 = vmatmul.mubr.msk.f32.vlgmr.msra.gmra.mrb[128].mxu1 %vm7752_vm9, %v23484_v33  ;;  %18314 = vmatprep.subr.bf16.mxu0 %v18313_v4 }
0x148e   :  { %18316 = vmatpush3.bf16.msra.mxu0 %v18313_v4  ;;  %18320 = vmatpush3.bf16.msra.mxu1 %v24176_v21 }
0x148f   :  { %18322 = vmatprep.subr.bf16.mxu1 %v24177_v13 }
0x1491   :  { %17797 = vmatmul.mubr.msk.f32.vlgmr.msra.gmra.mrb[144].mxu0 %vm7752_vm9, %v23484_v33 }
0x1492   :  { %18324 = vmatpush3.bf16.msra.mxu1 %v24177_v13 }
0x1548   :  { %v17749_v47 = vpop.f32.mrb[122].mxu1 }
0x1549   :  { %v13258_v54 = vpop.f32.mrb[123].mxu1  ;;  %v13264_v41 = vadd.f32 %v17749_v47, %v24179_v20 }
0x154a   :  { %v13259_v58 = vadd.f32 %v13258_v54, %v24178_v31 }
0x154c   :  { %v17756_v27 = vpop.f32.mrb[138].mxu0  ;;  %17807 = vmatprep.mubr.msk.f32.mxu1 %vm333_vm5, %v13259_v58 }
0x154d   :  { %v13333_v16 = vpop.f32.mrb[139].mxu0  ;;  %17808 = vmatmul.mubr.msk.f32.vlgmr.msra.gmra.mrb[130].mxu1 %vm333_vm5, %v13264_v41  ;;  %v13339_v52 = vadd.f32 %v17756_v27, %v24179_v20 }
0x154e   :  { %v13334_v57 = vadd.f32 %v13333_v16, %v24178_v31 }
0x1550   :  { %v17763_v3 = vpop.f32.mrb[124].mxu1  ;;  %17810 = vmatprep.mubr.msk.f32.mxu1 %vm333_vm5, %v13334_v57 }
0x1551   :  { %v13408_v33 = vpop.f32.mrb[125].mxu1  ;;  %17811 = vmatmul.mubr.msk.f32.gmra.mrb[132].mxu1 %vm333_vm5, %v13339_v52  ;;  %v13414_v32 = vadd.f32 %v17763_v3, %v24179_v20 }
0x1552   :  { %v13409_v29 = vadd.f32 %v13408_v33, %v24178_v31 }
0x1554   :  { %v17770_v49 = vpop.f32.mrb[140].mxu0  ;;  %17813 = vmatprep.mubr.msk.f32.mxu1 %vm333_vm5, %v13409_v29 }
0x1555   :  { %v13483_v42 = vpop.f32.mrb[141].mxu0  ;;  %17814 = vmatmul.mubr.msk.f32.gmra.mrb[134].mxu1 %vm333_vm5, %v13414_v32  ;;  %v13489_v40 = vadd.f32 %v17770_v49, %v24179_v20 }
0x1556   :  { %v13484_v48 = vadd.f32 %v13483_v42, %v24178_v31 }
0x1558   :  { %v17777_v37 = vpop.f32.mrb[126].mxu1  ;;  %17816 = vmatprep.mubr.msk.f32.mxu1 %vm333_vm5, %v13484_v48 }
0x1559   :  { %v13558_v51 = vpop.f32.mrb[127].mxu1  ;;  %17817 = vmatmul.mubr.msk.f32.gmra.mrb[136].mxu1 %vm333_vm5, %v13489_v40  ;;  %v13564_v12 = vadd.f32 %v17777_v37, %v24179_v20 }
0x155a   :  { %v13559_v26 = vadd.f32 %v13558_v51, %v24178_v31 }
0x155c   :  { %v17784_v53 = vpop.f32.mrb[142].mxu0  ;;  %17819 = vmatprep.mubr.msk.f32.mxu1 %vm333_vm5, %v13559_v26 }
0x155d   :  { %v13633_v2 = vpop.f32.mrb[143].mxu0  ;;  %17820 = vmatmul.mubr.msk.f32.gmra.mrb[138].mxu1 %vm333_vm5, %v13564_v12  ;;  %v13639_v63 = vadd.f32 %v17784_v53, %v24179_v20 }
0x155e   :  { %v13634_v39 = vadd.f32 %v13633_v2, %v24178_v31 }
0x1560   :  { %v17791_v61 = vpop.f32.mrb[128].mxu1  ;;  %17822 = vmatprep.mubr.msk.f32.mxu1 %vm333_vm5, %v13634_v39 }
0x1561   :  { %v13708_v43 = vpop.f32.mrb[129].mxu1  ;;  %17823 = vmatmul.mubr.msk.f32.gmra.mrb[140].mxu1 %vm333_vm5, %v13639_v63  ;;  %v13714_v14 = vadd.f32 %v17791_v61, %v24179_v20 }
0x1562   :  { %v13709_v10 = vadd.f32 %v13708_v43, %v24178_v31 }
0x1564   :  { %v17798_v44 = vpop.f32.mrb[144].mxu0  ;;  %17825 = vmatprep.mubr.msk.f32.mxu1 %vm333_vm5, %v13709_v10 }
0x1565   :  { %v13783_v22 = vpop.f32.mrb[145].mxu0  ;;  %17826 = vmatmul.mubr.msk.f32.gmra.mrb[142].mxu1 %vm333_vm5, %v13714_v14  ;;  %v13789_v38 = vadd.f32 %v17798_v44, %v24179_v20 }
0x1566   :  { %v13784_v1 = vadd.f32 %v13783_v22, %v24178_v31 }
0x1568   :  { %17828 = vmatprep.mubr.msk.f32.mxu1 %vm333_vm5, %v13784_v1 }
0x1569   :  { %17829 = vmatmul.mubr.msk.f32.gmra.mrb[144].mxu1 %vm333_vm5, %v13789_v38 }
0x1620   :  { %v17809_v62 = vpop.f32.mrb[130].mxu1 }
0x1621   :  { %v13906_v25 = vpop.f32.mrb[131].mxu1  ;;  %v13912_v23 = vadd.f32 %v19383_v59, %v17809_v62 }
0x1622   :  { %v13907_v19 = vadd.f32 %v19383_v59, %v13906_v25 }
0x1624   :  { %13985 = vxpose.xlu1.b32.start [1/16] (narrow) %v13907_v19, 8  ;;  %v17812_v7 = vpop.f32.mrb[132].mxu1 }
0x1625   :  { %v13916_v24 = vpop.f32.mrb[133].mxu1  ;;  %v13922_v60 = vadd.f32 %v19383_v59, %v17812_v7 }
0x1626   :  { %v13917_v55 = vadd.f32 %v19383_v59, %v13916_v24 }
0x1628   :  { %13986 = vxpose.xlu1.b32.cont [2/16] (narrow) %v13912_v23, 8  ;;  %v17815_v56 = vpop.f32.mrb[134].mxu1 }
0x1629   :  { %v13926_v46 = vpop.f32.mrb[135].mxu1  ;;  %v13932_v28 = vadd.f32 %v19383_v59, %v17815_v56 }
0x162a   :  { %v13927_v6 = vadd.f32 %v19383_v59, %v13926_v46 }
0x162c   :  { %v17818_v9 = vpop.f32.mrb[136].mxu1  ;;  %13987 = vxpose.xlu1.b32.cont [3/16] (narrow) %v13917_v55, 8 }
0x162d   :  { %v13936_v5 = vpop.f32.mrb[137].mxu1  ;;  %v13942_v0 = vadd.f32 %v19383_v59, %v17818_v9 }
0x162e   :  { %v13937_v18 = vadd.f32 %v19383_v59, %v13936_v5 }
0x1630   :  { %v17821_v34 = vpop.f32.mrb[138].mxu1  ;;  %13988 = vxpose.xlu1.b32.cont [4/16] (narrow) %v13922_v60, 8 }
0x1631   :  { %v13946_v8 = vpop.f32.mrb[139].mxu1  ;;  %v13952_v4 = vadd.f32 %v19383_v59, %v17821_v34 }
0x1632   :  { %v13947_v36 = vadd.f32 %v19383_v59, %v13946_v8 }
0x1634   :  { %v17824_v50 = vpop.f32.mrb[140].mxu1  ;;  %13989 = vxpose.xlu1.b32.cont [5/16] (narrow) %v13927_v6, 8 }
0x1635   :  { %v13956_v17 = vpop.f32.mrb[141].mxu1  ;;  %v13962_v13 = vadd.f32 %v19383_v59, %v17824_v50 }
0x1636   :  { %v13957_v21 = vadd.f32 %v19383_v59, %v13956_v17 }
0x1638   :  { %v17827_v35 = vpop.f32.mrb[142].mxu1  ;;  %13990 = vxpose.xlu1.b32.cont [6/16] (narrow) %v13932_v28, 8 }
0x1639   :  { %v13966_v15 = vpop.f32.mrb[143].mxu1  ;;  %v13972_v54 = vadd.f32 %v19383_v59, %v17827_v35 }
0x163a   :  { %v13967_v47 = vadd.f32 %v19383_v59, %v13966_v15 }
0x163c   :  { %13991 = vxpose.xlu1.b32.cont [7/16] (narrow) %v13937_v18, 8  ;;  %v17830_v45 = vpop.f32.mrb[144].mxu1 }
0x163d   :  { %v13976_v30 = vpop.f32.mrb[145].mxu1  ;;  %v13982_v58 = vadd.f32 %v19383_v59, %v17830_v45 }
0x163e   :  { %v13977_v31 = vadd.f32 %v19383_v59, %v13976_v30 }
0x1640   :  { %13992 = vxpose.xlu1.b32.cont [8/16] (narrow) %v13942_v0, 8 }
0x1644   :  { %13993 = vxpose.xlu1.b32.cont [9/16] (narrow) %v13947_v36, 8 }
0x1648   :  { %13994 = vxpose.xlu1.b32.cont [10/16] (narrow) %v13952_v4, 8 }
0x164c   :  { %13995 = vxpose.xlu1.b32.cont [11/16] (narrow) %v13957_v21, 8 }
0x1650   :  { %13996 = vxpose.xlu1.b32.cont [12/16] (narrow) %v13962_v13, 8 }
0x1654   :  { %13997 = vxpose.xlu1.b32.cont [13/16] (narrow) %v13967_v47, 8 }
0x1658   :  { %13998 = vxpose.xlu1.b32.cont [14/16] (narrow) %v13972_v54, 8 }
0x165c   :  { %13999 = vxpose.xlu1.b32.cont [15/16] (narrow) %v13977_v31, 8 }
0x1660   :  { %14000 = vxpose.xlu1.b32.end [16/16] (narrow) %v13982_v58, 8 }
0x16a4   :  { %v14001_v20 = vpop.trf.xlu1 }
0x16a5   :  { %14017 = vst [vmem:[%s23607_s21 + $0x2] sm:$0x3] %v14001_v20 }

</bundles_post_ra>
